<compile_context>
chip_gen: v5e
topology: v5e:2x2
jax: 0.10.0
libtpu: 0.0.40
codegen_flags: <defaults>
</compile_context>

<pallas_src>
import math
import functools

import jax
import jax.numpy as jnp
from jax import lax
from jax.experimental import pallas as pl
from jax.experimental.pallas import tpu as pltpu


# ------------------------------ tiling helper ------------------------------

def _pick_tile_m(M, target=256):
    """Pick an M tile: <= target, divides M, and (when possible) gives >= 2
    grid steps so both v7x TensorCores get work."""
    assert M % 8 == 0, "rows (B*S) must be a multiple of 8"
    tm = min(target, M)
    while M % tm != 0:
        tm -= 8
    if M // tm < 2 and tm >= 16 and tm % 16 == 0:
        tm //= 2
    return tm


# ------------- fused attention block: QKV -> MHA -> out-proj -> +res -> LN1 -------------

def _attn_block_kernel(x_ref, m_ref, w_in_ref, b_in_ref, w_out_ref, b_out_ref,
                       g_ref, bt_ref, o_ref, *, H, scale, eps):
    S, D = x_ref.shape
    Dh = D // H

    x = x_ref[...]                                        # (S, D) bf16

    # --- QKV in-projection (one full-width MXU matmul, f32 accumulate) ---
    qkv = (jnp.dot(x, w_in_ref[...], preferred_element_type=jnp.float32)
           + b_in_ref[...]).astype(jnp.bfloat16)          # (S, 3D)

    bias = m_ref[0]                                       # (1, S) additive key mask

    # --- per-head attention with the out-projection folded in ---
    # acc accumulates sum_h o_h @ W_out[h*Dh:(h+1)*Dh, :]  == concat(o_h) @ W_out
    # so the only store is the final lane-dense (S, D) block.
    acc = jnp.zeros((S, D), jnp.float32)
    for h in range(H):                                    # static unroll over heads
        q = qkv[:, h * Dh:(h + 1) * Dh]                   # (S, Dh) bf16 (value slice)
        k = qkv[:, D + h * Dh:D + (h + 1) * Dh]
        v = qkv[:, 2 * D + h * Dh:2 * D + (h + 1) * Dh]
        # scores = q @ k^T / sqrt(Dh): contract Dh without transposing k
        s = lax.dot_general(q, k, (((1,), (1,)), ((), ())),
                            preferred_element_type=jnp.float32) * scale
        s = s + bias
        s = s - jnp.max(s, axis=-1, keepdims=True)
        p = jnp.exp(s)
        p = p * pl.reciprocal(jnp.sum(p, axis=-1, keepdims=True), approx=False)
        o = jnp.dot(p.astype(jnp.bfloat16), v,
                    preferred_element_type=jnp.float32)   # (S, Dh)
        acc = acc + jnp.dot(o.astype(jnp.bfloat16),
                            w_out_ref[h * Dh:(h + 1) * Dh, :],
                            preferred_element_type=jnp.float32)

    # --- out-proj bias + residual + LayerNorm1 (post-norm) ---
    z = acc + b_out_ref[...] + x.astype(jnp.float32)
    mu = jnp.mean(z, axis=-1, keepdims=True)
    zc = z - mu
    var = jnp.mean(zc * zc, axis=-1, keepdims=True)       # biased var (PyTorch LN)
    o_ref[...] = (zc * lax.rsqrt(var + eps) * g_ref[...]
                  + bt_ref[...]).astype(o_ref.dtype)


def attention_block(x, mask_bias, w_in, b_in, w_out, b_out, gamma, beta,
                    *, B, S, H, eps=1e-5):
    """LN1(x + MHA(x)) fused in one kernel; grid over batch.

    x:(B*S, D) bf16; mask_bias:(B, 1, S) f32 additive key-padding bias.
    Weights (w_in: D x 3D, w_out: D x D, bf16) are held VMEM-resident via a
    constant index_map.  Output: (B*S, D) bf16.
    """
    M, D = x.shape
    assert M == B * S
    scale = 1.0 / math.sqrt(D // H)
    return pl.pallas_call(
        functools.partial(_attn_block_kernel, H=H, scale=scale, eps=eps),
        out_shape=jax.ShapeDtypeStruct((M, D), jnp.bfloat16),
        grid=(B,),
        in_specs=[pl.BlockSpec((S, D), lambda b: (b, 0)),        # x (per batch)
                  pl.BlockSpec((1, 1, S), lambda b: (b, 0, 0)),  # mask bias
                  pl.BlockSpec((D, 3 * D), lambda b: (0, 0)),    # w_in (resident)
                  pl.BlockSpec((1, 3 * D), lambda b: (0, 0)),    # b_in
                  pl.BlockSpec((D, D), lambda b: (0, 0)),        # w_out (resident)
                  pl.BlockSpec((1, D), lambda b: (0, 0)),        # b_out
                  pl.BlockSpec((1, D), lambda b: (0, 0)),        # ln1 gamma
                  pl.BlockSpec((1, D), lambda b: (0, 0))],       # ln1 beta
        out_specs=pl.BlockSpec((S, D), lambda b: (b, 0)),
        compiler_params=pltpu.CompilerParams(
            dimension_semantics=("parallel",)),
    )(x, mask_bias, w_in,
      b_in.reshape(1, -1).astype(jnp.float32),
      w_out,
      b_out.reshape(1, -1).astype(jnp.float32),
      gamma.reshape(1, -1).astype(jnp.float32),
      beta.reshape(1, -1).astype(jnp.float32))


# ----------------- fused FFN block: FF1 -> GELU -> FF2 -> +res -> LN2 -----------------

def _ffn_block_kernel(x_ref, w1_ref, b1_ref, w2_ref, b2_ref, g_ref, bt_ref,
                      o_ref, *, eps):
    x = x_ref[...]                                        # (tm, D) bf16
    h = jnp.dot(x, w1_ref[...], preferred_element_type=jnp.float32) + b1_ref[...]
    # exact (erf-based) GELU, matching PyTorch activation='gelu'
    h = 0.5 * h * (1.0 + lax.erf(h * (1.0 / math.sqrt(2.0))))
    y = (jnp.dot(h.astype(jnp.bfloat16), w2_ref[...],
                 preferred_element_type=jnp.float32) + b2_ref[...])
    z = y + x.astype(jnp.float32)                         # residual
    mu = jnp.mean(z, axis=-1, keepdims=True)
    zc = z - mu
    var = jnp.mean(zc * zc, axis=-1, keepdims=True)
    o_ref[...] = (zc * lax.rsqrt(var + eps) * g_ref[...]
                  + bt_ref[...]).astype(o_ref.dtype)


def ffn_block(x, w1, b1, w2, b2, gamma, beta, *, eps=1e-5, tm=256):
    """LN2(x + W2 @ gelu(W1 @ x)) fused in one kernel; M-tiled; W1/W2 resident."""
    M, D = x.shape
    dff = w1.shape[1]
    tm = _pick_tile_m(M, tm)
    return pl.pallas_call(
        functools.partial(_ffn_block_kernel, eps=eps),
        out_shape=jax.ShapeDtypeStruct((M, D), jnp.bfloat16),
        grid=(M // tm,),
        in_specs=[pl.BlockSpec((tm, D), lambda i: (i, 0)),
                  pl.BlockSpec((D, dff), lambda i: (0, 0)),      # w1 (resident)
                  pl.BlockSpec((1, dff), lambda i: (0, 0)),
                  pl.BlockSpec((dff, D), lambda i: (0, 0)),      # w2 (resident)
                  pl.BlockSpec((1, D), lambda i: (0, 0)),
                  pl.BlockSpec((1, D), lambda i: (0, 0)),
                  pl.BlockSpec((1, D), lambda i: (0, 0))],
        out_specs=pl.BlockSpec((tm, D), lambda i: (i, 0)),
        compiler_params=pltpu.CompilerParams(
            dimension_semantics=("parallel",)),
    )(x, w1, b1.reshape(1, -1).astype(jnp.float32),
      w2, b2.reshape(1, -1).astype(jnp.float32),
      gamma.reshape(1, -1).astype(jnp.float32),
      beta.reshape(1, -1).astype(jnp.float32))


# ------------------------- prediction head: x @ W + b (N-tiled) -------------------------

def _mm_bias_kernel(x_ref, w_ref, b_ref, o_ref):
    o_ref[...] = (jnp.dot(x_ref[...], w_ref[...],
                          preferred_element_type=jnp.float32)
                  + b_ref[...]).astype(o_ref.dtype)


def matmul_bias(x, w, b, *, out_dtype=jnp.float32, tm=256, tn=512):
    """y = x @ w + b.  K (=D) is un-tiled (weight column block resident);
    N stays tiled (tn<=512) so large vocabularies remain v7x-VMEM-safe."""
    M, K = x.shape
    _, N = w.shape
    tm = _pick_tile_m(M, tm)
    tn = min(tn, N)
    assert N % tn == 0
    grid = (M // tm, N // tn)
    return pl.pallas_call(
        _mm_bias_kernel,
        out_shape=jax.ShapeDtypeStruct((M, N), out_dtype),
        grid=grid,
        in_specs=[pl.BlockSpec((tm, K), lambda i, j: (i, 0)),
                  pl.BlockSpec((K, tn), lambda i, j: (0, j)),
                  pl.BlockSpec((1, tn), lambda i, j: (0, j))],
        out_specs=pl.BlockSpec((tm, tn), lambda i, j: (i, j)),
        compiler_params=pltpu.CompilerParams(
            dimension_semantics=("parallel", "parallel")),
    )(x, w, b.reshape(1, N).astype(jnp.float32))


# --------------------------------- params / glue ---------------------------------

def make_pos_embedding(maxlen, D):
    den = jnp.exp(-jnp.arange(0, D, 2, dtype=jnp.float32) * (math.log(10000.0) / D))
    pos = jnp.arange(maxlen, dtype=jnp.float32)[:, None]
    pe = jnp.zeros((maxlen, D), dtype=jnp.float32)
    pe = pe.at[:, 0::2].set(jnp.sin(pos * den))
    pe = pe.at[:, 1::2].set(jnp.cos(pos * den))
    return pe


def init_params(key, *, num_layers, D, dff, vocab, maxlen):
    def nxt():
        nonlocal key
        key, sub = jax.random.split(key)
        return sub

    def dense(shape):
        # weights stored bf16 for the MXU; accumulation stays f32 in-kernel
        return (0.02 * jax.random.normal(nxt(), shape, dtype=jnp.float32)
                ).astype(jnp.bfloat16)

    params = {
        "emb": 0.02 * jax.random.normal(nxt(), (vocab, D), dtype=jnp.float32),
        "pos": make_pos_embedding(maxlen, D),
        "w_pred": dense((D, vocab)),
        "b_pred": jnp.zeros((vocab,), jnp.float32),
        "layers": [],
    }
    for _ in range(num_layers):
        params["layers"].append({
            "w_in": dense((D, 3 * D)), "b_in": jnp.zeros((3 * D,), jnp.float32),
            "w_out": dense((D, D)),    "b_out": jnp.zeros((D,), jnp.float32),
            "ln1_g": jnp.ones((D,), jnp.float32), "ln1_b": jnp.zeros((D,), jnp.float32),
            "w_ff1": dense((D, dff)),  "b_ff1": jnp.zeros((dff,), jnp.float32),
            "w_ff2": dense((dff, D)),  "b_ff2": jnp.zeros((D,), jnp.float32),
            "ln2_g": jnp.ones((D,), jnp.float32), "ln2_b": jnp.zeros((D,), jnp.float32),
        })
    return params


def bert_encoder_forward(params, src, src_padding_mask, *, nhead):
    """src: (B,S) int32; src_padding_mask: (B,S) bool (True = padding/ignored)."""
    B, S = src.shape
    D = params["emb"].shape[1]
    M = B * S

    # TODO(synk): embedding gather stays in plain JAX (data-dependent gather);
    # the *sqrt(D) scale + positional add is folded in here so XLA fuses it
    # with the gather (perf review: drop the standalone mem-bound kernel).
    tok = jnp.take(params["emb"], src, axis=0)                        # (B,S,D) f32
    x = (tok * math.sqrt(D) + params["pos"][:S][None, :, :]
         ).astype(jnp.bfloat16).reshape(M, D)                         # (M,D) bf16

    # key-padding mask -> additive bias on attention scores
    mask_bias = jnp.where(src_padding_mask, -1e9, 0.0).astype(jnp.float32)
    mask_bias = mask_bias.reshape(B, 1, S)

    for layer in params["layers"]:
        # fused: QKV in-proj -> per-head attention -> out-proj -> +res -> LN1
        x = attention_block(x, mask_bias,
                            layer["w_in"], layer["b_in"],
                            layer["w_out"], layer["b_out"],
                            layer["ln1_g"], layer["ln1_b"],
                            B=B, S=S, H=nhead)
        # fused: FF1 -> exact GELU -> FF2 -> +res -> LN2
        x = ffn_block(x, layer["w_ff1"], layer["b_ff1"],
                      layer["w_ff2"], layer["b_ff2"],
                      layer["ln2_g"], layer["ln2_b"])

    logits = matmul_bias(x, params["w_pred"], params["b_pred"],
                         out_dtype=jnp.float32)                       # (M, VOCAB)
    return logits.reshape(B, S, -1)


# -------------------------------------- main --------------------------------------

if __name__ == "__main__":
    B, S = 2, 8
    D = 512          # reference module hard-codes d_model=512, so emb_size = 512
    H = 8
    DFF = 512
    VOCAB = 256
    LAYERS = 2

    key = jax.random.PRNGKey(0)
    k_param, k_src = jax.random.split(key)

    params = init_params(k_param, num_layers=LAYERS, D=D, dff=DFF,
                         vocab=VOCAB, maxlen=64)

    src = jax.random.randint(k_src, (B, S), 0, VOCAB, dtype=jnp.int32)
    # True = PAD token (ignored by attention); last two positions of batch 1 padded
    src_padding_mask = jnp.zeros((B, S), dtype=bool).at[1, -2:].set(True)

    fwd = jax.jit(functools.partial(bert_encoder_forward, nhead=H))
    out = fwd(params, src, src_padding_mask)
    out = jax.block_until_ready(out)

    assert out.shape == (B, S, VOCAB), out.shape
    assert bool(jnp.all(jnp.isfinite(out)))
    print("KERNEL_OK")
</pallas_src>

<mosaic_0001>
module attributes {stable_mosaic.version = 11 : i64} {
  func.func @_mm_bias_kernel(%arg0: i32, %arg1: i32, %arg2: memref<8x512xbf16, #tpu.memory_space<vmem>>, %arg3: memref<512x256xbf16, #tpu.memory_space<vmem>>, %arg4: memref<1x256xf32, #tpu.memory_space<vmem>>, %arg5: memref<8x256xf32, #tpu.memory_space<vmem>>) attributes {dimension_semantics = [#tpu.dimension_semantics<parallel>, #tpu.dimension_semantics<parallel>], iteration_bounds = array<i64: 2, 1>, scalar_prefetch = 0 : i64, scratch_operands = 0 : i64, tpu.core_type = #tpu.core_type<tc>, window_params = [{transform_indices = @transform_0, window_bounds = array<i64: 8, 512>}, {transform_indices = @transform_1, window_bounds = array<i64: 512, 256>}, {transform_indices = @transform_2, window_bounds = array<i64: 1, 256>}, {transform_indices = @transform_3, window_bounds = array<i64: 8, 256>}]} {
    %c0 = arith.constant 0 : index
    %c0_0 = arith.constant 0 : index
    %0 = vector.load %arg2[%c0, %c0_0] : memref<8x512xbf16, #tpu.memory_space<vmem>>, vector<8x512xbf16>
    %c0_1 = arith.constant 0 : index
    %c0_2 = arith.constant 0 : index
    %1 = vector.load %arg3[%c0_1, %c0_2] : memref<512x256xbf16, #tpu.memory_space<vmem>>, vector<512x256xbf16>
    %cst = arith.constant dense<0.000000e+00> : vector<8x256xf32>
    %2 = tpu.matmul %0, %1, %cst {dimension_numbers = #tpu.dot_dimension_numbers<[1], [0], [0], [1], [0, 0, 1, 1], [], []>} : vector<8x512xbf16>, vector<512x256xbf16>, vector<8x256xf32> -> vector<8x256xf32>
    %c0_3 = arith.constant 0 : index
    %c0_4 = arith.constant 0 : index
    %3 = vector.load %arg4[%c0_3, %c0_4] : memref<1x256xf32, #tpu.memory_space<vmem>>, vector<1x256xf32>
    %4 = vector.broadcast %3 : vector<1x256xf32> to vector<8x256xf32>
    %5 = arith.addf %2, %4 : vector<8x256xf32>
    %c0_5 = arith.constant 0 : index
    %c0_6 = arith.constant 0 : index
    %6 = vector.load %arg5[%c0_5, %c0_6] : memref<8x256xf32, #tpu.memory_space<vmem>>, vector<8x256xf32>
    tpu.vector_store %arg5[%c0_5, %c0_6], %5 {strides = array<i32>} : memref<8x256xf32, #tpu.memory_space<vmem>>, vector<8x256xf32>,
    return
  }
  func.func @transform_0(%arg0: i32, %arg1: i32) -> (i32, i32) {
    %c0_i32 = arith.constant 0 : i32
    %c0_i32_0 = arith.constant 0 : i32
    return %arg0, %c0_i32 : i32, i32
  }
  func.func @transform_1(%arg0: i32, %arg1: i32) -> (i32, i32) {
    %c0_i32 = arith.constant 0 : i32
    %c0_i32_0 = arith.constant 0 : i32
    return %c0_i32, %arg1 : i32, i32
  }
  func.func @transform_2(%arg0: i32, %arg1: i32) -> (i32, i32) {
    %c0_i32 = arith.constant 0 : i32
    %c0_i32_0 = arith.constant 0 : i32
    return %c0_i32, %arg1 : i32, i32
  }
  func.func @transform_3(%arg0: i32, %arg1: i32) -> (i32, i32) {
    %c0_i32 = arith.constant 0 : i32
    return %arg0, %arg1 : i32, i32
  }
}

module attributes {stable_mosaic.version = 11 : i64} {
  func.func @_ffn_block_kernel(%arg0: i32, %arg1: memref<8x512xbf16, #tpu.memory_space<vmem>>, %arg2: memref<512x512xbf16, #tpu.memory_space<vmem>>, %arg3: memref<1x512xf32, #tpu.memory_space<vmem>>, %arg4: memref<512x512xbf16, #tpu.memory_space<vmem>>, %arg5: memref<1x512xf32, #tpu.memory_space<vmem>>, %arg6: memref<1x512xf32, #tpu.memory_space<vmem>>, %arg7: memref<1x512xf32, #tpu.memory_space<vmem>>, %arg8: memref<8x512xbf16, #tpu.memory_space<vmem>>) attributes {dimension_semantics = [#tpu.dimension_semantics<parallel>], iteration_bounds = array<i64: 2>, scalar_prefetch = 0 : i64, scratch_operands = 0 : i64, tpu.core_type = #tpu.core_type<tc>, window_params = [{transform_indices = @transform_0, window_bounds = array<i64: 8, 512>}, {pipeline_mode = #tpu.pipeline_mode<synchronous>, transform_indices = @transform_1, window_bounds = array<i64: 512, 512>}, {pipeline_mode = #tpu.pipeline_mode<synchronous>, transform_indices = @transform_2, window_bounds = array<i64: 1, 512>}, {pipeline_mode = #tpu.pipeline_mode<synchronous>, transform_indices = @transform_3, window_bounds = array<i64: 512, 512>}, {pipeline_mode = #tpu.pipeline_mode<synchronous>, transform_indices = @transform_4, window_bounds = array<i64: 1, 512>}, {pipeline_mode = #tpu.pipeline_mode<synchronous>, transform_indices = @transform_5, window_bounds = array<i64: 1, 512>}, {pipeline_mode = #tpu.pipeline_mode<synchronous>, transform_indices = @transform_6, window_bounds = array<i64: 1, 512>}, {transform_indices = @transform_7, window_bounds = array<i64: 8, 512>}]} {
    %c0 = arith.constant 0 : index
    %c0_0 = arith.constant 0 : index
    %0 = vector.load %arg1[%c0, %c0_0] : memref<8x512xbf16, #tpu.memory_space<vmem>>, vector<8x512xbf16>
    %c0_1 = arith.constant 0 : index
    %c0_2 = arith.constant 0 : index
    %1 = vector.load %arg2[%c0_1, %c0_2] : memref<512x512xbf16, #tpu.memory_space<vmem>>, vector<512x512xbf16>
    %cst = arith.constant dense<0.000000e+00> : vector<8x512xf32>
    %2 = tpu.matmul %0, %1, %cst {dimension_numbers = #tpu.dot_dimension_numbers<[1], [0], [0], [1], [0, 0, 1, 1], [], []>} : vector<8x512xbf16>, vector<512x512xbf16>, vector<8x512xf32> -> vector<8x512xf32>
    %c0_3 = arith.constant 0 : index
    %c0_4 = arith.constant 0 : index
    %3 = vector.load %arg3[%c0_3, %c0_4] : memref<1x512xf32, #tpu.memory_space<vmem>>, vector<1x512xf32>
    %4 = vector.broadcast %3 : vector<1x512xf32> to vector<8x512xf32>
    %5 = arith.addf %2, %4 : vector<8x512xf32>
    %cst_5 = arith.constant 5.000000e-01 : f32
    %6 = vector.broadcast %cst_5 : f32 to vector<8x512xf32>
    %7 = arith.mulf %6, %5 : vector<8x512xf32>
    %cst_6 = arith.constant 0.707106769 : f32
    %8 = vector.broadcast %cst_6 : f32 to vector<8x512xf32>
    %9 = arith.mulf %5, %8 : vector<8x512xf32>
    %10 = math.erf %9 : vector<8x512xf32>
    %cst_7 = arith.constant 1.000000e+00 : f32
    %11 = vector.broadcast %cst_7 : f32 to vector<8x512xf32>
    %12 = arith.addf %11, %10 : vector<8x512xf32>
    %13 = arith.mulf %7, %12 : vector<8x512xf32>
    %14 = arith.truncf %13 : vector<8x512xf32> to vector<8x512xbf16>
    %c0_8 = arith.constant 0 : index
    %c0_9 = arith.constant 0 : index
    %15 = vector.load %arg4[%c0_8, %c0_9] : memref<512x512xbf16, #tpu.memory_space<vmem>>, vector<512x512xbf16>
    %cst_10 = arith.constant dense<0.000000e+00> : vector<8x512xf32>
    %16 = tpu.matmul %14, %15, %cst_10 {dimension_numbers = #tpu.dot_dimension_numbers<[1], [0], [0], [1], [0, 0, 1, 1], [], []>} : vector<8x512xbf16>, vector<512x512xbf16>, vector<8x512xf32> -> vector<8x512xf32>
    %c0_11 = arith.constant 0 : index
    %c0_12 = arith.constant 0 : index
    %17 = vector.load %arg5[%c0_11, %c0_12] : memref<1x512xf32, #tpu.memory_space<vmem>>, vector<1x512xf32>
    %18 = vector.broadcast %17 : vector<1x512xf32> to vector<8x512xf32>
    %19 = arith.addf %16, %18 : vector<8x512xf32>
    %20 = arith.extf %0 : vector<8x512xbf16> to vector<8x512xf32>
    %21 = arith.addf %19, %20 : vector<8x512xf32>
    %cst_13 = arith.constant dense<0.000000e+00> : vector<8xf32>
    %22 = vector.multi_reduction <add>, %21, %cst_13 [1] : vector<8x512xf32> to vector<8xf32>
    %23 = vector.shape_cast %22 : vector<8xf32> to vector<8x1xf32>
    %cst_14 = arith.constant 5.120000e+02 : f32
    %24 = vector.broadcast %cst_14 : f32 to vector<8x1xf32>
    %25 = arith.divf %23, %24 : vector<8x1xf32>
    %26 = vector.broadcast %25 : vector<8x1xf32> to vector<8x512xf32>
    %27 = arith.subf %21, %26 : vector<8x512xf32>
    %28 = arith.mulf %27, %27 : vector<8x512xf32>
    %cst_15 = arith.constant dense<0.000000e+00> : vector<8xf32>
    %29 = vector.multi_reduction <add>, %28, %cst_15 [1] : vector<8x512xf32> to vector<8xf32>
    %30 = vector.shape_cast %29 : vector<8xf32> to vector<8x1xf32>
    %cst_16 = arith.constant 5.120000e+02 : f32
    %31 = vector.broadcast %cst_16 : f32 to vector<8x1xf32>
    %32 = arith.divf %30, %31 : vector<8x1xf32>
    %cst_17 = arith.constant 9.99999974E-6 : f32
    %33 = vector.broadcast %cst_17 : f32 to vector<8x1xf32>
    %34 = arith.addf %32, %33 : vector<8x1xf32>
    %35 = math.rsqrt %34 : vector<8x1xf32>
    %36 = vector.broadcast %35 : vector<8x1xf32> to vector<8x512xf32>
    %37 = arith.mulf %27, %36 : vector<8x512xf32>
    %c0_18 = arith.constant 0 : index
    %c0_19 = arith.constant 0 : index
    %38 = vector.load %arg6[%c0_18, %c0_19] : memref<1x512xf32, #tpu.memory_space<vmem>>, vector<1x512xf32>
    %39 = vector.broadcast %38 : vector<1x512xf32> to vector<8x512xf32>
    %40 = arith.mulf %37, %39 : vector<8x512xf32>
    %c0_20 = arith.constant 0 : index
    %c0_21 = arith.constant 0 : index
    %41 = vector.load %arg7[%c0_20, %c0_21] : memref<1x512xf32, #tpu.memory_space<vmem>>, vector<1x512xf32>
    %42 = vector.broadcast %41 : vector<1x512xf32> to vector<8x512xf32>
    %43 = arith.addf %40, %42 : vector<8x512xf32>
    %44 = arith.truncf %43 : vector<8x512xf32> to vector<8x512xbf16>
    %c0_22 = arith.constant 0 : index
    %c0_23 = arith.constant 0 : index
    %45 = vector.load %arg8[%c0_22, %c0_23] : memref<8x512xbf16, #tpu.memory_space<vmem>>, vector<8x512xbf16>
    tpu.vector_store %arg8[%c0_22, %c0_23], %44 {strides = array<i32>} : memref<8x512xbf16, #tpu.memory_space<vmem>>, vector<8x512xbf16>,
    return
  }
  func.func @transform_0(%arg0: i32) -> (i32, i32) {
    %c0_i32 = arith.constant 0 : i32
    %c0_i32_0 = arith.constant 0 : i32
    return %arg0, %c0_i32 : i32, i32
  }
  func.func @transform_1(%arg0: i32) -> (i32, i32) {
    %c0_i32 = arith.constant 0 : i32
    %c0_i32_0 = arith.constant 0 : i32
    %c0_i32_1 = arith.constant 0 : i32
    return %c0_i32, %c0_i32_0 : i32, i32
  }
  func.func @transform_2(%arg0: i32) -> (i32, i32) {
    %c0_i32 = arith.constant 0 : i32
    %c0_i32_0 = arith.constant 0 : i32
    %c0_i32_1 = arith.constant 0 : i32
    return %c0_i32, %c0_i32_0 : i32, i32
  }
  func.func @transform_3(%arg0: i32) -> (i32, i32) {
    %c0_i32 = arith.constant 0 : i32
    %c0_i32_0 = arith.constant 0 : i32
    %c0_i32_1 = arith.constant 0 : i32
    return %c0_i32, %c0_i32_0 : i32, i32
  }
  func.func @transform_4(%arg0: i32) -> (i32, i32) {
    %c0_i32 = arith.constant 0 : i32
    %c0_i32_0 = arith.constant 0 : i32
    %c0_i32_1 = arith.constant 0 : i32
    return %c0_i32, %c0_i32_0 : i32, i32
  }
  func.func @transform_5(%arg0: i32) -> (i32, i32) {
    %c0_i32 = arith.constant 0 : i32
    %c0_i32_0 = arith.constant 0 : i32
    %c0_i32_1 = arith.constant 0 : i32
    return %c0_i32, %c0_i32_0 : i32, i32
  }
  func.func @transform_6(%arg0: i32) -> (i32, i32) {
    %c0_i32 = arith.constant 0 : i32
    %c0_i32_0 = arith.constant 0 : i32
    %c0_i32_1 = arith.constant 0 : i32
    return %c0_i32, %c0_i32_0 : i32, i32
  }
  func.func @transform_7(%arg0: i32) -> (i32, i32) {
    %c0_i32 = arith.constant 0 : i32
    %c0_i32_0 = arith.constant 0 : i32
    return %arg0, %c0_i32 : i32, i32
  }
}

module attributes {stable_mosaic.version = 11 : i64} {
  func.func @_attn_block_kernel(%arg0: i32, %arg1: memref<8x512xbf16, #tpu.memory_space<vmem>>, %arg2: memref<1x1x8xf32, #tpu.memory_space<vmem>>, %arg3: memref<512x1536xbf16, #tpu.memory_space<vmem>>, %arg4: memref<1x1536xf32, #tpu.memory_space<vmem>>, %arg5: memref<512x512xbf16, #tpu.memory_space<vmem>>, %arg6: memref<1x512xf32, #tpu.memory_space<vmem>>, %arg7: memref<1x512xf32, #tpu.memory_space<vmem>>, %arg8: memref<1x512xf32, #tpu.memory_space<vmem>>, %arg9: memref<8x512xbf16, #tpu.memory_space<vmem>>) attributes {dimension_semantics = [#tpu.dimension_semantics<parallel>], iteration_bounds = array<i64: 2>, scalar_prefetch = 0 : i64, scratch_operands = 0 : i64, tpu.core_type = #tpu.core_type<tc>, window_params = [{transform_indices = @transform_0, window_bounds = array<i64: 8, 512>}, {transform_indices = @transform_1, window_bounds = array<i64: 1, 1, 8>}, {pipeline_mode = #tpu.pipeline_mode<synchronous>, transform_indices = @transform_2, window_bounds = array<i64: 512, 1536>}, {pipeline_mode = #tpu.pipeline_mode<synchronous>, transform_indices = @transform_3, window_bounds = array<i64: 1, 1536>}, {pipeline_mode = #tpu.pipeline_mode<synchronous>, transform_indices = @transform_4, window_bounds = array<i64: 512, 512>}, {pipeline_mode = #tpu.pipeline_mode<synchronous>, transform_indices = @transform_5, window_bounds = array<i64: 1, 512>}, {pipeline_mode = #tpu.pipeline_mode<synchronous>, transform_indices = @transform_6, window_bounds = array<i64: 1, 512>}, {pipeline_mode = #tpu.pipeline_mode<synchronous>, transform_indices = @transform_7, window_bounds = array<i64: 1, 512>}, {transform_indices = @transform_8, window_bounds = array<i64: 8, 512>}]} {
    %c0 = arith.constant 0 : index
    %c0_0 = arith.constant 0 : index
    %0 = vector.load %arg1[%c0, %c0_0] : memref<8x512xbf16, #tpu.memory_space<vmem>>, vector<8x512xbf16>
    %c0_1 = arith.constant 0 : index
    %c0_2 = arith.constant 0 : index
    %1 = vector.load %arg3[%c0_1, %c0_2] : memref<512x1536xbf16, #tpu.memory_space<vmem>>, vector<512x1536xbf16>
    %cst = arith.constant dense<0.000000e+00> : vector<8x1536xf32>
    %2 = tpu.matmul %0, %1, %cst {dimension_numbers = #tpu.dot_dimension_numbers<[1], [0], [0], [1], [0, 0, 1, 1], [], []>} : vector<8x512xbf16>, vector<512x1536xbf16>, vector<8x1536xf32> -> vector<8x1536xf32>
    %c0_3 = arith.constant 0 : index
    %c0_4 = arith.constant 0 : index
    %3 = vector.load %arg4[%c0_3, %c0_4] : memref<1x1536xf32, #tpu.memory_space<vmem>>, vector<1x1536xf32>
    %4 = vector.broadcast %3 : vector<1x1536xf32> to vector<8x1536xf32>
    %5 = arith.addf %2, %4 : vector<8x1536xf32>
    %6 = arith.truncf %5 : vector<8x1536xf32> to vector<8x1536xbf16>
    %c0_5 = arith.constant 0 : index
    %c0_6 = arith.constant 0 : index
    %c0_7 = arith.constant 0 : index
    %7 = vector.load %arg2[%c0_5, %c0_6, %c0_7] : memref<1x1x8xf32, #tpu.memory_space<vmem>>, vector<1x1x8xf32>
    %8 = vector.shape_cast %7 : vector<1x1x8xf32> to vector<1x8xf32>
    %cst_8 = arith.constant 0.000000e+00 : f32
    %9 = vector.broadcast %cst_8 : f32 to vector<8x512xf32>
    %10 = vector.extract_strided_slice %6 {offsets = [0, 0], sizes = [8, 64], strides = [1, 1]} : vector<8x1536xbf16> to vector<8x64xbf16>
    %11 = vector.extract_strided_slice %6 {offsets = [0, 512], sizes = [8, 64], strides = [1, 1]} : vector<8x1536xbf16> to vector<8x64xbf16>
    %12 = vector.extract_strided_slice %6 {offsets = [0, 1024], sizes = [8, 64], strides = [1, 1]} : vector<8x1536xbf16> to vector<8x64xbf16>
    %cst_9 = arith.constant dense<0.000000e+00> : vector<8x8xf32>
    %13 = tpu.matmul %10, %11, %cst_9 {dimension_numbers = #tpu.dot_dimension_numbers<[1], [1], [0], [0], [0, 0, 1, 0], [], []>} : vector<8x64xbf16>, vector<8x64xbf16>, vector<8x8xf32> -> vector<8x8xf32>
    %cst_10 = arith.constant 1.250000e-01 : f32
    %14 = vector.broadcast %cst_10 : f32 to vector<8x8xf32>
    %15 = arith.mulf %13, %14 : vector<8x8xf32>
    %16 = vector.broadcast %8 : vector<1x8xf32> to vector<8x8xf32>
    %17 = arith.addf %15, %16 : vector<8x8xf32>
    %cst_11 = arith.constant dense<0xFF800000> : vector<8xf32>
    %18 = vector.multi_reduction <maximumf>, %17, %cst_11 [1] : vector<8x8xf32> to vector<8xf32>
    %19 = vector.shape_cast %18 : vector<8xf32> to vector<8x1xf32>
    %20 = vector.broadcast %19 : vector<8x1xf32> to vector<8x8xf32>
    %21 = arith.subf %17, %20 : vector<8x8xf32>
    %22 = math.exp %21 : vector<8x8xf32>
    %cst_12 = arith.constant dense<0.000000e+00> : vector<8xf32>
    %23 = vector.multi_reduction <add>, %22, %cst_12 [1] : vector<8x8xf32> to vector<8xf32>
    %24 = vector.shape_cast %23 : vector<8xf32> to vector<8x1xf32>
    %25 = tpu.reciprocal %24 : vector<8x1xf32> -> vector<8x1xf32>
    %26 = vector.broadcast %25 : vector<8x1xf32> to vector<8x8xf32>
    %27 = arith.mulf %22, %26 : vector<8x8xf32>
    %28 = arith.truncf %27 : vector<8x8xf32> to vector<8x8xbf16>
    %cst_13 = arith.constant dense<0.000000e+00> : vector<8x64xf32>
    %29 = tpu.matmul %28, %12, %cst_13 {dimension_numbers = #tpu.dot_dimension_numbers<[1], [0], [0], [1], [0, 0, 1, 1], [], []>} : vector<8x8xbf16>, vector<8x64xbf16>, vector<8x64xf32> -> vector<8x64xf32>
    %30 = arith.truncf %29 : vector<8x64xf32> to vector<8x64xbf16>
    %c0_14 = arith.constant 0 : index
    %c0_15 = arith.constant 0 : index
    %31 = vector.load %arg5[%c0_14, %c0_15] : memref<512x512xbf16, #tpu.memory_space<vmem>>, vector<64x512xbf16>
    %cst_16 = arith.constant dense<0.000000e+00> : vector<8x512xf32>
    %32 = tpu.matmul %30, %31, %cst_16 {dimension_numbers = #tpu.dot_dimension_numbers<[1], [0], [0], [1], [0, 0, 1, 1], [], []>} : vector<8x64xbf16>, vector<64x512xbf16>, vector<8x512xf32> -> vector<8x512xf32>
    %33 = arith.addf %9, %32 : vector<8x512xf32>
    %34 = vector.extract_strided_slice %6 {offsets = [0, 64], sizes = [8, 64], strides = [1, 1]} : vector<8x1536xbf16> to vector<8x64xbf16>
    %35 = vector.extract_strided_slice %6 {offsets = [0, 576], sizes = [8, 64], strides = [1, 1]} : vector<8x1536xbf16> to vector<8x64xbf16>
    %36 = vector.extract_strided_slice %6 {offsets = [0, 1088], sizes = [8, 64], strides = [1, 1]} : vector<8x1536xbf16> to vector<8x64xbf16>
    %cst_17 = arith.constant dense<0.000000e+00> : vector<8x8xf32>
    %37 = tpu.matmul %34, %35, %cst_17 {dimension_numbers = #tpu.dot_dimension_numbers<[1], [1], [0], [0], [0, 0, 1, 0], [], []>} : vector<8x64xbf16>, vector<8x64xbf16>, vector<8x8xf32> -> vector<8x8xf32>
    %cst_18 = arith.constant 1.250000e-01 : f32
    %38 = vector.broadcast %cst_18 : f32 to vector<8x8xf32>
    %39 = arith.mulf %37, %38 : vector<8x8xf32>
    %40 = vector.broadcast %8 : vector<1x8xf32> to vector<8x8xf32>
    %41 = arith.addf %39, %40 : vector<8x8xf32>
    %cst_19 = arith.constant dense<0xFF800000> : vector<8xf32>
    %42 = vector.multi_reduction <maximumf>, %41, %cst_19 [1] : vector<8x8xf32> to vector<8xf32>
    %43 = vector.shape_cast %42 : vector<8xf32> to vector<8x1xf32>
    %44 = vector.broadcast %43 : vector<8x1xf32> to vector<8x8xf32>
    %45 = arith.subf %41, %44 : vector<8x8xf32>
    %46 = math.exp %45 : vector<8x8xf32>
    %cst_20 = arith.constant dense<0.000000e+00> : vector<8xf32>
    %47 = vector.multi_reduction <add>, %46, %cst_20 [1] : vector<8x8xf32> to vector<8xf32>
    %48 = vector.shape_cast %47 : vector<8xf32> to vector<8x1xf32>
    %49 = tpu.reciprocal %48 : vector<8x1xf32> -> vector<8x1xf32>
    %50 = vector.broadcast %49 : vector<8x1xf32> to vector<8x8xf32>
    %51 = arith.mulf %46, %50 : vector<8x8xf32>
    %52 = arith.truncf %51 : vector<8x8xf32> to vector<8x8xbf16>
    %cst_21 = arith.constant dense<0.000000e+00> : vector<8x64xf32>
    %53 = tpu.matmul %52, %36, %cst_21 {dimension_numbers = #tpu.dot_dimension_numbers<[1], [0], [0], [1], [0, 0, 1, 1], [], []>} : vector<8x8xbf16>, vector<8x64xbf16>, vector<8x64xf32> -> vector<8x64xf32>
    %54 = arith.truncf %53 : vector<8x64xf32> to vector<8x64xbf16>
    %c64 = arith.constant 64 : index
    %c0_22 = arith.constant 0 : index
    %55 = vector.load %arg5[%c64, %c0_22] : memref<512x512xbf16, #tpu.memory_space<vmem>>, vector<64x512xbf16>
    %cst_23 = arith.constant dense<0.000000e+00> : vector<8x512xf32>
    %56 = tpu.matmul %54, %55, %cst_23 {dimension_numbers = #tpu.dot_dimension_numbers<[1], [0], [0], [1], [0, 0, 1, 1], [], []>} : vector<8x64xbf16>, vector<64x512xbf16>, vector<8x512xf32> -> vector<8x512xf32>
    %57 = arith.addf %33, %56 : vector<8x512xf32>
    %58 = vector.extract_strided_slice %6 {offsets = [0, 128], sizes = [8, 64], strides = [1, 1]} : vector<8x1536xbf16> to vector<8x64xbf16>
    %59 = vector.extract_strided_slice %6 {offsets = [0, 640], sizes = [8, 64], strides = [1, 1]} : vector<8x1536xbf16> to vector<8x64xbf16>
    %60 = vector.extract_strided_slice %6 {offsets = [0, 1152], sizes = [8, 64], strides = [1, 1]} : vector<8x1536xbf16> to vector<8x64xbf16>
    %cst_24 = arith.constant dense<0.000000e+00> : vector<8x8xf32>
    %61 = tpu.matmul %58, %59, %cst_24 {dimension_numbers = #tpu.dot_dimension_numbers<[1], [1], [0], [0], [0, 0, 1, 0], [], []>} : vector<8x64xbf16>, vector<8x64xbf16>, vector<8x8xf32> -> vector<8x8xf32>
    %cst_25 = arith.constant 1.250000e-01 : f32
    %62 = vector.broadcast %cst_25 : f32 to vector<8x8xf32>
    %63 = arith.mulf %61, %62 : vector<8x8xf32>
    %64 = vector.broadcast %8 : vector<1x8xf32> to vector<8x8xf32>
    %65 = arith.addf %63, %64 : vector<8x8xf32>
    %cst_26 = arith.constant dense<0xFF800000> : vector<8xf32>
    %66 = vector.multi_reduction <maximumf>, %65, %cst_26 [1] : vector<8x8xf32> to vector<8xf32>
    %67 = vector.shape_cast %66 : vector<8xf32> to vector<8x1xf32>
    %68 = vector.broadcast %67 : vector<8x1xf32> to vector<8x8xf32>
    %69 = arith.subf %65, %68 : vector<8x8xf32>
    %70 = math.exp %69 : vector<8x8xf32>
    %cst_27 = arith.constant dense<0.000000e+00> : vector<8xf32>
    %71 = vector.multi_reduction <add>, %70, %cst_27 [1] : vector<8x8xf32> to vector<8xf32>
    %72 = vector.shape_cast %71 : vector<8xf32> to vector<8x1xf32>
    %73 = tpu.reciprocal %72 : vector<8x1xf32> -> vector<8x1xf32>
    %74 = vector.broadcast %73 : vector<8x1xf32> to vector<8x8xf32>
    %75 = arith.mulf %70, %74 : vector<8x8xf32>
    %76 = arith.truncf %75 : vector<8x8xf32> to vector<8x8xbf16>
    %cst_28 = arith.constant dense<0.000000e+00> : vector<8x64xf32>
    %77 = tpu.matmul %76, %60, %cst_28 {dimension_numbers = #tpu.dot_dimension_numbers<[1], [0], [0], [1], [0, 0, 1, 1], [], []>} : vector<8x8xbf16>, vector<8x64xbf16>, vector<8x64xf32> -> vector<8x64xf32>
    %78 = arith.truncf %77 : vector<8x64xf32> to vector<8x64xbf16>
    %c128 = arith.constant 128 : index
    %c0_29 = arith.constant 0 : index
    %79 = vector.load %arg5[%c128, %c0_29] : memref<512x512xbf16, #tpu.memory_space<vmem>>, vector<64x512xbf16>
    %cst_30 = arith.constant dense<0.000000e+00> : vector<8x512xf32>
    %80 = tpu.matmul %78, %79, %cst_30 {dimension_numbers = #tpu.dot_dimension_numbers<[1], [0], [0], [1], [0, 0, 1, 1], [], []>} : vector<8x64xbf16>, vector<64x512xbf16>, vector<8x512xf32> -> vector<8x512xf32>
    %81 = arith.addf %57, %80 : vector<8x512xf32>
    %82 = vector.extract_strided_slice %6 {offsets = [0, 192], sizes = [8, 64], strides = [1, 1]} : vector<8x1536xbf16> to vector<8x64xbf16>
    %83 = vector.extract_strided_slice %6 {offsets = [0, 704], sizes = [8, 64], strides = [1, 1]} : vector<8x1536xbf16> to vector<8x64xbf16>
    %84 = vector.extract_strided_slice %6 {offsets = [0, 1216], sizes = [8, 64], strides = [1, 1]} : vector<8x1536xbf16> to vector<8x64xbf16>
    %cst_31 = arith.constant dense<0.000000e+00> : vector<8x8xf32>
    %85 = tpu.matmul %82, %83, %cst_31 {dimension_numbers = #tpu.dot_dimension_numbers<[1], [1], [0], [0], [0, 0, 1, 0], [], []>} : vector<8x64xbf16>, vector<8x64xbf16>, vector<8x8xf32> -> vector<8x8xf32>
    %cst_32 = arith.constant 1.250000e-01 : f32
    %86 = vector.broadcast %cst_32 : f32 to vector<8x8xf32>
    %87 = arith.mulf %85, %86 : vector<8x8xf32>
    %88 = vector.broadcast %8 : vector<1x8xf32> to vector<8x8xf32>
    %89 = arith.addf %87, %88 : vector<8x8xf32>
    %cst_33 = arith.constant dense<0xFF800000> : vector<8xf32>
    %90 = vector.multi_reduction <maximumf>, %89, %cst_33 [1] : vector<8x8xf32> to vector<8xf32>
    %91 = vector.shape_cast %90 : vector<8xf32> to vector<8x1xf32>
    %92 = vector.broadcast %91 : vector<8x1xf32> to vector<8x8xf32>
    %93 = arith.subf %89, %92 : vector<8x8xf32>
    %94 = math.exp %93 : vector<8x8xf32>
    %cst_34 = arith.constant dense<0.000000e+00> : vector<8xf32>
    %95 = vector.multi_reduction <add>, %94, %cst_34 [1] : vector<8x8xf32> to vector<8xf32>
    %96 = vector.shape_cast %95 : vector<8xf32> to vector<8x1xf32>
    %97 = tpu.reciprocal %96 : vector<8x1xf32> -> vector<8x1xf32>
    %98 = vector.broadcast %97 : vector<8x1xf32> to vector<8x8xf32>
    %99 = arith.mulf %94, %98 : vector<8x8xf32>
    %100 = arith.truncf %99 : vector<8x8xf32> to vector<8x8xbf16>
    %cst_35 = arith.constant dense<0.000000e+00> : vector<8x64xf32>
    %101 = tpu.matmul %100, %84, %cst_35 {dimension_numbers = #tpu.dot_dimension_numbers<[1], [0], [0], [1], [0, 0, 1, 1], [], []>} : vector<8x8xbf16>, vector<8x64xbf16>, vector<8x64xf32> -> vector<8x64xf32>
    %102 = arith.truncf %101 : vector<8x64xf32> to vector<8x64xbf16>
    %c192 = arith.constant 192 : index
    %c0_36 = arith.constant 0 : index
    %103 = vector.load %arg5[%c192, %c0_36] : memref<512x512xbf16, #tpu.memory_space<vmem>>, vector<64x512xbf16>
    %cst_37 = arith.constant dense<0.000000e+00> : vector<8x512xf32>
    %104 = tpu.matmul %102, %103, %cst_37 {dimension_numbers = #tpu.dot_dimension_numbers<[1], [0], [0], [1], [0, 0, 1, 1], [], []>} : vector<8x64xbf16>, vector<64x512xbf16>, vector<8x512xf32> -> vector<8x512xf32>
    %105 = arith.addf %81, %104 : vector<8x512xf32>
    %106 = vector.extract_strided_slice %6 {offsets = [0, 256], sizes = [8, 64], strides = [1, 1]} : vector<8x1536xbf16> to vector<8x64xbf16>
    %107 = vector.extract_strided_slice %6 {offsets = [0, 768], sizes = [8, 64], strides = [1, 1]} : vector<8x1536xbf16> to vector<8x64xbf16>
    %108 = vector.extract_strided_slice %6 {offsets = [0, 1280], sizes = [8, 64], strides = [1, 1]} : vector<8x1536xbf16> to vector<8x64xbf16>
    %cst_38 = arith.constant dense<0.000000e+00> : vector<8x8xf32>
    %109 = tpu.matmul %106, %107, %cst_38 {dimension_numbers = #tpu.dot_dimension_numbers<[1], [1], [0], [0], [0, 0, 1, 0], [], []>} : vector<8x64xbf16>, vector<8x64xbf16>, vector<8x8xf32> -> vector<8x8xf32>
    %cst_39 = arith.constant 1.250000e-01 : f32
    %110 = vector.broadcast %cst_39 : f32 to vector<8x8xf32>
    %111 = arith.mulf %109, %110 : vector<8x8xf32>
    %112 = vector.broadcast %8 : vector<1x8xf32> to vector<8x8xf32>
    %113 = arith.addf %111, %112 : vector<8x8xf32>
    %cst_40 = arith.constant dense<0xFF800000> : vector<8xf32>
    %114 = vector.multi_reduction <maximumf>, %113, %cst_40 [1] : vector<8x8xf32> to vector<8xf32>
    %115 = vector.shape_cast %114 : vector<8xf32> to vector<8x1xf32>
    %116 = vector.broadcast %115 : vector<8x1xf32> to vector<8x8xf32>
    %117 = arith.subf %113, %116 : vector<8x8xf32>
    %118 = math.exp %117 : vector<8x8xf32>
    %cst_41 = arith.constant dense<0.000000e+00> : vector<8xf32>
    %119 = vector.multi_reduction <add>, %118, %cst_41 [1] : vector<8x8xf32> to vector<8xf32>
    %120 = vector.shape_cast %119 : vector<8xf32> to vector<8x1xf32>
    %121 = tpu.reciprocal %120 : vector<8x1xf32> -> vector<8x1xf32>
    %122 = vector.broadcast %121 : vector<8x1xf32> to vector<8x8xf32>
    %123 = arith.mulf %118, %122 : vector<8x8xf32>
    %124 = arith.truncf %123 : vector<8x8xf32> to vector<8x8xbf16>
    %cst_42 = arith.constant dense<0.000000e+00> : vector<8x64xf32>
    %125 = tpu.matmul %124, %108, %cst_42 {dimension_numbers = #tpu.dot_dimension_numbers<[1], [0], [0], [1], [0, 0, 1, 1], [], []>} : vector<8x8xbf16>, vector<8x64xbf16>, vector<8x64xf32> -> vector<8x64xf32>
    %126 = arith.truncf %125 : vector<8x64xf32> to vector<8x64xbf16>
    %c256 = arith.constant 256 : index
    %c0_43 = arith.constant 0 : index
    %127 = vector.load %arg5[%c256, %c0_43] : memref<512x512xbf16, #tpu.memory_space<vmem>>, vector<64x512xbf16>
    %cst_44 = arith.constant dense<0.000000e+00> : vector<8x512xf32>
    %128 = tpu.matmul %126, %127, %cst_44 {dimension_numbers = #tpu.dot_dimension_numbers<[1], [0], [0], [1], [0, 0, 1, 1], [], []>} : vector<8x64xbf16>, vector<64x512xbf16>, vector<8x512xf32> -> vector<8x512xf32>
    %129 = arith.addf %105, %128 : vector<8x512xf32>
    %130 = vector.extract_strided_slice %6 {offsets = [0, 320], sizes = [8, 64], strides = [1, 1]} : vector<8x1536xbf16> to vector<8x64xbf16>
    %131 = vector.extract_strided_slice %6 {offsets = [0, 832], sizes = [8, 64], strides = [1, 1]} : vector<8x1536xbf16> to vector<8x64xbf16>
    %132 = vector.extract_strided_slice %6 {offsets = [0, 1344], sizes = [8, 64], strides = [1, 1]} : vector<8x1536xbf16> to vector<8x64xbf16>
    %cst_45 = arith.constant dense<0.000000e+00> : vector<8x8xf32>
    %133 = tpu.matmul %130, %131, %cst_45 {dimension_numbers = #tpu.dot_dimension_numbers<[1], [1], [0], [0], [0, 0, 1, 0], [], []>} : vector<8x64xbf16>, vector<8x64xbf16>, vector<8x8xf32> -> vector<8x8xf32>
    %cst_46 = arith.constant 1.250000e-01 : f32
    %134 = vector.broadcast %cst_46 : f32 to vector<8x8xf32>
    %135 = arith.mulf %133, %134 : vector<8x8xf32>
    %136 = vector.broadcast %8 : vector<1x8xf32> to vector<8x8xf32>
    %137 = arith.addf %135, %136 : vector<8x8xf32>
    %cst_47 = arith.constant dense<0xFF800000> : vector<8xf32>
    %138 = vector.multi_reduction <maximumf>, %137, %cst_47 [1] : vector<8x8xf32> to vector<8xf32>
    %139 = vector.shape_cast %138 : vector<8xf32> to vector<8x1xf32>
    %140 = vector.broadcast %139 : vector<8x1xf32> to vector<8x8xf32>
    %141 = arith.subf %137, %140 : vector<8x8xf32>
    %142 = math.exp %141 : vector<8x8xf32>
    %cst_48 = arith.constant dense<0.000000e+00> : vector<8xf32>
    %143 = vector.multi_reduction <add>, %142, %cst_48 [1] : vector<8x8xf32> to vector<8xf32>
    %144 = vector.shape_cast %143 : vector<8xf32> to vector<8x1xf32>
    %145 = tpu.reciprocal %144 : vector<8x1xf32> -> vector<8x1xf32>
    %146 = vector.broadcast %145 : vector<8x1xf32> to vector<8x8xf32>
    %147 = arith.mulf %142, %146 : vector<8x8xf32>
    %148 = arith.truncf %147 : vector<8x8xf32> to vector<8x8xbf16>
    %cst_49 = arith.constant dense<0.000000e+00> : vector<8x64xf32>
    %149 = tpu.matmul %148, %132, %cst_49 {dimension_numbers = #tpu.dot_dimension_numbers<[1], [0], [0], [1], [0, 0, 1, 1], [], []>} : vector<8x8xbf16>, vector<8x64xbf16>, vector<8x64xf32> -> vector<8x64xf32>
    %150 = arith.truncf %149 : vector<8x64xf32> to vector<8x64xbf16>
    %c320 = arith.constant 320 : index
    %c0_50 = arith.constant 0 : index
    %151 = vector.load %arg5[%c320, %c0_50] : memref<512x512xbf16, #tpu.memory_space<vmem>>, vector<64x512xbf16>
    %cst_51 = arith.constant dense<0.000000e+00> : vector<8x512xf32>
    %152 = tpu.matmul %150, %151, %cst_51 {dimension_numbers = #tpu.dot_dimension_numbers<[1], [0], [0], [1], [0, 0, 1, 1], [], []>} : vector<8x64xbf16>, vector<64x512xbf16>, vector<8x512xf32> -> vector<8x512xf32>
    %153 = arith.addf %129, %152 : vector<8x512xf32>
    %154 = vector.extract_strided_slice %6 {offsets = [0, 384], sizes = [8, 64], strides = [1, 1]} : vector<8x1536xbf16> to vector<8x64xbf16>
    %155 = vector.extract_strided_slice %6 {offsets = [0, 896], sizes = [8, 64], strides = [1, 1]} : vector<8x1536xbf16> to vector<8x64xbf16>
    %156 = vector.extract_strided_slice %6 {offsets = [0, 1408], sizes = [8, 64], strides = [1, 1]} : vector<8x1536xbf16> to vector<8x64xbf16>
    %cst_52 = arith.constant dense<0.000000e+00> : vector<8x8xf32>
    %157 = tpu.matmul %154, %155, %cst_52 {dimension_numbers = #tpu.dot_dimension_numbers<[1], [1], [0], [0], [0, 0, 1, 0], [], []>} : vector<8x64xbf16>, vector<8x64xbf16>, vector<8x8xf32> -> vector<8x8xf32>
    %cst_53 = arith.constant 1.250000e-01 : f32
    %158 = vector.broadcast %cst_53 : f32 to vector<8x8xf32>
    %159 = arith.mulf %157, %158 : vector<8x8xf32>
    %160 = vector.broadcast %8 : vector<1x8xf32> to vector<8x8xf32>
    %161 = arith.addf %159, %160 : vector<8x8xf32>
    %cst_54 = arith.constant dense<0xFF800000> : vector<8xf32>
    %162 = vector.multi_reduction <maximumf>, %161, %cst_54 [1] : vector<8x8xf32> to vector<8xf32>
    %163 = vector.shape_cast %162 : vector<8xf32> to vector<8x1xf32>
    %164 = vector.broadcast %163 : vector<8x1xf32> to vector<8x8xf32>
    %165 = arith.subf %161, %164 : vector<8x8xf32>
    %166 = math.exp %165 : vector<8x8xf32>
    %cst_55 = arith.constant dense<0.000000e+00> : vector<8xf32>
    %167 = vector.multi_reduction <add>, %166, %cst_55 [1] : vector<8x8xf32> to vector<8xf32>
    %168 = vector.shape_cast %167 : vector<8xf32> to vector<8x1xf32>
    %169 = tpu.reciprocal %168 : vector<8x1xf32> -> vector<8x1xf32>
    %170 = vector.broadcast %169 : vector<8x1xf32> to vector<8x8xf32>
    %171 = arith.mulf %166, %170 : vector<8x8xf32>
    %172 = arith.truncf %171 : vector<8x8xf32> to vector<8x8xbf16>
    %cst_56 = arith.constant dense<0.000000e+00> : vector<8x64xf32>
    %173 = tpu.matmul %172, %156, %cst_56 {dimension_numbers = #tpu.dot_dimension_numbers<[1], [0], [0], [1], [0, 0, 1, 1], [], []>} : vector<8x8xbf16>, vector<8x64xbf16>, vector<8x64xf32> -> vector<8x64xf32>
    %174 = arith.truncf %173 : vector<8x64xf32> to vector<8x64xbf16>
    %c384 = arith.constant 384 : index
    %c0_57 = arith.constant 0 : index
    %175 = vector.load %arg5[%c384, %c0_57] : memref<512x512xbf16, #tpu.memory_space<vmem>>, vector<64x512xbf16>
    %cst_58 = arith.constant dense<0.000000e+00> : vector<8x512xf32>
    %176 = tpu.matmul %174, %175, %cst_58 {dimension_numbers = #tpu.dot_dimension_numbers<[1], [0], [0], [1], [0, 0, 1, 1], [], []>} : vector<8x64xbf16>, vector<64x512xbf16>, vector<8x512xf32> -> vector<8x512xf32>
    %177 = arith.addf %153, %176 : vector<8x512xf32>
    %178 = vector.extract_strided_slice %6 {offsets = [0, 448], sizes = [8, 64], strides = [1, 1]} : vector<8x1536xbf16> to vector<8x64xbf16>
    %179 = vector.extract_strided_slice %6 {offsets = [0, 960], sizes = [8, 64], strides = [1, 1]} : vector<8x1536xbf16> to vector<8x64xbf16>
    %180 = vector.extract_strided_slice %6 {offsets = [0, 1472], sizes = [8, 64], strides = [1, 1]} : vector<8x1536xbf16> to vector<8x64xbf16>
    %cst_59 = arith.constant dense<0.000000e+00> : vector<8x8xf32>
    %181 = tpu.matmul %178, %179, %cst_59 {dimension_numbers = #tpu.dot_dimension_numbers<[1], [1], [0], [0], [0, 0, 1, 0], [], []>} : vector<8x64xbf16>, vector<8x64xbf16>, vector<8x8xf32> -> vector<8x8xf32>
    %cst_60 = arith.constant 1.250000e-01 : f32
    %182 = vector.broadcast %cst_60 : f32 to vector<8x8xf32>
    %183 = arith.mulf %181, %182 : vector<8x8xf32>
    %184 = vector.broadcast %8 : vector<1x8xf32> to vector<8x8xf32>
    %185 = arith.addf %183, %184 : vector<8x8xf32>
    %cst_61 = arith.constant dense<0xFF800000> : vector<8xf32>
    %186 = vector.multi_reduction <maximumf>, %185, %cst_61 [1] : vector<8x8xf32> to vector<8xf32>
    %187 = vector.shape_cast %186 : vector<8xf32> to vector<8x1xf32>
    %188 = vector.broadcast %187 : vector<8x1xf32> to vector<8x8xf32>
    %189 = arith.subf %185, %188 : vector<8x8xf32>
    %190 = math.exp %189 : vector<8x8xf32>
    %cst_62 = arith.constant dense<0.000000e+00> : vector<8xf32>
    %191 = vector.multi_reduction <add>, %190, %cst_62 [1] : vector<8x8xf32> to vector<8xf32>
    %192 = vector.shape_cast %191 : vector<8xf32> to vector<8x1xf32>
    %193 = tpu.reciprocal %192 : vector<8x1xf32> -> vector<8x1xf32>
    %194 = vector.broadcast %193 : vector<8x1xf32> to vector<8x8xf32>
    %195 = arith.mulf %190, %194 : vector<8x8xf32>
    %196 = arith.truncf %195 : vector<8x8xf32> to vector<8x8xbf16>
    %cst_63 = arith.constant dense<0.000000e+00> : vector<8x64xf32>
    %197 = tpu.matmul %196, %180, %cst_63 {dimension_numbers = #tpu.dot_dimension_numbers<[1], [0], [0], [1], [0, 0, 1, 1], [], []>} : vector<8x8xbf16>, vector<8x64xbf16>, vector<8x64xf32> -> vector<8x64xf32>
    %198 = arith.truncf %197 : vector<8x64xf32> to vector<8x64xbf16>
    %c448 = arith.constant 448 : index
    %c0_64 = arith.constant 0 : index
    %199 = vector.load %arg5[%c448, %c0_64] : memref<512x512xbf16, #tpu.memory_space<vmem>>, vector<64x512xbf16>
    %cst_65 = arith.constant dense<0.000000e+00> : vector<8x512xf32>
    %200 = tpu.matmul %198, %199, %cst_65 {dimension_numbers = #tpu.dot_dimension_numbers<[1], [0], [0], [1], [0, 0, 1, 1], [], []>} : vector<8x64xbf16>, vector<64x512xbf16>, vector<8x512xf32> -> vector<8x512xf32>
    %201 = arith.addf %177, %200 : vector<8x512xf32>
    %c0_66 = arith.constant 0 : index
    %c0_67 = arith.constant 0 : index
    %202 = vector.load %arg6[%c0_66, %c0_67] : memref<1x512xf32, #tpu.memory_space<vmem>>, vector<1x512xf32>
    %203 = vector.broadcast %202 : vector<1x512xf32> to vector<8x512xf32>
    %204 = arith.addf %201, %203 : vector<8x512xf32>
    %205 = arith.extf %0 : vector<8x512xbf16> to vector<8x512xf32>
    %206 = arith.addf %204, %205 : vector<8x512xf32>
    %cst_68 = arith.constant dense<0.000000e+00> : vector<8xf32>
    %207 = vector.multi_reduction <add>, %206, %cst_68 [1] : vector<8x512xf32> to vector<8xf32>
    %208 = vector.shape_cast %207 : vector<8xf32> to vector<8x1xf32>
    %cst_69 = arith.constant 5.120000e+02 : f32
    %209 = vector.broadcast %cst_69 : f32 to vector<8x1xf32>
    %210 = arith.divf %208, %209 : vector<8x1xf32>
    %211 = vector.broadcast %210 : vector<8x1xf32> to vector<8x512xf32>
    %212 = arith.subf %206, %211 : vector<8x512xf32>
    %213 = arith.mulf %212, %212 : vector<8x512xf32>
    %cst_70 = arith.constant dense<0.000000e+00> : vector<8xf32>
    %214 = vector.multi_reduction <add>, %213, %cst_70 [1] : vector<8x512xf32> to vector<8xf32>
    %215 = vector.shape_cast %214 : vector<8xf32> to vector<8x1xf32>
    %cst_71 = arith.constant 5.120000e+02 : f32
    %216 = vector.broadcast %cst_71 : f32 to vector<8x1xf32>
    %217 = arith.divf %215, %216 : vector<8x1xf32>
    %cst_72 = arith.constant 9.99999974E-6 : f32
    %218 = vector.broadcast %cst_72 : f32 to vector<8x1xf32>
    %219 = arith.addf %217, %218 : vector<8x1xf32>
    %220 = math.rsqrt %219 : vector<8x1xf32>
    %221 = vector.broadcast %220 : vector<8x1xf32> to vector<8x512xf32>
    %222 = arith.mulf %212, %221 : vector<8x512xf32>
    %c0_73 = arith.constant 0 : index
    %c0_74 = arith.constant 0 : index
    %223 = vector.load %arg7[%c0_73, %c0_74] : memref<1x512xf32, #tpu.memory_space<vmem>>, vector<1x512xf32>
    %224 = vector.broadcast %223 : vector<1x512xf32> to vector<8x512xf32>
    %225 = arith.mulf %222, %224 : vector<8x512xf32>
    %c0_75 = arith.constant 0 : index
    %c0_76 = arith.constant 0 : index
    %226 = vector.load %arg8[%c0_75, %c0_76] : memref<1x512xf32, #tpu.memory_space<vmem>>, vector<1x512xf32>
    %227 = vector.broadcast %226 : vector<1x512xf32> to vector<8x512xf32>
    %228 = arith.addf %225, %227 : vector<8x512xf32>
    %229 = arith.truncf %228 : vector<8x512xf32> to vector<8x512xbf16>
    %c0_77 = arith.constant 0 : index
    %c0_78 = arith.constant 0 : index
    %230 = vector.load %arg9[%c0_77, %c0_78] : memref<8x512xbf16, #tpu.memory_space<vmem>>, vector<8x512xbf16>
    tpu.vector_store %arg9[%c0_77, %c0_78], %229 {strides = array<i32>} : memref<8x512xbf16, #tpu.memory_space<vmem>>, vector<8x512xbf16>,
    return
  }
  func.func @transform_0(%arg0: i32) -> (i32, i32) {
    %c0_i32 = arith.constant 0 : i32
    %c0_i32_0 = arith.constant 0 : i32
    return %arg0, %c0_i32 : i32, i32
  }
  func.func @transform_1(%arg0: i32) -> (i32, i32, i32) {
    %c0_i32 = arith.constant 0 : i32
    %c0_i32_0 = arith.constant 0 : i32
    %c0_i32_1 = arith.constant 0 : i32
    return %arg0, %c0_i32, %c0_i32_0 : i32, i32, i32
  }
  func.func @transform_2(%arg0: i32) -> (i32, i32) {
    %c0_i32 = arith.constant 0 : i32
    %c0_i32_0 = arith.constant 0 : i32
    %c0_i32_1 = arith.constant 0 : i32
    return %c0_i32, %c0_i32_0 : i32, i32
  }
  func.func @transform_3(%arg0: i32) -> (i32, i32) {
    %c0_i32 = arith.constant 0 : i32
    %c0_i32_0 = arith.constant 0 : i32
    %c0_i32_1 = arith.constant 0 : i32
    return %c0_i32, %c0_i32_0 : i32, i32
  }
  func.func @transform_4(%arg0: i32) -> (i32, i32) {
    %c0_i32 = arith.constant 0 : i32
    %c0_i32_0 = arith.constant 0 : i32
    %c0_i32_1 = arith.constant 0 : i32
    return %c0_i32, %c0_i32_0 : i32, i32
  }
  func.func @transform_5(%arg0: i32) -> (i32, i32) {
    %c0_i32 = arith.constant 0 : i32
    %c0_i32_0 = arith.constant 0 : i32
    %c0_i32_1 = arith.constant 0 : i32
    return %c0_i32, %c0_i32_0 : i32, i32
  }
  func.func @transform_6(%arg0: i32) -> (i32, i32) {
    %c0_i32 = arith.constant 0 : i32
    %c0_i32_0 = arith.constant 0 : i32
    %c0_i32_1 = arith.constant 0 : i32
    return %c0_i32, %c0_i32_0 : i32, i32
  }
  func.func @transform_7(%arg0: i32) -> (i32, i32) {
    %c0_i32 = arith.constant 0 : i32
    %c0_i32_0 = arith.constant 0 : i32
    %c0_i32_1 = arith.constant 0 : i32
    return %c0_i32, %c0_i32_0 : i32, i32
  }
  func.func @transform_8(%arg0: i32) -> (i32, i32) {
    %c0_i32 = arith.constant 0 : i32
    %c0_i32_0 = arith.constant 0 : i32
    return %arg0, %c0_i32 : i32, i32
  }
}

</mosaic_0001>

<bundles_post_ra>
// kernel: bert_encoder_forward.9
= control target key start
LH: loop header
LB: loop body
LE: loop exit
PB: predicated region body
PF: predicated region fallthrough
CT: control target
= control target key end

     0   :  { %8 = vsyncpa [#allocation3], 0  ;;  %s1603_s0 = inlined_call_operand.vmem [shape: bf16[16,512], index: 0, kind: input, shape index: {}]   ;;  %s1604_s1 = inlined_call_operand.hbm [shape: bf16[512,256], index: 1, kind: input, shape index: {}]   ;;  %s1605_s2 = inlined_call_operand.hbm [shape: f32[1,256], index: 2, kind: input, shape index: {}]   ;;  %s1606_s3 = inlined_call_operand.hbm [shape: f32[16,256], index: 3, kind: output, shape index: {}]  }
   0x1   :  { %9 = vsyncpa [#allocation6], 0 }
   0x2   :  { %10 = vsyncpa [#allocation4], 0 }
   0x3   :  { %12 = vsyncpa [#allocation4 + $0x1], 0  ;;  %s1449_s12 = smov 0   ;;  %s1451_s13 = smov 0  }
   0x4   :  { %s1453_s14 = smov 0   ;;  %s1455_s15 = smov 0  }
   0x5   :  { %s1457_s16 = smov 0   ;;  %s1459_s17 = smov 0  }
   0x6 LB: > { %s860_s18 = sadd.s32 4294967295, %s1423_s17   ;;  %s861_s19 = sadd.s32 4294967294, %s1423_s17   ;;  %s1423_s17 = sphi %s1459_s17, %s18_s17   ;;  %s1419_s16 = sphi %s1457_s16, %s1615_s16   ;;  %s1415_s15 = sphi %s1455_s15, %s1614_s15   ;;  %s1411_s14 = sphi %s1453_s14, %s1613_s14   ;;  %s1407_s13 = sphi %s1451_s13, %s1612_s13   ;;  %s1403_s12 = sphi %s1449_s12, %s1611_s12  }
   0x7   : > { %s30_s20 = sadd.s32 1, %s1419_s16  ;;  %s117_s21 = sadd.s32 1, %s1411_s14 }
   0x8   : > { %p32_p0 = scmp.ge.s32.totalorder %s30_s20, 2  ;;  %p127_p1 = scmp.ne.s32.totalorder %s1411_s14, %s1407_s13 }
   0x9   : > { %p128_p2 = scmp.eq.s32.totalorder %s860_s18, 1  ;;  %p133_p3 = scmp.ne.s32.totalorder %s1407_s13, %s1403_s12 }
   0xa   : > { %s1617_s20 = smov (%p32_p0, %s30_s20), 0  ;;  %p134_p5 = scmp.eq.s32.totalorder %s861_s19, 1 }
   0xb   : > { %p1489_p4 = por %p128_p2, %p127_p1  ;;  %s112_s23 = ssub.s32 %s1419_s16, %s1617_s20 }
   0xc   : > { %p862_p6 = scmp.ge.s32.totalorder %s1423_s17, 1  ;;  %p115_p7 = scmp.eq.s32.totalorder %s112_s23, 0 }
   0xd   : > { %p1496_p8 = por %p134_p5, %p133_p3  ;;  %p141_p9 = scmp.lt.s32.totalorder %s1423_s17, 3 }
   0xe   : > { %s1502_s25 = scalar_select %p115_p7, %s1411_s14, %s117_s21  }
   0xf   : > { %p1504_p10 = pnand %p862_p6, %p141_p9  ;;  %p1508_p11 = scmp.eq.s32.totalorder %s860_s18, 0 }
  0x10   : > { %s155_s30 = sshll.u32 %s1604_s1, 4  ;;  %s1425_s4 = smov [#allocation2]   ;;  %s156_s30 = int_to_ptr.hbm [resolvable:$true] %s155_s30 }
  0x11   : > { %p1209_p12 = pneg %p1504_p10  ;;  %s157_s5 = sshll.u32 %s1425_s4, 4  ;;  %s158_s5 = int_to_ptr.vmem [resolvable:$true] %s157_s5 }
  0x12   : > { %s172_s8 = sshll.u32 %s1605_s2, 4  ;;  %s1426_s9 = smov 128   ;;  %s173_s8 = int_to_ptr.hbm [resolvable:$true] %s172_s8 }
  0x13   : > { %p1210_p13 = pnand %p1508_p11, %p1209_p12  ;;  %s1427_s10 = smov 8  }
  0x14   : > { %s1428_s11 = smov [#allocation5]   ;;  %195 = sbr.rel (%p1504_p10) target bundleno = 237 (0xed), region = 32 }
  0x15   : > { %1212 = dma.hbm_to_vmem [thread:$0]  (!%p1210_p13), %s156_s30, 8192, %s158_s5, [#allocation3], %s1426_s9, %s1426_s9, %s1427_s10  }
  0x16   : > { %s174_s18 = sshll.u32 %s1428_s11, 4  ;;  %s175_s18 = int_to_ptr.vmem [resolvable:$true] %s174_s18 }
  0x17   : > { %1215 = dma.hbm_to_vmem [thread:$0]  (!%p1210_p13), %s173_s8, 32, %s175_s18, [#allocation6]  }
  0x19   : > { %1390 = dma.done.wait (%p1508_p11), [#allocation3], 8192  }
  0x1a   : > { %1392 = vsyncadd (%p1508_p11), [#allocation3], 4294959104 }
  0x1b   : > { %1394 = dma.done.wait (%p1508_p11), [#allocation6], 32  }
  0x1c   : > { %1396 = vsyncadd (%p1508_p11), [#allocation6], 4294967264  ;;  %v930_v0 = vld [vmem:[#allocation2 + $0x70] sm:$0xf]  ;;  %v1149_v1 = vld [vmem:[#allocation2 + $0x74] sm:$0xf0] }
  0x1d   : > { %v994_v2 = vld [vmem:[#allocation2 + $0xf0] sm:$0xf]  ;;  %v931_v3 = vor.u32 %v1149_v1, %v930_v0  ;;  %v1165_v4 = vld [vmem:[#allocation2 + $0xf4] sm:$0xf0]  ;;  %v922_v11 = vld [vmem:[#allocation2 + $0x60] sm:$0xf] }
  0x1e   : > { %v1058_v5 = vld [vmem:[#allocation2 + $0x170] sm:$0xf]  ;;  %v1181_v6 = vld [vmem:[#allocation2 + $0x174] sm:$0xf0]  ;;  %v995_v7 = vor.u32 %v1165_v4, %v994_v2  ;;  %v1147_v13 = vld [vmem:[#allocation2 + $0x64] sm:$0xf0] }
  0x1f   : > { %v1059_v8 = vor.u32 %v1181_v6, %v1058_v5  ;;  %v1122_v9 = vld [vmem:[#allocation2 + $0x1f0] sm:$0xf]  ;;  %v1197_v10 = vld [vmem:[#allocation2 + $0x1f4] sm:$0xf0]  ;;  %639 = vmatpush.bf16.msra.mxu0 %v931_v3  ;;  %v986_v14 = vld [vmem:[#allocation2 + $0xe0] sm:$0xf]  ;;  %v923_v16 = vor.u32 %v1147_v13, %v922_v11 }
  0x20   : > { %v1123_v12 = vor.u32 %v1197_v10, %v1122_v9  ;;  %v1163_v15 = vld [vmem:[#allocation2 + $0xe4] sm:$0xf0]  ;;  %652 = vmatpush.bf16.msra.mxu1 %v995_v7  ;;  %v1050_v18 = vld [vmem:[#allocation2 + $0x160] sm:$0xf]  ;;  %v914_v23 = vld [vmem:[#allocation2 + $0x50] sm:$0xf] }
  0x21   : > { %665 = vmatpush.bf16.msra.mxu2 %v1059_v8  ;;  %v987_v17 = vor.u32 %v1163_v15, %v986_v14  ;;  %v1179_v19 = vld [vmem:[#allocation2 + $0x164] sm:$0xf0]  ;;  %v1114_v20 = vld [vmem:[#allocation2 + $0x1e0] sm:$0xf]  ;;  %v1145_v24 = vld [vmem:[#allocation2 + $0x54] sm:$0xf0] }
  0x22   : > { %678 = vmatpush.bf16.msra.mxu3 %v1123_v12  ;;  %v1051_v21 = vor.u32 %v1179_v19, %v1050_v18  ;;  %v1195_v22 = vld [vmem:[#allocation2 + $0x1e4] sm:$0xf0]  ;;  %v978_v26 = vld [vmem:[#allocation2 + $0xd0] sm:$0xf]  ;;  %v1161_v27 = vld [vmem:[#allocation2 + $0xd4] sm:$0xf0]  ;;  %v915_v29 = vor.u32 %v1145_v24, %v914_v23 }
  0x23   : > { %v1115_v25 = vor.u32 %v1195_v22, %v1114_v20  ;;  %v1042_v28 = vld [vmem:[#allocation2 + $0x150] sm:$0xf]  ;;  %640 = vmatpush.bf16.msra.mxu0 %v923_v16  ;;  %v1177_v30 = vld [vmem:[#allocation2 + $0x154] sm:$0xf0]  ;;  %v979_v33 = vor.u32 %v1161_v27, %v978_v26  ;;  %v906_v35 = vld [vmem:[#allocation2 + $0x40] sm:$0xf] }
  0x24   : > { %v1106_v31 = vld [vmem:[#allocation2 + $0x1d0] sm:$0xf]  ;;  %v1193_v32 = vld [vmem:[#allocation2 + $0x1d4] sm:$0xf0]  ;;  %653 = vmatpush.bf16.msra.mxu1 %v987_v17  ;;  %v1043_v34 = vor.u32 %v1177_v30, %v1042_v28  ;;  %v1143_v36 = vld [vmem:[#allocation2 + $0x44] sm:$0xf0] }
  0x25   : > { %666 = vmatpush.bf16.msra.mxu2 %v1051_v21  ;;  %v970_v37 = vld [vmem:[#allocation2 + $0xc0] sm:$0xf]  ;;  %v1107_v38 = vor.u32 %v1193_v32, %v1106_v31  ;;  %v1159_v39 = vld [vmem:[#allocation2 + $0xc4] sm:$0xf0]  ;;  %v907_v44 = vor.u32 %v1143_v36, %v906_v35  ;;  %p225_p0 = scmp.lt.s32.totalorder %s1415_s15, 1  ;;  %s222_s28 = sand.u32 1, %s1407_s13  }
  0x26   : > { %679 = vmatpush.bf16.msra.mxu3 %v1115_v25  ;;  %v1034_v40 = vld [vmem:[#allocation2 + $0x140] sm:$0xf]  ;;  %v1175_v41 = vld [vmem:[#allocation2 + $0x144] sm:$0xf0]  ;;  %v971_v45 = vor.u32 %v1159_v39, %v970_v37  ;;  %v898_v47 = vld [vmem:[#allocation2 + $0x30] sm:$0xf] }
  0x27   : > { %v1098_v42 = vld [vmem:[#allocation2 + $0x1c0] sm:$0xf]  ;;  %v1191_v43 = vld [vmem:[#allocation2 + $0x1c4] sm:$0xf0]  ;;  %641 = vmatpush.bf16.msra.mxu0 %v915_v29  ;;  %v1035_v46 = vor.u32 %v1175_v41, %v1034_v40  ;;  %v1141_v48 = vld [vmem:[#allocation2 + $0x34] sm:$0xf0] }
  0x28   : > { %654 = vmatpush.bf16.msra.mxu1 %v979_v33  ;;  %v962_v49 = vld [vmem:[#allocation2 + $0xb0] sm:$0xf]  ;;  %v1099_v50 = vor.u32 %v1191_v43, %v1098_v42  ;;  %v1157_v51 = vld [vmem:[#allocation2 + $0xb4] sm:$0xf0]  ;;  %v899_v56 = vor.u32 %v1141_v48, %v898_v47  ;;  %s1536_s19 = scalar_select %p225_p0, %s1415_s15, 1 }
  0x29   : > { %667 = vmatpush.bf16.msra.mxu2 %v1043_v34  ;;  %v1026_v52 = vld [vmem:[#allocation2 + $0x130] sm:$0xf]  ;;  %v1173_v53 = vld [vmem:[#allocation2 + $0x134] sm:$0xf0]  ;;  %v963_v57 = vor.u32 %v1157_v51, %v962_v49  ;;  %v890_v59 = vld [vmem:[#allocation2 + $0x20] sm:$0xf] }
  0x2a   : > { %680 = vmatpush.bf16.msra.mxu3 %v1107_v38  ;;  %v1090_v54 = vld [vmem:[#allocation2 + $0x1b0] sm:$0xf]  ;;  %v1189_v55 = vld [vmem:[#allocation2 + $0x1b4] sm:$0xf0]  ;;  %v1027_v58 = vor.u32 %v1173_v53, %v1026_v52  ;;  %v1139_v60 = vld [vmem:[#allocation2 + $0x24] sm:$0xf0] }
  0x2b   : > { %642 = vmatpush.bf16.msra.mxu0 %v907_v44  ;;  %v954_v61 = vld [vmem:[#allocation2 + $0xa0] sm:$0xf]  ;;  %v1091_v62 = vor.u32 %v1189_v55, %v1090_v54  ;;  %v1155_v63 = vld [vmem:[#allocation2 + $0xa4] sm:$0xf0]  ;;  %v891_v4 = vor.u32 %v1139_v60, %v890_v59  ;;  %s1133_s21 = sshll.u32 %s1536_s19, 4  ;;  %s869_s29 = sshll.u32 %s222_s28, 4 }
  0x2c   : > { %655 = vmatpush.bf16.msra.mxu1 %v971_v45  ;;  %v1018_v0 = vld [vmem:[#allocation2 + $0x120] sm:$0xf]  ;;  %v1171_v1 = vld [vmem:[#allocation2 + $0x124] sm:$0xf0]  ;;  %v955_v5 = vor.u32 %v1155_v63, %v954_v61  ;;  %v882_v7 = vld [vmem:[#allocation2 + $0x10] sm:$0xf]  ;;  %s1542_s27 = scalar_lea.vmem %s1603_s0, %s1133_s21 }
  0x2d   : > { %668 = vmatpush.bf16.msra.mxu2 %v1035_v46  ;;  %v1082_v2 = vld [vmem:[#allocation2 + $0x1a0] sm:$0xf]  ;;  %v1187_v3 = vld [vmem:[#allocation2 + $0x1a4] sm:$0xf0]  ;;  %v1019_v6 = vor.u32 %v1171_v1, %v1018_v0  ;;  %v1137_v8 = vld [vmem:[#allocation2 + $0x14] sm:$0xf0] }
  0x2e   : > { %681 = vmatpush.bf16.msra.mxu3 %v1099_v50  ;;  %v946_v9 = vld [vmem:[#allocation2 + $0x90] sm:$0xf]  ;;  %v1083_v10 = vor.u32 %v1187_v3, %v1082_v2  ;;  %v1153_v11 = vld [vmem:[#allocation2 + $0x94] sm:$0xf0]  ;;  %v883_v16 = vor.u32 %v1137_v8, %v882_v7  ;;  %v874_v17 = vld [vmem:[#allocation2] sm:$0xf] }
  0x2f   : > { %643 = vmatpush.bf16.msra.mxu0 %v899_v56  ;;  %v1010_v12 = vld [vmem:[#allocation2 + $0x110] sm:$0xf]  ;;  %v1169_v13 = vld [vmem:[#allocation2 + $0x114] sm:$0xf0]  ;;  %v1135_v18 = vld [vmem:[#allocation2 + $0x4] sm:$0xf0]  ;;  %v947_v20 = vor.u32 %v1153_v11, %v946_v9 }
  0x30   : > { %656 = vmatpush.bf16.msra.mxu1 %v963_v57  ;;  %v1074_v14 = vld [vmem:[#allocation2 + $0x190] sm:$0xf]  ;;  %v1185_v15 = vld [vmem:[#allocation2 + $0x194] sm:$0xf0]  ;;  %v938_v19 = vld [vmem:[#allocation2 + $0x80] sm:$0xf]  ;;  %v1011_v21 = vor.u32 %v1169_v13, %v1010_v12  ;;  %v875_v32 = vor.u32 %v1135_v18, %v874_v17 }
  0x31   : > { %669 = vmatpush.bf16.msra.mxu2 %v1027_v58  ;;  %v1151_v22 = vld [vmem:[#allocation2 + $0x84] sm:$0xf0]  ;;  %v1002_v23 = vld [vmem:[#allocation2 + $0x100] sm:$0xf]  ;;  %v1075_v25 = vor.u32 %v1185_v15, %v1074_v14  ;;  %v1148_v28 = vld [vmem:[#allocation2 + $0x74] sm:$0xf] }
  0x32   : > { %682 = vmatpush.bf16.msra.mxu3 %v1091_v62  ;;  %v1167_v24 = vld [vmem:[#allocation2 + $0x104] sm:$0xf0]  ;;  %v1066_v26 = vld [vmem:[#allocation2 + $0x180] sm:$0xf]  ;;  %v932_v29 = vld [vmem:[#allocation2 + $0x78] sm:$0xf0]  ;;  %v939_v37 = vor.u32 %v1151_v22, %v938_v19 }
  0x33   : > { %644 = vmatpush.bf16.msra.mxu0 %v891_v4  ;;  %v1183_v27 = vld [vmem:[#allocation2 + $0x184] sm:$0xf0]  ;;  %v1164_v30 = vld [vmem:[#allocation2 + $0xf4] sm:$0xf]  ;;  %v996_v33 = vld [vmem:[#allocation2 + $0xf8] sm:$0xf0]  ;;  %v1003_v38 = vor.u32 %v1167_v24, %v1002_v23  ;;  %v935_v43 = vor.u32 %v1148_v28, %v932_v29 }
  0x34   : > { %657 = vmatpush.bf16.msra.mxu1 %v955_v5  ;;  %v234_v31 = vld [vmem:[%s1542_s27 + $0x8] sm:$0xff]  ;;  %v1180_v34 = vld [vmem:[#allocation2 + $0x174] sm:$0xf]  ;;  %v1060_v35 = vld [vmem:[#allocation2 + $0x178] sm:$0xf0]  ;;  %v1067_v42 = vor.u32 %v1183_v27, %v1066_v26  ;;  %v999_v45 = vor.u32 %v1164_v30, %v996_v33  ;;  %s224_s30 = scalar_lea.vmem [#allocation7], %s869_s29 }
  0x35   : > { %670 = vmatpush.bf16.msra.mxu2 %v1019_v6  ;;  %v309_v36 = vunpack.c.l.b16 %v234_v31  ;;  %v1196_v39 = vld [vmem:[#allocation2 + $0x1f4] sm:$0xf]  ;;  %v1124_v40 = vld [vmem:[#allocation2 + $0x1f8] sm:$0xf0]  ;;  %v310_v41 = vunpack.c.h.b16 %v234_v31  ;;  %v233_v44 = vld [vmem:[%s1542_s27] sm:$0xff]  ;;  %v1063_v46 = vor.u32 %v1180_v34, %v1060_v35  ;;  %s1198_s4 = sshll.u32 %s1415_s15, 4 }
  0x36   : > { %683 = vmatpush.bf16.msra.mxu3 %v1083_v10  ;;  %v1146_v47 = vld [vmem:[#allocation2 + $0x64] sm:$0xf]  ;;  %v924_v48 = vld [vmem:[#allocation2 + $0x68] sm:$0xf0]  ;;  %v307_v50 = vunpack.c.l.b16 %v233_v44  ;;  %v308_v51 = vunpack.c.h.b16 %v233_v44  ;;  %v1127_v52 = vor.u32 %v1196_v39, %v1124_v40  ;;  %v1144_v1 = vld [vmem:[#allocation2 + $0x54] sm:$0xf]  ;;  %s759_s7 = scalar_lea.hbm %s1606_s3, %s1198_s4 }
  0x37   : > { %645 = vmatpush.bf16.msra.mxu0 %v883_v16  ;;  %v1162_v49 = vld [vmem:[#allocation2 + $0xe4] sm:$0xf]  ;;  %v988_v53 = vld [vmem:[#allocation2 + $0xe8] sm:$0xf0]  ;;  %v1546_v56 = vpack.c.b16 %v309_v36, %v309_v36  ;;  %v1548_v59 = vpack.c.b16 %v310_v41, %v310_v41  ;;  %v927_v61 = vor.u32 %v1146_v47, %v924_v48  ;;  %v916_v2 = vld [vmem:[#allocation2 + $0x58] sm:$0xf0] }
  0x38   : > { %658 = vmatpush.bf16.msra.mxu1 %v947_v20  ;;  %v1178_v54 = vld [vmem:[#allocation2 + $0x164] sm:$0xf]  ;;  %v1052_v55 = vld [vmem:[#allocation2 + $0x168] sm:$0xf0]  ;;  %v1550_v60 = vpack.c.b16 %v307_v50, %v307_v50  ;;  %v1552_v62 = vpack.c.b16 %v308_v51, %v308_v51  ;;  %v991_v63 = vor.u32 %v1162_v49, %v988_v53  ;;  %v1160_v3 = vld [vmem:[#allocation2 + $0xd4] sm:$0xf]  ;;  %v919_v10 = vor.u32 %v1144_v1, %v916_v2 }
  0x39   : > { %671 = vmatpush.bf16.msra.mxu2 %v1011_v21  ;;  %v1194_v57 = vld [vmem:[#allocation2 + $0x1e4] sm:$0xf]  ;;  %v1116_v58 = vld [vmem:[#allocation2 + $0x1e8] sm:$0xf0]  ;;  %v1055_v0 = vor.u32 %v1178_v54, %v1052_v55  ;;  %v980_v5 = vld [vmem:[#allocation2 + $0xd8] sm:$0xf0] }
  0x3a   : > { %684 = vmatpush.bf16.msra.mxu3 %v1075_v25  ;;  %v1119_v4 = vor.u32 %v1194_v57, %v1116_v58  ;;  %v1176_v6 = vld [vmem:[#allocation2 + $0x154] sm:$0xf]  ;;  %v1044_v7 = vld [vmem:[#allocation2 + $0x158] sm:$0xf0]  ;;  %v983_v11 = vor.u32 %v1160_v3, %v980_v5  ;;  %v1142_v13 = vld [vmem:[#allocation2 + $0x44] sm:$0xf] }
  0x3b   : > { %646 = vmatpush.bf16.msra.mxu0 %v875_v32  ;;  %v1192_v8 = vld [vmem:[#allocation2 + $0x1d4] sm:$0xf]  ;;  %v1108_v9 = vld [vmem:[#allocation2 + $0x1d8] sm:$0xf0]  ;;  %v1047_v12 = vor.u32 %v1176_v6, %v1044_v7  ;;  %v908_v14 = vld [vmem:[#allocation2 + $0x48] sm:$0xf0] }
  0x3c   : > { %659 = vmatpush.bf16.msra.mxu1 %v939_v37  ;;  %v1158_v15 = vld [vmem:[#allocation2 + $0xc4] sm:$0xf]  ;;  %v1111_v16 = vor.u32 %v1192_v8, %v1108_v9  ;;  %v972_v17 = vld [vmem:[#allocation2 + $0xc8] sm:$0xf0]  ;;  %v911_v22 = vor.u32 %v1142_v13, %v908_v14  ;;  %v1140_v25 = vld [vmem:[#allocation2 + $0x34] sm:$0xf] }
  0x3d   : > { %672 = vmatpush.bf16.msra.mxu2 %v1003_v38  ;;  %v1174_v18 = vld [vmem:[#allocation2 + $0x144] sm:$0xf]  ;;  %v1036_v19 = vld [vmem:[#allocation2 + $0x148] sm:$0xf0]  ;;  %v975_v23 = vor.u32 %v1158_v15, %v972_v17  ;;  %v900_v26 = vld [vmem:[#allocation2 + $0x38] sm:$0xf0] }
  0x3e   : > { %685 = vmatpush.bf16.msra.mxu3 %v1067_v42  ;;  %647 = vmatmul.bf16.vlgmr.msra.gmra.mxu0 %v1550_v60  ;;  %v1190_v20 = vld [vmem:[#allocation2 + $0x1c4] sm:$0xf]  ;;  %v1100_v21 = vld [vmem:[#allocation2 + $0x1c8] sm:$0xf0]  ;;  %v1039_v24 = vor.u32 %v1174_v18, %v1036_v19  ;;  %v1156_v27 = vld [vmem:[#allocation2 + $0xb4] sm:$0xf]  ;;  %v903_v34 = vor.u32 %v1140_v25, %v900_v26 }
  0x3f   : > { %691 = vmatpush.bf16.msrb.mxu0 %v935_v43  ;;  %660 = vmatmul.bf16.vlgmr.msra.gmra.mxu1 %v1552_v62  ;;  %v1103_v28 = vor.u32 %v1190_v20, %v1100_v21  ;;  %v964_v29 = vld [vmem:[#allocation2 + $0xb8] sm:$0xf0]  ;;  %v1172_v30 = vld [vmem:[#allocation2 + $0x134] sm:$0xf]  ;;  %v1138_v37 = vld [vmem:[#allocation2 + $0x24] sm:$0xf] }
  0x40   : > { %704 = vmatpush.bf16.msrb.mxu1 %v999_v45  ;;  %673 = vmatmul.bf16.vlgmr.msra.gmra.mxu2 %v1546_v56  ;;  %v1028_v31 = vld [vmem:[#allocation2 + $0x138] sm:$0xf0]  ;;  %v1188_v32 = vld [vmem:[#allocation2 + $0x1b4] sm:$0xf]  ;;  %v967_v35 = vor.u32 %v1156_v27, %v964_v29  ;;  %v892_v38 = vld [vmem:[#allocation2 + $0x28] sm:$0xf0] }
  0x41   : > { %717 = vmatpush.bf16.msrb.mxu2 %v1063_v46  ;;  %686 = vmatmul.bf16.vlgmr.msra.gmra.mxu3 %v1548_v59  ;;  %v1092_v33 = vld [vmem:[#allocation2 + $0x1b8] sm:$0xf0]  ;;  %v1031_v36 = vor.u32 %v1172_v30, %v1028_v31  ;;  %v1154_v39 = vld [vmem:[#allocation2 + $0xa4] sm:$0xf]  ;;  %v956_v41 = vld [vmem:[#allocation2 + $0xa8] sm:$0xf0]  ;;  %v895_v46 = vor.u32 %v1138_v37, %v892_v38 }
  0x42   : > { %730 = vmatpush.bf16.msrb.mxu3 %v1127_v52  ;;  %v1095_v40 = vor.u32 %v1188_v32, %v1092_v33  ;;  %v1170_v42 = vld [vmem:[#allocation2 + $0x124] sm:$0xf]  ;;  %v1020_v43 = vld [vmem:[#allocation2 + $0x128] sm:$0xf0]  ;;  %v959_v47 = vor.u32 %v1154_v39, %v956_v41  ;;  %v1136_v49 = vld [vmem:[#allocation2 + $0x14] sm:$0xf] }
  0x43   : > { %692 = vmatpush.bf16.msrb.mxu0 %v927_v61  ;;  %v1186_v44 = vld [vmem:[#allocation2 + $0x1a4] sm:$0xf]  ;;  %v1084_v45 = vld [vmem:[#allocation2 + $0x1a8] sm:$0xf0]  ;;  %v1023_v48 = vor.u32 %v1170_v42, %v1020_v43  ;;  %v884_v50 = vld [vmem:[#allocation2 + $0x18] sm:$0xf0] }
  0x44   : > { %705 = vmatpush.bf16.msrb.mxu1 %v991_v63  ;;  %v1152_v51 = vld [vmem:[#allocation2 + $0x94] sm:$0xf]  ;;  %v1087_v52 = vor.u32 %v1186_v44, %v1084_v45  ;;  %v948_v53 = vld [vmem:[#allocation2 + $0x98] sm:$0xf0]  ;;  %v887_v61 = vor.u32 %v1136_v49, %v884_v50  ;;  %v1134_v1 = vld [vmem:[#allocation2 + $0x4] sm:$0xf] }
  0x45   : > { %718 = vmatpush.bf16.msrb.mxu2 %v1055_v0  ;;  %v1168_v54 = vld [vmem:[#allocation2 + $0x114] sm:$0xf]  ;;  %v1012_v55 = vld [vmem:[#allocation2 + $0x118] sm:$0xf0]  ;;  %v951_v63 = vor.u32 %v1152_v51, %v948_v53  ;;  %v876_v2 = vld [vmem:[#allocation2 + $0x8] sm:$0xf0] }
  0x46   : > { %731 = vmatpush.bf16.msrb.mxu3 %v1119_v4  ;;  %v1184_v57 = vld [vmem:[#allocation2 + $0x194] sm:$0xf]  ;;  %v1076_v58 = vld [vmem:[#allocation2 + $0x198] sm:$0xf0]  ;;  %v1015_v0 = vor.u32 %v1168_v54, %v1012_v55  ;;  %v1150_v3 = vld [vmem:[#allocation2 + $0x84] sm:$0xf] }
  0x47   : > { %693 = vmatpush.bf16.msrb.mxu0 %v919_v10  ;;  %v1079_v4 = vor.u32 %v1184_v57, %v1076_v58  ;;  %v940_v5 = vld [vmem:[#allocation2 + $0x88] sm:$0xf0]  ;;  %v1166_v6 = vld [vmem:[#allocation2 + $0x104] sm:$0xf]  ;;  %v879_v10 = vor.u32 %v1134_v1, %v876_v2  ;;  %v299_v14 = vld [vmem:[#allocation5] sm:$0x3] }
  0x48   : > { %706 = vmatpush.bf16.msrb.mxu1 %v983_v11  ;;  %v1004_v7 = vld [vmem:[#allocation2 + $0x108] sm:$0xf0]  ;;  %v1182_v8 = vld [vmem:[#allocation2 + $0x184] sm:$0xf]  ;;  %v943_v11 = vor.u32 %v1150_v3, %v940_v5  ;;  %v301_v15 = vperm.slane %v299_v14, 0  ;;  %s761_s8 = sshll.u32 %s224_s30, 4  ;;  %s762_s8 = int_to_ptr.vmem [resolvable:$true] %s761_s8 }
  0x49   : > { %719 = vmatpush.bf16.msrb.mxu2 %v1047_v12  ;;  %v1068_v9 = vld [vmem:[#allocation2 + $0x188] sm:$0xf0]  ;;  %v1007_v12 = vor.u32 %v1166_v6, %v1004_v7  ;;  %s763_s9 = sshll.u32 %s759_s7, 4  ;;  %s746_s10 = scalar_lea.sflag [#allocation4], %s222_s28  ;;  %s764_s9 = int_to_ptr.hbm [resolvable:$true] %s763_s9 }
  0x4a   : > { %732 = vmatpush.bf16.msrb.mxu3 %v1111_v16  ;;  %v1071_v13 = vor.u32 %v1182_v8, %v1068_v9  ;;  %s1351_s15 = sshra.s32 %s764_s9, 4  ;;  %s1357_s21 = scalar_lea.hbm %s1606_s3, 32  ;;  %s1352_s15 = int_to_ptr.hbm [resolvable:$true] %s1351_s15 }
  0x4b   : > { %694 = vmatpush.bf16.msrb.mxu0 %v911_v22  ;;  %s1353_s11 = scalar_lea.hbm %s1352_s15, 16  ;;  %p1358_p5 = scmp.lt.s32.totalorder %s1352_s15, %s1606_s3 }
  0x4c   : > { %707 = vmatpush.bf16.msrb.mxu1 %v975_v23  ;;  %p1354_p1 = scmp.ne.s32.totalorder %s1352_s15, %s1353_s11  ;;  %p1359_p6 = scmp.lt.s32.totalorder %s1357_s21, %s1353_s11 }
  0x4d   : > { %720 = vmatpush.bf16.msrb.mxu2 %v1039_v24  ;;  %v302_v24 = vperm.slane %v299_v14, 1 }
  0x4e   : > { %733 = vmatpush.bf16.msrb.mxu3 %v1103_v28  ;;  %p1355_p2 = pnand %p1354_p1, %p1489_p4  ;;  %p1360_p7 = por %p1359_p6, %p1358_p5 }
  0x4f   : > { %695 = vmatpush.bf16.msrb.mxu0 %v903_v34 }
  0x50   : > { %708 = vmatpush.bf16.msrb.mxu1 %v967_v35  ;;  %p1356_p3 = pneg %p1355_p2 }
  0x51   : > { %721 = vmatpush.bf16.msrb.mxu2 %v1031_v36 }
  0x52   : > { %734 = vmatpush.bf16.msrb.mxu3 %v1095_v40  ;;  %p1361_p9 = pnand %p1360_p7, %p1356_p3 }
  0x53   : > { %696 = vmatpush.bf16.msrb.mxu0 %v895_v46 }
  0x54   : > { %709 = vmatpush.bf16.msrb.mxu1 %v959_v47 }
  0x55   : > { %722 = vmatpush.bf16.msrb.mxu2 %v1023_v48 }
  0x56   : > { %735 = vmatpush.bf16.msrb.mxu3 %v1087_v52 }
  0x57   : > { %697 = vmatpush.bf16.msrb.mxu0 %v887_v61 }
  0x58   : > { %710 = vmatpush.bf16.msrb.mxu1 %v951_v63 }
  0x59   : > { %723 = vmatpush.bf16.msrb.mxu2 %v1015_v0 }
  0x5a   : > { %736 = vmatpush.bf16.msrb.mxu3 %v1079_v4 }
  0x5b   : > { %698 = vmatpush.bf16.msrb.mxu0 %v879_v10 }
  0x5c   : > { %711 = vmatpush.bf16.msrb.mxu1 %v943_v11 }
  0x5d   : > { %724 = vmatpush.bf16.msrb.mxu2 %v1007_v12 }
  0x5e   : > { %737 = vmatpush.bf16.msrb.mxu3 %v1071_v13  ;;  %699 = vmatmul.bf16.vlgmr.msrb.gmra.mxu0 %v1550_v60 }
  0x5f   : > { %712 = vmatmul.bf16.vlgmr.msrb.gmra.mxu1 %v1552_v62 }
  0x60   : > { %725 = vmatmul.bf16.vlgmr.msrb.gmra.mxu2 %v1546_v56 }
  0x61   : > { %738 = vmatmul.bf16.vlgmr.msrb.gmra.mxu3 %v1548_v59 }
  0xbb   : > { %v648_v16 = vpop.f32.mrf.mxu0 }
  0xbc   : > { %v649_v17 = vadd.f32 %v648_v16, %v301_v15  ;;  %v661_v18 = vpop.f32.mrf.mxu1 }
  0xbe   : > { %v662_v19 = vadd.f32 %v661_v18, %v649_v17 }
  0xc3   : > { %v674_v20 = vpop.f32.mrf.mxu2  ;;  %v650_v23 = vpop.f32.mrf.mxu0 }
  0xc4   : > { %v675_v21 = vadd.f32 %v674_v20, %v662_v19  ;;  %v687_v22 = vpop.f32.mrf.mxu3  ;;  %v663_v62 = vpop.f32.mrf.mxu1 }
  0xc6   : > { %v688_v60 = vadd.f32 %v687_v22, %v675_v21 }
  0xc8   : > { %743 = vst [vmem:[%s224_s30] sm:$0xff] %v688_v60 }
  0xcb   : > { %v676_v56 = vpop.f32.mrf.mxu2 }
  0xcc   : > { %v689_v59 = vpop.f32.mrf.mxu3 }
  0xdb   : > { %v700_v25 = vpop.f32.mrf.mxu0 }
  0xdc   : > { %v701_v26 = vadd.f32 %v700_v25, %v302_v24  ;;  %v713_v27 = vpop.f32.mrf.mxu1 }
  0xde   : > { %v714_v28 = vadd.f32 %v713_v27, %v701_v26 }
  0xe3   : > { %v726_v29 = vpop.f32.mrf.mxu2  ;;  %v702_v32 = vpop.f32.mrf.mxu0 }
  0xe4   : > { %v727_v30 = vadd.f32 %v726_v29, %v714_v28  ;;  %v739_v31 = vpop.f32.mrf.mxu3  ;;  %v715_v33 = vpop.f32.mrf.mxu1 }
  0xe6   : > { %v740_v34 = vadd.f32 %v739_v31, %v727_v30 }
  0xe8   : > { %744 = vst [vmem:[%s224_s30 + $0x8] sm:$0xff] %v740_v34 }
  0xe9   : > { %1364 = shalt.err (!%p1361_p9)
}
  0xea   : > { %1207 = dma.vmem_to_hbm [thread:$0]  (%p1489_p4), %s762_s8, 256, %s764_s9, %s746_s10  }
  0xeb   : > { %v728_v35 = vpop.f32.mrf.mxu2 }
  0xec   : > { %v741_v36 = vpop.f32.mrf.mxu3 }
  0xed PF: > { %p1224_p10 = scmp.ge.s32.totalorder %s1423_s17, 2  ;;  %s775_s27 = sand.u32 1, %s1403_s12  }
  0xee   : > { %s776_s28 = scalar_lea.sflag [#allocation4], %s775_s27 }
  0xef   : > { %p1217_p11 = pnand %p1224_p10, %p1496_p8 }
  0xf1   : > { %p1218_p12 = pneg %p1217_p11 }
  0xf3   : > { %1398 = dma.done.wait (%p1218_p12), %s776_s28, 256  }
  0xf4   : > { %1400 = vsyncadd (%p1218_p12), %s776_s28, 4294967040  ;;  %s18_s17 = sadd.s32 1, %s1423_s17   ;;  %s1611_s12 = smov %s1407_s13 }
  0xf5   : > { %p15_p13 = scmp.ge.s32.totalorder %s18_s17, 4   ;;  %s1612_s13 = smov %s1411_s14 }
  0xf6   : > { %s1613_s14 = smov %s1502_s25  ;;  %s1614_s15 = smov %s1419_s16 }
  0xf7   : > { %s1615_s16 = smov %s1617_s20  ;;  %17 = sbr.rel (!%p15_p13) target bundleno = 6 (0x6), region = 78 }
  0xfc   :  { %782 = vsyncpa [#allocation3], 1 }
  0xfd   :  { %784 = vsyncpa [#allocation3 + $0x1], 1 }
  0xfe   :  { %785 = vsyncpa [#allocation6], 1 }
  0xff   :  { %786 = vsyncpa [#allocation4], 1 }
 0x100   :  { %788 = vsyncpa [#allocation4 + $0x1], 1 }

// kernel: bert_encoder_forward.6
= control target key start
LH: loop header
LB: loop body
LE: loop exit
PB: predicated region body
PF: predicated region fallthrough
CT: control target
= control target key end

     0   :  { %12 = vsyncpa [#allocation3], 0  ;;  %s4646_s0 = inlined_call_operand.vmem [shape: bf16[16,512], index: 0, kind: input, shape index: {}]   ;;  %s4647_s1 = inlined_call_operand.hbm [shape: bf16[512,512], index: 1, kind: input, shape index: {}]   ;;  %s4648_s2 = inlined_call_operand.hbm [shape: f32[1,512], index: 2, kind: input, shape index: {}]   ;;  %s4649_s3 = inlined_call_operand.hbm [shape: bf16[512,512], index: 3, kind: input, shape index: {}]   ;;  %s4650_s4 = inlined_call_operand.hbm [shape: f32[1,512], index: 4, kind: input, shape index: {}]   ;;  %s4651_s5 = inlined_call_operand.hbm [shape: f32[1,512], index: 5, kind: input, shape index: {}]   ;;  %s4652_s6 = inlined_call_operand.hbm [shape: f32[1,512], index: 6, kind: input, shape index: {}]   ;;  %s4653_s7 = inlined_call_operand.vmem [shape: bf16[16,512], index: 7, kind: output, shape index: {}]  }
   0x1   :  { %13 = vsyncpa [#allocation5], 0 }
   0x2   :  { %14 = vsyncpa [#allocation8], 0 }
   0x3   :  { %15 = vsyncpa [#allocation11], 0  ;;  %s4384_s24 = smov 0  }
   0x4 LB: > { %s230_s27 = sshll.u32 %s4648_s2, 4  ;;  %s4393_s28 = sadd.s32 4294967295, %s4333_s24   ;;  %s4333_s24 = sphi %s4384_s24, %s21_s24   ;;  %s231_s27 = int_to_ptr.hbm [resolvable:$true] %s230_s27 }
   0x5   : > { %p2738_p0 = scmp.ge.s32.totalorder %s4333_s24, 1  ;;  %p204_p1 = scmp.lt.s32.totalorder %s4333_s24, 3 }
   0x6   : > { %p4088_p2 = scmp.eq.s32.totalorder %s4393_s28, 0  ;;  %s4335_s30 = smov [#allocation4]  }
   0x7   : > { %p4398_p3 = pnand %p2738_p0, %p204_p1  ;;  %s232_s8 = sshll.u32 %s4335_s30, 4  ;;  %s233_s8 = int_to_ptr.vmem [resolvable:$true] %s232_s8 }
   0x8   : > { %s256_s11 = sshll.u32 %s4650_s4, 4  ;;  %s215_s14 = sshll.u32 %s4647_s1, 4  ;;  %s257_s11 = int_to_ptr.hbm [resolvable:$true] %s256_s11  ;;  %s216_s14 = int_to_ptr.hbm [resolvable:$true] %s215_s14 }
   0x9   : > { %p4069_p4 = pneg %p4398_p3  ;;  %s4336_s16 = smov [#allocation7]  }
   0xa   : > { %s258_s17 = sshll.u32 %s4336_s16, 4  ;;  %s4337_s18 = smov [#allocation2]   ;;  %s259_s17 = int_to_ptr.vmem [resolvable:$true] %s258_s17 }
   0xb   : > { %p4412_p5 = pnand %p4088_p2, %p4069_p4  ;;  %s217_s19 = sshll.u32 %s4337_s18, 4  ;;  %s218_s19 = int_to_ptr.vmem [resolvable:$true] %s217_s19 }
   0xc   : > { %s4338_s20 = smov 256   ;;  %s4339_s21 = smov 16  }
   0xd   : > { %4075 = dma.hbm_to_vmem [thread:$0]  (!%p4412_p5), %s231_s27, 64, %s233_s8, [#allocation5]  }
   0xe   : > { %4081 = dma.hbm_to_vmem [thread:$0]  (!%p4412_p5), %s257_s11, 64, %s259_s17, [#allocation8]  }
   0xf   : > { %4072 = dma.hbm_to_vmem [thread:$0]  (!%p4412_p5), %s216_s14, 16384, %s218_s19, [#allocation3], %s4338_s20, %s4338_s20, %s4339_s21  }
  0x10   : > { %s241_s25 = sshll.u32 %s4649_s3, 4  ;;  %s4340_s26 = smov [#allocation6]   ;;  %s242_s25 = int_to_ptr.hbm [resolvable:$true] %s241_s25 }
  0x11   : > { %s243_s30 = sshll.u32 %s4340_s26, 4  ;;  %s268_s9 = sshll.u32 %s4651_s5, 4  ;;  %s244_s30 = int_to_ptr.vmem [resolvable:$true] %s243_s30  ;;  %s269_s9 = int_to_ptr.hbm [resolvable:$true] %s268_s9 }
  0x12   : > { %4078 = dma.hbm_to_vmem [thread:$0]  (!%p4412_p5), %s242_s25, 16384, %s244_s30, [#allocation5], %s4338_s20, %s4338_s20, %s4339_s21  }
  0x13   : > { %s4341_s10 = smov [#allocation9]   ;;  %s280_s14 = sshll.u32 %s4652_s6, 4  ;;  %s281_s14 = int_to_ptr.hbm [resolvable:$true] %s280_s14 }
  0x14   : > { %s270_s11 = sshll.u32 %s4341_s10, 4  ;;  %s4342_s16 = smov [#allocation10]   ;;  %s271_s11 = int_to_ptr.vmem [resolvable:$true] %s270_s11 }
  0x15   : > { %4084 = dma.hbm_to_vmem [thread:$0]  (!%p4412_p5), %s269_s9, 64, %s271_s11, [#allocation8]  }
  0x16   : > { %s282_s17 = sshll.u32 %s4342_s16, 4  ;;  %303 = sbr.rel (%p4398_p3) target bundleno = 833 (0x341), region = 48  ;;  %s283_s17 = int_to_ptr.vmem [resolvable:$true] %s282_s17 }
  0x17   : > { %4087 = dma.hbm_to_vmem [thread:$0]  (!%p4412_p5), %s281_s14, 64, %s283_s17, [#allocation11]  }
  0x1b   : > { %4316 = dma.done.wait (%p4088_p2), [#allocation3], 16384  }
  0x1c   : > { %4318 = vsyncadd (%p4088_p2), [#allocation3], 4294950912 }
  0x1d   : > { %4320 = dma.done.wait (%p4088_p2), [#allocation5], 16448  }
  0x1e   : > { %4322 = vsyncadd (%p4088_p2), [#allocation5], 4294950848 }
  0x1f   : > { %4324 = dma.done.wait (%p4088_p2), [#allocation8], 128  }
  0x20   : > { %4326 = vsyncadd (%p4088_p2), [#allocation8], 4294967168 }
  0x21   : > { %4328 = dma.done.wait (%p4088_p2), [#allocation11], 64  }
  0x22   : > { %4330 = vsyncadd (%p4088_p2), [#allocation11], 4294967232  ;;  %v2871_v0 = vld [vmem:[#allocation2 + $0xe0] sm:$0xf]  ;;  %v3819_v1 = vld [vmem:[#allocation2 + $0xec] sm:$0xf0] }
  0x23   : > { %v2999_v2 = vld [vmem:[#allocation2 + $0x1e0] sm:$0xf]  ;;  %v2872_v3 = vor.u32 %v3819_v1, %v2871_v0  ;;  %v3851_v4 = vld [vmem:[#allocation2 + $0x1ec] sm:$0xf0]  ;;  %p361_p6 = scmp.lt.s32.totalorder %s4393_s28, 1 }
  0x24   : > { %v3127_v5 = vld [vmem:[#allocation2 + $0x2e0] sm:$0xf]  ;;  %v3883_v6 = vld [vmem:[#allocation2 + $0x2ec] sm:$0xf0]  ;;  %v3000_v7 = vor.u32 %v3851_v4, %v2999_v2 }
  0x25   : > { %v3128_v8 = vor.u32 %v3883_v6, %v3127_v5  ;;  %v3255_v9 = vld [vmem:[#allocation2 + $0x3e0] sm:$0xf]  ;;  %v3915_v10 = vld [vmem:[#allocation2 + $0x3ec] sm:$0xf0]  ;;  %1165 = vmatpush.bf16.msra.mxu0 %v2872_v3  ;;  %s4657_s28 = smov (!%p361_p6, %s4393_s28), 1 }
  0x26   : > { %v2855_v11 = vld [vmem:[#allocation2 + $0xc0] sm:$0xf]  ;;  %v3256_v12 = vor.u32 %v3915_v10, %v3255_v9  ;;  %v3815_v13 = vld [vmem:[#allocation2 + $0xcc] sm:$0xf0]  ;;  %1178 = vmatpush.bf16.msra.mxu1 %v3000_v7  ;;  %s3787_s29 = sshll.u32 %s4657_s28, 4 }
  0x27   : > { %v2983_v14 = vld [vmem:[#allocation2 + $0x1c0] sm:$0xf]  ;;  %v3847_v15 = vld [vmem:[#allocation2 + $0x1cc] sm:$0xf0]  ;;  %1191 = vmatpush.bf16.msra.mxu2 %v3128_v8  ;;  %v2856_v16 = vor.u32 %v3815_v13, %v2855_v11  ;;  %s4467_s19 = scalar_lea.vmem %s4646_s0, %s3787_s29  ;;  %s370_s22 = scalar_lea.vmem %s4653_s7, %s3787_s29 }
  0x28   : > { %v2984_v17 = vor.u32 %v3847_v15, %v2983_v14  ;;  %v3111_v18 = vld [vmem:[#allocation2 + $0x2c0] sm:$0xf]  ;;  %v3879_v19 = vld [vmem:[#allocation2 + $0x2cc] sm:$0xf0]  ;;  %1204 = vmatpush.bf16.msra.mxu3 %v3256_v12 }
  0x29   : > { %v3239_v20 = vld [vmem:[#allocation2 + $0x3c0] sm:$0xf]  ;;  %v3112_v21 = vor.u32 %v3879_v19, %v3111_v18  ;;  %v3911_v22 = vld [vmem:[#allocation2 + $0x3cc] sm:$0xf0]  ;;  %1166 = vmatpush.bf16.msra.mxu0 %v2856_v16 }
  0x2a   : > { %v2839_v23 = vld [vmem:[#allocation2 + $0xa0] sm:$0xf]  ;;  %v3811_v24 = vld [vmem:[#allocation2 + $0xac] sm:$0xf0]  ;;  %v3240_v25 = vor.u32 %v3911_v22, %v3239_v20  ;;  %1179 = vmatpush.bf16.msra.mxu1 %v2984_v17 }
  0x2b   : > { %v2967_v26 = vld [vmem:[#allocation2 + $0x1a0] sm:$0xf]  ;;  %v3843_v27 = vld [vmem:[#allocation2 + $0x1ac] sm:$0xf0]  ;;  %v2840_v29 = vor.u32 %v3811_v24, %v2839_v23  ;;  %1192 = vmatpush.bf16.msra.mxu2 %v3112_v21 }
  0x2c   : > { %v3095_v28 = vld [vmem:[#allocation2 + $0x2a0] sm:$0xf]  ;;  %v3875_v30 = vld [vmem:[#allocation2 + $0x2ac] sm:$0xf0]  ;;  %v2968_v33 = vor.u32 %v3843_v27, %v2967_v26  ;;  %1205 = vmatpush.bf16.msra.mxu3 %v3240_v25  ;;  %v372_v25 = vld [vmem:[%s4467_s19 + $0x8] sm:$0xff] }
  0x2d   : > { %v3223_v31 = vld [vmem:[#allocation2 + $0x3a0] sm:$0xf]  ;;  %v3907_v32 = vld [vmem:[#allocation2 + $0x3ac] sm:$0xf0]  ;;  %v3096_v34 = vor.u32 %v3875_v30, %v3095_v28  ;;  %1167 = vmatpush.bf16.msra.mxu0 %v2840_v29  ;;  %v3817_v30 = vld [vmem:[#allocation2 + $0xe4] sm:$0xf] }
  0x2e   : > { %v2823_v35 = vld [vmem:[#allocation2 + $0x80] sm:$0xf]  ;;  %v3807_v36 = vld [vmem:[#allocation2 + $0x8c] sm:$0xf0]  ;;  %v3224_v38 = vor.u32 %v3907_v32, %v3223_v31  ;;  %1180 = vmatpush.bf16.msra.mxu1 %v2968_v33  ;;  %v2873_v31 = vld [vmem:[#allocation2 + $0xf0] sm:$0xf0] }
  0x2f   : > { %v2951_v37 = vld [vmem:[#allocation2 + $0x180] sm:$0xf]  ;;  %v3839_v39 = vld [vmem:[#allocation2 + $0x18c] sm:$0xf0]  ;;  %v2824_v44 = vor.u32 %v3807_v36, %v2823_v35  ;;  %1193 = vmatpush.bf16.msra.mxu2 %v3096_v34  ;;  %v3849_v32 = vld [vmem:[#allocation2 + $0x1e4] sm:$0xf] }
  0x30   : > { %v3079_v40 = vld [vmem:[#allocation2 + $0x280] sm:$0xf]  ;;  %v3871_v41 = vld [vmem:[#allocation2 + $0x28c] sm:$0xf0]  ;;  %v2952_v45 = vor.u32 %v3839_v39, %v2951_v37  ;;  %1206 = vmatpush.bf16.msra.mxu3 %v3224_v38  ;;  %v3001_v34 = vld [vmem:[#allocation2 + $0x1f0] sm:$0xf0]  ;;  %v515_v37 = vunpack.c.l.b16 %v372_v25 }
  0x31   : > { %v3207_v42 = vld [vmem:[#allocation2 + $0x380] sm:$0xf]  ;;  %v3903_v43 = vld [vmem:[#allocation2 + $0x38c] sm:$0xf0]  ;;  %v3080_v46 = vor.u32 %v3871_v41, %v3079_v40  ;;  %1168 = vmatpush.bf16.msra.mxu0 %v2824_v44  ;;  %v3881_v35 = vld [vmem:[#allocation2 + $0x2e4] sm:$0xf] }
  0x32   : > { %v2807_v47 = vld [vmem:[#allocation2 + $0x60] sm:$0xf]  ;;  %v3803_v48 = vld [vmem:[#allocation2 + $0x6c] sm:$0xf0]  ;;  %v3208_v50 = vor.u32 %v3903_v43, %v3207_v42  ;;  %1181 = vmatpush.bf16.msra.mxu1 %v2952_v45  ;;  %v3129_v36 = vld [vmem:[#allocation2 + $0x2f0] sm:$0xf0]  ;;  %v516_v43 = vunpack.c.h.b16 %v372_v25  ;;  %v2876_v45 = vor.u32 %v3817_v30, %v2873_v31 }
  0x33   : > { %v2935_v49 = vld [vmem:[#allocation2 + $0x160] sm:$0xf]  ;;  %v3835_v51 = vld [vmem:[#allocation2 + $0x16c] sm:$0xf0]  ;;  %v2808_v56 = vor.u32 %v3803_v48, %v2807_v47  ;;  %1194 = vmatpush.bf16.msra.mxu2 %v3080_v46  ;;  %v3913_v40 = vld [vmem:[#allocation2 + $0x3e4] sm:$0xf]  ;;  %v3004_v47 = vor.u32 %v3849_v32, %v3001_v34  ;;  %v3132_v48 = vor.u32 %v3881_v35, %v3129_v36 }
  0x34   : > { %v3063_v52 = vld [vmem:[#allocation2 + $0x260] sm:$0xf]  ;;  %v3867_v53 = vld [vmem:[#allocation2 + $0x26c] sm:$0xf0]  ;;  %v2936_v57 = vor.u32 %v3835_v51, %v2935_v49  ;;  %1207 = vmatpush.bf16.msra.mxu3 %v3208_v50  ;;  %v3257_v41 = vld [vmem:[#allocation2 + $0x3f0] sm:$0xf0] }
  0x35   : > { %v3191_v54 = vld [vmem:[#allocation2 + $0x360] sm:$0xf]  ;;  %v3899_v55 = vld [vmem:[#allocation2 + $0x36c] sm:$0xf0]  ;;  %v3064_v58 = vor.u32 %v3867_v53, %v3063_v52  ;;  %1169 = vmatpush.bf16.msra.mxu0 %v2808_v56  ;;  %v3813_v49 = vld [vmem:[#allocation2 + $0xc4] sm:$0xf]  ;;  %v3260_v52 = vor.u32 %v3913_v40, %v3257_v41  ;;  %v4471_v53 = vpack.c.b16 %v515_v37, %v515_v37 }
  0x36   : > { %v2791_v59 = vld [vmem:[#allocation2 + $0x40] sm:$0xf]  ;;  %v3799_v60 = vld [vmem:[#allocation2 + $0x4c] sm:$0xf0]  ;;  %v3192_v62 = vor.u32 %v3899_v55, %v3191_v54  ;;  %1182 = vmatpush.bf16.msra.mxu1 %v2936_v57  ;;  %v2857_v50 = vld [vmem:[#allocation2 + $0xd0] sm:$0xf0] }
  0x37   : > { %v2919_v61 = vld [vmem:[#allocation2 + $0x140] sm:$0xf]  ;;  %v3831_v63 = vld [vmem:[#allocation2 + $0x14c] sm:$0xf0]  ;;  %v2792_v4 = vor.u32 %v3799_v60, %v2791_v59  ;;  %1195 = vmatpush.bf16.msra.mxu2 %v3064_v58  ;;  %v3845_v51 = vld [vmem:[#allocation2 + $0x1c4] sm:$0xf]  ;;  %v4475_v58 = vpack.c.b16 %v516_v43, %v516_v43 }
  0x38   : > { %v3047_v0 = vld [vmem:[#allocation2 + $0x240] sm:$0xf]  ;;  %v3863_v1 = vld [vmem:[#allocation2 + $0x24c] sm:$0xf0]  ;;  %v2920_v5 = vor.u32 %v3831_v63, %v2919_v61  ;;  %1208 = vmatpush.bf16.msra.mxu3 %v3192_v62  ;;  %v2985_v54 = vld [vmem:[#allocation2 + $0x1d0] sm:$0xf0]  ;;  %v2860_v61 = vor.u32 %v3813_v49, %v2857_v50 }
  0x39   : > { %v3175_v2 = vld [vmem:[#allocation2 + $0x340] sm:$0xf]  ;;  %v3895_v3 = vld [vmem:[#allocation2 + $0x34c] sm:$0xf0]  ;;  %v3048_v6 = vor.u32 %v3863_v1, %v3047_v0  ;;  %1170 = vmatpush.bf16.msra.mxu0 %v2792_v4  ;;  %v3877_v55 = vld [vmem:[#allocation2 + $0x2c4] sm:$0xf]  ;;  %v2988_v63 = vor.u32 %v3845_v51, %v2985_v54 }
  0x3a   : > { %v2775_v7 = vld [vmem:[#allocation2 + $0x20] sm:$0xf]  ;;  %v3795_v8 = vld [vmem:[#allocation2 + $0x2c] sm:$0xf0]  ;;  %v3176_v10 = vor.u32 %v3895_v3, %v3175_v2  ;;  %1183 = vmatpush.bf16.msra.mxu1 %v2920_v5  ;;  %v3113_v56 = vld [vmem:[#allocation2 + $0x2d0] sm:$0xf0] }
  0x3b   : > { %v2903_v9 = vld [vmem:[#allocation2 + $0x120] sm:$0xf]  ;;  %v3827_v11 = vld [vmem:[#allocation2 + $0x12c] sm:$0xf0]  ;;  %v2776_v17 = vor.u32 %v3795_v8, %v2775_v7  ;;  %1196 = vmatpush.bf16.msra.mxu2 %v3048_v6  ;;  %v3909_v59 = vld [vmem:[#allocation2 + $0x3c4] sm:$0xf]  ;;  %v3116_v0 = vor.u32 %v3877_v55, %v3113_v56 }
  0x3c   : > { %v3031_v12 = vld [vmem:[#allocation2 + $0x220] sm:$0xf]  ;;  %v3859_v13 = vld [vmem:[#allocation2 + $0x22c] sm:$0xf0]  ;;  %v2904_v21 = vor.u32 %v3827_v11, %v2903_v9  ;;  %1209 = vmatpush.bf16.msra.mxu3 %v3176_v10  ;;  %v3241_v60 = vld [vmem:[#allocation2 + $0x3d0] sm:$0xf0] }
  0x3d   : > { %v3159_v14 = vld [vmem:[#allocation2 + $0x320] sm:$0xf]  ;;  %v3891_v15 = vld [vmem:[#allocation2 + $0x32c] sm:$0xf0]  ;;  %v3032_v22 = vor.u32 %v3859_v13, %v3031_v12  ;;  %1171 = vmatpush.bf16.msra.mxu0 %v2776_v17  ;;  %v3809_v1 = vld [vmem:[#allocation2 + $0xa4] sm:$0xf]  ;;  %v3244_v4 = vor.u32 %v3909_v59, %v3241_v60 }
  0x3e   : > { %v2759_v16 = vld [vmem:[#allocation2] sm:$0xf]  ;;  %v3791_v18 = vld [vmem:[#allocation2 + $0xc] sm:$0xf0]  ;;  %v3160_v26 = vor.u32 %v3891_v15, %v3159_v14  ;;  %1184 = vmatpush.bf16.msra.mxu1 %v2904_v21  ;;  %v2841_v2 = vld [vmem:[#allocation2 + $0xb0] sm:$0xf0] }
  0x3f   : > { %v2887_v19 = vld [vmem:[#allocation2 + $0x100] sm:$0xf]  ;;  %v3823_v20 = vld [vmem:[#allocation2 + $0x10c] sm:$0xf0]  ;;  %v2760_v33 = vor.u32 %v3791_v18, %v2759_v16  ;;  %1197 = vmatpush.bf16.msra.mxu2 %v3032_v22  ;;  %v3841_v3 = vld [vmem:[#allocation2 + $0x1a4] sm:$0xf]  ;;  %v2844_v10 = vor.u32 %v3809_v1, %v2841_v2 }
  0x40   : > { %v3015_v23 = vld [vmem:[#allocation2 + $0x200] sm:$0xf]  ;;  %v3855_v24 = vld [vmem:[#allocation2 + $0x20c] sm:$0xf0]  ;;  %v2888_v38 = vor.u32 %v3823_v20, %v2887_v19  ;;  %1210 = vmatpush.bf16.msra.mxu3 %v3160_v26  ;;  %v2969_v5 = vld [vmem:[#allocation2 + $0x1b0] sm:$0xf0] }
  0x41   : > { %v3143_v27 = vld [vmem:[#allocation2 + $0x300] sm:$0xf]  ;;  %v3887_v28 = vld [vmem:[#allocation2 + $0x30c] sm:$0xf0]  ;;  %v3016_v39 = vor.u32 %v3855_v24, %v3015_v23  ;;  %1172 = vmatpush.bf16.msra.mxu0 %v2760_v33  ;;  %v3873_v6 = vld [vmem:[#allocation2 + $0x2a4] sm:$0xf]  ;;  %v2972_v11 = vor.u32 %v3841_v3, %v2969_v5 }
  0x42   : > { %v371_v29 = vld [vmem:[%s4467_s19] sm:$0xff]  ;;  %v3144_v44 = vor.u32 %v3887_v28, %v3143_v27  ;;  %1185 = vmatpush.bf16.msra.mxu1 %v2888_v38  ;;  %v3097_v7 = vld [vmem:[#allocation2 + $0x2b0] sm:$0xf0] }
  0x43   : > { %v513_v42 = vunpack.c.l.b16 %v371_v29  ;;  %v514_v46 = vunpack.c.h.b16 %v371_v29  ;;  %1198 = vmatpush.bf16.msra.mxu2 %v3016_v39  ;;  %v3905_v8 = vld [vmem:[#allocation2 + $0x3a4] sm:$0xf]  ;;  %v3225_v9 = vld [vmem:[#allocation2 + $0x3b0] sm:$0xf0]  ;;  %v3100_v12 = vor.u32 %v3873_v6, %v3097_v7 }
  0x44   : > { %1211 = vmatpush.bf16.msra.mxu3 %v3144_v44  ;;  %v3805_v13 = vld [vmem:[#allocation2 + $0x84] sm:$0xf]  ;;  %v2825_v14 = vld [vmem:[#allocation2 + $0x90] sm:$0xf0]  ;;  %v3228_v16 = vor.u32 %v3905_v8, %v3225_v9 }
  0x45   : > { %v4473_v57 = vpack.c.b16 %v513_v42, %v513_v42  ;;  %1217 = vmatpush.bf16.msrb.mxu0 %v2876_v45  ;;  %v4477_v62 = vpack.c.b16 %v514_v46, %v514_v46  ;;  %v3837_v15 = vld [vmem:[#allocation2 + $0x184] sm:$0xf]  ;;  %v2953_v17 = vld [vmem:[#allocation2 + $0x190] sm:$0xf0]  ;;  %v2828_v22 = vor.u32 %v3805_v13, %v2825_v14  ;;  %v3852_v14 = vld [vmem:[#allocation2 + $0x1f4] sm:$0xf0] }
  0x46   : > { %1230 = vmatpush.bf16.msrb.mxu1 %v3004_v47  ;;  %1199 = vmatmul.bf16.vlgmr.msra.gmra.mxu2 %v4471_v53  ;;  %v3869_v18 = vld [vmem:[#allocation2 + $0x284] sm:$0xf]  ;;  %v3081_v19 = vld [vmem:[#allocation2 + $0x290] sm:$0xf0]  ;;  %v2956_v23 = vor.u32 %v3837_v15, %v2953_v17  ;;  %v3135_v15 = vld [vmem:[#allocation2 + $0x2e8] sm:$0xf] }
  0x47   : > { %1243 = vmatpush.bf16.msrb.mxu2 %v3132_v48  ;;  %1173 = vmatmul.bf16.vlgmr.msra.gmra.mxu0 %v4473_v57  ;;  %v3901_v20 = vld [vmem:[#allocation2 + $0x384] sm:$0xf]  ;;  %v3209_v21 = vld [vmem:[#allocation2 + $0x390] sm:$0xf0]  ;;  %v3084_v24 = vor.u32 %v3869_v18, %v3081_v19  ;;  %v3263_v19 = vld [vmem:[#allocation2 + $0x3e8] sm:$0xf] }
  0x48   : > { %1256 = vmatpush.bf16.msrb.mxu3 %v3260_v52  ;;  %1186 = vmatmul.bf16.vlgmr.msra.gmra.mxu1 %v4477_v62  ;;  %v3801_v25 = vld [vmem:[#allocation2 + $0x64] sm:$0xf]  ;;  %v2809_v26 = vld [vmem:[#allocation2 + $0x70] sm:$0xf0]  ;;  %v3212_v28 = vor.u32 %v3901_v20, %v3209_v21  ;;  %v3916_v20 = vld [vmem:[#allocation2 + $0x3f4] sm:$0xf0] }
  0x49   : > { %1212 = vmatmul.bf16.vlgmr.msra.gmra.mxu3 %v4475_v58  ;;  %1218 = vmatpush.bf16.msrb.mxu0 %v2860_v61  ;;  %v3833_v27 = vld [vmem:[#allocation2 + $0x164] sm:$0xf]  ;;  %v2937_v29 = vld [vmem:[#allocation2 + $0x170] sm:$0xf0]  ;;  %v2812_v34 = vor.u32 %v3801_v25, %v2809_v26  ;;  %v2863_v25 = vld [vmem:[#allocation2 + $0xc8] sm:$0xf] }
  0x4a   : > { %1231 = vmatpush.bf16.msrb.mxu1 %v2988_v63  ;;  %v3865_v30 = vld [vmem:[#allocation2 + $0x264] sm:$0xf]  ;;  %v3065_v31 = vld [vmem:[#allocation2 + $0x270] sm:$0xf0]  ;;  %v2940_v35 = vor.u32 %v3833_v27, %v2937_v29  ;;  %v3816_v26 = vld [vmem:[#allocation2 + $0xd4] sm:$0xf0] }
  0x4b   : > { %1244 = vmatpush.bf16.msrb.mxu2 %v3116_v0  ;;  %v3897_v32 = vld [vmem:[#allocation2 + $0x364] sm:$0xf]  ;;  %v3193_v33 = vld [vmem:[#allocation2 + $0x370] sm:$0xf0]  ;;  %v3068_v36 = vor.u32 %v3865_v30, %v3065_v31  ;;  %v2991_v27 = vld [vmem:[#allocation2 + $0x1c8] sm:$0xf] }
  0x4c   : > { %1257 = vmatpush.bf16.msrb.mxu3 %v3244_v4  ;;  %v3797_v37 = vld [vmem:[#allocation2 + $0x44] sm:$0xf]  ;;  %v2793_v38 = vld [vmem:[#allocation2 + $0x50] sm:$0xf0]  ;;  %v3196_v40 = vor.u32 %v3897_v32, %v3193_v33  ;;  %v3848_v29 = vld [vmem:[#allocation2 + $0x1d4] sm:$0xf0] }
  0x4d   : > { %1219 = vmatpush.bf16.msrb.mxu0 %v2844_v10  ;;  %v3829_v39 = vld [vmem:[#allocation2 + $0x144] sm:$0xf]  ;;  %v2921_v41 = vld [vmem:[#allocation2 + $0x150] sm:$0xf0]  ;;  %v2796_v46 = vor.u32 %v3797_v37, %v2793_v38  ;;  %v2879_v10 = vld [vmem:[#allocation2 + $0xe8] sm:$0xf] }
  0x4e   : > { %1232 = vmatpush.bf16.msrb.mxu1 %v2972_v11  ;;  %v3861_v42 = vld [vmem:[#allocation2 + $0x244] sm:$0xf]  ;;  %v3049_v43 = vld [vmem:[#allocation2 + $0x250] sm:$0xf0]  ;;  %v2924_v47 = vor.u32 %v3829_v39, %v2921_v41  ;;  %v3820_v11 = vld [vmem:[#allocation2 + $0xf4] sm:$0xf0] }
  0x4f   : > { %1245 = vmatpush.bf16.msrb.mxu2 %v3100_v12  ;;  %v3893_v44 = vld [vmem:[#allocation2 + $0x344] sm:$0xf]  ;;  %v3177_v45 = vld [vmem:[#allocation2 + $0x350] sm:$0xf0]  ;;  %v3052_v48 = vor.u32 %v3861_v42, %v3049_v43  ;;  %v3007_v12 = vld [vmem:[#allocation2 + $0x1e8] sm:$0xf] }
  0x50   : > { %1258 = vmatpush.bf16.msrb.mxu3 %v3228_v16  ;;  %v3793_v49 = vld [vmem:[#allocation2 + $0x24] sm:$0xf]  ;;  %v2777_v50 = vld [vmem:[#allocation2 + $0x30] sm:$0xf0]  ;;  %v3180_v52 = vor.u32 %v3893_v44, %v3177_v45  ;;  %v3884_v16 = vld [vmem:[#allocation2 + $0x2f4] sm:$0xf0] }
  0x51   : > { %1220 = vmatpush.bf16.msrb.mxu0 %v2828_v22  ;;  %v3825_v51 = vld [vmem:[#allocation2 + $0x124] sm:$0xf]  ;;  %v2905_v54 = vld [vmem:[#allocation2 + $0x130] sm:$0xf0]  ;;  %v2780_v61 = vor.u32 %v3793_v49, %v2777_v50  ;;  %v2880_v22 = vor.u32 %v3820_v11, %v2879_v10  ;;  %v3119_v30 = vld [vmem:[#allocation2 + $0x2c8] sm:$0xf] }
  0x52   : > { %1233 = vmatpush.bf16.msrb.mxu1 %v2956_v23  ;;  %v3857_v55 = vld [vmem:[#allocation2 + $0x224] sm:$0xf]  ;;  %v3033_v56 = vld [vmem:[#allocation2 + $0x230] sm:$0xf0]  ;;  %v2908_v1 = vor.u32 %v3825_v51, %v2905_v54  ;;  %v3008_v23 = vor.u32 %v3852_v14, %v3007_v12  ;;  %v3880_v31 = vld [vmem:[#allocation2 + $0x2d4] sm:$0xf0] }
  0x53   : > { %1246 = vmatpush.bf16.msrb.mxu2 %v3084_v24  ;;  %v3889_v59 = vld [vmem:[#allocation2 + $0x324] sm:$0xf]  ;;  %v3161_v60 = vld [vmem:[#allocation2 + $0x330] sm:$0xf0]  ;;  %v3036_v2 = vor.u32 %v3857_v55, %v3033_v56  ;;  %v3136_v24 = vor.u32 %v3884_v16, %v3135_v15  ;;  %v3247_v32 = vld [vmem:[#allocation2 + $0x3c8] sm:$0xf] }
  0x54   : > { %1259 = vmatpush.bf16.msrb.mxu3 %v3212_v28  ;;  %v3789_v63 = vld [vmem:[#allocation2 + $0x4] sm:$0xf]  ;;  %v2761_v0 = vld [vmem:[#allocation2 + $0x10] sm:$0xf0]  ;;  %v3164_v6 = vor.u32 %v3889_v59, %v3161_v60  ;;  %v3264_v28 = vor.u32 %v3916_v20, %v3263_v19  ;;  %v3912_v33 = vld [vmem:[#allocation2 + $0x3d4] sm:$0xf0] }
  0x55   : > { %1221 = vmatpush.bf16.msrb.mxu0 %v2812_v34  ;;  %v3821_v3 = vld [vmem:[#allocation2 + $0x104] sm:$0xf]  ;;  %v2889_v4 = vld [vmem:[#allocation2 + $0x110] sm:$0xf0]  ;;  %v2764_v13 = vor.u32 %v3789_v63, %v2761_v0  ;;  %v2864_v34 = vor.u32 %v3816_v26, %v2863_v25  ;;  %v2847_v37 = vld [vmem:[#allocation2 + $0xa8] sm:$0xf] }
  0x56   : > { %1234 = vmatpush.bf16.msrb.mxu1 %v2940_v35  ;;  %v3853_v5 = vld [vmem:[#allocation2 + $0x204] sm:$0xf]  ;;  %v3017_v7 = vld [vmem:[#allocation2 + $0x210] sm:$0xf0]  ;;  %v2892_v17 = vor.u32 %v3821_v3, %v2889_v4  ;;  %v2992_v35 = vor.u32 %v3848_v29, %v2991_v27  ;;  %v3812_v38 = vld [vmem:[#allocation2 + $0xb4] sm:$0xf0] }
  0x57   : > { %1247 = vmatpush.bf16.msrb.mxu2 %v3068_v36  ;;  %v3885_v8 = vld [vmem:[#allocation2 + $0x304] sm:$0xf]  ;;  %v3145_v9 = vld [vmem:[#allocation2 + $0x310] sm:$0xf0]  ;;  %v3020_v18 = vor.u32 %v3853_v5, %v3017_v7  ;;  %v3120_v36 = vor.u32 %v3880_v31, %v3119_v30  ;;  %v2975_v39 = vld [vmem:[#allocation2 + $0x1a8] sm:$0xf] }
  0x58   : > { %1260 = vmatpush.bf16.msrb.mxu3 %v3196_v40  ;;  %v3148_v21 = vor.u32 %v3885_v8, %v3145_v9  ;;  %v3248_v40 = vor.u32 %v3912_v33, %v3247_v32  ;;  %v3844_v41 = vld [vmem:[#allocation2 + $0x1b4] sm:$0xf0]  ;;  %v3103_v42 = vld [vmem:[#allocation2 + $0x2a8] sm:$0xf] }
  0x59   : > { %1222 = vmatpush.bf16.msrb.mxu0 %v2796_v46  ;;  %v3876_v43 = vld [vmem:[#allocation2 + $0x2b4] sm:$0xf0]  ;;  %v3231_v44 = vld [vmem:[#allocation2 + $0x3a8] sm:$0xf]  ;;  %v2848_v46 = vor.u32 %v3812_v38, %v2847_v37 }
  0x5a   : > { %1235 = vmatpush.bf16.msrb.mxu1 %v2924_v47  ;;  %v3908_v45 = vld [vmem:[#allocation2 + $0x3b4] sm:$0xf0]  ;;  %v2976_v47 = vor.u32 %v3844_v41, %v2975_v39  ;;  %v2831_v49 = vld [vmem:[#allocation2 + $0x88] sm:$0xf] }
  0x5b   : > { %1248 = vmatpush.bf16.msrb.mxu2 %v3052_v48  ;;  %v3104_v48 = vor.u32 %v3876_v43, %v3103_v42  ;;  %v3808_v50 = vld [vmem:[#allocation2 + $0x94] sm:$0xf0]  ;;  %v2959_v51 = vld [vmem:[#allocation2 + $0x188] sm:$0xf] }
  0x5c   : > { %1261 = vmatpush.bf16.msrb.mxu3 %v3180_v52  ;;  %v3232_v52 = vor.u32 %v3908_v45, %v3231_v44  ;;  %v3840_v54 = vld [vmem:[#allocation2 + $0x194] sm:$0xf0]  ;;  %v3087_v55 = vld [vmem:[#allocation2 + $0x288] sm:$0xf] }
  0x5d   : > { %1223 = vmatpush.bf16.msrb.mxu0 %v2780_v61  ;;  %v3872_v56 = vld [vmem:[#allocation2 + $0x294] sm:$0xf0]  ;;  %v3215_v59 = vld [vmem:[#allocation2 + $0x388] sm:$0xf]  ;;  %v2832_v61 = vor.u32 %v3808_v50, %v2831_v49  ;;  %v2960_v63 = vor.u32 %v3840_v54, %v2959_v51  ;;  %v3009_v50 = vld [vmem:[#allocation2 + $0x1f8] sm:$0xf0] }
  0x5e   : > { %1236 = vmatpush.bf16.msrb.mxu1 %v2908_v1  ;;  %v3904_v60 = vld [vmem:[#allocation2 + $0x394] sm:$0xf0]  ;;  %v3088_v0 = vor.u32 %v3872_v56, %v3087_v55  ;;  %v2815_v1 = vld [vmem:[#allocation2 + $0x68] sm:$0xf]  ;;  %v3882_v51 = vld [vmem:[#allocation2 + $0x2ec] sm:$0xf] }
  0x5f   : > { %1249 = vmatpush.bf16.msrb.mxu2 %v3036_v2  ;;  %v3804_v2 = vld [vmem:[#allocation2 + $0x74] sm:$0xf0]  ;;  %v2943_v3 = vld [vmem:[#allocation2 + $0x168] sm:$0xf]  ;;  %v3216_v4 = vor.u32 %v3904_v60, %v3215_v59  ;;  %v3914_v56 = vld [vmem:[#allocation2 + $0x3ec] sm:$0xf] }
  0x60   : > { %1262 = vmatpush.bf16.msrb.mxu3 %v3164_v6  ;;  %v3836_v5 = vld [vmem:[#allocation2 + $0x174] sm:$0xf0]  ;;  %v3071_v6 = vld [vmem:[#allocation2 + $0x268] sm:$0xf]  ;;  %v2816_v10 = vor.u32 %v3804_v2, %v2815_v1  ;;  %v3265_v59 = vld [vmem:[#allocation2 + $0x3f8] sm:$0xf0] }
  0x61   : > { %1224 = vmatpush.bf16.msrb.mxu0 %v2764_v13  ;;  %v3868_v7 = vld [vmem:[#allocation2 + $0x274] sm:$0xf0]  ;;  %v3199_v8 = vld [vmem:[#allocation2 + $0x368] sm:$0xf]  ;;  %v2944_v11 = vor.u32 %v3836_v5, %v2943_v3  ;;  %v3814_v1 = vld [vmem:[#allocation2 + $0xcc] sm:$0xf] }
  0x62   : > { %1237 = vmatpush.bf16.msrb.mxu1 %v2892_v17  ;;  %v3900_v9 = vld [vmem:[#allocation2 + $0x374] sm:$0xf0]  ;;  %v3072_v12 = vor.u32 %v3868_v7, %v3071_v6  ;;  %v2799_v13 = vld [vmem:[#allocation2 + $0x48] sm:$0xf]  ;;  %v2865_v2 = vld [vmem:[#allocation2 + $0xd8] sm:$0xf0] }
  0x63   : > { %1250 = vmatpush.bf16.msrb.mxu2 %v3020_v18  ;;  %v3800_v14 = vld [vmem:[#allocation2 + $0x54] sm:$0xf0]  ;;  %v2927_v15 = vld [vmem:[#allocation2 + $0x148] sm:$0xf]  ;;  %v3200_v16 = vor.u32 %v3900_v9, %v3199_v8  ;;  %v3846_v3 = vld [vmem:[#allocation2 + $0x1cc] sm:$0xf] }
  0x64   : > { %1263 = vmatpush.bf16.msrb.mxu3 %v3148_v21  ;;  %1225 = vmatmul.bf16.vlgmr.msrb.gmra.mxu0 %v4473_v57  ;;  %v3832_v17 = vld [vmem:[#allocation2 + $0x154] sm:$0xf0]  ;;  %v3055_v18 = vld [vmem:[#allocation2 + $0x248] sm:$0xf]  ;;  %v2993_v5 = vld [vmem:[#allocation2 + $0x1d8] sm:$0xf0] }
  0x65   : > { %1269 = vmatpush.bf16.msra.mxu0 %v2880_v22  ;;  %1238 = vmatmul.bf16.vlgmr.msrb.gmra.mxu1 %v4477_v62  ;;  %v3864_v19 = vld [vmem:[#allocation2 + $0x254] sm:$0xf0]  ;;  %v3183_v20 = vld [vmem:[#allocation2 + $0x348] sm:$0xf]  ;;  %v2800_v22 = vor.u32 %v3800_v14, %v2799_v13  ;;  %v3878_v6 = vld [vmem:[#allocation2 + $0x2cc] sm:$0xf] }
  0x66   : > { %1282 = vmatpush.bf16.msra.mxu1 %v3008_v23  ;;  %1251 = vmatmul.bf16.vlgmr.msrb.gmra.mxu2 %v4471_v53  ;;  %v3896_v21 = vld [vmem:[#allocation2 + $0x354] sm:$0xf0]  ;;  %v2928_v23 = vor.u32 %v3832_v17, %v2927_v15  ;;  %v2783_v25 = vld [vmem:[#allocation2 + $0x28] sm:$0xf]  ;;  %v3121_v7 = vld [vmem:[#allocation2 + $0x2d8] sm:$0xf0] }
  0x67   : > { %1295 = vmatpush.bf16.msra.mxu2 %v3136_v24  ;;  %1264 = vmatmul.bf16.vlgmr.msrb.gmra.mxu3 %v4475_v58  ;;  %v3056_v24 = vor.u32 %v3864_v19, %v3055_v18  ;;  %v3796_v26 = vld [vmem:[#allocation2 + $0x34] sm:$0xf0]  ;;  %v2911_v27 = vld [vmem:[#allocation2 + $0x128] sm:$0xf]  ;;  %v3910_v8 = vld [vmem:[#allocation2 + $0x3cc] sm:$0xf] }
  0x68   : > { %1308 = vmatpush.bf16.msra.mxu3 %v3264_v28  ;;  %v3184_v28 = vor.u32 %v3896_v21, %v3183_v20  ;;  %v3828_v29 = vld [vmem:[#allocation2 + $0x134] sm:$0xf0]  ;;  %v3039_v30 = vld [vmem:[#allocation2 + $0x228] sm:$0xf]  ;;  %v3249_v9 = vld [vmem:[#allocation2 + $0x3d8] sm:$0xf0] }
  0x69   : > { %1270 = vmatpush.bf16.msra.mxu0 %v2864_v34  ;;  %v3860_v31 = vld [vmem:[#allocation2 + $0x234] sm:$0xf0]  ;;  %v3167_v32 = vld [vmem:[#allocation2 + $0x328] sm:$0xf]  ;;  %v2784_v34 = vor.u32 %v3796_v26, %v2783_v25  ;;  %v2912_v37 = vor.u32 %v3828_v29, %v2911_v27  ;;  %v3810_v13 = vld [vmem:[#allocation2 + $0xac] sm:$0xf] }
  0x6a   : > { %1283 = vmatpush.bf16.msra.mxu1 %v2992_v35  ;;  %v3892_v33 = vld [vmem:[#allocation2 + $0x334] sm:$0xf0]  ;;  %v2767_v35 = vld [vmem:[#allocation2 + $0x8] sm:$0xf]  ;;  %v3040_v38 = vor.u32 %v3860_v31, %v3039_v30  ;;  %v2849_v14 = vld [vmem:[#allocation2 + $0xb8] sm:$0xf0] }
  0x6b   : > { %1296 = vmatpush.bf16.msra.mxu2 %v3120_v36  ;;  %v3792_v36 = vld [vmem:[#allocation2 + $0x14] sm:$0xf0]  ;;  %v2895_v39 = vld [vmem:[#allocation2 + $0x108] sm:$0xf]  ;;  %v3168_v42 = vor.u32 %v3892_v33, %v3167_v32  ;;  %v3842_v15 = vld [vmem:[#allocation2 + $0x1ac] sm:$0xf] }
  0x6c   : > { %1309 = vmatpush.bf16.msra.mxu3 %v3248_v40  ;;  %v3824_v40 = vld [vmem:[#allocation2 + $0x114] sm:$0xf0]  ;;  %v3023_v41 = vld [vmem:[#allocation2 + $0x208] sm:$0xf]  ;;  %v2768_v49 = vor.u32 %v3792_v36, %v2767_v35  ;;  %v2977_v17 = vld [vmem:[#allocation2 + $0x1b8] sm:$0xf0] }
  0x6d   : > { %1271 = vmatpush.bf16.msra.mxu0 %v2848_v46  ;;  %v3856_v43 = vld [vmem:[#allocation2 + $0x214] sm:$0xf0]  ;;  %v3151_v44 = vld [vmem:[#allocation2 + $0x308] sm:$0xf]  ;;  %v3818_v46 = vld [vmem:[#allocation2 + $0xec] sm:$0xf]  ;;  %v2896_v54 = vor.u32 %v3824_v40, %v2895_v39 }
  0x6e   : > { %1284 = vmatpush.bf16.msra.mxu1 %v2976_v47  ;;  %v3888_v45 = vld [vmem:[#allocation2 + $0x314] sm:$0xf0]  ;;  %v2881_v47 = vld [vmem:[#allocation2 + $0xf8] sm:$0xf0]  ;;  %v3024_v55 = vor.u32 %v3856_v43, %v3023_v41  ;;  %v3874_v18 = vld [vmem:[#allocation2 + $0x2ac] sm:$0xf] }
  0x6f   : > { %1297 = vmatpush.bf16.msra.mxu2 %v3104_v48  ;;  %v3850_v48 = vld [vmem:[#allocation2 + $0x1ec] sm:$0xf]  ;;  %v3152_v60 = vor.u32 %v3888_v45, %v3151_v44  ;;  %v3105_v19 = vld [vmem:[#allocation2 + $0x2b8] sm:$0xf0] }
  0x70   : > { %1310 = vmatpush.bf16.msra.mxu3 %v3232_v52  ;;  %v3137_v52 = vld [vmem:[#allocation2 + $0x2f8] sm:$0xf0]  ;;  %v3906_v20 = vld [vmem:[#allocation2 + $0x3ac] sm:$0xf] }
  0x71   : > { %1272 = vmatpush.bf16.msra.mxu0 %v2832_v61  ;;  %v2884_v61 = vor.u32 %v3818_v46, %v2881_v47  ;;  %v3233_v21 = vld [vmem:[#allocation2 + $0x3b8] sm:$0xf0]  ;;  %v3806_v25 = vld [vmem:[#allocation2 + $0x8c] sm:$0xf] }
  0x72   : > { %1285 = vmatpush.bf16.msra.mxu1 %v2960_v63  ;;  %v3012_v63 = vor.u32 %v3850_v48, %v3009_v50  ;;  %v2833_v26 = vld [vmem:[#allocation2 + $0x98] sm:$0xf0]  ;;  %v3838_v27 = vld [vmem:[#allocation2 + $0x18c] sm:$0xf] }
  0x73   : > { %1298 = vmatpush.bf16.msra.mxu2 %v3088_v0  ;;  %v3140_v0 = vor.u32 %v3882_v51, %v3137_v52  ;;  %v2961_v29 = vld [vmem:[#allocation2 + $0x198] sm:$0xf0]  ;;  %v3870_v30 = vld [vmem:[#allocation2 + $0x28c] sm:$0xf] }
  0x74   : > { %1311 = vmatpush.bf16.msra.mxu3 %v3216_v4  ;;  %v3268_v4 = vor.u32 %v3914_v56, %v3265_v59  ;;  %v3089_v31 = vld [vmem:[#allocation2 + $0x298] sm:$0xf0]  ;;  %v3902_v32 = vld [vmem:[#allocation2 + $0x38c] sm:$0xf]  ;;  %v2964_v35 = vor.u32 %v3838_v27, %v2961_v29  ;;  %v3947_v27 = vld [vmem:[#allocation6 + $0xec] sm:$0xf0] }
  0x75   : > { %1273 = vmatpush.bf16.msra.mxu0 %v2816_v10  ;;  %v2868_v10 = vor.u32 %v3814_v1, %v2865_v2  ;;  %v3217_v33 = vld [vmem:[#allocation2 + $0x398] sm:$0xf0]  ;;  %v3092_v36 = vor.u32 %v3870_v30, %v3089_v31  ;;  %v3834_v39 = vld [vmem:[#allocation2 + $0x16c] sm:$0xf]  ;;  %v3371_v29 = vld [vmem:[#allocation6 + $0xc0] sm:$0xf] }
  0x76   : > { %1286 = vmatpush.bf16.msra.mxu1 %v2944_v11  ;;  %v2996_v11 = vor.u32 %v3846_v3, %v2993_v5  ;;  %v3220_v40 = vor.u32 %v3902_v32, %v3217_v33  ;;  %v2945_v41 = vld [vmem:[#allocation2 + $0x178] sm:$0xf0]  ;;  %v3898_v44 = vld [vmem:[#allocation2 + $0x36c] sm:$0xf]  ;;  %v3943_v30 = vld [vmem:[#allocation6 + $0xcc] sm:$0xf0] }
  0x77   : > { %1299 = vmatpush.bf16.msra.mxu2 %v3072_v12  ;;  %v3124_v12 = vor.u32 %v3878_v6, %v3121_v7  ;;  %v3073_v43 = vld [vmem:[#allocation2 + $0x278] sm:$0xf0]  ;;  %v2948_v47 = vor.u32 %v3834_v39, %v2945_v41  ;;  %v3830_v51 = vld [vmem:[#allocation2 + $0x14c] sm:$0xf]  ;;  %v3372_v31 = vor.u32 %v3943_v30, %v3371_v29  ;;  %v3355_v32 = vld [vmem:[#allocation6 + $0xa0] sm:$0xf] }
  0x78   : > { %1312 = vmatpush.bf16.msra.mxu3 %v3200_v16  ;;  %v3252_v16 = vor.u32 %v3910_v8, %v3249_v9  ;;  %v3201_v45 = vld [vmem:[#allocation2 + $0x378] sm:$0xf0]  ;;  %v3894_v59 = vld [vmem:[#allocation2 + $0x34c] sm:$0xf]  ;;  %v3939_v33 = vld [vmem:[#allocation6 + $0xac] sm:$0xf0] }
  0x79   : > { %1274 = vmatpush.bf16.msra.mxu0 %v2800_v22  ;;  %v2852_v22 = vor.u32 %v3810_v13, %v2849_v14  ;;  %v2801_v50 = vld [vmem:[#allocation2 + $0x58] sm:$0xf0]  ;;  %v3204_v52 = vor.u32 %v3898_v44, %v3201_v45  ;;  %v3794_v1 = vld [vmem:[#allocation2 + $0x2c] sm:$0xf]  ;;  %v3927_v39 = vld [vmem:[#allocation6 + $0x4c] sm:$0xf0] }
  0x7a   : > { %1287 = vmatpush.bf16.msra.mxu1 %v2928_v23  ;;  %v2980_v23 = vor.u32 %v3842_v15, %v2977_v17  ;;  %v3057_v56 = vld [vmem:[#allocation2 + $0x258] sm:$0xf0]  ;;  %v3826_v3 = vld [vmem:[#allocation2 + $0x12c] sm:$0xf] }
  0x7b   : > { %1300 = vmatpush.bf16.msra.mxu2 %v3056_v24  ;;  %v3108_v24 = vor.u32 %v3874_v18, %v3105_v19  ;;  %v2785_v2 = vld [vmem:[#allocation2 + $0x38] sm:$0xf0]  ;;  %v3858_v6 = vld [vmem:[#allocation2 + $0x22c] sm:$0xf] }
  0x7c   : > { %1313 = vmatpush.bf16.msra.mxu3 %v3184_v28  ;;  %v3236_v28 = vor.u32 %v3906_v20, %v3233_v21  ;;  %v2913_v5 = vld [vmem:[#allocation2 + $0x138] sm:$0xf0]  ;;  %v3890_v8 = vld [vmem:[#allocation2 + $0x32c] sm:$0xf] }
  0x7d   : > { %1275 = vmatpush.bf16.msra.mxu0 %v2784_v34  ;;  %v2836_v34 = vor.u32 %v3806_v25, %v2833_v26  ;;  %v3041_v7 = vld [vmem:[#allocation2 + $0x238] sm:$0xf0]  ;;  %v3790_v13 = vld [vmem:[#allocation2 + $0xc] sm:$0xf]  ;;  %v3387_v26 = vld [vmem:[#allocation6 + $0xe0] sm:$0xf] }
  0x7e   : > { %1288 = vmatpush.bf16.msra.mxu1 %v2912_v37  ;;  %v3802_v37 = vld [vmem:[#allocation2 + $0x6c] sm:$0xf]  ;;  %v3169_v9 = vld [vmem:[#allocation2 + $0x338] sm:$0xf0] }
  0x7f   : > { %1301 = vmatpush.bf16.msra.mxu2 %v3040_v38  ;;  %v2817_v38 = vld [vmem:[#allocation2 + $0x78] sm:$0xf0]  ;;  %v3822_v15 = vld [vmem:[#allocation2 + $0x10c] sm:$0xf] }
  0x80   : > { %1314 = vmatpush.bf16.msra.mxu3 %v3168_v42  ;;  %v3866_v42 = vld [vmem:[#allocation2 + $0x26c] sm:$0xf]  ;;  %v2820_v46 = vor.u32 %v3802_v37, %v2817_v38  ;;  %v2769_v14 = vld [vmem:[#allocation2 + $0x18] sm:$0xf0]  ;;  %v3307_v38 = vld [vmem:[#allocation6 + $0x40] sm:$0xf] }
  0x81   : > { %1276 = vmatpush.bf16.msra.mxu0 %v2768_v49  ;;  %v3076_v48 = vor.u32 %v3866_v42, %v3073_v43  ;;  %v3798_v49 = vld [vmem:[#allocation2 + $0x4c] sm:$0xf]  ;;  %v2897_v17 = vld [vmem:[#allocation2 + $0x118] sm:$0xf0]  ;;  %v3291_v42 = vld [vmem:[#allocation6 + $0x20] sm:$0xf] }
  0x82   : > { %1289 = vmatpush.bf16.msra.mxu1 %v2896_v54  ;;  %v2929_v54 = vld [vmem:[#allocation2 + $0x158] sm:$0xf0]  ;;  %v3854_v18 = vld [vmem:[#allocation2 + $0x20c] sm:$0xf]  ;;  %v3923_v43 = vld [vmem:[#allocation6 + $0x2c] sm:$0xf0] }
  0x83   : > { %1302 = vmatpush.bf16.msra.mxu2 %v3024_v55  ;;  %v3862_v55 = vld [vmem:[#allocation2 + $0x24c] sm:$0xf]  ;;  %v3025_v19 = vld [vmem:[#allocation2 + $0x218] sm:$0xf0]  ;;  %v3292_v44 = vor.u32 %v3923_v43, %v3291_v42 }
  0x84   : > { %1315 = vmatpush.bf16.msra.mxu3 %v3152_v60  ;;  %1277 = vmatmul.bf16.vlgmr.msra.gmra.mxu0 %v4473_v57  ;;  %v3185_v60 = vld [vmem:[#allocation2 + $0x358] sm:$0xf0]  ;;  %v3886_v20 = vld [vmem:[#allocation2 + $0x30c] sm:$0xf] }
  0x85   : > { %1321 = vmatpush.bf16.msrb.mxu0 %v2884_v61  ;;  %1290 = vmatmul.bf16.vlgmr.msra.gmra.mxu1 %v4477_v62  ;;  %v2804_v61 = vor.u32 %v3798_v49, %v2801_v50  ;;  %v3153_v21 = vld [vmem:[#allocation2 + $0x318] sm:$0xf0]  ;;  %v3919_v49 = vld [vmem:[#allocation6 + $0xc] sm:$0xf0] }
  0x86   : > { %1334 = vmatpush.bf16.msrb.mxu1 %v3012_v63  ;;  %1303 = vmatmul.bf16.vlgmr.msra.gmra.mxu2 %v4471_v53  ;;  %v2932_v63 = vor.u32 %v3830_v51, %v2929_v54  ;;  %v3156_v25 = vor.u32 %v3886_v20, %v3153_v21  ;;  %v3979_v54 = vld [vmem:[#allocation6 + $0x1ec] sm:$0xf0]  ;;  %v3467_v21 = vld [vmem:[#allocation6 + $0x180] sm:$0xf] }
  0x87   : > { %1347 = vmatpush.bf16.msrb.mxu2 %v3140_v0  ;;  %1316 = vmatmul.bf16.vlgmr.msra.gmra.mxu3 %v4475_v58  ;;  %v3060_v0 = vor.u32 %v3862_v55, %v3057_v56  ;;  %v3945_v55 = vld [vmem:[#allocation6 + $0xe4] sm:$0xf] }
  0x88   : > { %1360 = vmatpush.bf16.msrb.mxu3 %v3268_v4  ;;  %v3188_v4 = vor.u32 %v3894_v59, %v3185_v60  ;;  %v3389_v59 = vld [vmem:[#allocation6 + $0xf0] sm:$0xf0] }
  0x89   : > { %1322 = vmatpush.bf16.msrb.mxu0 %v2868_v10  ;;  %v2788_v10 = vor.u32 %v3794_v1, %v2785_v2  ;;  %v3499_v1 = vld [vmem:[#allocation6 + $0x1c0] sm:$0xf]  ;;  %v3975_v2 = vld [vmem:[#allocation6 + $0x1cc] sm:$0xf0] }
  0x8a   : > { %1335 = vmatpush.bf16.msrb.mxu1 %v2996_v11  ;;  %v2916_v11 = vor.u32 %v3826_v3, %v2913_v5  ;;  %v3941_v3 = vld [vmem:[#allocation6 + $0xc4] sm:$0xf] }
  0x8b   : > { %1348 = vmatpush.bf16.msrb.mxu2 %v3124_v12  ;;  %v3044_v12 = vor.u32 %v3858_v6, %v3041_v7  ;;  %v3500_v6 = vor.u32 %v3975_v2, %v3499_v1  ;;  %v3373_v7 = vld [vmem:[#allocation6 + $0xd0] sm:$0xf0]  ;;  %v3951_v1 = vld [vmem:[#allocation6 + $0x10c] sm:$0xf0]  ;;  %v3917_v2 = vld [vmem:[#allocation6 + $0x4] sm:$0xf] }
  0x8c   : > { %1361 = vmatpush.bf16.msrb.mxu3 %v3252_v16  ;;  %v3172_v16 = vor.u32 %v3890_v8, %v3169_v9  ;;  %v3376_v9 = vor.u32 %v3941_v3, %v3373_v7  ;;  %v3277_v7 = vld [vmem:[#allocation6 + $0x10] sm:$0xf0] }
  0x8d   : > { %1323 = vmatpush.bf16.msrb.mxu0 %v2852_v22  ;;  %v2772_v22 = vor.u32 %v3790_v13, %v2769_v14  ;;  %v3937_v13 = vld [vmem:[#allocation6 + $0xa4] sm:$0xf] }
  0x8e   : > { %1336 = vmatpush.bf16.msrb.mxu1 %v2980_v23  ;;  %v2900_v23 = vor.u32 %v3822_v15, %v2897_v17 }
  0x8f   : > { %1349 = vmatpush.bf16.msrb.mxu2 %v3108_v24  ;;  %v3028_v24 = vor.u32 %v3854_v18, %v3025_v19 }
  0x90   : > { %1362 = vmatpush.bf16.msrb.mxu3 %v3236_v28  ;;  %v3388_v28 = vor.u32 %v3947_v27, %v3387_v26  ;;  %v3341_v27 = vld [vmem:[#allocation6 + $0x90] sm:$0xf0] }
  0x91   : > { %1324 = vmatpush.bf16.msrb.mxu0 %v2836_v34  ;;  %v3356_v34 = vor.u32 %v3939_v33, %v3355_v32  ;;  %v3963_v32 = vld [vmem:[#allocation6 + $0x16c] sm:$0xf0]  ;;  %v3929_v33 = vld [vmem:[#allocation6 + $0x64] sm:$0xf] }
  0x92   : > { %1337 = vmatpush.bf16.msrb.mxu1 %v2964_v35  ;;  %v3339_v35 = vld [vmem:[#allocation6 + $0x80] sm:$0xf] }
  0x93   : > { %1350 = vmatpush.bf16.msrb.mxu2 %v3092_v36 }
  0x94   : > { %1363 = vmatpush.bf16.msrb.mxu3 %v3220_v40  ;;  %v3308_v40 = vor.u32 %v3927_v39, %v3307_v38  ;;  %v3435_v38 = vld [vmem:[#allocation6 + $0x140] sm:$0xf]  ;;  %v3959_v39 = vld [vmem:[#allocation6 + $0x14c] sm:$0xf0] }
  0x95   : > { %1325 = vmatpush.bf16.msrb.mxu0 %v2820_v46  ;;  %v3436_v43 = vor.u32 %v3959_v39, %v3435_v38 }
  0x96   : > { %1338 = vmatpush.bf16.msrb.mxu1 %v2948_v47 }
  0x97   : > { %1351 = vmatpush.bf16.msrb.mxu2 %v3076_v48  ;;  %v3275_v48 = vld [vmem:[#allocation6] sm:$0xf] }
  0x98   : > { %1364 = vmatpush.bf16.msrb.mxu3 %v3204_v52  ;;  %v3276_v51 = vor.u32 %v3919_v49, %v3275_v48  ;;  %v3515_v52 = vld [vmem:[#allocation6 + $0x1e0] sm:$0xf]  ;;  %v3955_v49 = vld [vmem:[#allocation6 + $0x12c] sm:$0xf0] }
  0x99   : > { %1326 = vmatpush.bf16.msrb.mxu0 %v2804_v61  ;;  %v3516_v56 = vor.u32 %v3979_v54, %v3515_v52  ;;  %v3392_v61 = vor.u32 %v3945_v55, %v3389_v59  ;;  %v3419_v48 = vld [vmem:[#allocation6 + $0x120] sm:$0xf]  ;;  %v3293_v55 = vld [vmem:[#allocation6 + $0x30] sm:$0xf0] }
  0x9a   : > { %1339 = vmatpush.bf16.msrb.mxu1 %v2932_v63  ;;  %v3420_v54 = vor.u32 %v3955_v49, %v3419_v48  ;;  %v3965_v48 = vld [vmem:[#allocation6 + $0x184] sm:$0xf]  ;;  %v3469_v49 = vld [vmem:[#allocation6 + $0x190] sm:$0xf0] }
  0x9b   : > { %1352 = vmatpush.bf16.msrb.mxu2 %v3060_v0 }
  0x9c   : > { %1365 = vmatpush.bf16.msrb.mxu3 %v3188_v4 }
  0x9d   : > { %1327 = vmatpush.bf16.msrb.mxu0 %v2788_v10 }
  0x9e   : > { %1340 = vmatpush.bf16.msrb.mxu1 %v2916_v11  ;;  %v3483_v11 = vld [vmem:[#allocation6 + $0x1a0] sm:$0xf] }
  0x9f   : > { %1353 = vmatpush.bf16.msrb.mxu2 %v3044_v12  ;;  %v3971_v12 = vld [vmem:[#allocation6 + $0x1ac] sm:$0xf0] }
  0xa0   : > { %1366 = vmatpush.bf16.msrb.mxu3 %v3172_v16  ;;  %v3484_v15 = vor.u32 %v3971_v12, %v3483_v11  ;;  %v3357_v16 = vld [vmem:[#allocation6 + $0xb0] sm:$0xf0]  ;;  %v3280_v12 = vor.u32 %v3917_v2, %v3277_v7 }
  0xa1   : > { %1328 = vmatpush.bf16.msrb.mxu0 %v2772_v22  ;;  %v3360_v18 = vor.u32 %v3937_v13, %v3357_v16  ;;  %v3967_v22 = vld [vmem:[#allocation6 + $0x18c] sm:$0xf0] }
  0xa2   : > { %1341 = vmatpush.bf16.msrb.mxu1 %v2900_v23  ;;  %v3933_v23 = vld [vmem:[#allocation6 + $0x84] sm:$0xf]  ;;  %v3468_v26 = vor.u32 %v3967_v22, %v3467_v21  ;;  %v3627_v22 = vld [vmem:[#allocation6 + $0x2c0] sm:$0xf] }
  0xa3   : > { %1354 = vmatpush.bf16.msrb.mxu2 %v3028_v24 }
  0xa4   : > { %1367 = vmatpush.bf16.msrb.mxu3 %v3156_v25  ;;  %1329 = vmatmul.bf16.vlgmr.msrb.gmra.mxu0 %v4473_v57  ;;  %v3935_v57 = vld [vmem:[#allocation6 + $0x8c] sm:$0xf0] }
  0xa5   : > { %1342 = vmatmul.bf16.vlgmr.msrb.gmra.mxu1 %v4477_v62  ;;  %2331 = vmatpush.bf16.msra.mxu0 %v3388_v28  ;;  %v3340_v36 = vor.u32 %v3935_v57, %v3339_v35  ;;  %v3323_v62 = vld [vmem:[#allocation6 + $0x60] sm:$0xf]  ;;  %v3344_v28 = vor.u32 %v3933_v23, %v3341_v27  ;;  %v4007_v23 = vld [vmem:[#allocation6 + $0x2cc] sm:$0xf0]  ;;  %v3501_v27 = vld [vmem:[#allocation6 + $0x1d0] sm:$0xf0] }
  0xa6   : > { %1355 = vmatmul.bf16.vlgmr.msrb.gmra.mxu2 %v4471_v53  ;;  %v3931_v53 = vld [vmem:[#allocation6 + $0x6c] sm:$0xf0]  ;;  %2344 = vmatpush.bf16.msra.mxu1 %v3516_v56 }
  0xa7   : > { %1368 = vmatmul.bf16.vlgmr.msrb.gmra.mxu3 %v4475_v58  ;;  %v3324_v37 = vor.u32 %v3931_v53, %v3323_v62  ;;  %v4495_v58 = vld [vmem:[#allocation4] sm:$0xf] }
  0xa8   : > { %v503_v41 = vperm.slane %v4495_v58, 0 }
  0xa9   : > { %2332 = vmatpush.bf16.msra.mxu0 %v3372_v31  ;;  %v3451_v31 = vld [vmem:[#allocation6 + $0x160] sm:$0xf] }
  0xaa   : > { %2345 = vmatpush.bf16.msra.mxu1 %v3500_v6  ;;  %v3452_v57 = vor.u32 %v3963_v32, %v3451_v31 }
  0xad   : > { %2333 = vmatpush.bf16.msra.mxu0 %v3356_v34 }
  0xae   : > { %2346 = vmatpush.bf16.msra.mxu1 %v3484_v15  ;;  %v3517_v15 = vld [vmem:[#allocation6 + $0x1f0] sm:$0xf0] }
  0xb1   : > { %2334 = vmatpush.bf16.msra.mxu0 %v3340_v36  ;;  %v3325_v36 = vld [vmem:[#allocation6 + $0x70] sm:$0xf0] }
  0xb2   : > { %2347 = vmatpush.bf16.msra.mxu1 %v3468_v26  ;;  %v3328_v62 = vor.u32 %v3929_v33, %v3325_v36  ;;  %v3973_v26 = vld [vmem:[#allocation6 + $0x1c4] sm:$0xf]  ;;  %v3611_v33 = vld [vmem:[#allocation6 + $0x2a0] sm:$0xf] }
  0xb5   : > { %2335 = vmatpush.bf16.msra.mxu0 %v3324_v37 }
  0xb6   : > { %2348 = vmatpush.bf16.msra.mxu1 %v3452_v57 }
  0xb9   : > { %2336 = vmatpush.bf16.msra.mxu0 %v3308_v40  ;;  %v3925_v40 = vld [vmem:[#allocation6 + $0x44] sm:$0xf] }
  0xba   : > { %2349 = vmatpush.bf16.msra.mxu1 %v3436_v43  ;;  %v3595_v43 = vld [vmem:[#allocation6 + $0x280] sm:$0xf] }
  0xbd   : > { %2337 = vmatpush.bf16.msra.mxu0 %v3292_v44  ;;  %v3309_v44 = vld [vmem:[#allocation6 + $0x50] sm:$0xf0] }
  0xbe   : > { %2350 = vmatpush.bf16.msra.mxu1 %v3420_v54 }
  0xc1   : > { %2338 = vmatpush.bf16.msra.mxu0 %v3276_v51 }
  0xc4   : > { %v1174_v45 = vpop.f32.mrf.mxu0 }
  0xc5   : > { %v1175_v46 = vadd.f32 %v1174_v45, %v503_v41  ;;  %v1187_v47 = vpop.f32.mrf.mxu1  ;;  %2383 = vmatpush.bf16.msrb.mxu0 %v3392_v61  ;;  %v3312_v45 = vor.u32 %v3925_v40, %v3309_v44  ;;  %v3999_v44 = vld [vmem:[#allocation6 + $0x28c] sm:$0xf0] }
  0xc7   : > { %v1188_v50 = vadd.f32 %v1187_v47, %v1175_v46  ;;  %v504_v47 = vperm.slane %v4495_v58, 1 }
  0xc9   : > { %v1200_v60 = vpop.f32.mrf.mxu2  ;;  %2384 = vmatpush.bf16.msrb.mxu0 %v3376_v9  ;;  %v4011_v9 = vld [vmem:[#allocation6 + $0x2ec] sm:$0xf0] }
  0xca   : > { %v1201_v63 = vadd.f32 %v1200_v60, %v1188_v50  ;;  %v3921_v50 = vld [vmem:[#allocation6 + $0x24] sm:$0xf] }
  0xcb   : > { %v3296_v56 = vor.u32 %v3921_v50, %v3293_v55 }
  0xcc   : > { %v1213_v0 = vpop.f32.mrf.mxu3  ;;  %v1176_v5 = vpop.f32.mrf.mxu0 }
  0xcd   : > { %v4498_v4 = vadd.f32 %v1213_v0, %v1201_v63  ;;  %v1189_v8 = vpop.f32.mrf.mxu1  ;;  %2385 = vmatpush.bf16.msrb.mxu0 %v3360_v18  ;;  %v3403_v0 = vld [vmem:[#allocation6 + $0x100] sm:$0xf] }
  0xce   : > { %v3404_v6 = vor.u32 %v3951_v1, %v3403_v0  ;;  %v3643_v8 = vld [vmem:[#allocation6 + $0x2e0] sm:$0xf] }
  0xcf   : > { %v4501_v10 = vmul.f32 0.70710677, %v4498_v4  ;;  %v3644_v13 = vor.u32 %v4011_v9, %v3643_v8 }
  0xd0   : > { %2351 = vmatpush.bf16.msra.mxu1 %v3404_v6 }
  0xd1   : > { %v1381_v14 = vmul.f32 %v4501_v10, %v4501_v10  ;;  %v1202_v17 = vpop.f32.mrf.mxu2  ;;  %2386 = vmatpush.bf16.msrb.mxu0 %v3344_v28  ;;  %2357 = vmatpush.bf16.msra.mxu2 %v3644_v13  ;;  %v3991_v13 = vld [vmem:[#allocation6 + $0x24c] sm:$0xf0] }
  0xd3   : > { %v4505_v19 = vmin.f32 %v1381_v14, 16.0  ;;  %v3977_v14 = vld [vmem:[#allocation6 + $0x1e4] sm:$0xf] }
  0xd4   : > { %v1215_v20 = vpop.f32.mrf.mxu3  ;;  %v3520_v17 = vor.u32 %v3977_v14, %v3517_v15  ;;  %v3957_v14 = vld [vmem:[#allocation6 + $0x144] sm:$0xf] }
  0xd5   : > { %v1383_v24 = vmul.f32 2.1237322e-06, %v4505_v19  ;;  %v1394_v25 = vmul.f32 3.8918573e-05, %v4505_v19  ;;  %2387 = vmatpush.bf16.msrb.mxu0 %v3328_v62  ;;  %v3485_v62 = vld [vmem:[#allocation6 + $0x1b0] sm:$0xf0] }
  0xd6   : > { %2396 = vmatpush.bf16.msrb.mxu1 %v3520_v17 }
  0xd7   : > { %v1384_v29 = vadd.f32 0.00028619796, %v1383_v24  ;;  %v1395_v30 = vadd.f32 0.001143296, %v1394_v25  ;;  %v3628_v25 = vor.u32 %v4007_v23, %v3627_v22 }
  0xd9   : > { %v1385_v34 = vmul.f32 %v1384_v29, %v4505_v19  ;;  %v1396_v35 = vmul.f32 %v1395_v30, %v4505_v19  ;;  %2388 = vmatpush.bf16.msrb.mxu0 %v3312_v45  ;;  %v3504_v29 = vor.u32 %v3973_v26, %v3501_v27  ;;  %2358 = vmatpush.bf16.msra.mxu2 %v3628_v25  ;;  %v3395_v25 = vld [vmem:[#allocation6 + $0xe8] sm:$0xf]  ;;  %v3948_v26 = vld [vmem:[#allocation6 + $0xf4] sm:$0xf0]  ;;  %v3547_v27 = vld [vmem:[#allocation6 + $0x220] sm:$0xf] }
  0xdb   : > { %v1386_v53 = vadd.f32 0.0036580483, %v1385_v34  ;;  %v1397_v37 = vadd.f32 0.014752088, %v1396_v35  ;;  %2397 = vmatpush.bf16.msrb.mxu1 %v3504_v29  ;;  %v4003_v34 = vld [vmem:[#allocation6 + $0x2ac] sm:$0xf0] }
  0xdc   : > { %v3969_v35 = vld [vmem:[#allocation6 + $0x1a4] sm:$0xf]  ;;  %v3612_v36 = vor.u32 %v4003_v34, %v3611_v33 }
  0xdd   : > { %v1387_v41 = vmul.f32 %v1386_v53, %v4505_v19  ;;  %v1398_v42 = vmul.f32 %v1397_v37, %v4505_v19  ;;  %2389 = vmatpush.bf16.msrb.mxu0 %v3296_v56  ;;  %v3488_v38 = vor.u32 %v3969_v35, %v3485_v62  ;;  %v3953_v34 = vld [vmem:[#allocation6 + $0x124] sm:$0xf]  ;;  %v3421_v35 = vld [vmem:[#allocation6 + $0x130] sm:$0xf0]  ;;  %v3379_v62 = vld [vmem:[#allocation6 + $0xc8] sm:$0xf] }
  0xde   : > { %2359 = vmatpush.bf16.msra.mxu2 %v3612_v36 }
  0xdf   : > { %v1399_v46 = vadd.f32 0.112945676, %v1398_v42  ;;  %v1388_v51 = vadd.f32 0.05243302, %v1387_v41  ;;  %2398 = vmatpush.bf16.msrb.mxu1 %v3488_v38  ;;  %v3396_v38 = vor.u32 %v3948_v26, %v3395_v25  ;;  %v4001_v25 = vld [vmem:[#allocation6 + $0x2a4] sm:$0xf] }
  0xe0   : > { %v3613_v26 = vld [vmem:[#allocation6 + $0x2b0] sm:$0xf0] }
  0xe1   : > { %v1400_v52 = vmul.f32 %v1399_v46, %v4505_v19  ;;  %v1226_v60 = vpop.f32.mrf.mxu0  ;;  %v1389_v3 = vmul.f32 %v1388_v51, %v4505_v19  ;;  %2390 = vmatpush.bf16.msrb.mxu0 %v3280_v12  ;;  %v3563_v12 = vld [vmem:[#allocation6 + $0x240] sm:$0xf] }
  0xe2   : > { %v1227_v61 = vadd.f32 %v1226_v60, %v504_v47  ;;  %v1239_v63 = vpop.f32.mrf.mxu1  ;;  %v3596_v47 = vor.u32 %v3999_v44, %v3595_v43  ;;  %v3995_v60 = vld [vmem:[#allocation6 + $0x26c] sm:$0xf0] }
  0xe3   : > { %v1401_v59 = vadd.f32 0.4994258, %v1400_v52  ;;  %v1390_v20 = vadd.f32 0.18741608, %v1389_v3  ;;  %v3472_v52 = vor.u32 %v3965_v48, %v3469_v49  ;;  %v3453_v3 = vld [vmem:[#allocation6 + $0x170] sm:$0xf0] }
  0xe4   : > { %v1240_v11 = vadd.f32 %v1239_v63, %v1227_v61  ;;  %2360 = vmatpush.bf16.msra.mxu2 %v3596_v47  ;;  %v3961_v61 = vld [vmem:[#allocation6 + $0x164] sm:$0xf]  ;;  %v3405_v48 = vld [vmem:[#allocation6 + $0x110] sm:$0xf0] }
  0xe5   : > { %v1402_v5 = vmul.f32 %v1401_v59, %v4505_v19  ;;  %v1391_v32 = vmul.f32 %v1390_v20, %v4505_v19  ;;  %2399 = vmatpush.bf16.msrb.mxu1 %v3472_v52  ;;  %v3579_v59 = vld [vmem:[#allocation6 + $0x260] sm:$0xf]  ;;  %v3456_v6 = vor.u32 %v3961_v61, %v3453_v3  ;;  %v3437_v20 = vld [vmem:[#allocation6 + $0x150] sm:$0xf0]  ;;  %v3363_v3 = vld [vmem:[#allocation6 + $0xa8] sm:$0xf] }
  0xe6   : > { %v3580_v2 = vor.u32 %v3995_v60, %v3579_v59  ;;  %v3645_v59 = vld [vmem:[#allocation6 + $0x2f0] sm:$0xf0] }
  0xe7   : > { %v4517_v16 = vadd.f32 1.0, %v1402_v5  ;;  %v1392_v19 = vadd.f32 1.1283791, %v1391_v32 }
  0xe8   : > { %2361 = vmatpush.bf16.msra.mxu2 %v3580_v2 }
  0xe9   : > { %v1252_v18 = vpop.f32.mrf.mxu2  ;;  %4117 = vrcp.f32 %v4517_v16  ;;  %v1228_v28 = vpop.f32.mrf.mxu0  ;;  %v1415_v37 = vand.u32 2147483648, %v4517_v16  ;;  %vm1409_vm0 = vweird.f32 %v4517_v16  ;;  %v1413_v50 = vand.u32 2147483647, %v4517_v16  ;;  %2400 = vmatpush.bf16.msrb.mxu1 %v3456_v6 }
  0xea   : > { %v1265_v21 = vpop.f32.mrf.mxu3  ;;  %v1253_v24 = vadd.f32 %v1252_v18, %v1240_v11  ;;  %v1241_v31 = vpop.f32.mrf.mxu1  ;;  %v1393_v5 = vmul.f32 %v1392_v19, %v4501_v10  ;;  %v3564_v10 = vor.u32 %v3991_v13, %v3563_v12  ;;  %v3987_v28 = vld [vmem:[#allocation6 + $0x22c] sm:$0xf0]  ;;  %v3949_v19 = vld [vmem:[#allocation6 + $0x104] sm:$0xf]  ;;  %v3629_v12 = vld [vmem:[#allocation6 + $0x2d0] sm:$0xf0] }
  0xeb   : > { %v1416_v51 = vor.u32 1.1754944e-38, %v1415_v37  ;;  %vm1414_vm3 = vcmp.eq.f32.partialorder %v1413_v50, 8.507059e+37  ;;  %v3548_v33 = vor.u32 %v3987_v28, %v3547_v27  ;;  %v3408_v50 = vor.u32 %v3949_v19, %v3405_v48 }
  0xec   : > { %v4520_v30 = vadd.f32 %v1265_v21, %v1253_v24  ;;  %v1373_v21 = vmul.f32 0.5, %v4498_v4  ;;  %v505_v24 = vperm.slane %v4495_v58, 2  ;;  %2362 = vmatpush.bf16.msra.mxu2 %v3564_v10 }
  0xee   : > { %v4524_v57 = vmul.f32 0.70710677, %v4520_v30 }
  0xef   : > { %v4118_v53 = vpop.eup %4117 }
  0xf0   : > { %v1405_v39 = vmul.f32 %v4118_v53, %v4517_v16  ;;  %v1421_v40 = vmul.f32 %v4524_v57, %v4524_v57  ;;  %vm1410_vm1 = vweird.f32 %v4118_v53  ;;  %v3440_v16 = vor.u32 %v3957_v14, %v3437_v20  ;;  %2363 = vmatpush.bf16.msra.mxu2 %v3548_v33 }
  0xf1   : > { %v1254_v41 = vpop.f32.mrf.mxu2  ;;  %vm1411_vm2 = vmor %vm1409_vm0, %vm1410_vm1  ;;  %v3616_v33 = vor.u32 %v4001_v25, %v3613_v26  ;;  %v3283_v25 = vld [vmem:[#allocation6 + $0x8] sm:$0xf]  ;;  %v3920_v26 = vld [vmem:[#allocation6 + $0x14] sm:$0xf0] }
  0xf2   : > { %v1267_v42 = vpop.f32.mrf.mxu3  ;;  %v1406_v45 = vsub.f32 1.0, %v1405_v39  ;;  %v4530_v46 = vmin.f32 %v1421_v40, 16.0  ;;  %2401 = vmatpush.bf16.msrb.mxu1 %v3440_v16  ;;  %v3424_v39 = vor.u32 %v3953_v34, %v3421_v35  ;;  %v3531_v40 = vld [vmem:[#allocation6 + $0x200] sm:$0xf]  ;;  %v3983_v41 = vld [vmem:[#allocation6 + $0x20c] sm:$0xf0] }
  0xf3   : > { %v3532_v49 = vor.u32 %v3983_v41, %v3531_v40  ;;  %v3347_v16 = vld [vmem:[#allocation6 + $0x88] sm:$0xf]  ;;  %v3928_v41 = vld [vmem:[#allocation6 + $0x54] sm:$0xf0] }
  0xf4   : > { %v1407_v54 = vmul.f32 %v4118_v53, %v1406_v45  ;;  %v1423_v55 = vmul.f32 2.1237322e-06, %v4530_v46  ;;  %v1434_v56 = vmul.f32 3.8918573e-05, %v4530_v46 }
  0xf5   : > { %2364 = vmatpush.bf16.msra.mxu2 %v3532_v49 }
  0xf6   : > { %v1408_v63 = vadd.f32 %v4118_v53, %v1407_v54  ;;  %v1424_v0 = vadd.f32 0.00028619796, %v1423_v55  ;;  %v1435_v1 = vadd.f32 0.001143296, %v1434_v56  ;;  %2402 = vmatpush.bf16.msrb.mxu1 %v3424_v39  ;;  %v4043_v55 = vld [vmem:[#allocation6 + $0x3ec] sm:$0xf0] }
  0xf7   : > { %v4009_v56 = vld [vmem:[#allocation6 + $0x2e4] sm:$0xf]  ;;  %v4031_v39 = vld [vmem:[#allocation6 + $0x38c] sm:$0xf0] }
  0xf8   : > { %v1412_v7 = vsel %vm1411_vm2, %v4118_v53, %v1408_v63  ;;  %v1425_v8 = vmul.f32 %v1424_v0, %v4530_v46  ;;  %v1436_v9 = vmul.f32 %v1435_v1, %v4530_v46  ;;  %v3944_v53 = vld [vmem:[#allocation6 + $0xd4] sm:$0xf0]  ;;  %v3648_v63 = vor.u32 %v4009_v56, %v3645_v59  ;;  %v3707_v59 = vld [vmem:[#allocation6 + $0x360] sm:$0xf] }
  0xf9   : > { %v1417_v11 = vsel %vm1414_vm3, %v1416_v51, %v1412_v7  ;;  %v3771_v51 = vld [vmem:[#allocation6 + $0x3e0] sm:$0xf]  ;;  %v3380_v60 = vor.u32 %v3944_v53, %v3379_v62 }
  0xfa   : > { %v1418_v15 = vmul.f32 %v1417_v11, %v1393_v5  ;;  %v1426_v17 = vadd.f32 0.0036580483, %v1425_v8  ;;  %v1437_v18 = vadd.f32 0.014752088, %v1436_v9  ;;  %v3772_v61 = vor.u32 %v4043_v55, %v3771_v51  ;;  %v3940_v5 = vld [vmem:[#allocation6 + $0xb4] sm:$0xf0]  ;;  %2403 = vmatpush.bf16.msrb.mxu1 %v3408_v50  ;;  %2409 = vmatpush.bf16.msrb.mxu2 %v3648_v63 }
  0xfb   : > { %v3755_v8 = vld [vmem:[#allocation6 + $0x3c0] sm:$0xf]  ;;  %v4039_v9 = vld [vmem:[#allocation6 + $0x3cc] sm:$0xf0]  ;;  %v4005_v11 = vld [vmem:[#allocation6 + $0x2c4] sm:$0xf]  ;;  %v3364_v14 = vor.u32 %v3940_v5, %v3363_v3 }
  0xfc   : > { %v3269_v22 = vclamps-f32 %v1418_v15, 1.0  ;;  %v1438_v23 = vmul.f32 %v1437_v18, %v4530_v46  ;;  %v1427_v31 = vmul.f32 %v1426_v17, %v4530_v46  ;;  %2370 = vmatpush.bf16.msra.mxu3 %v3772_v61  ;;  %v3756_v17 = vor.u32 %v4039_v9, %v3755_v8  ;;  %v3993_v61 = vld [vmem:[#allocation6 + $0x264] sm:$0xf]  ;;  %v3299_v3 = vld [vmem:[#allocation6 + $0x28] sm:$0xf] }
  0xfd   : > { %v3632_v18 = vor.u32 %v4005_v11, %v3629_v12  ;;  %v506_v8 = vperm.slane %v4495_v58, 3  ;;  %v3924_v9 = vld [vmem:[#allocation6 + $0x34] sm:$0xf0] }
  0xfe   : > { %v1541_v29 = vadd.f32 1.0, %v3269_v22  ;;  %v1439_v32 = vadd.f32 0.112945676, %v1438_v23  ;;  %v1428_v43 = vadd.f32 0.05243302, %v1427_v31 }
  0xff   : > { %v3739_v23 = vld [vmem:[#allocation6 + $0x3a0] sm:$0xf]  ;;  %2410 = vmatpush.bf16.msrb.mxu2 %v3632_v18  ;;  %v3932_v31 = vld [vmem:[#allocation6 + $0x74] sm:$0xf0] }
 0x100   : > { %v1545_v36 = vmul.f32 %v1541_v29, %v1373_v21  ;;  %v1440_v4 = vmul.f32 %v1439_v32, %v4530_v46  ;;  %v1429_v0 = vmul.f32 %v1428_v43, %v4530_v46  ;;  %v3936_v21 = vld [vmem:[#allocation6 + $0x94] sm:$0xf0]  ;;  %2371 = vmatpush.bf16.msra.mxu3 %v3756_v17  ;;  %v3331_v29 = vld [vmem:[#allocation6 + $0x68] sm:$0xf]  ;;  %v3997_v43 = vld [vmem:[#allocation6 + $0x284] sm:$0xf] }
 0x101   : > { %v1278_v37 = vpop.f32.mrf.mxu0  ;;  %v3348_v28 = vor.u32 %v3936_v21, %v3347_v16  ;;  %v3332_v40 = vor.u32 %v3932_v31, %v3331_v29  ;;  %v3691_v18 = vld [vmem:[#allocation6 + $0x340] sm:$0xf]  ;;  %v3989_v16 = vld [vmem:[#allocation6 + $0x244] sm:$0xf]  ;;  %v3565_v21 = vld [vmem:[#allocation6 + $0x250] sm:$0xf0] }
 0x102   : > { %v4546_v42 = vpack.c.bf16 %v1545_v36, %v1545_v36  ;;  %v1441_v44 = vadd.f32 0.4994258, %v1440_v4  ;;  %v1279_v45 = vadd.f32 %v1278_v37, %v505_v24  ;;  %v1291_v47 = vpop.f32.mrf.mxu1  ;;  %v1430_v10 = vadd.f32 0.18741608, %v1429_v0  ;;  %v4035_v24 = vld [vmem:[#allocation6 + $0x3ac] sm:$0xf0] }
 0x103   : > { %v3740_v32 = vor.u32 %v4035_v24, %v3739_v23  ;;  %v3315_v37 = vld [vmem:[#allocation6 + $0x48] sm:$0xf]  ;;  %2411 = vmatpush.bf16.msrb.mxu2 %v3616_v33  ;;  %v3300_v24 = vor.u32 %v3924_v9, %v3299_v3 }
 0x104   : > { %v1442_v52 = vmul.f32 %v1441_v44, %v4530_v46  ;;  %v1292_v54 = vadd.f32 %v1291_v47, %v1279_v45  ;;  %2339 = vmatmul.bf16.vlgmr.msra.gmra.mxu0 %v4546_v42  ;;  %v1431_v35 = vmul.f32 %v1430_v10, %v4530_v46  ;;  %v3597_v44 = vld [vmem:[#allocation6 + $0x290] sm:$0xf0]  ;;  %v3316_v56 = vor.u32 %v3928_v41, %v3315_v37  ;;  %v3523_v33 = vld [vmem:[#allocation6 + $0x1e8] sm:$0xf] }
 0x105   : > { %2435 = vmatpush.bf16.msra.mxu0 %v3396_v38  ;;  %2372 = vmatpush.bf16.msra.mxu3 %v3740_v32  ;;  %v3723_v38 = vld [vmem:[#allocation6 + $0x380] sm:$0xf]  ;;  %v3600_v48 = vor.u32 %v3997_v43, %v3597_v44 }
 0x106   : > { %v4551_v1 = vadd.f32 1.0, %v1442_v52  ;;  %v3724_v19 = vor.u32 %v4031_v39, %v3723_v38  ;;  %v1432_v49 = vadd.f32 1.1283791, %v1431_v35  ;;  %v3675_v35 = vld [vmem:[#allocation6 + $0x320] sm:$0xf]  ;;  %v3284_v39 = vor.u32 %v3920_v26, %v3283_v25 }
 0x107   : > { %2412 = vmatpush.bf16.msrb.mxu2 %v3600_v48  ;;  %v3934_v26 = vld [vmem:[#allocation6 + $0x8c] sm:$0xf] }
 0x108   : > { %4119 = vrcp.f32 %v4551_v1  ;;  %vm1449_vm4 = vweird.f32 %v4551_v1  ;;  %v1453_v50 = vand.u32 2147483647, %v4551_v1  ;;  %v1455_v51 = vand.u32 2147483648, %v4551_v1 }
 0x109   : > { %v1304_v2 = vpop.f32.mrf.mxu2  ;;  %2436 = vmatpush.bf16.msra.mxu0 %v3380_v60  ;;  %v1280_v15 = vpop.f32.mrf.mxu0  ;;  %2373 = vmatpush.bf16.msra.mxu3 %v3724_v19  ;;  %v4027_v60 = vld [vmem:[#allocation6 + $0x36c] sm:$0xf0]  ;;  %v1433_v12 = vmul.f32 %v1432_v49, %v4524_v57  ;;  %v3568_v57 = vor.u32 %v3989_v16, %v3565_v21  ;;  %v3972_v16 = vld [vmem:[#allocation6 + $0x1b4] sm:$0xf0]  ;;  %v4037_v21 = vld [vmem:[#allocation6 + $0x3c4] sm:$0xf] }
 0x10a   : > { %v1305_v6 = vadd.f32 %v1304_v2, %v1292_v54  ;;  %v1317_v7 = vpop.f32.mrf.mxu3  ;;  %v1293_v20 = vpop.f32.mrf.mxu1  ;;  %v3708_v5 = vor.u32 %v4027_v60, %v3707_v59  ;;  %vm1454_vm7 = vcmp.eq.f32.partialorder %v1453_v50, 8.507059e+37 }
 0x10b   : > { %v4023_v20 = vld [vmem:[#allocation6 + $0x34c] sm:$0xf0] }
 0x10c   : > { %v4554_v13 = vadd.f32 %v1317_v7, %v1305_v6  ;;  %v3581_v6 = vld [vmem:[#allocation6 + $0x270] sm:$0xf0]  ;;  %v1456_v7 = vor.u32 1.1754944e-38, %v1455_v51  ;;  %v3692_v58 = vor.u32 %v4023_v20, %v3691_v18  ;;  %v3659_v51 = vld [vmem:[#allocation6 + $0x300] sm:$0xf] }
 0x10d   : > { %2437 = vmatpush.bf16.msra.mxu0 %v3364_v14  ;;  %v3584_v11 = vor.u32 %v3993_v61, %v3581_v6  ;;  %2374 = vmatpush.bf16.msra.mxu3 %v3708_v5  ;;  %v3507_v61 = vld [vmem:[#allocation6 + $0x1c8] sm:$0xf]  ;;  %v4041_v6 = vld [vmem:[#allocation6 + $0x3e4] sm:$0xf] }
 0x10e   : > { %v4557_v22 = vmul.f32 0.70710677, %v4554_v13  ;;  %v4120_v34 = vpop.eup %4119  ;;  %v3491_v18 = vld [vmem:[#allocation6 + $0x1a8] sm:$0xf] }
 0x10f   : > { %v1445_v4 = vmul.f32 %v4120_v34, %v4551_v1  ;;  %vm1450_vm5 = vweird.f32 %v4120_v34  ;;  %2413 = vmatpush.bf16.msrb.mxu2 %v3584_v11  ;;  %v3938_v11 = vld [vmem:[#allocation6 + $0xac] sm:$0xf] }
 0x110   : > { %v1461_v27 = vmul.f32 %v4557_v22, %v4557_v22  ;;  %vm1451_vm6 = vmor %vm1449_vm4, %vm1450_vm5 }
 0x111   : > { %v1306_v36 = vpop.f32.mrf.mxu2  ;;  %v1446_v45 = vsub.f32 1.0, %v1445_v4  ;;  %2438 = vmatpush.bf16.msra.mxu0 %v3348_v28  ;;  %v1374_v28 = vmul.f32 0.5, %v4520_v30  ;;  %2375 = vmatpush.bf16.msra.mxu3 %v3692_v58  ;;  %v3985_v4 = vld [vmem:[#allocation6 + $0x224] sm:$0xf]  ;;  %v3549_v30 = vld [vmem:[#allocation6 + $0x230] sm:$0xf0] }
 0x112   : > { %v4563_v62 = vmin.f32 %v1461_v27, 16.0  ;;  %v1319_v53 = vpop.f32.mrf.mxu3  ;;  %v3946_v27 = vld [vmem:[#allocation6 + $0xec] sm:$0xf]  ;;  %v4019_v36 = vld [vmem:[#allocation6 + $0x32c] sm:$0xf0] }
 0x113   : > { %v1447_v52 = vmul.f32 %v4120_v34, %v1446_v45  ;;  %2414 = vmatpush.bf16.msrb.mxu2 %v3568_v57  ;;  %v3676_v41 = vor.u32 %v4019_v36, %v3675_v35  ;;  %v3942_v45 = vld [vmem:[#allocation6 + $0xcc] sm:$0xf] }
 0x114   : > { %v1463_v47 = vmul.f32 2.1237322e-06, %v4563_v62  ;;  %v1474_v46 = vmul.f32 3.8918573e-05, %v4563_v62  ;;  %2391 = vmatmul.bf16.vlgmr.msrb.gmra.mxu0 %v4546_v42 }
 0x115   : > { %v1448_v63 = vadd.f32 %v4120_v34, %v1447_v52  ;;  %2439 = vmatpush.bf16.msra.mxu0 %v3332_v40  ;;  %v3980_v40 = vld [vmem:[#allocation6 + $0x1f4] sm:$0xf0]  ;;  %2376 = vmatpush.bf16.msra.mxu3 %v3676_v41 }
 0x116   : > { %v1464_v54 = vadd.f32 0.00028619796, %v1463_v47  ;;  %v1475_v55 = vadd.f32 0.001143296, %v1474_v46  ;;  %v3381_v47 = vld [vmem:[#allocation6 + $0xd8] sm:$0xf0]  ;;  %v3552_v46 = vor.u32 %v3985_v4, %v3549_v30  ;;  %v3524_v52 = vor.u32 %v3980_v40, %v3523_v33 }
 0x117   : > { %v1452_v14 = vsel %vm1451_vm6, %v4120_v34, %v1448_v63  ;;  %v3397_v34 = vld [vmem:[#allocation6 + $0xf8] sm:$0xf0]  ;;  %v3976_v63 = vld [vmem:[#allocation6 + $0x1d4] sm:$0xf0]  ;;  %v3384_v3 = vor.u32 %v3942_v45, %v3381_v47  ;;  %v3475_v33 = vld [vmem:[#allocation6 + $0x188] sm:$0xf] }
 0x118   : > { %v1465_v0 = vmul.f32 %v1464_v54, %v4563_v62  ;;  %v1476_v2 = vmul.f32 %v1475_v55, %v4563_v62  ;;  %v1457_v10 = vsel %vm1454_vm7, %v1456_v7, %v1452_v14  ;;  %v3400_v44 = vor.u32 %v3946_v27, %v3397_v34  ;;  %2415 = vmatpush.bf16.msrb.mxu2 %v3552_v46  ;;  %v4015_v54 = vld [vmem:[#allocation6 + $0x30c] sm:$0xf0]  ;;  %v3981_v55 = vld [vmem:[#allocation6 + $0x204] sm:$0xf]  ;;  %v3773_v7 = vld [vmem:[#allocation6 + $0x3f0] sm:$0xf0] }
 0x119   : > { %v1458_v1 = vmul.f32 %v1457_v10, %v1433_v12  ;;  %2440 = vmatpush.bf16.msra.mxu0 %v3316_v56  ;;  %v3533_v56 = vld [vmem:[#allocation6 + $0x210] sm:$0xf0]  ;;  %v3365_v12 = vld [vmem:[#allocation6 + $0xb8] sm:$0xf0]  ;;  %v3776_v14 = vor.u32 %v4041_v6, %v3773_v7  ;;  %v3968_v34 = vld [vmem:[#allocation6 + $0x194] sm:$0xf0] }
 0x11a   : > { %v1466_v15 = vadd.f32 0.0036580483, %v1465_v0  ;;  %v1477_v17 = vadd.f32 0.014752088, %v1476_v2  ;;  %v3660_v0 = vor.u32 %v4015_v54, %v3659_v51  ;;  %v3536_v5 = vor.u32 %v3981_v55, %v3533_v56  ;;  %v3349_v27 = vld [vmem:[#allocation6 + $0x98] sm:$0xf0] }
 0x11b   : > { %v3270_v29 = vclamps-f32 %v1458_v1, 1.0  ;;  %v3757_v1 = vld [vmem:[#allocation6 + $0x3d0] sm:$0xf0]  ;;  %v3368_v58 = vor.u32 %v3938_v11, %v3365_v12  ;;  %v3352_v4 = vor.u32 %v3934_v26, %v3349_v27  ;;  %v3333_v40 = vld [vmem:[#allocation6 + $0x78] sm:$0xf0] }
 0x11c   : > { %v1478_v23 = vmul.f32 %v1477_v17, %v4563_v62  ;;  %v1467_v31 = vmul.f32 %v1466_v15, %v4563_v62  ;;  %2377 = vmatpush.bf16.msra.mxu3 %v3660_v0  ;;  %v3508_v17 = vor.u32 %v3976_v63, %v3507_v61  ;;  %2416 = vmatpush.bf16.msrb.mxu2 %v3536_v5  ;;  %v4029_v45 = vld [vmem:[#allocation6 + $0x384] sm:$0xf]  ;;  %v3725_v47 = vld [vmem:[#allocation6 + $0x390] sm:$0xf0]  ;;  %v3443_v51 = vld [vmem:[#allocation6 + $0x148] sm:$0xf] }
 0x11d   : > { %v1542_v53 = vadd.f32 1.0, %v3270_v29  ;;  %2441 = vmatpush.bf16.msra.mxu0 %v3300_v24  ;;  %v3760_v57 = vor.u32 %v4037_v21, %v3757_v1  ;;  %v3492_v29 = vor.u32 %v3972_v16, %v3491_v18  ;;  %v3926_v54 = vld [vmem:[#allocation6 + $0x4c] sm:$0xf]  ;;  %v3317_v55 = vld [vmem:[#allocation6 + $0x58] sm:$0xf0] }
 0x11e   : > { %v1479_v32 = vadd.f32 0.112945676, %v1478_v23  ;;  %v1468_v49 = vadd.f32 0.05243302, %v1467_v31  ;;  %v4033_v31 = vld [vmem:[#allocation6 + $0x3a4] sm:$0xf]  ;;  %v3320_v6 = vor.u32 %v3926_v54, %v3317_v55 }
 0x11f   : > { %v1546_v48 = vmul.f32 %v1542_v53, %v1374_v28  ;;  %v4025_v5 = vld [vmem:[#allocation6 + $0x364] sm:$0xf]  ;;  %v3709_v7 = vld [vmem:[#allocation6 + $0x370] sm:$0xf0] }
 0x120   : > { %v1480_v37 = vmul.f32 %v1479_v32, %v4563_v62  ;;  %2422 = vmatpush.bf16.msrb.mxu3 %v3776_v14  ;;  %v3741_v32 = vld [vmem:[#allocation6 + $0x3b0] sm:$0xf0]  ;;  %v3712_v14 = vor.u32 %v4025_v5, %v3709_v7  ;;  %v4021_v1 = vld [vmem:[#allocation6 + $0x344] sm:$0xf] }
 0x121   : > { %v1330_v38 = vpop.f32.mrf.mxu0  ;;  %v4582_v59 = vpack.c.bf16 %v1546_v48, %v1546_v48  ;;  %2442 = vmatpush.bf16.msra.mxu0 %v3284_v39  ;;  %v3744_v35 = vor.u32 %v4033_v31, %v3741_v32  ;;  %v3930_v39 = vld [vmem:[#allocation6 + $0x6c] sm:$0xf]  ;;  %v3728_v48 = vor.u32 %v4029_v45, %v3725_v47  ;;  %v3411_v31 = vld [vmem:[#allocation6 + $0x108] sm:$0xf]  ;;  %v3952_v32 = vld [vmem:[#allocation6 + $0x114] sm:$0xf0] }
 0x122   : > { %v1331_v19 = vadd.f32 %v1330_v38, %v506_v8  ;;  %v1343_v43 = vpop.f32.mrf.mxu1  ;;  %v1481_v50 = vadd.f32 0.4994258, %v1480_v37  ;;  %v1469_v8 = vmul.f32 %v1468_v49, %v4563_v62  ;;  %v3459_v38 = vld [vmem:[#allocation6 + $0x168] sm:$0xf]  ;;  %v3525_v47 = vld [vmem:[#allocation6 + $0x1f8] sm:$0xf0] }
 0x123   : > { %2352 = vmatmul.bf16.vlgmr.msra.gmra.mxu1 %v4582_v59 }
 0x124   : > { %v1482_v60 = vmul.f32 %v1481_v50, %v4563_v62  ;;  %v1344_v2 = vadd.f32 %v1343_v43, %v1331_v19  ;;  %2448 = vmatpush.bf16.msra.mxu1 %v3524_v52  ;;  %2443 = vmatmul.bf16.vlgmr.msra.gmra.mxu0 %v4546_v42  ;;  %v1470_v25 = vadd.f32 0.18741608, %v1469_v8  ;;  %v3476_v43 = vor.u32 %v3968_v34, %v3475_v33  ;;  %v3960_v52 = vld [vmem:[#allocation6 + $0x154] sm:$0xf0]  ;;  %v3918_v33 = vld [vmem:[#allocation6 + $0xc] sm:$0xf] }
 0x125   : > { %2487 = vmatpush.bf16.msrb.mxu0 %v3400_v44  ;;  %2423 = vmatpush.bf16.msrb.mxu3 %v3760_v57  ;;  %v3964_v44 = vld [vmem:[#allocation6 + $0x174] sm:$0xf0]  ;;  %v3444_v18 = vor.u32 %v3960_v52, %v3443_v51  ;;  %v3285_v34 = vld [vmem:[#allocation6 + $0x18] sm:$0xf0]  ;;  %v4013_v51 = vld [vmem:[#allocation6 + $0x304] sm:$0xf] }
 0x126   : > { %v4586_v9 = vadd.f32 1.0, %v1482_v60  ;;  %v1471_v37 = vmul.f32 %v1470_v25, %v4563_v62  ;;  %v3336_v62 = vor.u32 %v3930_v39, %v3333_v40  ;;  %v3460_v63 = vor.u32 %v3964_v44, %v3459_v38  ;;  %v3677_v38 = vld [vmem:[#allocation6 + $0x330] sm:$0xf0]  ;;  %v3651_v39 = vld [vmem:[#allocation6 + $0x2e8] sm:$0xf] }
 0x127   : > { %v4012_v40 = vld [vmem:[#allocation6 + $0x2f4] sm:$0xf0]  ;;  %v3288_v45 = vor.u32 %v3918_v33, %v3285_v34  ;;  %v3661_v52 = vld [vmem:[#allocation6 + $0x310] sm:$0xf0]  ;;  %v3571_v33 = vld [vmem:[#allocation6 + $0x248] sm:$0xf] }
 0x128   : > { %4121 = vrcp.f32 %v4586_v9  ;;  %2449 = vmatpush.bf16.msra.mxu1 %v3508_v17  ;;  %v1472_v56 = vadd.f32 1.1283791, %v1471_v37  ;;  %v1493_v60 = vand.u32 2147483647, %v4586_v9  ;;  %v1495_v61 = vand.u32 2147483648, %v4586_v9 }
 0x129   : > { %v1356_v15 = vpop.f32.mrf.mxu2  ;;  %v1332_v20 = vpop.f32.mrf.mxu0  ;;  %2488 = vmatpush.bf16.msrb.mxu0 %v3384_v3  ;;  %2424 = vmatpush.bf16.msrb.mxu3 %v3744_v35  ;;  %vm1489_vm9 = vweird.f32 %v4586_v9  ;;  %v4017_v37 = vld [vmem:[#allocation6 + $0x324] sm:$0xf]  ;;  %v3652_v54 = vor.u32 %v4012_v40, %v3651_v39  ;;  %v3992_v34 = vld [vmem:[#allocation6 + $0x254] sm:$0xf0] }
 0x12a   : > { %v1369_v10 = vpop.f32.mrf.mxu3  ;;  %v1357_v23 = vadd.f32 %v1356_v15, %v1344_v2  ;;  %v1345_v24 = vpop.f32.mrf.mxu1  ;;  %v1473_v15 = vmul.f32 %v1472_v56, %v4557_v22  ;;  %v1496_v17 = vor.u32 1.1754944e-38, %v1495_v61  ;;  %v3301_v20 = vld [vmem:[#allocation6 + $0x38] sm:$0xf0]  ;;  %vm1494_vm11 = vcmp.eq.f32.partialorder %v1493_v60, 8.507059e+37  ;;  %v3956_v22 = vld [vmem:[#allocation6 + $0x134] sm:$0xf0] }
 0x12b   : > { %v3635_v56 = vld [vmem:[#allocation6 + $0x2c8] sm:$0xf]  ;;  %v4008_v60 = vld [vmem:[#allocation6 + $0x2d4] sm:$0xf0] }
 0x12c   : > { %v4591_v28 = vadd.f32 %v1369_v10, %v1357_v23  ;;  %2450 = vmatpush.bf16.msra.mxu1 %v3492_v29  ;;  %v3922_v10 = vld [vmem:[#allocation6 + $0x2c] sm:$0xf]  ;;  %v3693_v23 = vld [vmem:[#allocation6 + $0x350] sm:$0xf0] }
 0x12d   : > { %2489 = vmatpush.bf16.msrb.mxu0 %v3368_v58  ;;  %2425 = vmatpush.bf16.msrb.mxu3 %v3728_v48  ;;  %v3427_v58 = vld [vmem:[#allocation6 + $0x128] sm:$0xf]  ;;  %v3696_v25 = vor.u32 %v4021_v1, %v3693_v23  ;;  %v3304_v57 = vor.u32 %v3922_v10, %v3301_v20 }
 0x12e   : > { %v4594_v36 = vmul.f32 0.70710677, %v4591_v28  ;;  %v4122_v53 = vpop.eup %4121  ;;  %v3603_v20 = vld [vmem:[#allocation6 + $0x288] sm:$0xf] }
 0x12f   : > { %v1485_v41 = vmul.f32 %v4122_v53, %v4586_v9  ;;  %vm1490_vm8 = vweird.f32 %v4122_v53 }
 0x130   : > { %v1501_v30 = vmul.f32 %v4594_v36, %v4594_v36  ;;  %2451 = vmatpush.bf16.msra.mxu1 %v3476_v43  ;;  %vm1491_vm10 = vmor %vm1489_vm9, %vm1490_vm8 }
 0x131   : > { %v1358_v19 = vpop.f32.mrf.mxu2  ;;  %v1486_v49 = vsub.f32 1.0, %v1485_v41  ;;  %2490 = vmatpush.bf16.msrb.mxu0 %v3352_v4  ;;  %2426 = vmatpush.bf16.msrb.mxu3 %v3712_v14  ;;  %v3978_v41 = vld [vmem:[#allocation6 + $0x1ec] sm:$0xf] }
 0x132   : > { %v1371_v46 = vpop.f32.mrf.mxu3  ;;  %v4600_v50 = vmin.f32 %v1501_v30, 16.0  ;;  %v3680_v30 = vor.u32 %v4017_v37, %v3677_v38  ;;  %v1375_v19 = vmul.f32 0.5, %v4554_v13  ;;  %v3528_v55 = vor.u32 %v3978_v41, %v3525_v47  ;;  %v3970_v14 = vld [vmem:[#allocation6 + $0x1ac] sm:$0xf] }
 0x133   : > { %v1487_v0 = vmul.f32 %v4122_v53, %v1486_v49  ;;  %2404 = vmatmul.bf16.vlgmr.msrb.gmra.mxu1 %v4582_v59 }
 0x134   : > { %v1503_v2 = vmul.f32 2.1237322e-06, %v4600_v50  ;;  %v1514_v3 = vmul.f32 3.8918573e-05, %v4600_v50  ;;  %2452 = vmatpush.bf16.msra.mxu1 %v3460_v63  ;;  %v3974_v63 = vld [vmem:[#allocation6 + $0x1cc] sm:$0xf] }
 0x135   : > { %v1488_v8 = vadd.f32 %v4122_v53, %v1487_v0  ;;  %2491 = vmatpush.bf16.msrb.mxu0 %v3336_v62  ;;  %2427 = vmatpush.bf16.msrb.mxu3 %v3696_v25  ;;  %v3412_v62 = vor.u32 %v3952_v32, %v3411_v31  ;;  %v3509_v0 = vld [vmem:[#allocation6 + $0x1d8] sm:$0xf0]  ;;  %v3962_v25 = vld [vmem:[#allocation6 + $0x16c] sm:$0xf] }
 0x136   : > { %v1504_v11 = vadd.f32 0.00028619796, %v1503_v2  ;;  %v1515_v12 = vadd.f32 0.001143296, %v1514_v3  ;;  %v3664_v2 = vor.u32 %v4013_v51, %v3661_v52  ;;  %v3512_v7 = vor.u32 %v3974_v63, %v3509_v0  ;;  %v3539_v52 = vld [vmem:[#allocation6 + $0x208] sm:$0xf] }
 0x137   : > { %v1492_v16 = vsel %vm1491_vm10, %v4122_v53, %v1488_v8  ;;  %v3428_v53 = vor.u32 %v3956_v22, %v3427_v58  ;;  %v3619_v8 = vld [vmem:[#allocation6 + $0x2a8] sm:$0xf]  ;;  %v3996_v22 = vld [vmem:[#allocation6 + $0x274] sm:$0xf0]  ;;  %v3653_v63 = vld [vmem:[#allocation6 + $0x2f8] sm:$0xf0] }
 0x138   : > { %v1505_v9 = vmul.f32 %v1504_v11, %v4600_v50  ;;  %v1516_v21 = vmul.f32 %v1515_v12, %v4600_v50  ;;  %v1497_v24 = vsel %vm1494_vm11, %v1496_v17, %v1492_v16  ;;  %2453 = vmatpush.bf16.msra.mxu1 %v3444_v18  ;;  %v4004_v11 = vld [vmem:[#allocation6 + $0x2b4] sm:$0xf0]  ;;  %v1376_v0 = vmul.f32 0.5, %v4591_v28 }
 0x139   : > { %v1498_v26 = vmul.f32 %v1497_v24, %v1473_v15  ;;  %2492 = vmatpush.bf16.msrb.mxu0 %v3320_v6  ;;  %2428 = vmatpush.bf16.msrb.mxu3 %v3680_v30  ;;  %v3636_v6 = vor.u32 %v4008_v60, %v3635_v56  ;;  %v3493_v15 = vld [vmem:[#allocation6 + $0x1b8] sm:$0xf0]  ;;  %v3620_v18 = vor.u32 %v4004_v11, %v3619_v8  ;;  %v4000_v16 = vld [vmem:[#allocation6 + $0x294] sm:$0xf0]  ;;  %v3587_v24 = vld [vmem:[#allocation6 + $0x268] sm:$0xf] }
 0x13a   : > { %v1517_v27 = vadd.f32 0.014752088, %v1516_v21  ;;  %v1506_v29 = vadd.f32 0.0036580483, %v1505_v9  ;;  %v3496_v10 = vor.u32 %v3970_v14, %v3493_v15  ;;  %v3966_v9 = vld [vmem:[#allocation6 + $0x18c] sm:$0xf]  ;;  %v3588_v31 = vor.u32 %v3996_v22, %v3587_v24 }
 0x13b   : > { %v3271_v35 = vclamps-f32 %v1498_v26, 1.0  ;;  %v3477_v21 = vld [vmem:[#allocation6 + $0x198] sm:$0xf0]  ;;  %v3555_v30 = vld [vmem:[#allocation6 + $0x228] sm:$0xf] }
 0x13c   : > { %v1518_v4 = vmul.f32 %v1517_v27, %v4600_v50  ;;  %v1507_v46 = vmul.f32 %v1506_v29, %v4600_v50  ;;  %2454 = vmatpush.bf16.msra.mxu1 %v3428_v53  ;;  %v3480_v23 = vor.u32 %v3966_v9, %v3477_v21  ;;  %v3461_v26 = vld [vmem:[#allocation6 + $0x178] sm:$0xf0]  ;;  %v4006_v11 = vld [vmem:[#allocation6 + $0x2cc] sm:$0xf]  ;;  %v3747_v9 = vld [vmem:[#allocation6 + $0x3a8] sm:$0xf] }
 0x13d   : > { %v1543_v43 = vadd.f32 1.0, %v3271_v35  ;;  %2493 = vmatpush.bf16.msrb.mxu0 %v3304_v57  ;;  %2429 = vmatpush.bf16.msrb.mxu3 %v3664_v2  ;;  %v3464_v32 = vor.u32 %v3962_v25, %v3461_v26  ;;  %v3445_v53 = vld [vmem:[#allocation6 + $0x158] sm:$0xf0]  ;;  %v4036_v21 = vld [vmem:[#allocation6 + $0x3b4] sm:$0xf0] }
 0x13e   : > { %v1519_v44 = vadd.f32 0.112945676, %v1518_v4  ;;  %v1508_v3 = vadd.f32 0.05243302, %v1507_v46  ;;  %v3958_v4 = vld [vmem:[#allocation6 + $0x14c] sm:$0xf]  ;;  %v3748_v24 = vor.u32 %v4036_v21, %v3747_v9 }
 0x13f   : > { %v1547_v48 = vmul.f32 %v1543_v43, %v1375_v19  ;;  %v3448_v41 = vor.u32 %v3958_v4, %v3445_v53  ;;  %v3988_v19 = vld [vmem:[#allocation6 + $0x234] sm:$0xf0]  ;;  %v3413_v56 = vld [vmem:[#allocation6 + $0x118] sm:$0xf0]  ;;  %v3994_v26 = vld [vmem:[#allocation6 + $0x26c] sm:$0xf] }
 0x140   : > { %v1520_v49 = vmul.f32 %v1519_v44, %v4600_v50  ;;  %2455 = vmatpush.bf16.msra.mxu1 %v3412_v62  ;;  %v1509_v17 = vmul.f32 %v1508_v3, %v4600_v50  ;;  %v3954_v44 = vld [vmem:[#allocation6 + $0x12c] sm:$0xf]  ;;  %v3556_v62 = vor.u32 %v3988_v19, %v3555_v30  ;;  %v4032_v22 = vld [vmem:[#allocation6 + $0x394] sm:$0xf0]  ;;  %v3541_v19 = vld [vmem:[#allocation6 + $0x218] sm:$0xf0] }
 0x141   : > { %v4616_v13 = vpack.c.bf16 %v1547_v48, %v1547_v48  ;;  %2494 = vmatpush.bf16.msrb.mxu0 %v3288_v45  ;;  %v3429_v45 = vld [vmem:[#allocation6 + $0x138] sm:$0xf0]  ;;  %v4024_v4 = vld [vmem:[#allocation6 + $0x354] sm:$0xf0]  ;;  %v3982_v30 = vld [vmem:[#allocation6 + $0x20c] sm:$0xf] }
 0x142   : > { %v1521_v61 = vadd.f32 0.4994258, %v1520_v49  ;;  %v1510_v1 = vadd.f32 0.18741608, %v1509_v17  ;;  %v3432_v51 = vor.u32 %v3954_v44, %v3429_v45  ;;  %v3763_v17 = vld [vmem:[#allocation6 + $0x3c8] sm:$0xf] }
 0x143   : > { %2365 = vmatmul.bf16.vlgmr.msra.gmra.mxu2 %v4616_v13  ;;  %2456 = vmatmul.bf16.vlgmr.msra.gmra.mxu1 %v4582_v59  ;;  %v3667_v44 = vld [vmem:[#allocation6 + $0x308] sm:$0xf]  ;;  %v4016_v45 = vld [vmem:[#allocation6 + $0x314] sm:$0xf0] }
 0x144   : > { %v1522_v5 = vmul.f32 %v1521_v61, %v4600_v50  ;;  %2461 = vmatpush.bf16.msra.mxu2 %v3652_v54  ;;  %2500 = vmatpush.bf16.msrb.mxu1 %v3528_v55  ;;  %v1511_v27 = vmul.f32 %v1510_v1, %v4600_v50  ;;  %v3572_v50 = vor.u32 %v3992_v34, %v3571_v33  ;;  %v3984_v54 = vld [vmem:[#allocation6 + $0x214] sm:$0xf0]  ;;  %v3950_v55 = vld [vmem:[#allocation6 + $0x10c] sm:$0xf]  ;;  %v3573_v33 = vld [vmem:[#allocation6 + $0x258] sm:$0xf0] }
 0x145   : > { %2495 = vmatmul.bf16.vlgmr.msrb.gmra.mxu0 %v4546_v42  ;;  %v3604_v42 = vor.u32 %v4000_v16, %v3603_v20  ;;  %v4010_v61 = vld [vmem:[#allocation6 + $0x2ec] sm:$0xf]  ;;  %v3416_v3 = vor.u32 %v3950_v55, %v3413_v56  ;;  %v3621_v20 = vld [vmem:[#allocation6 + $0x2b8] sm:$0xf0] }
 0x146   : > { %v1523_v12 = vadd.f32 1.0, %v1522_v5  ;;  %v1512_v37 = vadd.f32 1.1283791, %v1511_v27  ;;  %v3779_v5 = vld [vmem:[#allocation6 + $0x3e8] sm:$0xf] }
 0x147   : > { %v3589_v27 = vld [vmem:[#allocation6 + $0x278] sm:$0xf0]  ;;  %v4034_v55 = vld [vmem:[#allocation6 + $0x3ac] sm:$0xf] }
 0x148   : > { %4123 = vrcp.f32 %v1523_v12  ;;  %2462 = vmatpush.bf16.msra.mxu2 %v3636_v6  ;;  %2501 = vmatpush.bf16.msrb.mxu1 %v3512_v7  ;;  %v1535_v35 = vand.u32 2147483648, %v1523_v12  ;;  %v1533_v39 = vand.u32 2147483647, %v1523_v12  ;;  %vm1529_vm13 = vweird.f32 %v1523_v12  ;;  %v4044_v6 = vld [vmem:[#allocation6 + $0x3f4] sm:$0xf0] }
 0x149   : > { %v1513_v47 = vmul.f32 %v1512_v37, %v4594_v36  ;;  %v3540_v36 = vor.u32 %v3984_v54, %v3539_v52  ;;  %v3656_v7 = vor.u32 %v4010_v61, %v3653_v63  ;;  %v3780_v14 = vor.u32 %v4044_v6, %v3779_v5  ;;  %v3986_v37 = vld [vmem:[#allocation6 + $0x22c] sm:$0xf]  ;;  %v3765_v52 = vld [vmem:[#allocation6 + $0x3d8] sm:$0xf0] }
 0x14a   : > { %v1536_v43 = vor.u32 1.1754944e-38, %v1535_v35  ;;  %vm1534_vm15 = vcmp.eq.f32.partialorder %v1533_v39, 8.507059e+37  ;;  %v3699_v35 = vld [vmem:[#allocation6 + $0x348] sm:$0xf]  ;;  %v3749_v56 = vld [vmem:[#allocation6 + $0x3b8] sm:$0xf0] }
 0x14b   : > { %v3700_v39 = vor.u32 %v4024_v4, %v3699_v35  ;;  %v4030_v63 = vld [vmem:[#allocation6 + $0x38c] sm:$0xf] }
 0x14c   : > { %2463 = vmatpush.bf16.msra.mxu2 %v3620_v18  ;;  %2502 = vmatpush.bf16.msrb.mxu1 %v3496_v10  ;;  %v4040_v18 = vld [vmem:[#allocation6 + $0x3d4] sm:$0xf0]  ;;  %v4002_v10 = vld [vmem:[#allocation6 + $0x2ac] sm:$0xf] }
 0x14d   : > { %v3764_v16 = vor.u32 %v4040_v18, %v3763_v17  ;;  %v3624_v1 = vor.u32 %v4002_v10, %v3621_v20  ;;  %v4014_v18 = vld [vmem:[#allocation6 + $0x30c] sm:$0xf]  ;;  %v1681_v20 = vld [vmem:[#allocation7] sm:$0xf] }
 0x14e   : > { %v4124_v58 = vpop.eup %4123  ;;  %v1683_v9 = vperm.slane %v1681_v20, 0 }
 0x14f   : > { %v1525_v57 = vmul.f32 %v4124_v58, %v1523_v12  ;;  %vm1530_vm12 = vweird.f32 %v4124_v58  ;;  %v3637_v12 = vld [vmem:[#allocation6 + $0x2d8] sm:$0xf0] }
 0x150   : > { %2464 = vmatpush.bf16.msra.mxu2 %v3604_v42  ;;  %2503 = vmatpush.bf16.msrb.mxu1 %v3480_v23  ;;  %vm1531_vm14 = vmor %vm1529_vm13, %vm1530_vm12  ;;  %v3640_v28 = vor.u32 %v4006_v11, %v3637_v12  ;;  %v3998_v42 = vld [vmem:[#allocation6 + $0x28c] sm:$0xf]  ;;  %v3605_v23 = vld [vmem:[#allocation6 + $0x298] sm:$0xf0] }
 0x151   : > { %v1526_v29 = vsub.f32 1.0, %v1525_v57  ;;  %v3608_v25 = vor.u32 %v3998_v42, %v3605_v23  ;;  %v4018_v11 = vld [vmem:[#allocation6 + $0x32c] sm:$0xf]  ;;  %v3685_v12 = vld [vmem:[#allocation6 + $0x338] sm:$0xf0] }
 0x153   : > { %v1527_v38 = vmul.f32 %v4124_v58, %v1526_v29  ;;  %2417 = vmatmul.bf16.vlgmr.msrb.gmra.mxu2 %v4616_v13  ;;  %v4028_v29 = vld [vmem:[#allocation6 + $0x374] sm:$0xf0] }
 0x154   : > { %2465 = vmatpush.bf16.msra.mxu2 %v3588_v31  ;;  %2504 = vmatpush.bf16.msrb.mxu1 %v3464_v32  ;;  %v3592_v31 = vor.u32 %v3994_v26, %v3589_v27  ;;  %v3990_v32 = vld [vmem:[#allocation6 + $0x24c] sm:$0xf] }
 0x155   : > { %v1528_v40 = vadd.f32 %v4124_v58, %v1527_v38  ;;  %v3576_v53 = vor.u32 %v3990_v32, %v3573_v33  ;;  %v3557_v38 = vld [vmem:[#allocation6 + $0x238] sm:$0xf0] }
 0x157   : > { %v1532_v46 = vsel %vm1531_vm14, %v4124_v58, %v1528_v40  ;;  %v3731_v58 = vld [vmem:[#allocation6 + $0x388] sm:$0xf] }
 0x158   : > { %v1537_v48 = vsel %vm1534_vm15, %v1536_v43, %v1532_v46  ;;  %2466 = vmatpush.bf16.msra.mxu2 %v3572_v50  ;;  %2505 = vmatpush.bf16.msrb.mxu1 %v3448_v41  ;;  %v3732_v57 = vor.u32 %v4032_v22, %v3731_v58  ;;  %v3683_v40 = vld [vmem:[#allocation6 + $0x328] sm:$0xf]  ;;  %v4020_v50 = vld [vmem:[#allocation6 + $0x334] sm:$0xf0]  ;;  %v3560_v41 = vor.u32 %v3986_v37, %v3557_v38  ;;  %v4042_v46 = vld [vmem:[#allocation6 + $0x3ec] sm:$0xf] }
 0x159   : > { %v1538_v49 = vmul.f32 %v1537_v48, %v1513_v47  ;;  %v3684_v43 = vor.u32 %v4020_v50, %v3683_v40  ;;  %v3544_v47 = vor.u32 %v3982_v30, %v3541_v19  ;;  %v3781_v48 = vld [vmem:[#allocation6 + $0x3f8] sm:$0xf0]  ;;  %v1684_v22 = vperm.slane %v1681_v20, 1 }
 0x15b   : > { %v3272_v60 = vclamps-f32 %v1538_v49, 1.0  ;;  %v3668_v49 = vor.u32 %v4016_v45, %v3667_v44 }
 0x15c   : > { %2467 = vmatpush.bf16.msra.mxu2 %v3556_v62  ;;  %2506 = vmatpush.bf16.msrb.mxu1 %v3432_v51  ;;  %v3784_v62 = vor.u32 %v4042_v46, %v3781_v48  ;;  %v4038_v51 = vld [vmem:[#allocation6 + $0x3cc] sm:$0xf] }
 0x15d   : > { %v1544_v2 = vadd.f32 1.0, %v3272_v60  ;;  %v3768_v54 = vor.u32 %v4038_v51, %v3765_v52  ;;  %v3752_v60 = vor.u32 %v4034_v55, %v3749_v56 }
 0x15f   : > { %v1548_v8 = vmul.f32 %v1544_v2, %v1376_v0  ;;  %v3733_v0 = vld [vmem:[#allocation6 + $0x398] sm:$0xf0] }
 0x160   : > { %2468 = vmatpush.bf16.msra.mxu2 %v3540_v36  ;;  %2507 = vmatpush.bf16.msrb.mxu1 %v3416_v3  ;;  %v3736_v2 = vor.u32 %v4030_v63, %v3733_v0  ;;  %v4026_v36 = vld [vmem:[#allocation6 + $0x36c] sm:$0xf]  ;;  %v3717_v3 = vld [vmem:[#allocation6 + $0x378] sm:$0xf0]  ;;  %v4130_v0 = vld [vmem:[%s4467_s19 + $0x8] sm:$0xff] }
 0x161   : > { %v4627_v15 = vpack.c.bf16 %v1548_v8, %v1548_v8  ;;  %v3720_v5 = vor.u32 %v4026_v36, %v3717_v3  ;;  %v3701_v8 = vld [vmem:[#allocation6 + $0x358] sm:$0xf0] }
 0x163   : > { %2378 = vmatmul.bf16.vlgmr.msra.gmra.mxu3 %v4627_v15  ;;  %2508 = vmatmul.bf16.vlgmr.msrb.gmra.mxu1 %v4582_v59  ;;  %v3715_v59 = vld [vmem:[#allocation6 + $0x368] sm:$0xf] }
 0x164   : > { %2513 = vmatpush.bf16.msrb.mxu2 %v3656_v7  ;;  %2474 = vmatpush.bf16.msra.mxu3 %v3780_v14  ;;  %v3716_v34 = vor.u32 %v4028_v29, %v3715_v59  ;;  %v4022_v7 = vld [vmem:[#allocation6 + $0x34c] sm:$0xf]  ;;  %v3688_v14 = vor.u32 %v4018_v11, %v3685_v12  ;;  %v1685_v59 = vperm.slane %v1681_v20, 2 }
 0x165   : > { %2469 = vmatmul.bf16.vlgmr.msra.gmra.mxu2 %v4616_v13 }
 0x168   : > { %2514 = vmatpush.bf16.msrb.mxu2 %v3640_v28  ;;  %2475 = vmatpush.bf16.msra.mxu3 %v3764_v16  ;;  %v3669_v28 = vld [vmem:[#allocation6 + $0x318] sm:$0xf0] }
 0x169   : > { %v3672_v10 = vor.u32 %v4014_v18, %v3669_v28 }
 0x16c   : > { %2515 = vmatpush.bf16.msrb.mxu2 %v3624_v1  ;;  %2476 = vmatpush.bf16.msra.mxu3 %v3748_v24 }
 0x170   : > { %2516 = vmatpush.bf16.msrb.mxu2 %v3608_v25  ;;  %2477 = vmatpush.bf16.msra.mxu3 %v3732_v57 }
 0x173   : > { %2430 = vmatmul.bf16.vlgmr.msrb.gmra.mxu3 %v4627_v15 }
 0x174   : > { %2517 = vmatpush.bf16.msrb.mxu2 %v3592_v31  ;;  %2478 = vmatpush.bf16.msra.mxu3 %v3716_v34 }
 0x178   : > { %2518 = vmatpush.bf16.msrb.mxu2 %v3576_v53  ;;  %2479 = vmatpush.bf16.msra.mxu3 %v3700_v39 }
 0x17c   : > { %2519 = vmatpush.bf16.msrb.mxu2 %v3560_v41  ;;  %2480 = vmatpush.bf16.msra.mxu3 %v3684_v43 }
 0x180   : > { %2520 = vmatpush.bf16.msrb.mxu2 %v3544_v47  ;;  %2481 = vmatpush.bf16.msra.mxu3 %v3668_v49 }
 0x181   : > { %v2340_v61 = vpop.f32.mrf.mxu0 }
 0x182   : > { %v2341_v21 = vadd.f32 %v2340_v61, %v1683_v9 }
 0x183   : > { %2521 = vmatmul.bf16.vlgmr.msrb.gmra.mxu2 %v4616_v13  ;;  %2482 = vmatmul.bf16.vlgmr.msra.gmra.mxu3 %v4627_v15  ;;  %v3704_v13 = vor.u32 %v4022_v7, %v3701_v8  ;;  %v2542_v8 = vunpack.c.h.bf16 %v4130_v0 }
 0x184   : > { %2526 = vmatpush.bf16.msrb.mxu3 %v3784_v62  ;;  %v1686_v62 = vperm.slane %v1681_v20, 3 }
 0x188   : > { %2527 = vmatpush.bf16.msrb.mxu3 %v3768_v54  ;;  %v4129_v54 = vld [vmem:[%s4467_s19] sm:$0xff] }
 0x189   : > { %v2342_v6 = vpop.f32.mrf.mxu0  ;;  %v2540_v55 = vunpack.c.h.bf16 %v4129_v54  ;;  %v2539_v61 = vunpack.c.l.bf16 %v4129_v54 }
 0x18c   : > { %2528 = vmatpush.bf16.msrb.mxu3 %v3752_v60 }
 0x190   : > { %2529 = vmatpush.bf16.msrb.mxu3 %v3736_v2  ;;  %v2541_v2 = vunpack.c.l.bf16 %v4130_v0 }
 0x191   : > { %v2392_v17 = vpop.f32.mrf.mxu0 }
 0x192   : > { %v2393_v25 = vadd.f32 %v2392_v17, %v1684_v22 }
 0x194   : > { %2530 = vmatpush.bf16.msrb.mxu3 %v3720_v5 }
 0x198   : > { %2531 = vmatpush.bf16.msrb.mxu3 %v3704_v13 }
 0x199   : > { %v2394_v16 = vpop.f32.mrf.mxu0 }
 0x19c   : > { %2532 = vmatpush.bf16.msrb.mxu3 %v3688_v14 }
 0x1a0   : > { %2533 = vmatpush.bf16.msrb.mxu3 %v3672_v10  ;;  %v2353_v1 = vpop.f32.mrf.mxu1  ;;  %v4343_v10 = vmov 512.0  }
 0x1a1   : > { %v2354_v42 = vadd.f32 %v2353_v1, %v2341_v21  ;;  %v2444_v23 = vpop.f32.mrf.mxu0  ;;  %4125 = vrcp.f32 %v4343_v10 }
 0x1a2   : > { %v2445_v29 = vadd.f32 %v2444_v23, %v1685_v59 }
 0x1a3   : > { %2534 = vmatmul.bf16.vlgmr.msrb.gmra.mxu3 %v4627_v15 }
 0x1a7   : > { %v4126_v20 = vpop.eup %4125 }
 0x1a8   : > { %v2355_v24 = vpop.f32.mrf.mxu1  ;;  %v2553_v16 = vmul.f32 512.0, %v4126_v20  ;;  %vm2557_vm0 = vweird.f32 %v4126_v20 }
 0x1a9   : > { %v2446_v58 = vpop.f32.mrf.mxu0 }
 0x1aa   : > { %v2554_v9 = vsub.f32 1.0, %v2553_v16 }
 0x1ac   : > { %v2555_v21 = vmul.f32 %v4126_v20, %v2554_v9 }
 0x1ae   : > { %v2556_v1 = vadd.f32 %v4126_v20, %v2555_v21 }
 0x1b0   : > { %v2405_v26 = vpop.f32.mrf.mxu1 }
 0x1b1   : > { %v2406_v27 = vadd.f32 %v2405_v26, %v2393_v25 }
 0x1b8   : > { %v2407_v57 = vpop.f32.mrf.mxu1 }
 0x1c0   : > { %v2457_v32 = vpop.f32.mrf.mxu1 }
 0x1c1   : > { %v2458_v33 = vadd.f32 %v2457_v32, %v2445_v29 }
 0x1c2   : > { %v2496_v31 = vpop.f32.mrf.mxu0 }
 0x1c3   : > { %v2497_v56 = vadd.f32 %v2496_v31, %v1686_v62 }
 0x1c6   : > { %v2366_v34 = vpop.f32.mrf.mxu2 }
 0x1c7   : > { %v2367_v35 = vadd.f32 %v2366_v34, %v2354_v42  ;;  %v2558_v42 = vsel %vm2557_vm0, %v4126_v20, %v2556_v1 }
 0x1c8   : > { %v2459_v15 = vpop.f32.mrf.mxu1 }
 0x1ca   : > { %v2498_v4 = vpop.f32.mrf.mxu0 }
 0x1ce   : > { %v2368_v53 = vpop.f32.mrf.mxu2 }
 0x1d6   : > { %v2418_v37 = vpop.f32.mrf.mxu2 }
 0x1d7   : > { %v2419_v38 = vadd.f32 %v2418_v37, %v2406_v27 }
 0x1de   : > { %v2420_v39 = vpop.f32.mrf.mxu2 }
 0x1df   : > { %v2589_v39 = vld [vmem:[#allocation9] sm:$0xf] }
 0x1e0   : > { %v2509_v40 = vpop.f32.mrf.mxu1 }
 0x1e1   : > { %v2510_v36 = vadd.f32 %v2509_v40, %v2497_v56  ;;  %v2603_v40 = vld [vmem:[#allocation10] sm:$0xf] }
 0x1e6   : > { %v2379_v50 = vpop.f32.mrf.mxu3 }
 0x1e7   : > { %v2380_v60 = vadd.f32 %v2379_v50, %v2367_v35 }
 0x1e8   : > { %v2470_v41 = vpop.f32.mrf.mxu2  ;;  %v2511_v30 = vpop.f32.mrf.mxu1 }
 0x1e9   : > { %v2471_v51 = vadd.f32 %v2470_v41, %v2458_v33  ;;  %v2543_v5 = vadd.f32 %v2539_v61, %v2380_v60  ;;  %v2591_v41 = vperm.slane %v2589_v39, 0 }
 0x1ee   : > { %v2381_v19 = vpop.f32.mrf.mxu3 }
 0x1ef   : > { %v2592_v19 = vperm.slane %v2589_v39, 1 }
 0x1f0   : > { %v2472_v43 = vpop.f32.mrf.mxu2 }
 0x1f1   : > { %v2593_v43 = vperm.slane %v2589_v39, 2 }
 0x1f6   : > { %v2431_v44 = vpop.f32.mrf.mxu3 }
 0x1f7   : > { %v2432_v52 = vadd.f32 %v2431_v44, %v2419_v38  ;;  %v2594_v44 = vperm.slane %v2589_v39, 3 }
 0x1f9   : > { %v2544_v3 = vadd.f32 %v2540_v55, %v2432_v52 }
 0x1fb   : > { %v2547_v12 = vadd.f32 %v2544_v3, %v2543_v5 }
 0x1fe   : > { %v2433_v45 = vpop.f32.mrf.mxu3 }
 0x1ff   : > { %v2605_v45 = vperm.slane %v2603_v40, 0 }
 0x206   : > { %v2522_v47 = vpop.f32.mrf.mxu2  ;;  %v2483_v46 = vpop.f32.mrf.mxu3 }
 0x207   : > { %v2484_v63 = vadd.f32 %v2483_v46, %v2471_v51  ;;  %v2523_v6 = vadd.f32 %v2522_v47, %v2510_v36  ;;  %v2606_v47 = vperm.slane %v2603_v40, 1  ;;  %v2607_v46 = vperm.slane %v2603_v40, 2 }
 0x209   : > { %v2545_v7 = vadd.f32 %v2541_v2, %v2484_v63 }
 0x20b   : > { %v2548_v17 = vadd.f32 %v2547_v12, %v2545_v7 }
 0x20e   : > { %v2524_v48 = vpop.f32.mrf.mxu2  ;;  %v2485_v49 = vpop.f32.mrf.mxu3 }
 0x20f   : > { %v2608_v48 = vperm.slane %v2603_v40, 3 }
 0x226   : > { %v2535_v13 = vpop.f32.mrf.mxu3 }
 0x227   : > { %v2536_v11 = vadd.f32 %v2535_v13, %v2523_v6 }
 0x229   : > { %v2546_v14 = vadd.f32 %v2542_v8, %v2536_v11 }
 0x22b   : > { %v2549_v18 = vadd.f32 %v2548_v17, %v2546_v14 }
 0x22d   : > { %2550 = vadd.xlane.f32.xlu0 %v2549_v18 }
 0x22e   : > { %v2537_v28 = vpop.f32.mrf.mxu3 }
 0x2a0   : > { %v2551_v23 = vpop.xlane.xlu0 %2550 }
 0x2a1   : > { %v2559_v24 = vmul.f32 %v2558_v42, %v2551_v23 }
 0x2a3   : > { %v2560_v58 = vsub.f32 %v2543_v5, %v2559_v24  ;;  %v2561_v22 = vsub.f32 %v2544_v3, %v2559_v24  ;;  %v2562_v25 = vsub.f32 %v2545_v7, %v2559_v24  ;;  %v2563_v26 = vsub.f32 %v2546_v14, %v2559_v24 }
 0x2a5   : > { %v2564_v27 = vmul.f32 %v2560_v58, %v2560_v58  ;;  %v2565_v57 = vmul.f32 %v2561_v22, %v2561_v22  ;;  %v2566_v59 = vmul.f32 %v2562_v25, %v2562_v25  ;;  %v2567_v31 = vmul.f32 %v2563_v26, %v2563_v26 }
 0x2a7   : > { %v2568_v29 = vadd.f32 %v2565_v57, %v2564_v27 }
 0x2a9   : > { %v2569_v32 = vadd.f32 %v2568_v29, %v2566_v59 }
 0x2ab   : > { %v2570_v33 = vadd.f32 %v2569_v32, %v2567_v31 }
 0x2ad   : > { %2571 = vadd.xlane.f32.xlu0 %v2570_v33 }
 0x320   : > { %v2572_v34 = vpop.xlane.xlu0 %2571 }
 0x321   : > { %v2573_v35 = vmul.f32 %v2572_v34, %v2558_v42 }
 0x323   : > { %v2574_v4 = vadd.f32 1e-05, %v2573_v35 }
 0x325   : > { %4127 = vrsqrt.f32 %v2574_v4  ;;  %vm2581_vm2 = vweird.f32 %v2574_v4 }
 0x32b   : > { %v4128_v15 = vpop.eup %4127 }
 0x32c   : > { %v2576_v53 = vmul.f32 %v4128_v15, %v2574_v4  ;;  %vm2582_vm1 = vweird.f32 %v4128_v15 }
 0x32d   : > { %vm2583_vm3 = vmor %vm2581_vm2, %vm2582_vm1 }
 0x32e   : > { %v2577_v37 = vmul.f32 %v4128_v15, %v2576_v53 }
 0x330   : > { %v2578_v38 = vmul.f32 0.5, %v2577_v37 }
 0x332   : > { %v2579_v50 = vsub.f32 1.5, %v2578_v38 }
 0x334   : > { %v2580_v30 = vmul.f32 %v4128_v15, %v2579_v50 }
 0x336   : > { %v2584_v49 = vsel %vm2583_vm3, %v4128_v15, %v2580_v30 }
 0x337   : > { %v2585_v62 = vmul.f32 %v2584_v49, %v2560_v58  ;;  %v2586_v51 = vmul.f32 %v2584_v49, %v2561_v22  ;;  %v2587_v52 = vmul.f32 %v2584_v49, %v2562_v25  ;;  %v2588_v54 = vmul.f32 %v2584_v49, %v2563_v26 }
 0x339   : > { %v2599_v55 = vmul.f32 %v2591_v41, %v2585_v62  ;;  %v2600_v56 = vmul.f32 %v2592_v19, %v2586_v51  ;;  %v2601_v60 = vmul.f32 %v2593_v43, %v2587_v52  ;;  %v2602_v61 = vmul.f32 %v2594_v44, %v2588_v54 }
 0x33b   : > { %v2613_v63 = vadd.f32 %v2605_v45, %v2599_v55  ;;  %v2614_v0 = vadd.f32 %v2606_v47, %v2600_v56  ;;  %v2615_v2 = vadd.f32 %v2607_v46, %v2601_v60  ;;  %v2616_v36 = vadd.f32 %v2608_v48, %v2602_v61 }
 0x33d   : > { %v2617_v3 = vpack.c.bf16 %v2614_v0, %v2613_v63  ;;  %v2618_v5 = vpack.c.bf16 %v2616_v36, %v2615_v2 }
 0x33f   : > { %2619 = vst [vmem:[%s370_s22] sm:$0xff] %v2617_v3 }
 0x340   : > { %2620 = vst [vmem:[%s370_s22 + $0x8] sm:$0xff] %v2618_v5 }
 0x341 PF: > { %s21_s24 = sadd.s32 1, %s4333_s24  }
 0x342   : > { %p18_p7 = scmp.ge.s32.totalorder %s21_s24, 4  }
 0x344   :  { %20 = sbr.rel (!%p18_p7) target bundleno = 4 (0x4), region = 103 }
 0x349   :  { %2642 = vsyncpa [#allocation3], 1 }
 0x34a   :  { %2644 = vsyncpa [#allocation3 + $0x1], 1 }
 0x34b   :  { %2645 = vsyncpa [#allocation5], 1 }
 0x34c   :  { %2646 = vsyncpa [#allocation8], 1 }
 0x34d   :  { %2647 = vsyncpa [#allocation11], 1 }

// kernel: bert_encoder_forward.5
= control target key start
LH: loop header
LB: loop body
LE: loop exit
PB: predicated region body
PF: predicated region fallthrough
CT: control target
= control target key end

     0   :  { %13 = vsyncpa [#allocation3], 0  ;;  %s8829_s0 = inlined_call_operand.vmem [shape: bf16[16,512], index: 0, kind: input, shape index: {}]   ;;  %s8830_s1 = inlined_call_operand.vmem [shape: f32[2,1,8], index: 1, kind: input, shape index: {}]   ;;  %s8831_s2 = inlined_call_operand.hbm [shape: bf16[512,1536], index: 2, kind: input, shape index: {}]   ;;  %s8832_s3 = inlined_call_operand.vmem [shape: f32[1,1536], index: 3, kind: input, shape index: {}]   ;;  %s8833_s4 = inlined_call_operand.hbm [shape: bf16[512,512], index: 4, kind: input, shape index: {}]   ;;  %s8834_s5 = inlined_call_operand.hbm [shape: f32[1,512], index: 5, kind: input, shape index: {}]   ;;  %s8835_s6 = inlined_call_operand.hbm [shape: f32[1,512], index: 6, kind: input, shape index: {}]   ;;  %s8836_s7 = inlined_call_operand.hbm [shape: f32[1,512], index: 7, kind: input, shape index: {}]   ;;  %s8837_s8 = inlined_call_operand.vmem [shape: bf16[16,512], index: 8, kind: output, shape index: {}]  }
   0x1   :  { %14 = vsyncpa [#allocation5], 0 }
   0x2   :  { %15 = vsyncpa [#allocation8], 0  ;;  %s8370_s27 = smov 0  }
   0x3 LB: > { %s258_s30 = sshll.u32 %s8833_s4, 4  ;;  %s8379_s9 = sadd.s32 4294967295, %s8312_s27   ;;  %s8312_s27 = sphi %s8370_s27, %s21_s27   ;;  %s259_s30 = int_to_ptr.hbm [resolvable:$true] %s258_s30 }
   0x4   : > { %p5409_p0 = scmp.ge.s32.totalorder %s8312_s27, 1  ;;  %p230_p1 = scmp.lt.s32.totalorder %s8312_s27, 3 }
   0x5   : > { %p8074_p2 = scmp.eq.s32.totalorder %s8379_s9, 0  ;;  %s8314_s11 = smov [#allocation4]  }
   0x6   : > { %p8384_p3 = pnand %p5409_p0, %p230_p1  ;;  %s260_s12 = sshll.u32 %s8314_s11, 4  ;;  %s261_s12 = int_to_ptr.vmem [resolvable:$true] %s260_s12 }
   0x7   : > { %s285_s15 = sshll.u32 %s8835_s6, 4  ;;  %s8315_s17 = smov [#allocation7]   ;;  %s286_s15 = int_to_ptr.hbm [resolvable:$true] %s285_s15 }
   0x8   : > { %p8058_p4 = pneg %p8384_p3  ;;  %s287_s18 = sshll.u32 %s8315_s17, 4  ;;  %s288_s18 = int_to_ptr.vmem [resolvable:$true] %s287_s18 }
   0x9   : > { %s241_s21 = sshll.u32 %s8831_s2, 4  ;;  %s8316_s22 = smov 256   ;;  %s242_s21 = int_to_ptr.hbm [resolvable:$true] %s241_s21 }
   0xa   : > { %p8395_p5 = pnand %p8074_p2, %p8058_p4  ;;  %s8317_s23 = smov 16  }
   0xb   : > { %s8318_s24 = smov [#allocation2]   ;;  %s8319_s26 = smov 768  }
   0xc   : > { %8064 = dma.hbm_to_vmem [thread:$0]  (!%p8395_p5), %s259_s30, 16384, %s261_s12, [#allocation5], %s8316_s22, %s8316_s22, %s8317_s23  }
   0xd   : > { %8070 = dma.hbm_to_vmem [thread:$0]  (!%p8395_p5), %s286_s15, 64, %s288_s18, [#allocation8]  }
   0xe   : > { %s243_s25 = sshll.u32 %s8318_s24, 4  ;;  %s8320_s28 = smov 48   ;;  %s244_s25 = int_to_ptr.vmem [resolvable:$true] %s243_s25 }
   0xf   : > { %8061 = dma.hbm_to_vmem [thread:$0]  (!%p8395_p5), %s242_s21, 49152, %s244_s25, [#allocation3], %s8319_s26, %s8319_s26, %s8320_s28  }
  0x10   : > { %s273_s13 = sshll.u32 %s8834_s5, 4  ;;  %s8321_s14 = smov [#allocation6]   ;;  %s274_s13 = int_to_ptr.hbm [resolvable:$true] %s273_s13 }
  0x11   : > { %s275_s17 = sshll.u32 %s8321_s14, 4  ;;  %s297_s15 = sshll.u32 %s8836_s7, 4  ;;  %s276_s17 = int_to_ptr.vmem [resolvable:$true] %s275_s17  ;;  %s298_s15 = int_to_ptr.hbm [resolvable:$true] %s297_s15 }
  0x12   : > { %8067 = dma.hbm_to_vmem [thread:$0]  (!%p8395_p5), %s274_s13, 64, %s276_s17, [#allocation5]  }
  0x13   : > { %s8322_s18 = smov [#allocation9]   ;;  %326 = sbr.rel (%p8384_p3) target bundleno = 4740 (0x1284), region = 52 }
  0x14   : > { %s299_s19 = sshll.u32 %s8322_s18, 4  ;;  %s300_s19 = int_to_ptr.vmem [resolvable:$true] %s299_s19 }
  0x15   : > { %8073 = dma.hbm_to_vmem [thread:$0]  (!%p8395_p5), %s298_s15, 64, %s300_s19, [#allocation8]  }
  0x18   : > { %8299 = dma.done.wait (%p8074_p2), [#allocation3], 49152  }
  0x19   : > { %8301 = vsyncadd (%p8074_p2), [#allocation3], 4294918144 }
  0x1a   : > { %8303 = dma.done.wait (%p8074_p2), [#allocation5], 16448  }
  0x1b   : > { %8305 = vsyncadd (%p8074_p2), [#allocation5], 4294950848 }
  0x1c   : > { %8307 = dma.done.wait (%p8074_p2), [#allocation8], 128  }
  0x1d   : > { %8309 = vsyncadd (%p8074_p2), [#allocation8], 4294967168  ;;  %v5764_v0 = vld [vmem:[#allocation2 + $0x2a0] sm:$0xf]  ;;  %v7616_v1 = vld [vmem:[#allocation2 + $0x2cc] sm:$0xf0] }
  0x1e   : > { %v6148_v2 = vld [vmem:[#allocation2 + $0x5a0] sm:$0xf]  ;;  %v5765_v3 = vor.u32 %v7616_v1, %v5764_v0  ;;  %v7712_v4 = vld [vmem:[#allocation2 + $0x5cc] sm:$0xf0]  ;;  %p384_p6 = scmp.lt.s32.totalorder %s8379_s9, 1  ;;  %s8323_s26 = smov 64  }
  0x1f   : > { %v6532_v5 = vld [vmem:[#allocation2 + $0x8a0] sm:$0xf]  ;;  %v7808_v6 = vld [vmem:[#allocation2 + $0x8cc] sm:$0xf0]  ;;  %v6149_v7 = vor.u32 %v7712_v4, %v6148_v2  ;;  %vm3377_vm0 = vcmask 523264   ;;  %vm3431_vm1 = vcmask 1043456  }
  0x20   : > { %v6533_v8 = vor.u32 %v7808_v6, %v6532_v5  ;;  %v6916_v9 = vld [vmem:[#allocation2 + $0xba0] sm:$0xf]  ;;  %v7904_v10 = vld [vmem:[#allocation2 + $0xbcc] sm:$0xf0]  ;;  %2746 = vmatpush.bf16.msra.mxu0 %v5765_v3  ;;  %s8841_s9 = smov (!%p384_p6, %s8379_s9), 1  ;;  %vm3402_vm2 = vcmask 64512  }
  0x21   : > { %v5716_v11 = vld [vmem:[#allocation2 + $0x240] sm:$0xf]  ;;  %v6917_v12 = vor.u32 %v7904_v10, %v6916_v9  ;;  %v7604_v13 = vld [vmem:[#allocation2 + $0x26c] sm:$0xf0]  ;;  %2759 = vmatpush.bf16.msra.mxu1 %v6149_v7  ;;  %s7524_s10 = sshll.u32 %s8841_s9, 4  ;;  %s8557_s11 = scalar_lea.vmem %s8830_s1, %s8841_s9 }
  0x22   : > { %v6100_v14 = vld [vmem:[#allocation2 + $0x540] sm:$0xf]  ;;  %v7700_v15 = vld [vmem:[#allocation2 + $0x56c] sm:$0xf0]  ;;  %2772 = vmatpush.bf16.msra.mxu2 %v6533_v8  ;;  %v5717_v16 = vor.u32 %v7604_v13, %v5716_v11  ;;  %s8444_s21 = scalar_lea.vmem %s8829_s0, %s7524_s10  ;;  %s396_s12 = scalar_lea.vmem %s8837_s8, %s7524_s10 }
  0x23   : > { %v6101_v17 = vor.u32 %v7700_v15, %v6100_v14  ;;  %v6484_v18 = vld [vmem:[#allocation2 + $0x840] sm:$0xf]  ;;  %v7796_v19 = vld [vmem:[#allocation2 + $0x86c] sm:$0xf0]  ;;  %2785 = vmatpush.bf16.msra.mxu3 %v6917_v12 }
  0x24   : > { %v6868_v20 = vld [vmem:[#allocation2 + $0xb40] sm:$0xf]  ;;  %v6485_v21 = vor.u32 %v7796_v19, %v6484_v18  ;;  %v7892_v22 = vld [vmem:[#allocation2 + $0xb6c] sm:$0xf0]  ;;  %2747 = vmatpush.bf16.msra.mxu0 %v5717_v16 }
  0x25   : > { %v5668_v23 = vld [vmem:[#allocation2 + $0x1e0] sm:$0xf]  ;;  %v7592_v24 = vld [vmem:[#allocation2 + $0x20c] sm:$0xf0]  ;;  %v6869_v25 = vor.u32 %v7892_v22, %v6868_v20  ;;  %2760 = vmatpush.bf16.msra.mxu1 %v6101_v17 }
  0x26   : > { %v6052_v26 = vld [vmem:[#allocation2 + $0x4e0] sm:$0xf]  ;;  %v7688_v27 = vld [vmem:[#allocation2 + $0x50c] sm:$0xf0]  ;;  %v5669_v29 = vor.u32 %v7592_v24, %v5668_v23  ;;  %2773 = vmatpush.bf16.msra.mxu2 %v6485_v21 }
  0x27   : > { %v6436_v28 = vld [vmem:[#allocation2 + $0x7e0] sm:$0xf]  ;;  %v7784_v30 = vld [vmem:[#allocation2 + $0x80c] sm:$0xf0]  ;;  %v6053_v33 = vor.u32 %v7688_v27, %v6052_v26  ;;  %2786 = vmatpush.bf16.msra.mxu3 %v6869_v25 }
  0x28   : > { %v6820_v31 = vld [vmem:[#allocation2 + $0xae0] sm:$0xf]  ;;  %v7880_v32 = vld [vmem:[#allocation2 + $0xb0c] sm:$0xf0]  ;;  %v6437_v34 = vor.u32 %v7784_v30, %v6436_v28  ;;  %2748 = vmatpush.bf16.msra.mxu0 %v5669_v29  ;;  %v7610_v28 = vld [vmem:[#allocation2 + $0x2a4] sm:$0xf] }
  0x29   : > { %v5620_v35 = vld [vmem:[#allocation2 + $0x180] sm:$0xf]  ;;  %v7580_v36 = vld [vmem:[#allocation2 + $0x1ac] sm:$0xf0]  ;;  %v6821_v38 = vor.u32 %v7880_v32, %v6820_v31  ;;  %2761 = vmatpush.bf16.msra.mxu1 %v6053_v33  ;;  %v5766_v29 = vld [vmem:[#allocation2 + $0x2d0] sm:$0xf0] }
  0x2a   : > { %v6004_v37 = vld [vmem:[#allocation2 + $0x480] sm:$0xf]  ;;  %v7676_v39 = vld [vmem:[#allocation2 + $0x4ac] sm:$0xf0]  ;;  %v5621_v44 = vor.u32 %v7580_v36, %v5620_v35  ;;  %2774 = vmatpush.bf16.msra.mxu2 %v6437_v34  ;;  %v7706_v30 = vld [vmem:[#allocation2 + $0x5a4] sm:$0xf] }
  0x2b   : > { %v6388_v40 = vld [vmem:[#allocation2 + $0x780] sm:$0xf]  ;;  %v7772_v41 = vld [vmem:[#allocation2 + $0x7ac] sm:$0xf0]  ;;  %v6005_v45 = vor.u32 %v7676_v39, %v6004_v37  ;;  %2787 = vmatpush.bf16.msra.mxu3 %v6821_v38  ;;  %v6150_v32 = vld [vmem:[#allocation2 + $0x5d0] sm:$0xf0] }
  0x2c   : > { %v6772_v42 = vld [vmem:[#allocation2 + $0xa80] sm:$0xf]  ;;  %v7868_v43 = vld [vmem:[#allocation2 + $0xaac] sm:$0xf0]  ;;  %v6389_v46 = vor.u32 %v7772_v41, %v6388_v40  ;;  %2749 = vmatpush.bf16.msra.mxu0 %v5621_v44  ;;  %v7802_v33 = vld [vmem:[#allocation2 + $0x8a4] sm:$0xf]  ;;  %v5769_v40 = vor.u32 %v7610_v28, %v5766_v29  ;;  %v6153_v41 = vor.u32 %v7706_v30, %v6150_v32 }
  0x2d   : > { %v5572_v47 = vld [vmem:[#allocation2 + $0x120] sm:$0xf]  ;;  %v7568_v48 = vld [vmem:[#allocation2 + $0x14c] sm:$0xf0]  ;;  %v6773_v50 = vor.u32 %v7868_v43, %v6772_v42  ;;  %2762 = vmatpush.bf16.msra.mxu1 %v6005_v45  ;;  %v6534_v34 = vld [vmem:[#allocation2 + $0x8d0] sm:$0xf0] }
  0x2e   : > { %v5956_v49 = vld [vmem:[#allocation2 + $0x420] sm:$0xf]  ;;  %v7664_v51 = vld [vmem:[#allocation2 + $0x44c] sm:$0xf0]  ;;  %v5573_v56 = vor.u32 %v7568_v48, %v5572_v47  ;;  %2775 = vmatpush.bf16.msra.mxu2 %v6389_v46  ;;  %v7898_v37 = vld [vmem:[#allocation2 + $0xba4] sm:$0xf]  ;;  %v6537_v42 = vor.u32 %v7802_v33, %v6534_v34 }
  0x2f   : > { %v6340_v52 = vld [vmem:[#allocation2 + $0x720] sm:$0xf]  ;;  %v7760_v53 = vld [vmem:[#allocation2 + $0x74c] sm:$0xf0]  ;;  %v5957_v57 = vor.u32 %v7664_v51, %v5956_v49  ;;  %2788 = vmatpush.bf16.msra.mxu3 %v6773_v50  ;;  %v6918_v38 = vld [vmem:[#allocation2 + $0xbd0] sm:$0xf0] }
  0x30   : > { %v6724_v54 = vld [vmem:[#allocation2 + $0xa20] sm:$0xf]  ;;  %v7856_v55 = vld [vmem:[#allocation2 + $0xa4c] sm:$0xf0]  ;;  %v6341_v58 = vor.u32 %v7760_v53, %v6340_v52  ;;  %2750 = vmatpush.bf16.msra.mxu0 %v5573_v56  ;;  %v7598_v43 = vld [vmem:[#allocation2 + $0x244] sm:$0xf]  ;;  %v6921_v46 = vor.u32 %v7898_v37, %v6918_v38 }
  0x31   : > { %v5524_v59 = vld [vmem:[#allocation2 + $0xc0] sm:$0xf]  ;;  %v7556_v60 = vld [vmem:[#allocation2 + $0xec] sm:$0xf0]  ;;  %v6725_v62 = vor.u32 %v7856_v55, %v6724_v54  ;;  %2763 = vmatpush.bf16.msra.mxu1 %v5957_v57  ;;  %v5718_v44 = vld [vmem:[#allocation2 + $0x270] sm:$0xf0] }
  0x32   : > { %v5908_v61 = vld [vmem:[#allocation2 + $0x3c0] sm:$0xf]  ;;  %v7652_v63 = vld [vmem:[#allocation2 + $0x3ec] sm:$0xf0]  ;;  %v5525_v4 = vor.u32 %v7556_v60, %v5524_v59  ;;  %2776 = vmatpush.bf16.msra.mxu2 %v6341_v58  ;;  %v7694_v45 = vld [vmem:[#allocation2 + $0x544] sm:$0xf]  ;;  %v5721_v53 = vor.u32 %v7598_v43, %v5718_v44 }
  0x33   : > { %v6292_v0 = vld [vmem:[#allocation2 + $0x6c0] sm:$0xf]  ;;  %v7748_v1 = vld [vmem:[#allocation2 + $0x6ec] sm:$0xf0]  ;;  %v5909_v5 = vor.u32 %v7652_v63, %v5908_v61  ;;  %2789 = vmatpush.bf16.msra.mxu3 %v6725_v62  ;;  %v6102_v47 = vld [vmem:[#allocation2 + $0x570] sm:$0xf0] }
  0x34   : > { %v6676_v2 = vld [vmem:[#allocation2 + $0x9c0] sm:$0xf]  ;;  %v7844_v3 = vld [vmem:[#allocation2 + $0x9ec] sm:$0xf0]  ;;  %v6293_v6 = vor.u32 %v7748_v1, %v6292_v0  ;;  %2751 = vmatpush.bf16.msra.mxu0 %v5525_v4  ;;  %v7790_v48 = vld [vmem:[#allocation2 + $0x844] sm:$0xf]  ;;  %v6105_v57 = vor.u32 %v7694_v45, %v6102_v47 }
  0x35   : > { %v5476_v7 = vld [vmem:[#allocation2 + $0x60] sm:$0xf]  ;;  %v7544_v8 = vld [vmem:[#allocation2 + $0x8c] sm:$0xf0]  ;;  %v6677_v10 = vor.u32 %v7844_v3, %v6676_v2  ;;  %2764 = vmatpush.bf16.msra.mxu1 %v5909_v5  ;;  %v6486_v49 = vld [vmem:[#allocation2 + $0x870] sm:$0xf0] }
  0x36   : > { %v5860_v9 = vld [vmem:[#allocation2 + $0x360] sm:$0xf]  ;;  %v7640_v11 = vld [vmem:[#allocation2 + $0x38c] sm:$0xf0]  ;;  %v5477_v16 = vor.u32 %v7544_v8, %v5476_v7  ;;  %2777 = vmatpush.bf16.msra.mxu2 %v6293_v6  ;;  %v7886_v50 = vld [vmem:[#allocation2 + $0xb44] sm:$0xf]  ;;  %v6489_v58 = vor.u32 %v7790_v48, %v6486_v49 }
  0x37   : > { %v6244_v12 = vld [vmem:[#allocation2 + $0x660] sm:$0xf]  ;;  %v7736_v13 = vld [vmem:[#allocation2 + $0x68c] sm:$0xf0]  ;;  %v5861_v19 = vor.u32 %v7640_v11, %v5860_v9  ;;  %2790 = vmatpush.bf16.msra.mxu3 %v6677_v10  ;;  %v6870_v51 = vld [vmem:[#allocation2 + $0xb70] sm:$0xf0] }
  0x38   : > { %v6628_v14 = vld [vmem:[#allocation2 + $0x960] sm:$0xf]  ;;  %v7832_v15 = vld [vmem:[#allocation2 + $0x98c] sm:$0xf0]  ;;  %v6245_v20 = vor.u32 %v7736_v13, %v6244_v12  ;;  %2752 = vmatpush.bf16.msra.mxu0 %v5477_v16  ;;  %v399_v52 = vld [vmem:[%s8444_s21 + $0x8] sm:$0xff]  ;;  %v6873_v62 = vor.u32 %v7886_v50, %v6870_v51 }
  0x39   : > { %v5428_v17 = vld [vmem:[#allocation2] sm:$0xf]  ;;  %v7532_v18 = vld [vmem:[#allocation2 + $0x2c] sm:$0xf0]  ;;  %v6629_v24 = vor.u32 %v7832_v15, %v6628_v14  ;;  %2765 = vmatpush.bf16.msra.mxu1 %v5861_v19  ;;  %v7586_v54 = vld [vmem:[#allocation2 + $0x1e4] sm:$0xf]  ;;  %v816_v55 = vunpack.c.l.b16 %v399_v52  ;;  %v817_v56 = vunpack.c.h.b16 %v399_v52 }
  0x3a   : > { %v5812_v21 = vld [vmem:[#allocation2 + $0x300] sm:$0xf]  ;;  %v7628_v22 = vld [vmem:[#allocation2 + $0x32c] sm:$0xf0]  ;;  %v5429_v31 = vor.u32 %v7532_v18, %v5428_v17  ;;  %2778 = vmatpush.bf16.msra.mxu2 %v6245_v20  ;;  %v5670_v59 = vld [vmem:[#allocation2 + $0x210] sm:$0xf0] }
  0x3b   : > { %v6196_v23 = vld [vmem:[#allocation2 + $0x600] sm:$0xf]  ;;  %v7724_v25 = vld [vmem:[#allocation2 + $0x62c] sm:$0xf0]  ;;  %v5813_v35 = vor.u32 %v7628_v22, %v5812_v21  ;;  %2791 = vmatpush.bf16.msra.mxu3 %v6629_v24  ;;  %v7682_v60 = vld [vmem:[#allocation2 + $0x4e4] sm:$0xf]  ;;  %v8447_v1 = vpack.c.b16 %v816_v55, %v816_v55  ;;  %v8450_v6 = vpack.c.b16 %v817_v56, %v817_v56  ;;  %v5673_v8 = vor.u32 %v7586_v54, %v5670_v59 }
  0x3c   : > { %v6580_v26 = vld [vmem:[#allocation2 + $0x900] sm:$0xf]  ;;  %v7820_v27 = vld [vmem:[#allocation2 + $0x92c] sm:$0xf0]  ;;  %v6197_v36 = vor.u32 %v7724_v25, %v6196_v23  ;;  %2753 = vmatpush.bf16.msra.mxu0 %v5429_v31  ;;  %v6054_v61 = vld [vmem:[#allocation2 + $0x510] sm:$0xf0] }
  0x3d   : > { %v6581_v39 = vor.u32 %v7820_v27, %v6580_v26  ;;  %2766 = vmatpush.bf16.msra.mxu1 %v5813_v35  ;;  %v7778_v63 = vld [vmem:[#allocation2 + $0x7e4] sm:$0xf]  ;;  %v6438_v0 = vld [vmem:[#allocation2 + $0x810] sm:$0xf0]  ;;  %v6057_v9 = vor.u32 %v7682_v60, %v6054_v61 }
  0x3e   : > { %2779 = vmatpush.bf16.msra.mxu2 %v6197_v36  ;;  %v398_v2 = vld [vmem:[%s8444_s21] sm:$0xff]  ;;  %v6822_v4 = vld [vmem:[#allocation2 + $0xb10] sm:$0xf0]  ;;  %v6441_v10 = vor.u32 %v7778_v63, %v6438_v0 }
  0x3f   : > { %2792 = vmatpush.bf16.msra.mxu3 %v6581_v39  ;;  %v7874_v3 = vld [vmem:[#allocation2 + $0xae4] sm:$0xf]  ;;  %v814_v5 = vunpack.c.l.b16 %v398_v2  ;;  %v815_v7 = vunpack.c.h.b16 %v398_v2  ;;  %v5622_v12 = vld [vmem:[#allocation2 + $0x1b0] sm:$0xf0] }
  0x40   : > { %2798 = vmatpush.bf16.msrb.mxu0 %v5769_v40  ;;  %v7574_v11 = vld [vmem:[#allocation2 + $0x184] sm:$0xf]  ;;  %v6825_v16 = vor.u32 %v7874_v3, %v6822_v4  ;;  %v6006_v17 = vld [vmem:[#allocation2 + $0x4b0] sm:$0xf0] }
  0x41   : > { %2811 = vmatpush.bf16.msrb.mxu1 %v6153_v41  ;;  %2780 = vmatmul.bf16.vlgmr.msra.gmra.mxu2 %v8447_v1  ;;  %v7670_v13 = vld [vmem:[#allocation2 + $0x484] sm:$0xf]  ;;  %v8453_v14 = vpack.c.b16 %v814_v5, %v814_v5  ;;  %v8455_v15 = vpack.c.b16 %v815_v7, %v815_v7  ;;  %v6390_v19 = vld [vmem:[#allocation2 + $0x7b0] sm:$0xf0]  ;;  %v5625_v22 = vor.u32 %v7574_v11, %v5622_v12  ;;  %v7713_v12 = vld [vmem:[#allocation2 + $0x5d4] sm:$0xf0] }
  0x42   : > { %2824 = vmatpush.bf16.msrb.mxu2 %v6537_v42  ;;  %v7766_v18 = vld [vmem:[#allocation2 + $0x784] sm:$0xf]  ;;  %v6774_v21 = vld [vmem:[#allocation2 + $0xab0] sm:$0xf0]  ;;  %2793 = vmatmul.bf16.vlgmr.msra.gmra.mxu3 %v8450_v6  ;;  %v6009_v23 = vor.u32 %v7670_v13, %v6006_v17  ;;  %v6540_v13 = vld [vmem:[#allocation2 + $0x8a8] sm:$0xf] }
  0x43   : > { %2837 = vmatpush.bf16.msrb.mxu3 %v6921_v46  ;;  %v7862_v20 = vld [vmem:[#allocation2 + $0xa84] sm:$0xf]  ;;  %2754 = vmatmul.bf16.vlgmr.msra.gmra.mxu0 %v8453_v14  ;;  %v6393_v24 = vor.u32 %v7766_v18, %v6390_v19  ;;  %v5574_v26 = vld [vmem:[#allocation2 + $0x150] sm:$0xf0]  ;;  %v6924_v19 = vld [vmem:[#allocation2 + $0xba8] sm:$0xf] }
  0x44   : > { %2799 = vmatpush.bf16.msrb.mxu0 %v5721_v53  ;;  %2767 = vmatmul.bf16.vlgmr.msra.gmra.mxu1 %v8455_v15  ;;  %v7562_v25 = vld [vmem:[#allocation2 + $0x124] sm:$0xf]  ;;  %v6777_v28 = vor.u32 %v7862_v20, %v6774_v21  ;;  %v5958_v29 = vld [vmem:[#allocation2 + $0x450] sm:$0xf0]  ;;  %v7905_v20 = vld [vmem:[#allocation2 + $0xbd4] sm:$0xf0] }
  0x45   : > { %2812 = vmatpush.bf16.msrb.mxu1 %v6105_v57  ;;  %v7658_v27 = vld [vmem:[#allocation2 + $0x424] sm:$0xf]  ;;  %v6342_v31 = vld [vmem:[#allocation2 + $0x750] sm:$0xf0]  ;;  %v5577_v34 = vor.u32 %v7562_v25, %v5574_v26  ;;  %v5724_v25 = vld [vmem:[#allocation2 + $0x248] sm:$0xf] }
  0x46   : > { %2825 = vmatpush.bf16.msrb.mxu2 %v6489_v58  ;;  %v7754_v30 = vld [vmem:[#allocation2 + $0x724] sm:$0xf]  ;;  %v6726_v33 = vld [vmem:[#allocation2 + $0xa50] sm:$0xf0]  ;;  %v5961_v35 = vor.u32 %v7658_v27, %v5958_v29  ;;  %v7605_v26 = vld [vmem:[#allocation2 + $0x274] sm:$0xf0] }
  0x47   : > { %2838 = vmatpush.bf16.msrb.mxu3 %v6873_v62  ;;  %v7850_v32 = vld [vmem:[#allocation2 + $0xa24] sm:$0xf]  ;;  %v6345_v36 = vor.u32 %v7754_v30, %v6342_v31  ;;  %v5526_v38 = vld [vmem:[#allocation2 + $0xf0] sm:$0xf0]  ;;  %v6108_v27 = vld [vmem:[#allocation2 + $0x548] sm:$0xf] }
  0x48   : > { %2800 = vmatpush.bf16.msrb.mxu0 %v5673_v8  ;;  %v7550_v37 = vld [vmem:[#allocation2 + $0xc4] sm:$0xf]  ;;  %v6729_v40 = vor.u32 %v7850_v32, %v6726_v33  ;;  %v5910_v41 = vld [vmem:[#allocation2 + $0x3f0] sm:$0xf0]  ;;  %v5772_v8 = vld [vmem:[#allocation2 + $0x2a8] sm:$0xf] }
  0x49   : > { %2813 = vmatpush.bf16.msrb.mxu1 %v6057_v9  ;;  %v7646_v39 = vld [vmem:[#allocation2 + $0x3c4] sm:$0xf]  ;;  %v6294_v43 = vld [vmem:[#allocation2 + $0x6f0] sm:$0xf0]  ;;  %v5529_v46 = vor.u32 %v7550_v37, %v5526_v38  ;;  %v7617_v9 = vld [vmem:[#allocation2 + $0x2d4] sm:$0xf0] }
  0x4a   : > { %2826 = vmatpush.bf16.msrb.mxu2 %v6441_v10  ;;  %v7742_v42 = vld [vmem:[#allocation2 + $0x6c4] sm:$0xf]  ;;  %v6678_v45 = vld [vmem:[#allocation2 + $0x9f0] sm:$0xf0]  ;;  %v5913_v47 = vor.u32 %v7646_v39, %v5910_v41  ;;  %v6156_v10 = vld [vmem:[#allocation2 + $0x5a8] sm:$0xf] }
  0x4b   : > { %2839 = vmatpush.bf16.msrb.mxu3 %v6825_v16  ;;  %v7838_v44 = vld [vmem:[#allocation2 + $0x9c4] sm:$0xf]  ;;  %v6297_v48 = vor.u32 %v7742_v42, %v6294_v43  ;;  %v5478_v50 = vld [vmem:[#allocation2 + $0x90] sm:$0xf0]  ;;  %v7809_v16 = vld [vmem:[#allocation2 + $0x8d4] sm:$0xf0] }
  0x4c   : > { %2801 = vmatpush.bf16.msrb.mxu0 %v5625_v22  ;;  %v7538_v49 = vld [vmem:[#allocation2 + $0x64] sm:$0xf]  ;;  %v6681_v52 = vor.u32 %v7838_v44, %v6678_v45  ;;  %v5862_v53 = vld [vmem:[#allocation2 + $0x390] sm:$0xf0]  ;;  %v5773_v22 = vor.u32 %v7617_v9, %v5772_v8  ;;  %v7701_v29 = vld [vmem:[#allocation2 + $0x574] sm:$0xf0] }
  0x4d   : > { %2814 = vmatpush.bf16.msrb.mxu1 %v6009_v23  ;;  %v7634_v51 = vld [vmem:[#allocation2 + $0x364] sm:$0xf]  ;;  %v6246_v55 = vld [vmem:[#allocation2 + $0x690] sm:$0xf0]  ;;  %v5481_v58 = vor.u32 %v7538_v49, %v5478_v50  ;;  %v6157_v23 = vor.u32 %v7713_v12, %v6156_v10  ;;  %v6492_v30 = vld [vmem:[#allocation2 + $0x848] sm:$0xf] }
  0x4e   : > { %2827 = vmatpush.bf16.msrb.mxu2 %v6393_v24  ;;  %v7730_v54 = vld [vmem:[#allocation2 + $0x664] sm:$0xf]  ;;  %v6630_v57 = vld [vmem:[#allocation2 + $0x990] sm:$0xf0]  ;;  %v5865_v61 = vor.u32 %v7634_v51, %v5862_v53  ;;  %v6541_v24 = vor.u32 %v7809_v16, %v6540_v13  ;;  %v7797_v31 = vld [vmem:[#allocation2 + $0x874] sm:$0xf0] }
  0x4f   : > { %2840 = vmatpush.bf16.msrb.mxu3 %v6777_v28  ;;  %v7826_v56 = vld [vmem:[#allocation2 + $0x964] sm:$0xf]  ;;  %v5430_v60 = vld [vmem:[#allocation2 + $0x30] sm:$0xf0]  ;;  %v6249_v62 = vor.u32 %v7730_v54, %v6246_v55  ;;  %v6925_v28 = vor.u32 %v7905_v20, %v6924_v19  ;;  %v6876_v32 = vld [vmem:[#allocation2 + $0xb48] sm:$0xf] }
  0x50   : > { %2802 = vmatpush.bf16.msrb.mxu0 %v5577_v34  ;;  %v7526_v59 = vld [vmem:[#allocation2 + $0x4] sm:$0xf]  ;;  %v5814_v0 = vld [vmem:[#allocation2 + $0x330] sm:$0xf0]  ;;  %v6633_v3 = vor.u32 %v7826_v56, %v6630_v57  ;;  %v7893_v33 = vld [vmem:[#allocation2 + $0xb74] sm:$0xf0]  ;;  %v5725_v34 = vor.u32 %v7605_v26, %v5724_v25 }
  0x51   : > { %2815 = vmatpush.bf16.msrb.mxu1 %v5961_v35  ;;  %v7622_v63 = vld [vmem:[#allocation2 + $0x304] sm:$0xf]  ;;  %v6198_v4 = vld [vmem:[#allocation2 + $0x630] sm:$0xf0]  ;;  %v5433_v11 = vor.u32 %v7526_v59, %v5430_v60  ;;  %v6109_v35 = vor.u32 %v7701_v29, %v6108_v27  ;;  %v5676_v37 = vld [vmem:[#allocation2 + $0x1e8] sm:$0xf] }
  0x52   : > { %2828 = vmatpush.bf16.msrb.mxu2 %v6345_v36  ;;  %v7718_v2 = vld [vmem:[#allocation2 + $0x604] sm:$0xf]  ;;  %v6582_v7 = vld [vmem:[#allocation2 + $0x930] sm:$0xf0]  ;;  %v5817_v17 = vor.u32 %v7622_v63, %v5814_v0  ;;  %v6493_v36 = vor.u32 %v7797_v31, %v6492_v30  ;;  %v7593_v38 = vld [vmem:[#allocation2 + $0x214] sm:$0xf0] }
  0x53   : > { %2841 = vmatpush.bf16.msrb.mxu3 %v6729_v40  ;;  %v7814_v5 = vld [vmem:[#allocation2 + $0x904] sm:$0xf]  ;;  %v6201_v18 = vor.u32 %v7718_v2, %v6198_v4  ;;  %v6060_v39 = vld [vmem:[#allocation2 + $0x4e8] sm:$0xf]  ;;  %v6877_v40 = vor.u32 %v7893_v33, %v6876_v32  ;;  %v7689_v41 = vld [vmem:[#allocation2 + $0x514] sm:$0xf0] }
  0x54   : > { %2803 = vmatpush.bf16.msrb.mxu0 %v5529_v46  ;;  %v6585_v21 = vor.u32 %v7814_v5, %v6582_v7  ;;  %v6444_v42 = vld [vmem:[#allocation2 + $0x7e8] sm:$0xf]  ;;  %v7785_v43 = vld [vmem:[#allocation2 + $0x814] sm:$0xf0]  ;;  %v5677_v46 = vor.u32 %v7593_v38, %v5676_v37 }
  0x55   : > { %2816 = vmatpush.bf16.msrb.mxu1 %v5913_v47  ;;  %v6828_v44 = vld [vmem:[#allocation2 + $0xae8] sm:$0xf]  ;;  %v7881_v45 = vld [vmem:[#allocation2 + $0xb14] sm:$0xf0]  ;;  %v6061_v47 = vor.u32 %v7689_v41, %v6060_v39 }
  0x56   : > { %2829 = vmatpush.bf16.msrb.mxu2 %v6297_v48  ;;  %v6445_v48 = vor.u32 %v7785_v43, %v6444_v42  ;;  %v5628_v49 = vld [vmem:[#allocation2 + $0x188] sm:$0xf]  ;;  %v7581_v50 = vld [vmem:[#allocation2 + $0x1b4] sm:$0xf0] }
  0x57   : > { %2842 = vmatpush.bf16.msrb.mxu3 %v6681_v52  ;;  %v6012_v51 = vld [vmem:[#allocation2 + $0x488] sm:$0xf]  ;;  %v6829_v52 = vor.u32 %v7881_v45, %v6828_v44  ;;  %v7677_v53 = vld [vmem:[#allocation2 + $0x4b4] sm:$0xf0] }
  0x58   : > { %2804 = vmatpush.bf16.msrb.mxu0 %v5481_v58  ;;  %v6396_v54 = vld [vmem:[#allocation2 + $0x788] sm:$0xf]  ;;  %v7773_v55 = vld [vmem:[#allocation2 + $0x7b4] sm:$0xf0]  ;;  %v5629_v58 = vor.u32 %v7581_v50, %v5628_v49  ;;  %v6013_v59 = vor.u32 %v7677_v53, %v6012_v51  ;;  %v6158_v50 = vld [vmem:[#allocation2 + $0x5d8] sm:$0xf0] }
  0x59   : > { %2817 = vmatpush.bf16.msrb.mxu1 %v5865_v61  ;;  %v6780_v56 = vld [vmem:[#allocation2 + $0xa88] sm:$0xf]  ;;  %v7869_v57 = vld [vmem:[#allocation2 + $0xab4] sm:$0xf0]  ;;  %v6397_v60 = vor.u32 %v7773_v55, %v6396_v54  ;;  %v7803_v51 = vld [vmem:[#allocation2 + $0x8ac] sm:$0xf] }
  0x5a   : > { %2830 = vmatpush.bf16.msrb.mxu2 %v6249_v62  ;;  %v5580_v61 = vld [vmem:[#allocation2 + $0x128] sm:$0xf]  ;;  %v7569_v62 = vld [vmem:[#allocation2 + $0x154] sm:$0xf0]  ;;  %v6781_v0 = vor.u32 %v7869_v57, %v6780_v56  ;;  %v7899_v55 = vld [vmem:[#allocation2 + $0xbac] sm:$0xf] }
  0x5b   : > { %2843 = vmatpush.bf16.msrb.mxu3 %v6633_v3  ;;  %v5964_v63 = vld [vmem:[#allocation2 + $0x428] sm:$0xf]  ;;  %v7665_v2 = vld [vmem:[#allocation2 + $0x454] sm:$0xf0]  ;;  %v5581_v8 = vor.u32 %v7569_v62, %v5580_v61  ;;  %v6926_v56 = vld [vmem:[#allocation2 + $0xbd8] sm:$0xf0] }
  0x5c   : > { %2805 = vmatpush.bf16.msrb.mxu0 %v5433_v11  ;;  %v6348_v3 = vld [vmem:[#allocation2 + $0x728] sm:$0xf]  ;;  %v7761_v4 = vld [vmem:[#allocation2 + $0x754] sm:$0xf0]  ;;  %v5965_v9 = vor.u32 %v7665_v2, %v5964_v63  ;;  %v7599_v61 = vld [vmem:[#allocation2 + $0x24c] sm:$0xf] }
  0x5d   : > { %2818 = vmatpush.bf16.msrb.mxu1 %v5817_v17  ;;  %v6732_v5 = vld [vmem:[#allocation2 + $0xa28] sm:$0xf]  ;;  %v7857_v7 = vld [vmem:[#allocation2 + $0xa54] sm:$0xf0]  ;;  %v6349_v10 = vor.u32 %v7761_v4, %v6348_v3  ;;  %v5726_v62 = vld [vmem:[#allocation2 + $0x278] sm:$0xf0] }
  0x5e   : > { %2831 = vmatpush.bf16.msrb.mxu2 %v6201_v18  ;;  %v5532_v11 = vld [vmem:[#allocation2 + $0xc8] sm:$0xf]  ;;  %v7557_v12 = vld [vmem:[#allocation2 + $0xf4] sm:$0xf0]  ;;  %v6733_v16 = vor.u32 %v7857_v7, %v6732_v5  ;;  %v7695_v63 = vld [vmem:[#allocation2 + $0x54c] sm:$0xf] }
  0x5f   : > { %2844 = vmatpush.bf16.msrb.mxu3 %v6585_v21  ;;  %2806 = vmatmul.bf16.vlgmr.msrb.gmra.mxu0 %v8453_v14  ;;  %v5916_v13 = vld [vmem:[#allocation2 + $0x3c8] sm:$0xf]  ;;  %v7653_v17 = vld [vmem:[#allocation2 + $0x3f4] sm:$0xf0]  ;;  %v6110_v2 = vld [vmem:[#allocation2 + $0x578] sm:$0xf0] }
  0x60   : > { %2850 = vmatpush.bf16.msra.mxu0 %v5773_v22  ;;  %2819 = vmatmul.bf16.vlgmr.msrb.gmra.mxu1 %v8455_v15  ;;  %v6300_v18 = vld [vmem:[#allocation2 + $0x6c8] sm:$0xf]  ;;  %v7749_v19 = vld [vmem:[#allocation2 + $0x6f4] sm:$0xf0]  ;;  %v5533_v22 = vor.u32 %v7557_v12, %v5532_v11  ;;  %v7791_v3 = vld [vmem:[#allocation2 + $0x84c] sm:$0xf] }
  0x61   : > { %2863 = vmatpush.bf16.msra.mxu1 %v6157_v23  ;;  %2832 = vmatmul.bf16.vlgmr.msrb.gmra.mxu2 %v8447_v1  ;;  %v6684_v20 = vld [vmem:[#allocation2 + $0x9c8] sm:$0xf]  ;;  %v7845_v21 = vld [vmem:[#allocation2 + $0x9f4] sm:$0xf0]  ;;  %v5917_v23 = vor.u32 %v7653_v17, %v5916_v13  ;;  %v6494_v4 = vld [vmem:[#allocation2 + $0x878] sm:$0xf0] }
  0x62   : > { %2876 = vmatpush.bf16.msra.mxu2 %v6541_v24  ;;  %2845 = vmatmul.bf16.vlgmr.msrb.gmra.mxu3 %v8450_v6  ;;  %v6301_v24 = vor.u32 %v7749_v19, %v6300_v18  ;;  %v5484_v25 = vld [vmem:[#allocation2 + $0x68] sm:$0xf]  ;;  %v7545_v26 = vld [vmem:[#allocation2 + $0x94] sm:$0xf0]  ;;  %v7887_v5 = vld [vmem:[#allocation2 + $0xb4c] sm:$0xf] }
  0x63   : > { %2889 = vmatpush.bf16.msra.mxu3 %v6925_v28  ;;  %v5868_v27 = vld [vmem:[#allocation2 + $0x368] sm:$0xf]  ;;  %v6685_v28 = vor.u32 %v7845_v21, %v6684_v20  ;;  %v7641_v29 = vld [vmem:[#allocation2 + $0x394] sm:$0xf0]  ;;  %v6878_v7 = vld [vmem:[#allocation2 + $0xb78] sm:$0xf0] }
  0x64   : > { %2851 = vmatpush.bf16.msra.mxu0 %v5725_v34  ;;  %v6252_v30 = vld [vmem:[#allocation2 + $0x668] sm:$0xf]  ;;  %v7737_v31 = vld [vmem:[#allocation2 + $0x694] sm:$0xf0]  ;;  %v5485_v34 = vor.u32 %v7545_v26, %v5484_v25  ;;  %v5869_v37 = vor.u32 %v7641_v29, %v5868_v27  ;;  %v7587_v11 = vld [vmem:[#allocation2 + $0x1ec] sm:$0xf] }
  0x65   : > { %2864 = vmatpush.bf16.msra.mxu1 %v6109_v35  ;;  %v6636_v32 = vld [vmem:[#allocation2 + $0x968] sm:$0xf]  ;;  %v7833_v33 = vld [vmem:[#allocation2 + $0x994] sm:$0xf0]  ;;  %v6253_v38 = vor.u32 %v7737_v31, %v6252_v30  ;;  %v5678_v12 = vld [vmem:[#allocation2 + $0x218] sm:$0xf0] }
  0x66   : > { %2877 = vmatpush.bf16.msra.mxu2 %v6493_v36  ;;  %v5436_v35 = vld [vmem:[#allocation2 + $0x8] sm:$0xf]  ;;  %v7533_v36 = vld [vmem:[#allocation2 + $0x34] sm:$0xf0]  ;;  %v6637_v42 = vor.u32 %v7833_v33, %v6636_v32  ;;  %v7683_v13 = vld [vmem:[#allocation2 + $0x4ec] sm:$0xf] }
  0x67   : > { %2890 = vmatpush.bf16.msra.mxu3 %v6877_v40  ;;  %v5820_v39 = vld [vmem:[#allocation2 + $0x308] sm:$0xf]  ;;  %v7629_v40 = vld [vmem:[#allocation2 + $0x334] sm:$0xf0]  ;;  %v5437_v49 = vor.u32 %v7533_v36, %v5436_v35  ;;  %v6062_v17 = vld [vmem:[#allocation2 + $0x518] sm:$0xf0] }
  0x68   : > { %2852 = vmatpush.bf16.msra.mxu0 %v5677_v46  ;;  %v6204_v41 = vld [vmem:[#allocation2 + $0x608] sm:$0xf]  ;;  %v7725_v43 = vld [vmem:[#allocation2 + $0x634] sm:$0xf0]  ;;  %v7611_v46 = vld [vmem:[#allocation2 + $0x2ac] sm:$0xf]  ;;  %v5821_v53 = vor.u32 %v7629_v40, %v5820_v39 }
  0x69   : > { %2865 = vmatpush.bf16.msra.mxu1 %v6061_v47  ;;  %v6588_v44 = vld [vmem:[#allocation2 + $0x908] sm:$0xf]  ;;  %v7821_v45 = vld [vmem:[#allocation2 + $0x934] sm:$0xf0]  ;;  %v5774_v47 = vld [vmem:[#allocation2 + $0x2d8] sm:$0xf0]  ;;  %v6205_v54 = vor.u32 %v7725_v43, %v6204_v41 }
  0x6a   : > { %2878 = vmatpush.bf16.msra.mxu2 %v6445_v48  ;;  %v7707_v48 = vld [vmem:[#allocation2 + $0x5ac] sm:$0xf]  ;;  %v6589_v57 = vor.u32 %v7821_v45, %v6588_v44  ;;  %v6446_v19 = vld [vmem:[#allocation2 + $0x818] sm:$0xf0] }
  0x6b   : > { %2891 = vmatpush.bf16.msra.mxu3 %v6829_v52  ;;  %v6542_v52 = vld [vmem:[#allocation2 + $0x8d8] sm:$0xf0]  ;;  %v7779_v18 = vld [vmem:[#allocation2 + $0x7ec] sm:$0xf] }
  0x6c   : > { %2853 = vmatpush.bf16.msra.mxu0 %v5629_v58  ;;  %v5777_v58 = vor.u32 %v7611_v46, %v5774_v47  ;;  %v7875_v20 = vld [vmem:[#allocation2 + $0xaec] sm:$0xf]  ;;  %v6830_v21 = vld [vmem:[#allocation2 + $0xb18] sm:$0xf0] }
  0x6d   : > { %2866 = vmatpush.bf16.msra.mxu1 %v6013_v59  ;;  %v6161_v59 = vor.u32 %v7707_v48, %v6158_v50  ;;  %v7575_v25 = vld [vmem:[#allocation2 + $0x18c] sm:$0xf]  ;;  %v5630_v26 = vld [vmem:[#allocation2 + $0x1b8] sm:$0xf0] }
  0x6e   : > { %2879 = vmatpush.bf16.msra.mxu2 %v6397_v60  ;;  %v6545_v60 = vor.u32 %v7803_v51, %v6542_v52  ;;  %v7671_v27 = vld [vmem:[#allocation2 + $0x48c] sm:$0xf]  ;;  %v6014_v29 = vld [vmem:[#allocation2 + $0x4b8] sm:$0xf0] }
  0x6f   : > { %2892 = vmatpush.bf16.msra.mxu3 %v6781_v0  ;;  %v6929_v0 = vor.u32 %v7899_v55, %v6926_v56  ;;  %v7767_v30 = vld [vmem:[#allocation2 + $0x78c] sm:$0xf]  ;;  %v6398_v31 = vld [vmem:[#allocation2 + $0x7b8] sm:$0xf0]  ;;  %v6017_v35 = vor.u32 %v7671_v27, %v6014_v29  ;;  %v6548_v27 = vld [vmem:[#allocation2 + $0x8b0] sm:$0xf] }
  0x70   : > { %2854 = vmatpush.bf16.msra.mxu0 %v5581_v8  ;;  %v5729_v8 = vor.u32 %v7599_v61, %v5726_v62  ;;  %v7863_v32 = vld [vmem:[#allocation2 + $0xa8c] sm:$0xf]  ;;  %v6782_v33 = vld [vmem:[#allocation2 + $0xab8] sm:$0xf0]  ;;  %v6401_v36 = vor.u32 %v7767_v30, %v6398_v31  ;;  %v6932_v31 = vld [vmem:[#allocation2 + $0xbb0] sm:$0xf] }
  0x71   : > { %2867 = vmatpush.bf16.msra.mxu1 %v5965_v9  ;;  %v6113_v9 = vor.u32 %v7695_v63, %v6110_v2  ;;  %v7659_v39 = vld [vmem:[#allocation2 + $0x42c] sm:$0xf]  ;;  %v6785_v40 = vor.u32 %v7863_v32, %v6782_v33  ;;  %v5966_v41 = vld [vmem:[#allocation2 + $0x458] sm:$0xf0]  ;;  %v7906_v32 = vld [vmem:[#allocation2 + $0xbdc] sm:$0xf0] }
  0x72   : > { %2880 = vmatpush.bf16.msra.mxu2 %v6349_v10  ;;  %v6497_v10 = vor.u32 %v7791_v3, %v6494_v4  ;;  %v6350_v43 = vld [vmem:[#allocation2 + $0x758] sm:$0xf0]  ;;  %v7851_v44 = vld [vmem:[#allocation2 + $0xa2c] sm:$0xf]  ;;  %v5969_v47 = vor.u32 %v7659_v39, %v5966_v41  ;;  %v6116_v39 = vld [vmem:[#allocation2 + $0x550] sm:$0xf] }
  0x73   : > { %2893 = vmatpush.bf16.msra.mxu3 %v6733_v16  ;;  %v6881_v16 = vor.u32 %v7887_v5, %v6878_v7  ;;  %v6734_v45 = vld [vmem:[#allocation2 + $0xa58] sm:$0xf0]  ;;  %v7647_v51 = vld [vmem:[#allocation2 + $0x3cc] sm:$0xf]  ;;  %v7702_v41 = vld [vmem:[#allocation2 + $0x57c] sm:$0xf0] }
  0x74   : > { %2855 = vmatpush.bf16.msra.mxu0 %v5533_v22  ;;  %v5681_v22 = vor.u32 %v7587_v11, %v5678_v12  ;;  %v5534_v50 = vld [vmem:[#allocation2 + $0xf8] sm:$0xf0]  ;;  %v6737_v52 = vor.u32 %v7851_v44, %v6734_v45  ;;  %v7839_v56 = vld [vmem:[#allocation2 + $0x9cc] sm:$0xf]  ;;  %v6884_v44 = vld [vmem:[#allocation2 + $0xb50] sm:$0xf] }
  0x75   : > { %2868 = vmatpush.bf16.msra.mxu1 %v5917_v23  ;;  %v6065_v23 = vor.u32 %v7683_v13, %v6062_v17  ;;  %v6302_v55 = vld [vmem:[#allocation2 + $0x6f8] sm:$0xf0]  ;;  %v7539_v61 = vld [vmem:[#allocation2 + $0x6c] sm:$0xf]  ;;  %v7894_v45 = vld [vmem:[#allocation2 + $0xb7c] sm:$0xf0] }
  0x76   : > { %2881 = vmatpush.bf16.msra.mxu2 %v6301_v24  ;;  %v6449_v24 = vor.u32 %v7779_v18, %v6446_v19  ;;  %v5486_v62 = vld [vmem:[#allocation2 + $0x98] sm:$0xf0]  ;;  %v7635_v63 = vld [vmem:[#allocation2 + $0x36c] sm:$0xf] }
  0x77   : > { %2894 = vmatpush.bf16.msra.mxu3 %v6685_v28  ;;  %v6833_v28 = vor.u32 %v7875_v20, %v6830_v21  ;;  %v5870_v2 = vld [vmem:[#allocation2 + $0x398] sm:$0xf0]  ;;  %v7731_v3 = vld [vmem:[#allocation2 + $0x66c] sm:$0xf] }
  0x78   : > { %2856 = vmatpush.bf16.msra.mxu0 %v5485_v34  ;;  %v5633_v34 = vor.u32 %v7575_v25, %v5630_v26  ;;  %v6254_v4 = vld [vmem:[#allocation2 + $0x698] sm:$0xf0]  ;;  %v7827_v5 = vld [vmem:[#allocation2 + $0x96c] sm:$0xf]  ;;  %v5873_v11 = vor.u32 %v7635_v63, %v5870_v2  ;;  %v7714_v26 = vld [vmem:[#allocation2 + $0x5dc] sm:$0xf0] }
  0x79   : > { %2869 = vmatpush.bf16.msra.mxu1 %v5869_v37  ;;  %v7563_v37 = vld [vmem:[#allocation2 + $0x12c] sm:$0xf]  ;;  %v6638_v7 = vld [vmem:[#allocation2 + $0x998] sm:$0xf0]  ;;  %v6257_v12 = vor.u32 %v7731_v3, %v6254_v4  ;;  %v6020_v63 = vld [vmem:[#allocation2 + $0x490] sm:$0xf] }
  0x7a   : > { %2882 = vmatpush.bf16.msra.mxu2 %v6253_v38  ;;  %v5582_v38 = vld [vmem:[#allocation2 + $0x158] sm:$0xf0]  ;;  %v7623_v13 = vld [vmem:[#allocation2 + $0x30c] sm:$0xf]  ;;  %v6641_v18 = vor.u32 %v7827_v5, %v6638_v7  ;;  %v7678_v2 = vld [vmem:[#allocation2 + $0x4bc] sm:$0xf0] }
  0x7b   : > { %2895 = vmatpush.bf16.msra.mxu3 %v6637_v42  ;;  %v7755_v42 = vld [vmem:[#allocation2 + $0x72c] sm:$0xf]  ;;  %v5585_v46 = vor.u32 %v7563_v37, %v5582_v38  ;;  %v6206_v19 = vld [vmem:[#allocation2 + $0x638] sm:$0xf0]  ;;  %v5732_v37 = vld [vmem:[#allocation2 + $0x250] sm:$0xf] }
  0x7c   : > { %2857 = vmatpush.bf16.msra.mxu0 %v5437_v49  ;;  %v6353_v48 = vor.u32 %v7755_v42, %v6350_v43  ;;  %v7551_v49 = vld [vmem:[#allocation2 + $0xcc] sm:$0xf]  ;;  %v6590_v21 = vld [vmem:[#allocation2 + $0x938] sm:$0xf0]  ;;  %v7606_v38 = vld [vmem:[#allocation2 + $0x27c] sm:$0xf0] }
  0x7d   : > { %2870 = vmatpush.bf16.msra.mxu1 %v5821_v53  ;;  %v5918_v53 = vld [vmem:[#allocation2 + $0x3f8] sm:$0xf0]  ;;  %v7719_v17 = vld [vmem:[#allocation2 + $0x60c] sm:$0xf]  ;;  %v6500_v42 = vld [vmem:[#allocation2 + $0x850] sm:$0xf] }
  0x7e   : > { %2883 = vmatpush.bf16.msra.mxu2 %v6205_v54  ;;  %v7743_v54 = vld [vmem:[#allocation2 + $0x6cc] sm:$0xf]  ;;  %v6209_v30 = vor.u32 %v7719_v17, %v6206_v19  ;;  %v7798_v43 = vld [vmem:[#allocation2 + $0x87c] sm:$0xf0]  ;;  %v6404_v3 = vld [vmem:[#allocation2 + $0x790] sm:$0xf] }
  0x7f   : > { %2896 = vmatpush.bf16.msra.mxu3 %v6589_v57  ;;  %2858 = vmatmul.bf16.vlgmr.msra.gmra.mxu0 %v8453_v14  ;;  %v6686_v57 = vld [vmem:[#allocation2 + $0x9f8] sm:$0xf0]  ;;  %v7815_v20 = vld [vmem:[#allocation2 + $0x90c] sm:$0xf]  ;;  %v7774_v4 = vld [vmem:[#allocation2 + $0x7bc] sm:$0xf0] }
  0x80   : > { %2902 = vmatpush.bf16.msrb.mxu0 %v5777_v58  ;;  %2871 = vmatmul.bf16.vlgmr.msra.gmra.mxu1 %v8455_v15  ;;  %v5537_v58 = vor.u32 %v7551_v49, %v5534_v50  ;;  %v6593_v33 = vor.u32 %v7815_v20, %v6590_v21  ;;  %v5684_v49 = vld [vmem:[#allocation2 + $0x1f0] sm:$0xf]  ;;  %v7594_v50 = vld [vmem:[#allocation2 + $0x21c] sm:$0xf0] }
  0x81   : > { %2915 = vmatpush.bf16.msrb.mxu1 %v6161_v59  ;;  %2884 = vmatmul.bf16.vlgmr.msra.gmra.mxu2 %v8447_v1  ;;  %v5921_v59 = vor.u32 %v7647_v51, %v5918_v53  ;;  %v6068_v51 = vld [vmem:[#allocation2 + $0x4f0] sm:$0xf]  ;;  %v7690_v53 = vld [vmem:[#allocation2 + $0x51c] sm:$0xf0] }
  0x82   : > { %2928 = vmatpush.bf16.msrb.mxu2 %v6545_v60  ;;  %2897 = vmatmul.bf16.vlgmr.msra.gmra.mxu3 %v8450_v6  ;;  %v6305_v60 = vor.u32 %v7743_v54, %v6302_v55  ;;  %v6452_v54 = vld [vmem:[#allocation2 + $0x7f0] sm:$0xf]  ;;  %v7786_v55 = vld [vmem:[#allocation2 + $0x81c] sm:$0xf0] }
  0x83   : > { %2941 = vmatpush.bf16.msrb.mxu3 %v6929_v0  ;;  %v6689_v0 = vor.u32 %v7839_v56, %v6686_v57  ;;  %v6836_v56 = vld [vmem:[#allocation2 + $0xaf0] sm:$0xf]  ;;  %v7882_v57 = vld [vmem:[#allocation2 + $0xb1c] sm:$0xf0] }
  0x84   : > { %2903 = vmatpush.bf16.msrb.mxu0 %v5729_v8  ;;  %v5489_v8 = vor.u32 %v7539_v61, %v5486_v62  ;;  %v5636_v61 = vld [vmem:[#allocation2 + $0x190] sm:$0xf]  ;;  %v7582_v62 = vld [vmem:[#allocation2 + $0x1bc] sm:$0xf0] }
  0x85   : > { %2916 = vmatpush.bf16.msrb.mxu1 %v6113_v9  ;;  %v7527_v9 = vld [vmem:[#allocation2 + $0xc] sm:$0xf]  ;;  %v6788_v5 = vld [vmem:[#allocation2 + $0xa90] sm:$0xf]  ;;  %v7870_v7 = vld [vmem:[#allocation2 + $0xabc] sm:$0xf0] }
  0x86   : > { %2929 = vmatpush.bf16.msrb.mxu2 %v6497_v10  ;;  %v5438_v10 = vld [vmem:[#allocation2 + $0x38] sm:$0xf0]  ;;  %v7666_v17 = vld [vmem:[#allocation2 + $0x45c] sm:$0xf0]  ;;  %v6740_v20 = vld [vmem:[#allocation2 + $0xa30] sm:$0xf] }
  0x87   : > { %2942 = vmatpush.bf16.msrb.mxu3 %v6881_v16  ;;  %v5822_v16 = vld [vmem:[#allocation2 + $0x338] sm:$0xf0]  ;;  %v5441_v25 = vor.u32 %v7527_v9, %v5438_v10  ;;  %v6021_v9 = vor.u32 %v7678_v2, %v6020_v63  ;;  %v6405_v10 = vor.u32 %v7774_v4, %v6404_v3  ;;  %v7762_v19 = vld [vmem:[#allocation2 + $0x75c] sm:$0xf0]  ;;  %v7804_v63 = vld [vmem:[#allocation2 + $0x8b4] sm:$0xf] }
  0x88   : > { %2904 = vmatpush.bf16.msrb.mxu0 %v5681_v22  ;;  %v5780_v22 = vld [vmem:[#allocation2 + $0x2b0] sm:$0xf]  ;;  %v5825_v29 = vor.u32 %v7623_v13, %v5822_v16  ;;  %v6789_v16 = vor.u32 %v7870_v7, %v6788_v5  ;;  %v7858_v21 = vld [vmem:[#allocation2 + $0xa5c] sm:$0xf0]  ;;  %v7900_v4 = vld [vmem:[#allocation2 + $0xbb4] sm:$0xf] }
  0x89   : > { %2917 = vmatpush.bf16.msrb.mxu1 %v6065_v23  ;;  %v7618_v23 = vld [vmem:[#allocation2 + $0x2dc] sm:$0xf0]  ;;  %v5972_v13 = vld [vmem:[#allocation2 + $0x430] sm:$0xf]  ;;  %v6934_v5 = vld [vmem:[#allocation2 + $0xbe0] sm:$0xf0] }
  0x8a   : > { %2930 = vmatpush.bf16.msrb.mxu2 %v6449_v24  ;;  %v6164_v24 = vld [vmem:[#allocation2 + $0x5b0] sm:$0xf] }
  0x8b   : > { %2943 = vmatpush.bf16.msrb.mxu3 %v6833_v28  ;;  %v7810_v28 = vld [vmem:[#allocation2 + $0x8dc] sm:$0xf0] }
  0x8c   : > { %2905 = vmatpush.bf16.msrb.mxu0 %v5633_v34  ;;  %v5781_v34 = vor.u32 %v7618_v23, %v5780_v22  ;;  %v5973_v23 = vor.u32 %v7666_v17, %v5972_v13  ;;  %v7696_v13 = vld [vmem:[#allocation2 + $0x554] sm:$0xf]  ;;  %v6118_v17 = vld [vmem:[#allocation2 + $0x580] sm:$0xf0] }
  0x8d   : > { %2918 = vmatpush.bf16.msrb.mxu1 %v6017_v35  ;;  %v6165_v35 = vor.u32 %v7714_v26, %v6164_v24  ;;  %v7558_v26 = vld [vmem:[#allocation2 + $0xfc] sm:$0xf0] }
  0x8e   : > { %2931 = vmatpush.bf16.msrb.mxu2 %v6401_v36  ;;  %v6549_v36 = vor.u32 %v7810_v28, %v6548_v27  ;;  %v5924_v27 = vld [vmem:[#allocation2 + $0x3d0] sm:$0xf]  ;;  %v6741_v28 = vor.u32 %v7858_v21, %v6740_v20  ;;  %v7888_v20 = vld [vmem:[#allocation2 + $0xb54] sm:$0xf]  ;;  %v6886_v21 = vld [vmem:[#allocation2 + $0xb80] sm:$0xf0] }
  0x8f   : > { %2944 = vmatpush.bf16.msrb.mxu3 %v6785_v40  ;;  %v6933_v40 = vor.u32 %v7906_v32, %v6932_v31  ;;  %v7750_v31 = vld [vmem:[#allocation2 + $0x6fc] sm:$0xf0]  ;;  %v6692_v32 = vld [vmem:[#allocation2 + $0x9d0] sm:$0xf] }
  0x90   : > { %2906 = vmatpush.bf16.msrb.mxu0 %v5585_v46  ;;  %v5733_v46 = vor.u32 %v7606_v38, %v5732_v37  ;;  %v5492_v37 = vld [vmem:[#allocation2 + $0x70] sm:$0xf]  ;;  %v7546_v38 = vld [vmem:[#allocation2 + $0x9c] sm:$0xf0] }
  0x91   : > { %2919 = vmatpush.bf16.msrb.mxu1 %v5969_v47  ;;  %v6117_v47 = vor.u32 %v7702_v41, %v6116_v39  ;;  %v5876_v39 = vld [vmem:[#allocation2 + $0x370] sm:$0xf]  ;;  %v7642_v41 = vld [vmem:[#allocation2 + $0x39c] sm:$0xf0] }
  0x92   : > { %2932 = vmatpush.bf16.msrb.mxu2 %v6353_v48  ;;  %v6501_v48 = vor.u32 %v7798_v43, %v6500_v42  ;;  %v6260_v42 = vld [vmem:[#allocation2 + $0x670] sm:$0xf]  ;;  %v7738_v43 = vld [vmem:[#allocation2 + $0x69c] sm:$0xf0] }
  0x93   : > { %2945 = vmatpush.bf16.msrb.mxu3 %v6737_v52  ;;  %v6885_v52 = vor.u32 %v7894_v45, %v6884_v44  ;;  %v6644_v44 = vld [vmem:[#allocation2 + $0x970] sm:$0xf]  ;;  %v7834_v45 = vld [vmem:[#allocation2 + $0x99c] sm:$0xf0] }
  0x94   : > { %2907 = vmatpush.bf16.msrb.mxu0 %v5537_v58  ;;  %v5685_v58 = vor.u32 %v7594_v50, %v5684_v49  ;;  %v5877_v49 = vor.u32 %v7642_v41, %v5876_v39  ;;  %v6261_v50 = vor.u32 %v7738_v43, %v6260_v42  ;;  %v7672_v39 = vld [vmem:[#allocation2 + $0x494] sm:$0xf]  ;;  %v6406_v43 = vld [vmem:[#allocation2 + $0x7c0] sm:$0xf0] }
  0x95   : > { %2920 = vmatpush.bf16.msrb.mxu1 %v5921_v59  ;;  %v6069_v59 = vor.u32 %v7690_v53, %v6068_v51  ;;  %v5828_v51 = vld [vmem:[#allocation2 + $0x310] sm:$0xf]  ;;  %v7768_v42 = vld [vmem:[#allocation2 + $0x794] sm:$0xf] }
  0x96   : > { %2933 = vmatpush.bf16.msrb.mxu2 %v6305_v60  ;;  %v6453_v60 = vor.u32 %v7786_v55, %v6452_v54  ;;  %v6212_v53 = vld [vmem:[#allocation2 + $0x610] sm:$0xf]  ;;  %v6645_v54 = vor.u32 %v7834_v45, %v6644_v44  ;;  %v7726_v55 = vld [vmem:[#allocation2 + $0x63c] sm:$0xf0]  ;;  %v7864_v45 = vld [vmem:[#allocation2 + $0xa94] sm:$0xf] }
  0x97   : > { %2946 = vmatpush.bf16.msrb.mxu3 %v6689_v0  ;;  %v6837_v0 = vor.u32 %v7882_v57, %v6836_v56  ;;  %v6596_v56 = vld [vmem:[#allocation2 + $0x910] sm:$0xf]  ;;  %v7822_v57 = vld [vmem:[#allocation2 + $0x93c] sm:$0xf0]  ;;  %v6213_v3 = vor.u32 %v7726_v55, %v6212_v53  ;;  %v5974_v55 = vld [vmem:[#allocation2 + $0x460] sm:$0xf0] }
  0x98   : > { %2908 = vmatpush.bf16.msrb.mxu0 %v5489_v8  ;;  %v5637_v8 = vor.u32 %v7582_v62, %v5636_v61  ;;  %v6166_v62 = vld [vmem:[#allocation2 + $0x5e0] sm:$0xf0]  ;;  %v6597_v7 = vor.u32 %v7822_v57, %v6596_v56  ;;  %v7756_v56 = vld [vmem:[#allocation2 + $0x734] sm:$0xf] }
  0x99   : > { %2921 = vmatpush.bf16.msrb.mxu1 %v5873_v11  ;;  %v5588_v11 = vld [vmem:[#allocation2 + $0x130] sm:$0xf]  ;;  %v8479_v44 = vld [vmem:[%s8832_s3] sm:$0xff] }
  0x9a   : > { %2934 = vmatpush.bf16.msrb.mxu2 %v6257_v12  ;;  %v7570_v12 = vld [vmem:[#allocation2 + $0x15c] sm:$0xf0]  ;;  %v788_v53 = vperm.slane %v8479_v44, 0  ;;  %v6358_v57 = vld [vmem:[#allocation2 + $0x760] sm:$0xf0] }
  0x9b   : > { %2947 = vmatpush.bf16.msrb.mxu3 %v6641_v18  ;;  %v6356_v18 = vld [vmem:[#allocation2 + $0x730] sm:$0xf]  ;;  %v5589_v22 = vor.u32 %v7570_v12, %v5588_v11  ;;  %v7600_v11 = vld [vmem:[#allocation2 + $0x254] sm:$0xf]  ;;  %v5734_v12 = vld [vmem:[#allocation2 + $0x280] sm:$0xf0] }
  0x9c   : > { %2909 = vmatpush.bf16.msrb.mxu0 %v5441_v25  ;;  %v6357_v24 = vor.u32 %v7762_v19, %v6356_v18  ;;  %v5540_v25 = vld [vmem:[#allocation2 + $0xd0] sm:$0xf]  ;;  %v7792_v18 = vld [vmem:[#allocation2 + $0x854] sm:$0xf]  ;;  %v6502_v19 = vld [vmem:[#allocation2 + $0x880] sm:$0xf0] }
  0x9d   : > { %2922 = vmatpush.bf16.msrb.mxu1 %v5825_v29  ;;  %v7654_v29 = vld [vmem:[#allocation2 + $0x3fc] sm:$0xf0] }
  0x9e   : > { %2935 = vmatpush.bf16.msrb.mxu2 %v6209_v30  ;;  %v6308_v30 = vld [vmem:[#allocation2 + $0x6d0] sm:$0xf] }
  0x9f   : > { %2948 = vmatpush.bf16.msrb.mxu3 %v6593_v33  ;;  %2910 = vmatmul.bf16.vlgmr.msrb.gmra.mxu0 %v8453_v14  ;;  %v7846_v33 = vld [vmem:[#allocation2 + $0x9fc] sm:$0xf0] }
  0xa0   : > { %2954 = vmatpush.bf16.msra.mxu0 %v5781_v34  ;;  %2923 = vmatmul.bf16.vlgmr.msrb.gmra.mxu1 %v8455_v15  ;;  %v5541_v34 = vor.u32 %v7558_v26, %v5540_v25  ;;  %v7588_v25 = vld [vmem:[#allocation2 + $0x1f4] sm:$0xf]  ;;  %v5686_v26 = vld [vmem:[#allocation2 + $0x220] sm:$0xf0] }
  0xa1   : > { %2967 = vmatpush.bf16.msra.mxu1 %v6165_v35  ;;  %2936 = vmatmul.bf16.vlgmr.msrb.gmra.mxu2 %v8447_v1  ;;  %v5925_v35 = vor.u32 %v7654_v29, %v5924_v27  ;;  %v7684_v27 = vld [vmem:[#allocation2 + $0x4f4] sm:$0xf]  ;;  %v6070_v29 = vld [vmem:[#allocation2 + $0x520] sm:$0xf0] }
  0xa2   : > { %2980 = vmatpush.bf16.msra.mxu2 %v6549_v36  ;;  %2949 = vmatmul.bf16.vlgmr.msrb.gmra.mxu3 %v8450_v6  ;;  %v6309_v36 = vor.u32 %v7750_v31, %v6308_v30  ;;  %v7780_v30 = vld [vmem:[#allocation2 + $0x7f4] sm:$0xf]  ;;  %v6454_v31 = vld [vmem:[#allocation2 + $0x820] sm:$0xf0] }
  0xa3   : > { %2993 = vmatpush.bf16.msra.mxu3 %v6933_v40  ;;  %v6693_v40 = vor.u32 %v7846_v33, %v6692_v32  ;;  %v7876_v32 = vld [vmem:[#allocation2 + $0xaf4] sm:$0xf]  ;;  %v6838_v33 = vld [vmem:[#allocation2 + $0xb20] sm:$0xf0] }
  0xa4   : > { %2955 = vmatpush.bf16.msra.mxu0 %v5733_v46  ;;  %v5493_v46 = vor.u32 %v7546_v38, %v5492_v37  ;;  %v6457_v37 = vor.u32 %v7780_v30, %v6454_v31  ;;  %v5638_v38 = vld [vmem:[#allocation2 + $0x1c0] sm:$0xf0]  ;;  %v6841_v41 = vor.u32 %v7876_v32, %v6838_v33  ;;  %v7528_v33 = vld [vmem:[#allocation2 + $0x14] sm:$0xf] }
  0xa5   : > { %2968 = vmatpush.bf16.msra.mxu1 %v6117_v47  ;;  %v5444_v47 = vld [vmem:[#allocation2 + $0x10] sm:$0xf]  ;;  %v6646_v30 = vld [vmem:[#allocation2 + $0x9a0] sm:$0xf0] }
  0xa6   : > { %2981 = vmatpush.bf16.msra.mxu2 %v6501_v48  ;;  %v7534_v48 = vld [vmem:[#allocation2 + $0x3c] sm:$0xf0] }
  0xa7   : > { %2994 = vmatpush.bf16.msra.mxu3 %v6885_v52  ;;  %v7630_v52 = vld [vmem:[#allocation2 + $0x33c] sm:$0xf0]  ;;  %v5445_v61 = vor.u32 %v7534_v48, %v5444_v47  ;;  %v7564_v48 = vld [vmem:[#allocation2 + $0x134] sm:$0xf] }
  0xa8   : > { %2956 = vmatpush.bf16.msra.mxu0 %v5685_v58  ;;  %v7612_v58 = vld [vmem:[#allocation2 + $0x2b4] sm:$0xf]  ;;  %v5829_v2 = vor.u32 %v7630_v52, %v5828_v51  ;;  %v5590_v51 = vld [vmem:[#allocation2 + $0x160] sm:$0xf0] }
  0xa9   : > { %2969 = vmatpush.bf16.msra.mxu1 %v6069_v59  ;;  %v5782_v59 = vld [vmem:[#allocation2 + $0x2e0] sm:$0xf0]  ;;  %v7660_v52 = vld [vmem:[#allocation2 + $0x434] sm:$0xf] }
  0xaa   : > { %2982 = vmatpush.bf16.msra.mxu2 %v6453_v60  ;;  %v7708_v60 = vld [vmem:[#allocation2 + $0x5b4] sm:$0xf] }
  0xab   : > { %2995 = vmatpush.bf16.msra.mxu3 %v6837_v0  ;;  %v6550_v0 = vld [vmem:[#allocation2 + $0x8e0] sm:$0xf0] }
  0xac   : > { %2957 = vmatpush.bf16.msra.mxu0 %v5637_v8  ;;  %v5785_v8 = vor.u32 %v7612_v58, %v5782_v59  ;;  %v7852_v58 = vld [vmem:[#allocation2 + $0xa34] sm:$0xf]  ;;  %v6742_v59 = vld [vmem:[#allocation2 + $0xa60] sm:$0xf0] }
  0xad   : > { %2970 = vmatpush.bf16.msra.mxu1 %v6021_v9  ;;  %v6169_v9 = vor.u32 %v7708_v60, %v6166_v62  ;;  %v5593_v60 = vor.u32 %v7564_v48, %v5590_v51  ;;  %v5977_v62 = vor.u32 %v7660_v52, %v5974_v55  ;;  %v7619_v48 = vld [vmem:[#allocation2 + $0x2e4] sm:$0xf0] }
  0xae   : > { %2983 = vmatpush.bf16.msra.mxu2 %v6405_v10  ;;  %v6553_v10 = vor.u32 %v7804_v63, %v6550_v0  ;;  %v6361_v63 = vor.u32 %v7756_v56, %v6358_v57  ;;  %v7552_v0 = vld [vmem:[#allocation2 + $0xd4] sm:$0xf]  ;;  %v5740_v56 = vld [vmem:[#allocation2 + $0x258] sm:$0xf]  ;;  %v7607_v57 = vld [vmem:[#allocation2 + $0x284] sm:$0xf0] }
  0xaf   : > { %2996 = vmatpush.bf16.msra.mxu3 %v6789_v16  ;;  %v6937_v16 = vor.u32 %v7900_v4, %v6934_v5 }
  0xb0   : > { %2958 = vmatpush.bf16.msra.mxu0 %v5589_v22  ;;  %v5737_v22 = vor.u32 %v7600_v11, %v5734_v12  ;;  %v7840_v11 = vld [vmem:[#allocation2 + $0x9d4] sm:$0xf]  ;;  %v6694_v12 = vld [vmem:[#allocation2 + $0xa00] sm:$0xf0] }
  0xb1   : > { %2971 = vmatpush.bf16.msra.mxu1 %v5973_v23  ;;  %v6121_v23 = vor.u32 %v7696_v13, %v6118_v17 }
  0xb2   : > { %2984 = vmatpush.bf16.msra.mxu2 %v6357_v24  ;;  %v6505_v24 = vor.u32 %v7792_v18, %v6502_v19 }
  0xb3   : > { %2997 = vmatpush.bf16.msra.mxu3 %v6741_v28  ;;  %v6889_v28 = vor.u32 %v7888_v20, %v6886_v21  ;;  %v7540_v20 = vld [vmem:[#allocation2 + $0x74] sm:$0xf]  ;;  %v5494_v21 = vld [vmem:[#allocation2 + $0xa0] sm:$0xf0] }
  0xb4   : > { %2959 = vmatpush.bf16.msra.mxu0 %v5541_v34  ;;  %v5689_v34 = vor.u32 %v7588_v25, %v5686_v26  ;;  %v5878_v25 = vld [vmem:[#allocation2 + $0x3a0] sm:$0xf0]  ;;  %v7732_v26 = vld [vmem:[#allocation2 + $0x674] sm:$0xf]  ;;  %v5497_v32 = vor.u32 %v7540_v20, %v5494_v21  ;;  %v5500_v21 = vld [vmem:[#allocation2 + $0x78] sm:$0xf] }
  0xb5   : > { %2972 = vmatpush.bf16.msra.mxu1 %v5925_v35  ;;  %v7576_v35 = vld [vmem:[#allocation2 + $0x194] sm:$0xf] }
  0xb6   : > { %2985 = vmatpush.bf16.msra.mxu2 %v6309_v36  ;;  %v6073_v36 = vor.u32 %v7684_v27, %v6070_v29  ;;  %v5641_v47 = vor.u32 %v7576_v35, %v5638_v38  ;;  %v6262_v27 = vld [vmem:[#allocation2 + $0x6a0] sm:$0xf0]  ;;  %v7828_v29 = vld [vmem:[#allocation2 + $0x974] sm:$0xf] }
  0xb7   : > { %2998 = vmatpush.bf16.msra.mxu3 %v6693_v40  ;;  %v6022_v40 = vld [vmem:[#allocation2 + $0x4c0] sm:$0xf0]  ;;  %v7624_v38 = vld [vmem:[#allocation2 + $0x314] sm:$0xf] }
  0xb8   : > { %2960 = vmatpush.bf16.msra.mxu0 %v5493_v46  ;;  %v6790_v46 = vld [vmem:[#allocation2 + $0xac0] sm:$0xf0] }
  0xb9   : > { %2973 = vmatpush.bf16.msra.mxu1 %v5877_v49  ;;  %v6025_v49 = vor.u32 %v7672_v39, %v6022_v40  ;;  %v5830_v39 = vld [vmem:[#allocation2 + $0x340] sm:$0xf0] }
  0xba   : > { %2986 = vmatpush.bf16.msra.mxu2 %v6261_v50  ;;  %v6409_v50 = vor.u32 %v7768_v42, %v6406_v43  ;;  %v7720_v42 = vld [vmem:[#allocation2 + $0x614] sm:$0xf]  ;;  %v6214_v43 = vld [vmem:[#allocation2 + $0x640] sm:$0xf0]  ;;  %v5833_v51 = vor.u32 %v7624_v38, %v5830_v39  ;;  %v5742_v38 = vld [vmem:[#allocation2 + $0x288] sm:$0xf0] }
  0xbb   : > { %2999 = vmatpush.bf16.msra.mxu3 %v6645_v54  ;;  %v6793_v54 = vor.u32 %v7864_v45, %v6790_v46  ;;  %v7816_v45 = vld [vmem:[#allocation2 + $0x914] sm:$0xf]  ;;  %v6598_v46 = vld [vmem:[#allocation2 + $0x940] sm:$0xf0]  ;;  %v6217_v52 = vor.u32 %v7720_v42, %v6214_v43  ;;  %v6172_v43 = vld [vmem:[#allocation2 + $0x5b8] sm:$0xf] }
  0xbc   : > { %2961 = vmatpush.bf16.msra.mxu0 %v5445_v61 }
  0xbd   : > { %2974 = vmatpush.bf16.msra.mxu1 %v5829_v2  ;;  %v5542_v2 = vld [vmem:[#allocation2 + $0x100] sm:$0xf0] }
  0xbe   : > { %2987 = vmatpush.bf16.msra.mxu2 %v6213_v3  ;;  %v7648_v3 = vld [vmem:[#allocation2 + $0x3d4] sm:$0xf]  ;;  %v5545_v17 = vor.u32 %v7552_v0, %v5542_v2  ;;  %v789_v0 = vperm.slane %v8479_v44, 1 }
  0xbf   : > { %3000 = vmatpush.bf16.msra.mxu3 %v6597_v7  ;;  %2962 = vmatmul.bf16.vlgmr.msra.gmra.mxu0 %v8453_v14  ;;  %v6745_v7 = vor.u32 %v7852_v58, %v6742_v59  ;;  %v5741_v58 = vor.u32 %v7607_v57, %v5740_v56  ;;  %v5692_v59 = vld [vmem:[#allocation2 + $0x1f8] sm:$0xf]  ;;  %v7703_v57 = vld [vmem:[#allocation2 + $0x584] sm:$0xf0] }
  0xc0   : > { %3006 = vmatpush.bf16.msrb.mxu0 %v5785_v8  ;;  %2975 = vmatmul.bf16.vlgmr.msra.gmra.mxu1 %v8455_v15  ;;  %v2755_v61 = vpop.f32.mrf.mxu0  ;;  %v5926_v8 = vld [vmem:[#allocation2 + $0x400] sm:$0xf0]  ;;  %v6124_v56 = vld [vmem:[#allocation2 + $0x558] sm:$0xf] }
  0xc1   : > { %3019 = vmatpush.bf16.msrb.mxu1 %v6169_v9  ;;  %2988 = vmatmul.bf16.vlgmr.msra.gmra.mxu2 %v8447_v1  ;;  %v2756_v4 = vadd.f32 %v2755_v61, %v788_v53  ;;  %v2768_v5 = vpop.f32.mrf.mxu1  ;;  %v7744_v9 = vld [vmem:[#allocation2 + $0x6d4] sm:$0xf]  ;;  %v5929_v18 = vor.u32 %v7648_v3, %v5926_v8  ;;  %v6601_v53 = vor.u32 %v7816_v45, %v6598_v46  ;;  %v7571_v8 = vld [vmem:[#allocation2 + $0x164] sm:$0xf0]  ;;  %v6508_v46 = vld [vmem:[#allocation2 + $0x858] sm:$0xf] }
  0xc2   : > { %3032 = vmatpush.bf16.msrb.mxu2 %v6553_v10  ;;  %3001 = vmatmul.bf16.vlgmr.msra.gmra.mxu3 %v8450_v6  ;;  %v6310_v10 = vld [vmem:[#allocation2 + $0x700] sm:$0xf0]  ;;  %v7715_v45 = vld [vmem:[#allocation2 + $0x5e4] sm:$0xf0] }
  0xc3   : > { %3045 = vmatpush.bf16.msrb.mxu3 %v6937_v16  ;;  %v2769_v13 = vadd.f32 %v2768_v5, %v2756_v4  ;;  %v6313_v19 = vor.u32 %v7744_v9, %v6310_v10 }
  0xc4   : > { %3007 = vmatpush.bf16.msrb.mxu0 %v5737_v22  ;;  %v2781_v16 = vpop.f32.mrf.mxu2  ;;  %v7636_v22 = vld [vmem:[#allocation2 + $0x374] sm:$0xf] }
  0xc5   : > { %3020 = vmatpush.bf16.msrb.mxu1 %v6121_v23  ;;  %v2782_v23 = vadd.f32 %v2781_v16, %v2769_v13  ;;  %v5881_v35 = vor.u32 %v7636_v22, %v5878_v25  ;;  %v7559_v13 = vld [vmem:[#allocation2 + $0x104] sm:$0xf0] }
  0xc6   : > { %3033 = vmatpush.bf16.msrb.mxu2 %v6505_v24  ;;  %v6697_v24 = vor.u32 %v7840_v11, %v6694_v12  ;;  %v5548_v12 = vld [vmem:[#allocation2 + $0xd8] sm:$0xf]  ;;  %v7547_v22 = vld [vmem:[#allocation2 + $0xa4] sm:$0xf0] }
  0xc7   : > { %3046 = vmatpush.bf16.msrb.mxu3 %v6889_v28  ;;  %v2794_v28 = vpop.f32.mrf.mxu3  ;;  %v5501_v25 = vor.u32 %v7547_v22, %v5500_v21  ;;  %v7871_v21 = vld [vmem:[#allocation2 + $0xac4] sm:$0xf0] }
  0xc8   : > { %3008 = vmatpush.bf16.msrb.mxu0 %v5689_v34  ;;  %v8482_v31 = vadd.f32 %v2794_v28, %v2782_v23  ;;  %v2757_v34 = vpop.f32.mrf.mxu0 }
  0xc9   : > { %3021 = vmatpush.bf16.msrb.mxu1 %v6073_v36  ;;  %v6265_v36 = vor.u32 %v7732_v26, %v6262_v27  ;;  %v2770_v40 = vpop.f32.mrf.mxu1  ;;  %v5452_v26 = vld [vmem:[#allocation2 + $0x18] sm:$0xf]  ;;  %v7535_v27 = vld [vmem:[#allocation2 + $0x44] sm:$0xf0] }
  0xca   : > { %3034 = vmatpush.bf16.msrb.mxu2 %v6457_v37  ;;  %v5446_v37 = vld [vmem:[#allocation2 + $0x40] sm:$0xf0]  ;;  %v6940_v40 = vld [vmem:[#allocation2 + $0xbb8] sm:$0xf] }
  0xcb   : > { %3047 = vmatpush.bf16.msrb.mxu3 %v6841_v41  ;;  %v6649_v41 = vor.u32 %v7828_v29, %v6646_v30  ;;  %v7613_v29 = vld [vmem:[#allocation2 + $0x2bc] sm:$0xf]  ;;  %v5790_v30 = vld [vmem:[#allocation2 + $0x2e8] sm:$0xf0] }
  0xcc   : > { %3009 = vmatpush.bf16.msrb.mxu0 %v5641_v47  ;;  %v5788_v47 = vld [vmem:[#allocation2 + $0x2b8] sm:$0xf]  ;;  %v5793_v34 = vor.u32 %v7613_v29, %v5790_v30  ;;  %v7553_v29 = vld [vmem:[#allocation2 + $0xdc] sm:$0xf]  ;;  %v5550_v30 = vld [vmem:[#allocation2 + $0x108] sm:$0xf0] }
  0xcd   : > { %3022 = vmatpush.bf16.msrb.mxu1 %v6025_v49  ;;  %v2783_v49 = vpop.f32.mrf.mxu2 }
  0xce   : > { %3035 = vmatpush.bf16.msrb.mxu2 %v6409_v50  ;;  %v5449_v50 = vor.u32 %v7528_v33, %v5446_v37  ;;  %v5453_v33 = vor.u32 %v7535_v27, %v5452_v26  ;;  %v7601_v37 = vld [vmem:[#allocation2 + $0x25c] sm:$0xf]  ;;  %v6173_v49 = vor.u32 %v7715_v45, %v6172_v43  ;;  %v6028_v26 = vld [vmem:[#allocation2 + $0x498] sm:$0xf]  ;;  %v7679_v27 = vld [vmem:[#allocation2 + $0x4c4] sm:$0xf0] }
  0xcf   : > { %3048 = vmatpush.bf16.msrb.mxu3 %v6793_v54  ;;  %v5789_v54 = vor.u32 %v7619_v48, %v5788_v47  ;;  %v2796_v55 = vpop.f32.mrf.mxu3  ;;  %v5745_v42 = vor.u32 %v7601_v37, %v5742_v38  ;;  %v7589_v47 = vld [vmem:[#allocation2 + $0x1fc] sm:$0xf]  ;;  %v5694_v48 = vld [vmem:[#allocation2 + $0x228] sm:$0xf0]  ;;  %v7859_v37 = vld [vmem:[#allocation2 + $0xa64] sm:$0xf0] }
  0xd0   : > { %3010 = vmatpush.bf16.msrb.mxu0 %v5593_v60  ;;  %v7595_v60 = vld [vmem:[#allocation2 + $0x224] sm:$0xf0]  ;;  %v5697_v55 = vor.u32 %v7589_v47, %v5694_v48  ;;  %v6316_v43 = vld [vmem:[#allocation2 + $0x6d8] sm:$0xf]  ;;  %v7541_v45 = vld [vmem:[#allocation2 + $0x7c] sm:$0xf] }
  0xd1   : > { %3023 = vmatpush.bf16.msrb.mxu1 %v5977_v62  ;;  %v5693_v61 = vor.u32 %v7595_v60, %v5692_v59  ;;  %v5644_v62 = vld [vmem:[#allocation2 + $0x198] sm:$0xf]  ;;  %v7577_v59 = vld [vmem:[#allocation2 + $0x19c] sm:$0xf]  ;;  %v5646_v60 = vld [vmem:[#allocation2 + $0x1c8] sm:$0xf0] }
  0xd2   : > { %3036 = vmatpush.bf16.msrb.mxu2 %v6361_v63  ;;  %v7583_v63 = vld [vmem:[#allocation2 + $0x1c4] sm:$0xf0] }
  0xd3   : > { %3049 = vmatpush.bf16.msrb.mxu3 %v6745_v7  ;;  %v5645_v2 = vor.u32 %v7583_v63, %v5644_v62  ;;  %v5596_v7 = vld [vmem:[#allocation2 + $0x138] sm:$0xf]  ;;  %v7787_v62 = vld [vmem:[#allocation2 + $0x824] sm:$0xf0]  ;;  %v790_v63 = vperm.slane %v8479_v44, 2 }
  0xd4   : > { %3011 = vmatpush.bf16.msrb.mxu0 %v5545_v17  ;;  %v5597_v10 = vor.u32 %v7571_v8, %v5596_v7  ;;  %v6076_v7 = vld [vmem:[#allocation2 + $0x4f8] sm:$0xf]  ;;  %v7691_v8 = vld [vmem:[#allocation2 + $0x524] sm:$0xf0] }
  0xd5   : > { %3024 = vmatpush.bf16.msrb.mxu1 %v5929_v18 }
  0xd6   : > { %3037 = vmatpush.bf16.msrb.mxu2 %v6313_v19  ;;  %v5549_v19 = vor.u32 %v7559_v13, %v5548_v12  ;;  %v6077_v13 = vor.u32 %v7691_v8, %v6076_v7  ;;  %v7835_v7 = vld [vmem:[#allocation2 + $0x9a4] sm:$0xf0] }
  0xd7   : > { %3050 = vmatpush.bf16.msrb.mxu3 %v6697_v24 }
  0xd8   : > { %3012 = vmatpush.bf16.msrb.mxu0 %v5497_v32 }
  0xd9   : > { %3025 = vmatpush.bf16.msrb.mxu1 %v5881_v35  ;;  %v6556_v35 = vld [vmem:[#allocation2 + $0x8b8] sm:$0xf] }
  0xda   : > { %3038 = vmatpush.bf16.msrb.mxu2 %v6265_v36  ;;  %v7811_v36 = vld [vmem:[#allocation2 + $0x8e4] sm:$0xf0] }
  0xdb   : > { %3051 = vmatpush.bf16.msrb.mxu3 %v6649_v41  ;;  %v6557_v39 = vor.u32 %v7811_v36, %v6556_v35  ;;  %v7907_v41 = vld [vmem:[#allocation2 + $0xbe4] sm:$0xf0]  ;;  %v6748_v36 = vld [vmem:[#allocation2 + $0xa38] sm:$0xf] }
  0xdc   : > { %3013 = vmatpush.bf16.msrb.mxu0 %v5449_v50  ;;  %v2807_v3 = vpop.f32.mrf.mxu0  ;;  %v7799_v50 = vld [vmem:[#allocation2 + $0x884] sm:$0xf0] }
  0xdd   : > { %3026 = vmatpush.bf16.msrb.mxu1 %v5833_v51  ;;  %v2808_v4 = vadd.f32 %v2807_v3, %v789_v0  ;;  %v2820_v5 = vpop.f32.mrf.mxu1  ;;  %v6509_v51 = vor.u32 %v7799_v50, %v6508_v46  ;;  %v7883_v3 = vld [vmem:[#allocation2 + $0xb24] sm:$0xf0]  ;;  %v5502_v46 = vld [vmem:[#allocation2 + $0xa8] sm:$0xf0] }
  0xde   : > { %3039 = vmatpush.bf16.msrb.mxu2 %v6217_v52  ;;  %v6892_v52 = vld [vmem:[#allocation2 + $0xb58] sm:$0xf]  ;;  %v7751_v50 = vld [vmem:[#allocation2 + $0x704] sm:$0xf0] }
  0xdf   : > { %3052 = vmatpush.bf16.msrb.mxu3 %v6601_v53  ;;  %3014 = vmatmul.bf16.vlgmr.msrb.gmra.mxu0 %v8453_v14  ;;  %v2821_v9 = vadd.f32 %v2820_v5, %v2808_v4  ;;  %v7895_v53 = vld [vmem:[#allocation2 + $0xb84] sm:$0xf0]  ;;  %v5649_v5 = vor.u32 %v7577_v59, %v5646_v60  ;;  %v6268_v60 = vld [vmem:[#allocation2 + $0x678] sm:$0xf] }
  0xe0   : > { %3058 = vmatpush.bf16.msra.mxu0 %v5789_v54  ;;  %3027 = vmatmul.bf16.vlgmr.msrb.gmra.mxu1 %v8455_v15  ;;  %v6893_v54 = vor.u32 %v7895_v53, %v6892_v52  ;;  %v6317_v52 = vor.u32 %v7751_v50, %v6316_v43  ;;  %v6700_v53 = vld [vmem:[#allocation2 + $0x9d8] sm:$0xf]  ;;  %v7655_v59 = vld [vmem:[#allocation2 + $0x404] sm:$0xf0]  ;;  %v7889_v43 = vld [vmem:[#allocation2 + $0xb5c] sm:$0xf] }
  0xe1   : > { %3040 = vmatmul.bf16.vlgmr.msrb.gmra.mxu2 %v8447_v1  ;;  %3071 = vmatpush.bf16.msra.mxu1 %v6173_v49  ;;  %v7697_v50 = vld [vmem:[#allocation2 + $0x55c] sm:$0xf] }
  0xe2   : > { %3053 = vmatmul.bf16.vlgmr.msrb.gmra.mxu3 %v8450_v6  ;;  %3084 = vmatpush.bf16.msra.mxu2 %v6557_v39 }
  0xe4   : > { %3059 = vmatpush.bf16.msra.mxu0 %v5741_v58  ;;  %v2833_v11 = vpop.f32.mrf.mxu2  ;;  %v2809_v20 = vpop.f32.mrf.mxu0  ;;  %v6460_v58 = vld [vmem:[#allocation2 + $0x7f8] sm:$0xf] }
  0xe5   : > { %v2834_v16 = vadd.f32 %v2833_v11, %v2821_v9  ;;  %v2846_v17 = vpop.f32.mrf.mxu3  ;;  %v2822_v23 = vpop.f32.mrf.mxu1  ;;  %v6461_v0 = vor.u32 %v7787_v62, %v6460_v58  ;;  %v6412_v9 = vld [vmem:[#allocation2 + $0x798] sm:$0xf]  ;;  %v5598_v11 = vld [vmem:[#allocation2 + $0x168] sm:$0xf0]  ;;  %v5796_v62 = vld [vmem:[#allocation2 + $0x2c0] sm:$0xf] }
  0xe6   : > { %3085 = vmatpush.bf16.msra.mxu2 %v6509_v51  ;;  %v6796_v20 = vld [vmem:[#allocation2 + $0xa98] sm:$0xf] }
  0xe7   : > { %v2847_v18 = vadd.f32 %v2846_v17, %v2834_v16  ;;  %v7775_v16 = vld [vmem:[#allocation2 + $0x7c4] sm:$0xf0]  ;;  %v5932_v58 = vld [vmem:[#allocation2 + $0x3d8] sm:$0xf] }
  0xe8   : > { %3060 = vmatpush.bf16.msra.mxu0 %v5693_v61  ;;  %v6125_v61 = vor.u32 %v7703_v57, %v6124_v56  ;;  %v5505_v57 = vor.u32 %v7541_v45, %v5502_v46  ;;  %v6894_v45 = vld [vmem:[#allocation2 + $0xb88] sm:$0xf0] }
  0xe9   : > { %v8490_v24 = vpack.c.bf16 %v2847_v18, %v8482_v31  ;;  %v6941_v31 = vor.u32 %v7907_v41, %v6940_v40  ;;  %v6749_v40 = vor.u32 %v7859_v37, %v6748_v36  ;;  %v5553_v41 = vor.u32 %v7553_v29, %v5550_v30  ;;  %v7901_v29 = vld [vmem:[#allocation2 + $0xbbc] sm:$0xf]  ;;  %v6942_v30 = vld [vmem:[#allocation2 + $0xbe8] sm:$0xf0] }
  0xea   : > { %3072 = vmatpush.bf16.msra.mxu1 %v6125_v61  ;;  %3086 = vmatpush.bf16.msra.mxu2 %v6461_v0  ;;  %v5454_v61 = vld [vmem:[#allocation2 + $0x48] sm:$0xf0]  ;;  %v7739_v0 = vld [vmem:[#allocation2 + $0x6a4] sm:$0xf0]  ;;  %v7709_v36 = vld [vmem:[#allocation2 + $0x5bc] sm:$0xf] }
  0xeb   : > { %3097 = vmatpush.bf16.msra.mxu3 %v6941_v31  ;;  %v5980_v31 = vld [vmem:[#allocation2 + $0x438] sm:$0xf]  ;;  %v6174_v37 = vld [vmem:[#allocation2 + $0x5e8] sm:$0xf0] }
  0xec   : > { %3061 = vmatpush.bf16.msra.mxu0 %v5645_v2  ;;  %v2835_v28 = vpop.f32.mrf.mxu2  ;;  %v6844_v2 = vld [vmem:[#allocation2 + $0xaf8] sm:$0xf] }
  0xed   : > { %v2848_v32 = vpop.f32.mrf.mxu3  ;;  %v6845_v4 = vor.u32 %v7883_v3, %v6844_v2  ;;  %v6364_v28 = vld [vmem:[#allocation2 + $0x738] sm:$0xf]  ;;  %v7620_v2 = vld [vmem:[#allocation2 + $0x2ec] sm:$0xf0] }
  0xee   : > { %3073 = vmatpush.bf16.msra.mxu1 %v6077_v13  ;;  %v6029_v32 = vor.u32 %v7679_v27, %v6028_v26  ;;  %v7643_v13 = vld [vmem:[#allocation2 + $0x3a4] sm:$0xf0] }
  0xef   : > { %3098 = vmatpush.bf16.msra.mxu3 %v6893_v54  ;;  %v7847_v54 = vld [vmem:[#allocation2 + $0xa04] sm:$0xf0] }
  0xf0   : > { %3062 = vmatpush.bf16.msra.mxu0 %v5597_v10  ;;  %v7565_v10 = vld [vmem:[#allocation2 + $0x13c] sm:$0xf]  ;;  %v6701_v56 = vor.u32 %v7847_v54, %v6700_v53  ;;  %v7823_v26 = vld [vmem:[#allocation2 + $0x944] sm:$0xf0]  ;;  %v5652_v53 = vld [vmem:[#allocation2 + $0x1a0] sm:$0xf] }
  0xf1   : > { %v5601_v22 = vor.u32 %v7565_v10, %v5598_v11  ;;  %v5884_v11 = vld [vmem:[#allocation2 + $0x378] sm:$0xf]  ;;  %v7584_v54 = vld [vmem:[#allocation2 + $0x1cc] sm:$0xf0] }
  0xf2   : > { %3074 = vmatpush.bf16.msra.mxu1 %v6029_v32  ;;  %v5836_v32 = vld [vmem:[#allocation2 + $0x318] sm:$0xf] }
  0xf3   : > { %3099 = vmatpush.bf16.msra.mxu3 %v6845_v4  ;;  %v6269_v4 = vor.u32 %v7739_v0, %v6268_v60  ;;  %v791_v60 = vperm.slane %v8479_v44, 3  ;;  %v6078_v0 = vld [vmem:[#allocation2 + $0x528] sm:$0xf0] }
  0xf4   : > { %3063 = vmatpush.bf16.msra.mxu0 %v5549_v19  ;;  %v6413_v19 = vor.u32 %v7775_v16, %v6412_v9  ;;  %v6220_v16 = vld [vmem:[#allocation2 + $0x618] sm:$0xf] }
  0xf6   : > { %3087 = vmatpush.bf16.msra.mxu2 %v6413_v19  ;;  %v7608_v19 = vld [vmem:[#allocation2 + $0x28c] sm:$0xf0] }
  0xf8   : > { %3064 = vmatpush.bf16.msra.mxu0 %v5501_v25  ;;  %v6797_v25 = vor.u32 %v7871_v21, %v6796_v20  ;;  %v5885_v20 = vor.u32 %v7643_v13, %v5884_v11  ;;  %v6798_v11 = vld [vmem:[#allocation2 + $0xac8] sm:$0xf0] }
  0xfa   : > { %3100 = vmatpush.bf16.msra.mxu3 %v6797_v25  ;;  %v6604_v25 = vld [vmem:[#allocation2 + $0x918] sm:$0xf] }
  0xfc   : > { %3065 = vmatpush.bf16.msra.mxu0 %v5453_v33  ;;  %v2859_v12 = vpop.f32.mrf.mxu0  ;;  %v7763_v33 = vld [vmem:[#allocation2 + $0x764] sm:$0xf0] }
  0xfd   : > { %v2860_v17 = vadd.f32 %v2859_v12, %v790_v63  ;;  %v2872_v18 = vpop.f32.mrf.mxu1  ;;  %v6365_v35 = vor.u32 %v7763_v33, %v6364_v28  ;;  %v5933_v63 = vor.u32 %v7655_v59, %v5932_v58  ;;  %v5797_v12 = vor.u32 %v7620_v2, %v5796_v62  ;;  %v7877_v58 = vld [vmem:[#allocation2 + $0xafc] sm:$0xf]  ;;  %v6846_v59 = vld [vmem:[#allocation2 + $0xb28] sm:$0xf0] }
  0xfe   : > { %3101 = vmatpush.bf16.msra.mxu3 %v6749_v40  ;;  %v6605_v28 = vor.u32 %v7823_v26, %v6604_v25  ;;  %v5653_v62 = vor.u32 %v7584_v54, %v5652_v53  ;;  %v7769_v2 = vld [vmem:[#allocation2 + $0x79c] sm:$0xf]  ;;  %v6366_v25 = vld [vmem:[#allocation2 + $0x768] sm:$0xf0] }
  0xff   : > { %3066 = vmatmul.bf16.vlgmr.msra.gmra.mxu0 %v8453_v14  ;;  %v2873_v23 = vadd.f32 %v2872_v18, %v2860_v17  ;;  %3088 = vmatpush.bf16.msra.mxu2 %v6365_v35  ;;  %v7727_v17 = vld [vmem:[#allocation2 + $0x644] sm:$0xf0]  ;;  %v5748_v18 = vld [vmem:[#allocation2 + $0x260] sm:$0xf]  ;;  %v7853_v26 = vld [vmem:[#allocation2 + $0xa3c] sm:$0xf] }
 0x100   : > { %3110 = vmatpush.bf16.msrb.mxu0 %v5793_v34  ;;  %v6221_v21 = vor.u32 %v7727_v17, %v6220_v16  ;;  %v5749_v33 = vor.u32 %v7608_v19, %v5748_v18  ;;  %v7631_v35 = vld [vmem:[#allocation2 + $0x344] sm:$0xf0]  ;;  %v7673_v17 = vld [vmem:[#allocation2 + $0x49c] sm:$0xf]  ;;  %v6030_v18 = vld [vmem:[#allocation2 + $0x4c8] sm:$0xf0] }
 0x101   : > { %v5837_v40 = vor.u32 %v7631_v35, %v5836_v32  ;;  %v7757_v19 = vld [vmem:[#allocation2 + $0x73c] sm:$0xf]  ;;  %v5934_v54 = vld [vmem:[#allocation2 + $0x408] sm:$0xf0] }
 0x102   : > { %3102 = vmatpush.bf16.msra.mxu3 %v6701_v56  ;;  %v6462_v56 = vld [vmem:[#allocation2 + $0x828] sm:$0xf0]  ;;  %v7661_v35 = vld [vmem:[#allocation2 + $0x43c] sm:$0xf] }
 0x103   : > { %3089 = vmatpush.bf16.msra.mxu2 %v6317_v52  ;;  %v7781_v52 = vld [vmem:[#allocation2 + $0x7fc] sm:$0xf] }
 0x104   : > { %3111 = vmatpush.bf16.msrb.mxu0 %v5745_v42  ;;  %v2885_v34 = vpop.f32.mrf.mxu2  ;;  %v7667_v42 = vld [vmem:[#allocation2 + $0x464] sm:$0xf0]  ;;  %v2861_v48 = vpop.f32.mrf.mxu0  ;;  %v7649_v53 = vld [vmem:[#allocation2 + $0x3dc] sm:$0xf] }
 0x105   : > { %v2886_v38 = vadd.f32 %v2885_v34, %v2873_v23  ;;  %v2898_v39 = vpop.f32.mrf.mxu3  ;;  %v5981_v49 = vor.u32 %v7667_v42, %v5980_v31  ;;  %v2874_v51 = vpop.f32.mrf.mxu1  ;;  %v6558_v23 = vld [vmem:[#allocation2 + $0x8e8] sm:$0xf0]  ;;  %v6945_v34 = vor.u32 %v7901_v29, %v6942_v30  ;;  %v7793_v31 = vld [vmem:[#allocation2 + $0x85c] sm:$0xf]  ;;  %v6897_v48 = vor.u32 %v7889_v43, %v6894_v45 }
 0x106   : > { %v6510_v42 = vld [vmem:[#allocation2 + $0x888] sm:$0xf0]  ;;  %v6369_v29 = vor.u32 %v7757_v19, %v6366_v25  ;;  %v7841_v45 = vld [vmem:[#allocation2 + $0x9dc] sm:$0xf] }
 0x107   : > { %v8494_v47 = vadd.f32 %v2898_v39, %v2886_v38  ;;  %3075 = vmatpush.bf16.msra.mxu1 %v5981_v49  ;;  %3090 = vmatpush.bf16.msra.mxu2 %v6269_v4  ;;  %v5700_v38 = vld [vmem:[#allocation2 + $0x200] sm:$0xf]  ;;  %v7596_v39 = vld [vmem:[#allocation2 + $0x22c] sm:$0xf0]  ;;  %v6513_v46 = vor.u32 %v7793_v31, %v6510_v42  ;;  %v6126_v51 = vld [vmem:[#allocation2 + $0x588] sm:$0xf0] }
 0x108   : > { %3112 = vmatpush.bf16.msrb.mxu0 %v5697_v55  ;;  %v7529_v55 = vld [vmem:[#allocation2 + $0x1c] sm:$0xf]  ;;  %v5701_v49 = vor.u32 %v7596_v39, %v5700_v38  ;;  %v7572_v4 = vld [vmem:[#allocation2 + $0x16c] sm:$0xf0]  ;;  %v5508_v38 = vld [vmem:[#allocation2 + $0x80] sm:$0xf] }
 0x109   : > { %v5457_v10 = vor.u32 %v7529_v55, %v5454_v61  ;;  %v6129_v55 = vor.u32 %v7697_v50, %v6126_v51  ;;  %v6849_v61 = vor.u32 %v7877_v58, %v6846_v59  ;;  %v7548_v39 = vld [vmem:[#allocation2 + $0xac] sm:$0xf0]  ;;  %v5937_v58 = vor.u32 %v7649_v53, %v5934_v54  ;;  %v6270_v59 = vld [vmem:[#allocation2 + $0x6a8] sm:$0xf0] }
 0x10a   : > { %v7884_v53 = vld [vmem:[#allocation2 + $0xb2c] sm:$0xf0] }
 0x10b   : > { %3076 = vmatpush.bf16.msra.mxu1 %v5933_v63  ;;  %3091 = vmatpush.bf16.msra.mxu2 %v6221_v21  ;;  %v7685_v63 = vld [vmem:[#allocation2 + $0x4fc] sm:$0xf]  ;;  %v5556_v21 = vld [vmem:[#allocation2 + $0xe0] sm:$0xf] }
 0x10c   : > { %3113 = vmatpush.bf16.msrb.mxu0 %v5649_v5  ;;  %v2887_v3 = vpop.f32.mrf.mxu2  ;;  %v6652_v5 = vld [vmem:[#allocation2 + $0x978] sm:$0xf] }
 0x10d   : > { %v2900_v8 = vpop.f32.mrf.mxu3  ;;  %v6653_v9 = vor.u32 %v7835_v7, %v6652_v5  ;;  %v5604_v3 = vld [vmem:[#allocation2 + $0x140] sm:$0xf]  ;;  %v6081_v5 = vor.u32 %v7685_v63, %v6078_v0  ;;  %v6414_v7 = vld [vmem:[#allocation2 + $0x7c8] sm:$0xf0] }
 0x10e   : > { %3092 = vmatmul.bf16.vlgmr.msra.gmra.mxu2 %v8447_v1  ;;  %v5605_v16 = vor.u32 %v7572_v4, %v5604_v3  ;;  %v6654_v63 = vld [vmem:[#allocation2 + $0x9a8] sm:$0xf0]  ;;  %v7637_v4 = vld [vmem:[#allocation2 + $0x37c] sm:$0xf] }
 0x10f   : > { %3103 = vmatpush.bf16.msra.mxu3 %v6653_v9  ;;  %3077 = vmatpush.bf16.msra.mxu1 %v5885_v20  ;;  %v6417_v9 = vor.u32 %v7769_v2, %v6414_v7  ;;  %v5886_v7 = vld [vmem:[#allocation2 + $0x3a8] sm:$0xf0] }
 0x110   : > { %3114 = vmatpush.bf16.msrb.mxu0 %v5601_v22  ;;  %v7805_v22 = vld [vmem:[#allocation2 + $0x8bc] sm:$0xf] }
 0x111   : > { %v6561_v27 = vor.u32 %v7805_v22, %v6558_v23  ;;  %v7560_v22 = vld [vmem:[#allocation2 + $0x10c] sm:$0xf0]  ;;  %v6033_v23 = vor.u32 %v7673_v17, %v6030_v18  ;;  %v7817_v17 = vld [vmem:[#allocation2 + $0x91c] sm:$0xf]  ;;  %v6606_v18 = vld [vmem:[#allocation2 + $0x948] sm:$0xf0] }
 0x113   : > { %3136 = vmatpush.bf16.msrb.mxu2 %v6561_v27  ;;  %3104 = vmatpush.bf16.msra.mxu3 %v6605_v28  ;;  %v6750_v27 = vld [vmem:[#allocation2 + $0xa68] sm:$0xf0] }
 0x114   : > { %3115 = vmatpush.bf16.msrb.mxu0 %v5553_v41  ;;  %v6177_v41 = vor.u32 %v7709_v36, %v6174_v37  ;;  %3078 = vmatpush.bf16.msra.mxu1 %v5837_v40  ;;  %v6753_v30 = vor.u32 %v7853_v26, %v6750_v27  ;;  %v5982_v36 = vld [vmem:[#allocation2 + $0x468] sm:$0xf0]  ;;  %v7745_v37 = vld [vmem:[#allocation2 + $0x6dc] sm:$0xf] }
 0x115   : > { %v5985_v40 = vor.u32 %v7661_v35, %v5982_v36  ;;  %v5838_v27 = vld [vmem:[#allocation2 + $0x348] sm:$0xf0]  ;;  %v6516_v35 = vld [vmem:[#allocation2 + $0x860] sm:$0xf]  ;;  %v7800_v36 = vld [vmem:[#allocation2 + $0x88c] sm:$0xf0] }
 0x116   : > { %3105 = vmatmul.bf16.vlgmr.msra.gmra.mxu3 %v8450_v6 }
 0x117   : > { %3149 = vmatpush.bf16.msrb.mxu3 %v6945_v34  ;;  %3137 = vmatpush.bf16.msrb.mxu2 %v6513_v46  ;;  %v5557_v34 = vor.u32 %v7560_v22, %v5556_v21  ;;  %v6702_v46 = vld [vmem:[#allocation2 + $0xa08] sm:$0xf0]  ;;  %v6948_v21 = vld [vmem:[#allocation2 + $0xbc0] sm:$0xf]  ;;  %v7908_v22 = vld [vmem:[#allocation2 + $0xbec] sm:$0xf0] }
 0x118   : > { %3116 = vmatpush.bf16.msrb.mxu0 %v5505_v57  ;;  %3123 = vmatpush.bf16.msrb.mxu1 %v6177_v41  ;;  %v6465_v57 = vor.u32 %v7781_v52, %v6462_v56  ;;  %v6318_v41 = vld [vmem:[#allocation2 + $0x708] sm:$0xf0]  ;;  %v6705_v50 = vor.u32 %v7841_v45, %v6702_v46  ;;  %v5509_v52 = vor.u32 %v7548_v39, %v5508_v38  ;;  %v7536_v56 = vld [vmem:[#allocation2 + $0x4c] sm:$0xf0]  ;;  %v7578_v45 = vld [vmem:[#allocation2 + $0x1a4] sm:$0xf] }
 0x119   : > { %3079 = vmatmul.bf16.vlgmr.msra.gmra.mxu1 %v8455_v15  ;;  %v6321_v43 = vor.u32 %v7745_v37, %v6318_v41  ;;  %v6949_v26 = vor.u32 %v7908_v22, %v6948_v21  ;;  %v6900_v37 = vld [vmem:[#allocation2 + $0xb60] sm:$0xf]  ;;  %v7896_v38 = vld [vmem:[#allocation2 + $0xb8c] sm:$0xf0]  ;;  %v6517_v39 = vor.u32 %v7800_v36, %v6516_v35  ;;  %v5654_v46 = vld [vmem:[#allocation2 + $0x1d0] sm:$0xf0] }
 0x11a   : > { %v5988_v21 = vld [vmem:[#allocation2 + $0x440] sm:$0xf]  ;;  %v7668_v22 = vld [vmem:[#allocation2 + $0x46c] sm:$0xf0]  ;;  %v7530_v35 = vld [vmem:[#allocation2 + $0x24] sm:$0xf] }
 0x11b   : > { %3150 = vmatpush.bf16.msrb.mxu3 %v6897_v48  ;;  %3138 = vmatpush.bf16.msrb.mxu2 %v6465_v57  ;;  %v5460_v48 = vld [vmem:[#allocation2 + $0x20] sm:$0xf]  ;;  %v7614_v57 = vld [vmem:[#allocation2 + $0x2c4] sm:$0xf] }
 0x11c   : > { %3117 = vmatpush.bf16.msrb.mxu0 %v5457_v10  ;;  %3124 = vmatpush.bf16.msrb.mxu1 %v6129_v55  ;;  %v2911_v8 = vpop.f32.mrf.mxu0  ;;  %v7865_v10 = vld [vmem:[#allocation2 + $0xa9c] sm:$0xf] }
 0x11d   : > { %v2924_v13 = vpop.f32.mrf.mxu1  ;;  %v6801_v44 = vor.u32 %v7865_v10, %v6798_v11  ;;  %v7733_v55 = vld [vmem:[#allocation2 + $0x67c] sm:$0xf]  ;;  %v7602_v10 = vld [vmem:[#allocation2 + $0x264] sm:$0xf]  ;;  %v5750_v11 = vld [vmem:[#allocation2 + $0x290] sm:$0xf0] }
 0x11e   : > { %v5753_v25 = vor.u32 %v7602_v10, %v5750_v11  ;;  %v7554_v10 = vld [vmem:[#allocation2 + $0xe4] sm:$0xf]  ;;  %v5558_v11 = vld [vmem:[#allocation2 + $0x110] sm:$0xf0] }
 0x11f   : > { %3118 = vmatmul.bf16.vlgmr.msrb.gmra.mxu0 %v8453_v14  ;;  %3151 = vmatpush.bf16.msrb.mxu3 %v6849_v61  ;;  %v6273_v61 = vor.u32 %v7733_v55, %v6270_v59  ;;  %v5657_v55 = vor.u32 %v7578_v45, %v5654_v46  ;;  %v7566_v59 = vld [vmem:[#allocation2 + $0x144] sm:$0xf]  ;;  %v7740_v45 = vld [vmem:[#allocation2 + $0x6ac] sm:$0xf0]  ;;  %v7621_v46 = vld [vmem:[#allocation2 + $0x2f4] sm:$0xf0] }
 0x120   : > { %3162 = vmatpush.bf16.msra.mxu0 %v5797_v12  ;;  %v2912_v12 = vadd.f32 %v2911_v8, %v791_v60  ;;  %3125 = vmatpush.bf16.msrb.mxu1 %v6081_v5  ;;  %v5798_v60 = vld [vmem:[#allocation2 + $0x2f0] sm:$0xf0]  ;;  %v7721_v8 = vld [vmem:[#allocation2 + $0x61c] sm:$0xf] }
 0x121   : > { %3139 = vmatpush.bf16.msrb.mxu2 %v6417_v9  ;;  %v5801_v5 = vor.u32 %v7614_v57, %v5798_v60  ;;  %v6222_v9 = vld [vmem:[#allocation2 + $0x648] sm:$0xf0]  ;;  %v7692_v57 = vld [vmem:[#allocation2 + $0x52c] sm:$0xf0]  ;;  %v5606_v60 = vld [vmem:[#allocation2 + $0x170] sm:$0xf0] }
 0x122   : > { %v2925_v20 = vadd.f32 %v2924_v13, %v2912_v12  ;;  %v5889_v12 = vor.u32 %v7637_v4, %v5886_v7  ;;  %v6225_v13 = vor.u32 %v7721_v8, %v6222_v9  ;;  %v6036_v7 = vld [vmem:[#allocation2 + $0x4a0] sm:$0xf]  ;;  %v7680_v8 = vld [vmem:[#allocation2 + $0x4cc] sm:$0xf0] }
 0x123   : > { %3152 = vmatpush.bf16.msrb.mxu3 %v6801_v44  ;;  %v6564_v44 = vld [vmem:[#allocation2 + $0x8c0] sm:$0xf] }
 0x124   : > { %3163 = vmatpush.bf16.msra.mxu0 %v5749_v33  ;;  %v2937_v28 = vpop.f32.mrf.mxu2  ;;  %3126 = vmatpush.bf16.msrb.mxu1 %v6033_v23  ;;  %v2913_v42 = vpop.f32.mrf.mxu0  ;;  %v7625_v23 = vld [vmem:[#allocation2 + $0x31c] sm:$0xf]  ;;  %v6372_v9 = vld [vmem:[#allocation2 + $0x740] sm:$0xf] }
 0x125   : > { %v2938_v32 = vadd.f32 %v2937_v28, %v2925_v20  ;;  %v2950_v33 = vpop.f32.mrf.mxu3  ;;  %3140 = vmatpush.bf16.msrb.mxu2 %v6369_v29  ;;  %v6609_v20 = vor.u32 %v7817_v17, %v6606_v18  ;;  %v6180_v28 = vld [vmem:[#allocation2 + $0x5c0] sm:$0xf]  ;;  %v7716_v29 = vld [vmem:[#allocation2 + $0x5ec] sm:$0xf0] }
 0x126   : > { %v7704_v42 = vld [vmem:[#allocation2 + $0x58c] sm:$0xf0] }
 0x127   : > { %v2951_v31 = vadd.f32 %v2950_v33, %v2938_v32  ;;  %3153 = vmatpush.bf16.msrb.mxu3 %v6753_v30  ;;  %v7590_v30 = vld [vmem:[#allocation2 + $0x204] sm:$0xf]  ;;  %v5702_v32 = vld [vmem:[#allocation2 + $0x230] sm:$0xf0]  ;;  %v5841_v33 = vor.u32 %v7625_v23, %v5838_v27  ;;  %v7860_v17 = vld [vmem:[#allocation2 + $0xa6c] sm:$0xf0] }
 0x128   : > { %3164 = vmatpush.bf16.msra.mxu0 %v5701_v49  ;;  %v2926_v49 = vpop.f32.mrf.mxu1  ;;  %3127 = vmatpush.bf16.msrb.mxu1 %v5985_v40  ;;  %v6901_v40 = vor.u32 %v7896_v38, %v6900_v37  ;;  %v5705_v41 = vor.u32 %v7590_v30, %v5702_v32  ;;  %v6324_v23 = vld [vmem:[#allocation2 + $0x6e0] sm:$0xf]  ;;  %v5510_v27 = vld [vmem:[#allocation2 + $0xb0] sm:$0xf0] }
 0x129   : > { %v8502_v51 = vpack.c.bf16 %v2951_v31, %v8494_v47  ;;  %3141 = vmatpush.bf16.msrb.mxu2 %v6321_v43  ;;  %v5461_v47 = vor.u32 %v7536_v56, %v5460_v48  ;;  %v6132_v31 = vld [vmem:[#allocation2 + $0x560] sm:$0xf]  ;;  %v7788_v49 = vld [vmem:[#allocation2 + $0x82c] sm:$0xf0] }
 0x12a   : > { %v6468_v43 = vld [vmem:[#allocation2 + $0x800] sm:$0xf]  ;;  %v6133_v48 = vor.u32 %v7704_v42, %v6132_v31  ;;  %v5462_v31 = vld [vmem:[#allocation2 + $0x50] sm:$0xf0]  ;;  %v5804_v42 = vld [vmem:[#allocation2 + $0x2c8] sm:$0xf] }
 0x12b   : > { %3154 = vmatpush.bf16.msrb.mxu3 %v6705_v50  ;;  %v6469_v50 = vor.u32 %v7788_v49, %v6468_v43  ;;  %v6084_v56 = vld [vmem:[#allocation2 + $0x500] sm:$0xf] }
 0x12c   : > { %3165 = vmatpush.bf16.msra.mxu0 %v5653_v62  ;;  %v7829_v62 = vld [vmem:[#allocation2 + $0x97c] sm:$0xf]  ;;  %v2939_v0 = vpop.f32.mrf.mxu2  ;;  %3128 = vmatpush.bf16.msrb.mxu1 %v5937_v58  ;;  %v6420_v58 = vld [vmem:[#allocation2 + $0x7a0] sm:$0xf] }
 0x12d   : > { %v6657_v2 = vor.u32 %v7829_v62, %v6654_v63  ;;  %v2952_v3 = vpop.f32.mrf.mxu3  ;;  %3142 = vmatpush.bf16.msrb.mxu2 %v6273_v61  ;;  %v6085_v61 = vor.u32 %v7692_v57, %v6084_v56  ;;  %v7776_v62 = vld [vmem:[#allocation2 + $0x7cc] sm:$0xf0]  ;;  %v6804_v0 = vld [vmem:[#allocation2 + $0xaa0] sm:$0xf]  ;;  %v5805_v56 = vor.u32 %v7621_v46, %v5804_v42 }
 0x12e   : > { %v6421_v63 = vor.u32 %v7776_v62, %v6420_v58  ;;  %v5609_v3 = vor.u32 %v7566_v59, %v5606_v60  ;;  %v6708_v32 = vld [vmem:[#allocation2 + $0x9e0] sm:$0xf]  ;;  %v7644_v58 = vld [vmem:[#allocation2 + $0x3ac] sm:$0xf0]  ;;  %v7609_v62 = vld [vmem:[#allocation2 + $0x294] sm:$0xf0] }
 0x12f   : > { %3155 = vmatpush.bf16.msrb.mxu3 %v6657_v2  ;;  %v6660_v49 = vld [vmem:[#allocation2 + $0x980] sm:$0xf]  ;;  %v7728_v60 = vld [vmem:[#allocation2 + $0x64c] sm:$0xf0] }
 0x130   : > { %3166 = vmatpush.bf16.msra.mxu0 %v5605_v16  ;;  %v7812_v16 = vld [vmem:[#allocation2 + $0x8ec] sm:$0xf0]  ;;  %3129 = vmatpush.bf16.msrb.mxu1 %v5889_v12  ;;  %v6037_v12 = vor.u32 %v7680_v8, %v6036_v7  ;;  %v6228_v59 = vld [vmem:[#allocation2 + $0x620] sm:$0xf]  ;;  %v5708_v8 = vld [vmem:[#allocation2 + $0x208] sm:$0xf] }
 0x131   : > { %v6565_v19 = vor.u32 %v7812_v16, %v6564_v44  ;;  %3143 = vmatpush.bf16.msrb.mxu2 %v6225_v13  ;;  %v7764_v13 = vld [vmem:[#allocation2 + $0x76c] sm:$0xf0]  ;;  %v6756_v16 = vld [vmem:[#allocation2 + $0xa40] sm:$0xf] }
 0x132   : > { %v6373_v44 = vor.u32 %v7764_v13, %v6372_v9  ;;  %v6757_v18 = vor.u32 %v7860_v17, %v6756_v16  ;;  %v7824_v7 = vld [vmem:[#allocation2 + $0x94c] sm:$0xf0]  ;;  %v5844_v13 = vld [vmem:[#allocation2 + $0x320] sm:$0xf] }
 0x133   : > { %3156 = vmatpush.bf16.msrb.mxu3 %v6609_v20  ;;  %v7632_v17 = vld [vmem:[#allocation2 + $0x34c] sm:$0xf0] }
 0x134   : > { %3167 = vmatpush.bf16.msra.mxu0 %v5557_v34  ;;  %v6181_v34 = vor.u32 %v7716_v29, %v6180_v28  ;;  %3130 = vmatpush.bf16.msrb.mxu1 %v5841_v33  ;;  %v5989_v28 = vor.u32 %v7668_v22, %v5988_v21  ;;  %v7752_v29 = vld [vmem:[#allocation2 + $0x70c] sm:$0xf0]  ;;  %v7597_v21 = vld [vmem:[#allocation2 + $0x234] sm:$0xf0]  ;;  %v5845_v22 = vor.u32 %v7632_v17, %v5844_v13  ;;  %v6758_v17 = vld [vmem:[#allocation2 + $0xa70] sm:$0xf0] }
 0x135   : > { %3188 = vmatpush.bf16.msra.mxu2 %v6565_v19  ;;  %v5561_v19 = vor.u32 %v7554_v10, %v5558_v11  ;;  %v6325_v30 = vor.u32 %v7752_v29, %v6324_v23  ;;  %v7848_v33 = vld [vmem:[#allocation2 + $0xa0c] sm:$0xf0]  ;;  %v7902_v11 = vld [vmem:[#allocation2 + $0xbc4] sm:$0xf] }
 0x136   : > { %3144 = vmatmul.bf16.vlgmr.msrb.gmra.mxu2 %v8447_v1  ;;  %3157 = vmatmul.bf16.vlgmr.msrb.gmra.mxu3 %v8450_v6  ;;  %v6709_v36 = vor.u32 %v7848_v33, %v6708_v32  ;;  %v7890_v29 = vld [vmem:[#allocation2 + $0xb64] sm:$0xf] }
 0x137   : > { %3201 = vmatpush.bf16.msra.mxu3 %v6949_v26  ;;  %3131 = vmatmul.bf16.vlgmr.msrb.gmra.mxu1 %v8455_v15  ;;  %v7542_v26 = vld [vmem:[#allocation2 + $0x84] sm:$0xf] }
 0x138   : > { %3168 = vmatpush.bf16.msra.mxu0 %v5509_v52  ;;  %3175 = vmatpush.bf16.msra.mxu1 %v6181_v34  ;;  %v6852_v52 = vld [vmem:[#allocation2 + $0xb00] sm:$0xf]  ;;  %v5513_v37 = vor.u32 %v7542_v26, %v5510_v27  ;;  %v7794_v26 = vld [vmem:[#allocation2 + $0x864] sm:$0xf]  ;;  %v6518_v27 = vld [vmem:[#allocation2 + $0x890] sm:$0xf0] }
 0x139   : > { %3189 = vmatpush.bf16.msra.mxu2 %v6517_v39  ;;  %v6853_v54 = vor.u32 %v7884_v53, %v6852_v52  ;;  %v5940_v39 = vld [vmem:[#allocation2 + $0x3e0] sm:$0xf]  ;;  %v5465_v53 = vor.u32 %v7530_v35, %v5462_v31  ;;  %v5709_v35 = vor.u32 %v7597_v21, %v5708_v8  ;;  %v6470_v31 = vld [vmem:[#allocation2 + $0x830] sm:$0xf0]  ;;  %v7758_v8 = vld [vmem:[#allocation2 + $0x744] sm:$0xf] }
 0x13a   : > { %v8520_v32 = vld [vmem:[%s8832_s3] sm:$0xff] }
 0x13b   : > { %3202 = vmatpush.bf16.msra.mxu3 %v6901_v40  ;;  %v7656_v40 = vld [vmem:[#allocation2 + $0x40c] sm:$0xf0]  ;;  %v792_v33 = vperm.slane %v8520_v32, 4  ;;  %v793_v46 = vperm.slane %v8520_v32, 5  ;;  %v7662_v21 = vld [vmem:[#allocation2 + $0x444] sm:$0xf] }
 0x13c   : > { %3169 = vmatpush.bf16.msra.mxu0 %v5461_v47  ;;  %3176 = vmatpush.bf16.msra.mxu1 %v6133_v48  ;;  %v8508_v2 = vpop.f32.mrf.mxu0  ;;  %v7872_v47 = vld [vmem:[#allocation2 + $0xacc] sm:$0xf0]  ;;  %v5941_v43 = vor.u32 %v7656_v40, %v5940_v39  ;;  %v5660_v39 = vld [vmem:[#allocation2 + $0x1a8] sm:$0xf]  ;;  %v7585_v40 = vld [vmem:[#allocation2 + $0x1d4] sm:$0xf0] }
 0x13d   : > { %3190 = vmatpush.bf16.msra.mxu2 %v6469_v50  ;;  %v8510_v4 = vpop.f32.mrf.mxu1  ;;  %v7836_v50 = vld [vmem:[#allocation2 + $0x9ac] sm:$0xf0] }
 0x13e   : > { %v6661_v52 = vor.u32 %v7836_v50, %v6660_v49  ;;  %v2964_v49 = vadd.f32 %v8508_v2, %v792_v33  ;;  %v5661_v50 = vor.u32 %v7585_v40, %v5660_v39  ;;  %v5468_v39 = vld [vmem:[#allocation2 + $0x28] sm:$0xf] }
 0x13f   : > { %3170 = vmatmul.bf16.vlgmr.msra.gmra.mxu0 %v8453_v14  ;;  %3203 = vmatpush.bf16.msra.mxu3 %v6853_v54 }
 0x140   : > { %3214 = vmatpush.bf16.msrb.mxu0 %v5801_v5  ;;  %3177 = vmatpush.bf16.msra.mxu1 %v6085_v61  ;;  %v6805_v5 = vor.u32 %v7872_v47, %v6804_v0  ;;  %v5756_v61 = vld [vmem:[#allocation2 + $0x268] sm:$0xf]  ;;  %v6229_v0 = vor.u32 %v7728_v60, %v6228_v59  ;;  %v7806_v47 = vld [vmem:[#allocation2 + $0x8c4] sm:$0xf]  ;;  %v2977_v2 = vadd.f32 %v8510_v4, %v2964_v49  ;;  %v7615_v49 = vld [vmem:[#allocation2 + $0x2cc] sm:$0xf] }
 0x141   : > { %3191 = vmatpush.bf16.msra.mxu2 %v6421_v63 }
 0x143   : > { %3204 = vmatpush.bf16.msra.mxu3 %v6805_v5  ;;  %v6612_v5 = vld [vmem:[#allocation2 + $0x920] sm:$0xf] }
 0x144   : > { %3215 = vmatpush.bf16.msrb.mxu0 %v5753_v25  ;;  %v8512_v20 = vpop.f32.mrf.mxu2  ;;  %3178 = vmatpush.bf16.msra.mxu1 %v6037_v12  ;;  %v2965_v34 = vpop.f32.mrf.mxu0  ;;  %v6613_v10 = vor.u32 %v7824_v7, %v6612_v5  ;;  %v6950_v12 = vld [vmem:[#allocation2 + $0xbf0] sm:$0xf0]  ;;  %v7674_v5 = vld [vmem:[#allocation2 + $0x4a4] sm:$0xf] }
 0x145   : > { %v8514_v25 = vpop.f32.mrf.mxu3  ;;  %3192 = vmatpush.bf16.msra.mxu2 %v6373_v44  ;;  %v2978_v38 = vpop.f32.mrf.mxu1  ;;  %v5757_v44 = vor.u32 %v7609_v62, %v5756_v61  ;;  %v6953_v16 = vor.u32 %v7902_v11, %v6950_v12  ;;  %v7866_v61 = vld [vmem:[#allocation2 + $0xaa4] sm:$0xf]  ;;  %v6806_v62 = vld [vmem:[#allocation2 + $0xad0] sm:$0xf0] }
 0x146   : > { %v7782_v38 = vld [vmem:[#allocation2 + $0x804] sm:$0xf]  ;;  %v6038_v7 = vld [vmem:[#allocation2 + $0x4d0] sm:$0xf0] }
 0x147   : > { %3205 = vmatpush.bf16.msra.mxu3 %v6757_v18  ;;  %v7710_v18 = vld [vmem:[#allocation2 + $0x5c4] sm:$0xf]  ;;  %v6473_v42 = vor.u32 %v7782_v38, %v6470_v31  ;;  %v6041_v11 = vor.u32 %v7674_v5, %v6038_v7  ;;  %v6374_v12 = vld [vmem:[#allocation2 + $0x770] sm:$0xf0]  ;;  %v6572_v7 = vld [vmem:[#allocation2 + $0x8c8] sm:$0xf] }
 0x148   : > { %3216 = vmatpush.bf16.msrb.mxu0 %v5705_v41  ;;  %3179 = vmatpush.bf16.msra.mxu1 %v5989_v28  ;;  %v6276_v41 = vld [vmem:[#allocation2 + $0x680] sm:$0xf]  ;;  %v6521_v28 = vor.u32 %v7794_v26, %v6518_v27  ;;  %v5516_v27 = vld [vmem:[#allocation2 + $0x88] sm:$0xf]  ;;  %v6710_v38 = vld [vmem:[#allocation2 + $0xa10] sm:$0xf0] }
 0x149   : > { %3193 = vmatpush.bf16.msra.mxu2 %v6325_v30  ;;  %v6277_v48 = vor.u32 %v7740_v45, %v6276_v41  ;;  %v6902_v30 = vld [vmem:[#allocation2 + $0xb90] sm:$0xf0] }
 0x14a   : > { %v6905_v34 = vor.u32 %v7890_v29, %v6902_v30  ;;  %v6854_v45 = vld [vmem:[#allocation2 + $0xb30] sm:$0xf0] }
 0x14b   : > { %3206 = vmatpush.bf16.msra.mxu3 %v6709_v36  ;;  %v7698_v36 = vld [vmem:[#allocation2 + $0x564] sm:$0xf]  ;;  %v6326_v30 = vld [vmem:[#allocation2 + $0x710] sm:$0xf0] }
 0x14c   : > { %3217 = vmatpush.bf16.msrb.mxu0 %v5657_v55  ;;  %v2991_v54 = vpop.f32.mrf.mxu2  ;;  %3180 = vmatpush.bf16.msra.mxu1 %v5941_v43  ;;  %v5892_v55 = vld [vmem:[#allocation2 + $0x380] sm:$0xf]  ;;  %v7878_v43 = vld [vmem:[#allocation2 + $0xb04] sm:$0xf]  ;;  %v6230_v5 = vld [vmem:[#allocation2 + $0x650] sm:$0xf0] }
 0x14d   : > { %v3004_v57 = vpop.f32.mrf.mxu3  ;;  %3194 = vmatpush.bf16.msra.mxu2 %v6277_v48  ;;  %v5893_v63 = vor.u32 %v7644_v58, %v5892_v55  ;;  %v6857_v48 = vor.u32 %v7878_v43, %v6854_v45  ;;  %v7770_v54 = vld [vmem:[#allocation2 + $0x7a4] sm:$0xf]  ;;  %v5612_v55 = vld [vmem:[#allocation2 + $0x148] sm:$0xf]  ;;  %v6422_v58 = vld [vmem:[#allocation2 + $0x7d0] sm:$0xf0] }
 0x14e   : > { %v6425_v60 = vor.u32 %v7770_v54, %v6422_v58  ;;  %v7650_v43 = vld [vmem:[#allocation2 + $0x3e4] sm:$0xf]  ;;  %v5942_v45 = vld [vmem:[#allocation2 + $0x410] sm:$0xf0]  ;;  %v5806_v54 = vld [vmem:[#allocation2 + $0x2f8] sm:$0xf0] }
 0x14f   : > { %3207 = vmatpush.bf16.msra.mxu3 %v6661_v52  ;;  %v7686_v52 = vld [vmem:[#allocation2 + $0x504] sm:$0xf] }
 0x150   : > { %3218 = vmatpush.bf16.msrb.mxu0 %v5609_v3  ;;  %v6566_v3 = vld [vmem:[#allocation2 + $0x8f0] sm:$0xf0]  ;;  %3181 = vmatpush.bf16.msra.mxu1 %v5893_v63 }
 0x151   : > { %v6569_v9 = vor.u32 %v7806_v47, %v6566_v3  ;;  %3195 = vmatpush.bf16.msra.mxu2 %v6229_v0  ;;  %v6809_v47 = vor.u32 %v7866_v61, %v6806_v62  ;;  %v5758_v61 = vld [vmem:[#allocation2 + $0x298] sm:$0xf0]  ;;  %v7638_v62 = vld [vmem:[#allocation2 + $0x384] sm:$0xf] }
 0x153   : > { %3208 = vmatpush.bf16.msra.mxu3 %v6613_v10  ;;  %v7561_v10 = vld [vmem:[#allocation2 + $0x114] sm:$0xf0] }
 0x154   : > { %3219 = vmatpush.bf16.msrb.mxu0 %v5561_v19  ;;  %v6182_v19 = vld [vmem:[#allocation2 + $0x5f0] sm:$0xf0]  ;;  %3182 = vmatpush.bf16.msra.mxu1 %v5845_v22 }
 0x155   : > { %3240 = vmatpush.bf16.msrb.mxu2 %v6569_v9  ;;  %v6185_v23 = vor.u32 %v7710_v18, %v6182_v19  ;;  %v5564_v9 = vld [vmem:[#allocation2 + $0xe8] sm:$0xf]  ;;  %v2990_v19 = vadd.f32 %v8512_v20, %v2977_v2  ;;  %v5990_v22 = vld [vmem:[#allocation2 + $0x470] sm:$0xf0] }
 0x156   : > { %3196 = vmatmul.bf16.vlgmr.msra.gmra.mxu2 %v8447_v1  ;;  %3209 = vmatmul.bf16.vlgmr.msra.gmra.mxu3 %v8450_v6  ;;  %v5565_v4 = vor.u32 %v7561_v10, %v5564_v9  ;;  %v5993_v29 = vor.u32 %v7662_v21, %v5990_v22  ;;  %v7626_v21 = vld [vmem:[#allocation2 + $0x324] sm:$0xf]  ;;  %v5846_v22 = vld [vmem:[#allocation2 + $0x350] sm:$0xf0] }
 0x157   : > { %3253 = vmatpush.bf16.msrb.mxu3 %v6953_v16  ;;  %3183 = vmatmul.bf16.vlgmr.msra.gmra.mxu1 %v8455_v15  ;;  %v7854_v16 = vld [vmem:[#allocation2 + $0xa44] sm:$0xf] }
 0x158   : > { %3220 = vmatpush.bf16.msrb.mxu0 %v5513_v37  ;;  %3227 = vmatpush.bf16.msrb.mxu1 %v6185_v23  ;;  %v6134_v37 = vld [vmem:[#allocation2 + $0x590] sm:$0xf0]  ;;  %v6761_v18 = vor.u32 %v7854_v16, %v6758_v17  ;;  %v7746_v23 = vld [vmem:[#allocation2 + $0x6e4] sm:$0xf]  ;;  %v6956_v17 = vld [vmem:[#allocation2 + $0xbc8] sm:$0xf] }
 0x159   : > { %3241 = vmatpush.bf16.msrb.mxu2 %v6521_v28  ;;  %v6137_v41 = vor.u32 %v7698_v36, %v6134_v37  ;;  %v7549_v28 = vld [vmem:[#allocation2 + $0xb4] sm:$0xf0]  ;;  %v6329_v36 = vor.u32 %v7746_v23, %v6326_v30  ;;  %v7842_v37 = vld [vmem:[#allocation2 + $0x9e4] sm:$0xf]  ;;  %v6188_v23 = vld [vmem:[#allocation2 + $0x5c8] sm:$0xf] }
 0x15a   : > { %v6713_v40 = vor.u32 %v7842_v37, %v6710_v38  ;;  %v7801_v30 = vld [vmem:[#allocation2 + $0x894] sm:$0xf0] }
 0x15b   : > { %3254 = vmatpush.bf16.msrb.mxu3 %v6905_v34  ;;  %v7897_v37 = vld [vmem:[#allocation2 + $0xb94] sm:$0xf0] }
 0x15c   : > { %3221 = vmatpush.bf16.msrb.mxu0 %v5465_v53  ;;  %3228 = vmatpush.bf16.msrb.mxu1 %v6137_v41  ;;  %v6086_v53 = vld [vmem:[#allocation2 + $0x530] sm:$0xf0]  ;;  %v3015_v59 = vpop.f32.mrf.mxu0  ;;  %v3003_v41 = vadd.f32 %v8514_v25, %v2990_v19  ;;  %v7591_v19 = vld [vmem:[#allocation2 + $0x20c] sm:$0xf] }
 0x15d   : > { %3242 = vmatpush.bf16.msrb.mxu2 %v6473_v42  ;;  %v6089_v57 = vor.u32 %v7686_v52, %v6086_v53  ;;  %v3016_v63 = vadd.f32 %v3015_v59, %v793_v46  ;;  %v3028_v0 = vpop.f32.mrf.mxu1  ;;  %v5517_v42 = vor.u32 %v7549_v28, %v5516_v27  ;;  %v7734_v46 = vld [vmem:[#allocation2 + $0x684] sm:$0xf]  ;;  %v6278_v52 = vld [vmem:[#allocation2 + $0x6b0] sm:$0xf0]  ;;  %v5849_v27 = vor.u32 %v7626_v21, %v5846_v22  ;;  %v7717_v28 = vld [vmem:[#allocation2 + $0x5f4] sm:$0xf0] }
 0x15e   : > { %v7753_v22 = vld [vmem:[#allocation2 + $0x714] sm:$0xf0] }
 0x15f   : > { %3222 = vmatmul.bf16.vlgmr.msrb.gmra.mxu0 %v8453_v14  ;;  %3255 = vmatpush.bf16.msrb.mxu3 %v6857_v48  ;;  %v3029_v13 = vadd.f32 %v3028_v0, %v3016_v63  ;;  %v7537_v48 = vld [vmem:[#allocation2 + $0x54] sm:$0xf0]  ;;  %v5894_v63 = vld [vmem:[#allocation2 + $0x3b0] sm:$0xf0] }
 0x160   : > { %3266 = vmatpush.bf16.msra.mxu0 %v5805_v56  ;;  %v7573_v56 = vld [vmem:[#allocation2 + $0x174] sm:$0xf0]  ;;  %3229 = vmatpush.bf16.msrb.mxu1 %v6089_v57  ;;  %v6662_v57 = vld [vmem:[#allocation2 + $0x9b0] sm:$0xf0]  ;;  %v5469_v58 = vor.u32 %v7537_v48, %v5468_v39  ;;  %v5897_v2 = vor.u32 %v7638_v62, %v5894_v63  ;;  %v7579_v48 = vld [vmem:[#allocation2 + $0x1ac] sm:$0xf] }
 0x161   : > { %v5613_v3 = vor.u32 %v7573_v56, %v5612_v55  ;;  %3243 = vmatpush.bf16.msrb.mxu2 %v6425_v60  ;;  %v6281_v55 = vor.u32 %v7734_v46, %v6278_v52  ;;  %v7830_v56 = vld [vmem:[#allocation2 + $0x984] sm:$0xf]  ;;  %v7603_v60 = vld [vmem:[#allocation2 + $0x26c] sm:$0xf]  ;;  %v7705_v39 = vld [vmem:[#allocation2 + $0x594] sm:$0xf0] }
 0x162   : > { %v6665_v25 = vor.u32 %v7830_v56, %v6662_v57  ;;  %v6428_v57 = vld [vmem:[#allocation2 + $0x7a8] sm:$0xf] }
 0x163   : > { %3256 = vmatpush.bf16.msrb.mxu3 %v6809_v47  ;;  %v5809_v47 = vor.u32 %v7615_v49, %v5806_v54  ;;  %v5662_v49 = vld [vmem:[#allocation2 + $0x1d8] sm:$0xf0]  ;;  %v6092_v54 = vld [vmem:[#allocation2 + $0x508] sm:$0xf] }
 0x164   : > { %3267 = vmatpush.bf16.msra.mxu0 %v5757_v44  ;;  %v6377_v44 = vor.u32 %v7758_v8, %v6374_v12  ;;  %3230 = vmatpush.bf16.msrb.mxu1 %v6041_v11  ;;  %v3041_v26 = vpop.f32.mrf.mxu2  ;;  %v7813_v11 = vld [vmem:[#allocation2 + $0x8f4] sm:$0xf0]  ;;  %v7818_v12 = vld [vmem:[#allocation2 + $0x924] sm:$0xf]  ;;  %v6812_v63 = vld [vmem:[#allocation2 + $0xaa8] sm:$0xf] }
 0x165   : > { %v3042_v33 = vadd.f32 %v3041_v26, %v3029_v13  ;;  %v3054_v34 = vpop.f32.mrf.mxu3  ;;  %v3030_v20 = vpop.f32.mrf.mxu1  ;;  %v6614_v13 = vld [vmem:[#allocation2 + $0x950] sm:$0xf0]  ;;  %v5761_v26 = vor.u32 %v7603_v60, %v5758_v61  ;;  %v5614_v60 = vld [vmem:[#allocation2 + $0x178] sm:$0xf0] }
 0x166   : > { %3244 = vmatpush.bf16.msrb.mxu2 %v6377_v44  ;;  %v6573_v44 = vor.u32 %v7813_v11, %v6572_v7  ;;  %v6617_v16 = vor.u32 %v7818_v12, %v6614_v13  ;;  %v6140_v20 = vld [vmem:[#allocation2 + $0x568] sm:$0xf]  ;;  %v7765_v11 = vld [vmem:[#allocation2 + $0x774] sm:$0xf0] }
 0x167   : > { %3257 = vmatpush.bf16.msrb.mxu3 %v6761_v18  ;;  %v3055_v31 = vadd.f32 %v3054_v34, %v3042_v33  ;;  %v7909_v18 = vld [vmem:[#allocation2 + $0xbf4] sm:$0xf0]  ;;  %v3466_v33 = vunpack.c.l.b16 %v8490_v24  ;;  %v5710_v34 = vld [vmem:[#allocation2 + $0x238] sm:$0xf0]  ;;  %v6380_v7 = vld [vmem:[#allocation2 + $0x748] sm:$0xf] }
 0x168   : > { %3268 = vmatpush.bf16.msra.mxu0 %v5709_v35  ;;  %v3017_v35 = vpop.f32.mrf.mxu0  ;;  %3231 = vmatpush.bf16.msrb.mxu1 %v5993_v29  ;;  %v6524_v29 = vld [vmem:[#allocation2 + $0x868] sm:$0xf]  ;;  %v6381_v12 = vor.u32 %v7765_v11, %v6380_v7  ;;  %v6526_v7 = vld [vmem:[#allocation2 + $0x898] sm:$0xf0]  ;;  %v7891_v11 = vld [vmem:[#allocation2 + $0xb6c] sm:$0xf] }
 0x169   : > { %v8531_v53 = vpack.c.bf16 %v3055_v31, %v3003_v41  ;;  %v6189_v35 = vor.u32 %v7717_v28, %v6188_v23  ;;  %v6525_v38 = vor.u32 %v7801_v30, %v6524_v29  ;;  %v6476_v41 = vld [vmem:[#allocation2 + $0x808] sm:$0xf]  ;;  %v7789_v31 = vld [vmem:[#allocation2 + $0x834] sm:$0xf0]  ;;  %v3467_v46 = vpack.c.b16 %v3466_v33, %v3466_v33  ;;  %v5518_v28 = vld [vmem:[#allocation2 + $0xb8] sm:$0xf0] }
 0x16a   : > { %3245 = vmatpush.bf16.msrb.mxu2 %v6329_v36  ;;  %v6908_v36 = vld [vmem:[#allocation2 + $0xb68] sm:$0xf]  ;;  %v6477_v52 = vor.u32 %v7789_v31, %v6476_v41  ;;  %v5470_v41 = vld [vmem:[#allocation2 + $0x58] sm:$0xf0] }
 0x16b   : > { %3258 = vmatpush.bf16.msrb.mxu3 %v6713_v40  ;;  %v3471_v59 = vunpack.c.l.b16 %v8531_v53  ;;  %v6909_v40 = vor.u32 %v7897_v37, %v6908_v36  ;;  %v6764_v13 = vld [vmem:[#allocation2 + $0xa48] sm:$0xf]  ;;  %v7741_v37 = vld [vmem:[#allocation2 + $0x6b4] sm:$0xf0] }
 0x16c   : > { %3269 = vmatpush.bf16.msra.mxu0 %v5661_v50  ;;  %v5945_v50 = vor.u32 %v7650_v43, %v5942_v45  ;;  %v3043_v0 = vpop.f32.mrf.mxu2  ;;  %v6860_v43 = vld [vmem:[#allocation2 + $0xb08] sm:$0xf]  ;;  %v7885_v45 = vld [vmem:[#allocation2 + $0xb34] sm:$0xf0] }
 0x16d   : > { %v3056_v8 = vpop.f32.mrf.mxu3  ;;  %v3472_v9 = vpack.c.b16 %v3471_v59, %v3471_v59  ;;  %v6861_v56 = vor.u32 %v7885_v45, %v6860_v43  ;;  %v7567_v59 = vld [vmem:[#allocation2 + $0x14c] sm:$0xf]  ;;  %v7873_v0 = vld [vmem:[#allocation2 + $0xad4] sm:$0xf0]  ;;  %v6716_v23 = vld [vmem:[#allocation2 + $0x9e8] sm:$0xf] }
 0x16e   : > { %3232 = vmatpush.bf16.msrb.mxu1 %v5945_v50  ;;  %3246 = vmatpush.bf16.msrb.mxu2 %v6281_v55  ;;  %v6141_v50 = vor.u32 %v7705_v39, %v6140_v20  ;;  %v7693_v55 = vld [vmem:[#allocation2 + $0x534] sm:$0xf0]  ;;  %v7555_v8 = vld [vmem:[#allocation2 + $0xec] sm:$0xf]  ;;  %v5948_v33 = vld [vmem:[#allocation2 + $0x3e8] sm:$0xf] }
 0x16f   : > { %3259 = vmatpush.bf16.msrb.mxu3 %v6665_v25  ;;  %3473 = vrot.lane.b32.xlu0 %v3472_v9, %s8323_s26  ;;  %v7777_v25 = vld [vmem:[#allocation2 + $0x7d4] sm:$0xf0]  ;;  %v6093_v61 = vor.u32 %v7693_v55, %v6092_v54  ;;  %v5566_v9 = vld [vmem:[#allocation2 + $0x118] sm:$0xf0]  ;;  %v6284_v36 = vld [vmem:[#allocation2 + $0x688] sm:$0xf] }
 0x170   : > { %3270 = vmatpush.bf16.msra.mxu0 %v5613_v3  ;;  %v7722_v3 = vld [vmem:[#allocation2 + $0x624] sm:$0xf]  ;;  %v6429_v62 = vor.u32 %v7777_v25, %v6428_v57  ;;  %v5569_v21 = vor.u32 %v7555_v8, %v5566_v9  ;;  %v6668_v20 = vld [vmem:[#allocation2 + $0x988] sm:$0xf]  ;;  %v7837_v39 = vld [vmem:[#allocation2 + $0x9b4] sm:$0xf0] }
 0x171   : > { %v6233_v10 = vor.u32 %v7722_v3, %v6230_v5  ;;  %v6044_v3 = vld [vmem:[#allocation2 + $0x4a8] sm:$0xf]  ;;  %v7681_v5 = vld [vmem:[#allocation2 + $0x4d4] sm:$0xf0]  ;;  %v7807_v54 = vld [vmem:[#allocation2 + $0x8cc] sm:$0xf] }
 0x172   : > { %3233 = vmatpush.bf16.msrb.mxu1 %v5897_v2  ;;  %v5617_v2 = vor.u32 %v7567_v59, %v5614_v60  ;;  %v5900_v43 = vld [vmem:[#allocation2 + $0x388] sm:$0xf]  ;;  %v7645_v45 = vld [vmem:[#allocation2 + $0x3b4] sm:$0xf0]  ;;  %v6574_v55 = vld [vmem:[#allocation2 + $0x8f8] sm:$0xf0] }
 0x173   : > { %3247 = vmatpush.bf16.msrb.mxu2 %v6233_v10  ;;  %3260 = vmatpush.bf16.msrb.mxu3 %v6617_v16  ;;  %v6045_v10 = vor.u32 %v7681_v5, %v6044_v3  ;;  %v6620_v57 = vld [vmem:[#allocation2 + $0x928] sm:$0xf]  ;;  %v7825_v25 = vld [vmem:[#allocation2 + $0x954] sm:$0xf0]  ;;  %v6958_v60 = vld [vmem:[#allocation2 + $0xbf8] sm:$0xf0] }
 0x174   : > { %3271 = vmatpush.bf16.msra.mxu0 %v5565_v4  ;;  %v6957_v4 = vor.u32 %v7909_v18, %v6956_v17  ;;  %v5996_v17 = vld [vmem:[#allocation2 + $0x448] sm:$0xf]  ;;  %v7669_v18 = vld [vmem:[#allocation2 + $0x474] sm:$0xf0]  ;;  %v6621_v3 = vor.u32 %v7825_v25, %v6620_v57  ;;  %v7795_v5 = vld [vmem:[#allocation2 + $0x86c] sm:$0xf] }
 0x175   : > { %v5997_v29 = vor.u32 %v7669_v18, %v5996_v17  ;;  %v7783_v17 = vld [vmem:[#allocation2 + $0x80c] sm:$0xf]  ;;  %v6478_v18 = vld [vmem:[#allocation2 + $0x838] sm:$0xf0] }
 0x176   : > { %3234 = vmatpush.bf16.msrb.mxu1 %v5849_v27  ;;  %3248 = vmatmul.bf16.vlgmr.msrb.gmra.mxu2 %v8447_v1  ;;  %v7543_v27 = vld [vmem:[#allocation2 + $0x8c] sm:$0xf] }
 0x177   : > { %3292 = vmatpush.bf16.msra.mxu2 %v6573_v44  ;;  %3305 = vmatpush.bf16.msra.mxu3 %v6957_v4  ;;  %v7861_v44 = vld [vmem:[#allocation2 + $0xa74] sm:$0xf0]  ;;  %v7843_v25 = vld [vmem:[#allocation2 + $0x9ec] sm:$0xf] }
 0x178   : > { %3272 = vmatpush.bf16.msra.mxu0 %v5517_v42  ;;  %v5713_v42 = vor.u32 %v7591_v19, %v5710_v34  ;;  %3261 = vmatmul.bf16.vlgmr.msrb.gmra.mxu3 %v8450_v6  ;;  %v6765_v16 = vor.u32 %v7861_v44, %v6764_v13  ;;  %v6332_v19 = vld [vmem:[#allocation2 + $0x6e8] sm:$0xf]  ;;  %v7657_v34 = vld [vmem:[#allocation2 + $0x414] sm:$0xf0]  ;;  %v6529_v13 = vor.u32 %v7795_v5, %v6526_v7  ;;  %v7699_v44 = vld [vmem:[#allocation2 + $0x56c] sm:$0xf] }
 0x179   : > { %3468 = vrot.lane.b32.xlu0 %v3467_v46, %s8323_s26  ;;  %3235 = vmatmul.bf16.vlgmr.msrb.gmra.mxu1 %v8455_v15  ;;  %v6333_v30 = vor.u32 %v7753_v22, %v6332_v19  ;;  %v5949_v31 = vor.u32 %v7657_v34, %v5948_v33  ;;  %v6669_v46 = vor.u32 %v7837_v39, %v6668_v20  ;;  %v7879_v22 = vld [vmem:[#allocation2 + $0xb0c] sm:$0xf]  ;;  %v794_v33 = vperm.slane %v8520_v32, 6  ;;  %v6046_v20 = vld [vmem:[#allocation2 + $0x4d8] sm:$0xf0] }
 0x17a   : > { %3279 = vmatpush.bf16.msra.mxu1 %v6189_v35  ;;  %v7759_v39 = vld [vmem:[#allocation2 + $0x74c] sm:$0xf] }
 0x17b   : > { %3293 = vmatpush.bf16.msra.mxu2 %v6525_v38  ;;  %3306 = vmatpush.bf16.msra.mxu3 %v6909_v40  ;;  %v5521_v38 = vor.u32 %v7543_v27, %v5518_v28  ;;  %v7531_v40 = vld [vmem:[#allocation2 + $0x2c] sm:$0xf] }
 0x17c   : > { %3273 = vmatpush.bf16.msra.mxu0 %v5469_v58  ;;  %v5665_v58 = vor.u32 %v7579_v48, %v5662_v49  ;;  %v8541_v4 = vpop.f32.mrf.mxu0  ;;  %v6236_v48 = vld [vmem:[#allocation2 + $0x628] sm:$0xf]  ;;  %v7729_v49 = vld [vmem:[#allocation2 + $0x654] sm:$0xf0]  ;;  %v7687_v27 = vld [vmem:[#allocation2 + $0x50c] sm:$0xf] }
 0x17d   : > { %v6237_v59 = vor.u32 %v7729_v49, %v6236_v48  ;;  %v7771_v28 = vld [vmem:[#allocation2 + $0x7ac] sm:$0xf] }
 0x17e   : > { %3280 = vmatpush.bf16.msra.mxu1 %v6141_v50  ;;  %v7663_v49 = vld [vmem:[#allocation2 + $0x44c] sm:$0xf] }
 0x17f   : > { %3274 = vmatmul.bf16.vlgmr.msra.gmra.mxu0 %v8453_v14  ;;  %3294 = vmatpush.bf16.msra.mxu2 %v6477_v52  ;;  %v5473_v52 = vor.u32 %v7531_v40, %v5470_v41  ;;  %v6382_v40 = vld [vmem:[#allocation2 + $0x778] sm:$0xf0] }
 0x180   : > { %3318 = vmatpush.bf16.msrb.mxu0 %v5809_v47  ;;  %3307 = vmatpush.bf16.msra.mxu3 %v6861_v56  ;;  %v6813_v47 = vor.u32 %v7873_v0, %v6812_v63  ;;  %v5901_v56 = vor.u32 %v7645_v45, %v5900_v43  ;;  %v6577_v63 = vor.u32 %v7807_v54, %v6574_v55  ;;  %v7711_v0 = vld [vmem:[#allocation2 + $0x5cc] sm:$0xf]  ;;  %v6334_v54 = vld [vmem:[#allocation2 + $0x718] sm:$0xf0] }
 0x181   : > { %v7855_v45 = vld [vmem:[#allocation2 + $0xa4c] sm:$0xf]  ;;  %v6385_v48 = vor.u32 %v7759_v39, %v6382_v40 }
 0x182   : > { %3281 = vmatpush.bf16.msra.mxu1 %v6093_v61  ;;  %v5852_v61 = vld [vmem:[#allocation2 + $0x328] sm:$0xf] }
 0x183   : > { %3295 = vmatpush.bf16.msra.mxu2 %v6429_v62  ;;  %v7633_v62 = vld [vmem:[#allocation2 + $0x354] sm:$0xf0] }
 0x184   : > { %3319 = vmatpush.bf16.msrb.mxu0 %v5761_v26  ;;  %3308 = vmatpush.bf16.msra.mxu3 %v6813_v47  ;;  %v7849_v26 = vld [vmem:[#allocation2 + $0xa14] sm:$0xf0]  ;;  %v3069_v50 = vpop.f32.mrf.mxu0  ;;  %v6190_v47 = vld [vmem:[#allocation2 + $0x5f8] sm:$0xf0]  ;;  %v5853_v9 = vor.u32 %v7633_v62, %v5852_v61 }
 0x185   : > { %v6717_v35 = vor.u32 %v7849_v26, %v6716_v23  ;;  %v6862_v23 = vld [vmem:[#allocation2 + $0xb38] sm:$0xf0]  ;;  %v6481_v26 = vor.u32 %v7783_v17, %v6478_v18 }
 0x186   : > { %3282 = vmatpush.bf16.msra.mxu1 %v6045_v10  ;;  %v6193_v10 = vor.u32 %v7711_v0, %v6190_v47  ;;  %v5998_v50 = vld [vmem:[#allocation2 + $0x478] sm:$0xf0] }
 0x187   : > { %3296 = vmatpush.bf16.msra.mxu2 %v6381_v12  ;;  %v6910_v12 = vld [vmem:[#allocation2 + $0xb98] sm:$0xf0] }
 0x188   : > { %3320 = vmatpush.bf16.msrb.mxu0 %v5713_v42  ;;  %3309 = vmatpush.bf16.msra.mxu3 %v6765_v16  ;;  %v6285_v42 = vor.u32 %v7741_v37, %v6284_v36  ;;  %v6142_v16 = vld [vmem:[#allocation2 + $0x598] sm:$0xf0]  ;;  %v6913_v19 = vor.u32 %v7891_v11, %v6910_v12  ;;  %v7639_v12 = vld [vmem:[#allocation2 + $0x38c] sm:$0xf] }
 0x189   : > { %v6814_v36 = vld [vmem:[#allocation2 + $0xad8] sm:$0xf0] }
 0x18a   : > { %3283 = vmatpush.bf16.msra.mxu1 %v5997_v29  ;;  %v6430_v29 = vld [vmem:[#allocation2 + $0x7d8] sm:$0xf0] }
 0x18b   : > { %3297 = vmatpush.bf16.msra.mxu2 %v6333_v30  ;;  %v6865_v30 = vor.u32 %v7879_v22, %v6862_v23  ;;  %v6433_v37 = vor.u32 %v7771_v28, %v6430_v29  ;;  %v5950_v61 = vld [vmem:[#allocation2 + $0x418] sm:$0xf0] }
 0x18c   : > { %3321 = vmatpush.bf16.msrb.mxu0 %v5665_v58  ;;  %3310 = vmatpush.bf16.msra.mxu3 %v6717_v35  ;;  %v7903_v58 = vld [vmem:[#allocation2 + $0xbcc] sm:$0xf]  ;;  %v6286_v0 = vld [vmem:[#allocation2 + $0x6b8] sm:$0xf0] }
 0x18d   : > { %v6961_v8 = vor.u32 %v7903_v58, %v6958_v60  ;;  %v7867_v35 = vld [vmem:[#allocation2 + $0xaac] sm:$0xf]  ;;  %v6718_v58 = vld [vmem:[#allocation2 + $0xa18] sm:$0xf0] }
 0x18e   : > { %3284 = vmatpush.bf16.msra.mxu1 %v5949_v31  ;;  %v3068_v31 = vadd.f32 %v8541_v4, %v794_v33  ;;  %v6001_v4 = vor.u32 %v7663_v49, %v5998_v50  ;;  %v7651_v60 = vld [vmem:[#allocation2 + $0x3ec] sm:$0xf]  ;;  %v6622_v22 = vld [vmem:[#allocation2 + $0x958] sm:$0xf0] }
 0x18f   : > { %3298 = vmatpush.bf16.msra.mxu2 %v6285_v42  ;;  %v6817_v42 = vor.u32 %v7867_v35, %v6814_v36  ;;  %v5953_v7 = vor.u32 %v7651_v60, %v5950_v61  ;;  %v795_v35 = vperm.slane %v8520_v32, 7 }
 0x190   : > { %3322 = vmatpush.bf16.msrb.mxu0 %v5617_v2  ;;  %3311 = vmatpush.bf16.msra.mxu3 %v6669_v46  ;;  %v3382_v2 = vsel %vm3377_vm0, %v8531_v53, 0  ;;  %v6766_v46 = vld [vmem:[#allocation2 + $0xa78] sm:$0xf0] }
 0x191   : > { %v3093_v62 = vpop.f32.mrf.mxu2 }
 0x192   : > { %3285 = vmatpush.bf16.msra.mxu1 %v5901_v56  ;;  %v6769_v56 = vor.u32 %v7855_v45, %v6766_v46 }
 0x193   : > { %3299 = vmatpush.bf16.msra.mxu2 %v6237_v59 }
 0x194   : > { %3323 = vmatpush.bf16.msrb.mxu0 %v5569_v21  ;;  %3312 = vmatpush.bf16.msra.mxu3 %v6621_v3  ;;  %v6145_v21 = vor.u32 %v7699_v44, %v6142_v16  ;;  %v6721_v3 = vor.u32 %v7843_v25, %v6718_v58  ;;  %v7723_v44 = vld [vmem:[#allocation2 + $0x62c] sm:$0xf]  ;;  %v6238_v16 = vld [vmem:[#allocation2 + $0x658] sm:$0xf0] }
 0x195   : > { %v6241_v23 = vor.u32 %v7723_v44, %v6238_v16 }
 0x196   : > { %3286 = vmatpush.bf16.msra.mxu1 %v5853_v9  ;;  %3300 = vmatmul.bf16.vlgmr.msra.gmra.mxu2 %v8447_v1  ;;  %v3080_v55 = vpop.f32.mrf.mxu1  ;;  %v6670_v9 = vld [vmem:[#allocation2 + $0x9b8] sm:$0xf0] }
 0x197   : > { %3344 = vmatpush.bf16.msrb.mxu2 %v6577_v63  ;;  %3313 = vmatmul.bf16.vlgmr.msra.gmra.mxu3 %v8450_v6  ;;  %v3081_v57 = vadd.f32 %v3080_v55, %v3068_v31  ;;  %v7735_v63 = vld [vmem:[#allocation2 + $0x68c] sm:$0xf] }
 0x198   : > { %3324 = vmatpush.bf16.msrb.mxu0 %v5521_v38  ;;  %3357 = vmatpush.bf16.msrb.mxu3 %v6961_v8  ;;  %v7675_v38 = vld [vmem:[#allocation2 + $0x4ac] sm:$0xf]  ;;  %v6289_v11 = vor.u32 %v7735_v63, %v6286_v0 }
 0x199   : > { %3287 = vmatmul.bf16.vlgmr.msra.gmra.mxu1 %v8455_v15  ;;  %v6049_v43 = vor.u32 %v7675_v38, %v6046_v20  ;;  %v3106_v5 = vpop.f32.mrf.mxu3  ;;  %v7831_v8 = vld [vmem:[#allocation2 + $0x98c] sm:$0xf] }
 0x19a   : > { %3331 = vmatpush.bf16.msrb.mxu1 %v6193_v10  ;;  %v6673_v18 = vor.u32 %v7831_v8, %v6670_v9 }
 0x19b   : > { %3345 = vmatpush.bf16.msrb.mxu2 %v6529_v13  ;;  %v5902_v13 = vld [vmem:[#allocation2 + $0x3b8] sm:$0xf0] }
 0x19c   : > { %3325 = vmatpush.bf16.msrb.mxu0 %v5473_v52  ;;  %3358 = vmatpush.bf16.msrb.mxu3 %v6913_v19  ;;  %v8550_v41 = vpop.f32.mrf.mxu0  ;;  %v7747_v52 = vld [vmem:[#allocation2 + $0x6ec] sm:$0xf]  ;;  %v5905_v19 = vor.u32 %v7639_v12, %v5902_v13 }
 0x19d   : > { %v6337_v59 = vor.u32 %v7747_v52, %v6334_v54  ;;  %v3120_v36 = vadd.f32 %v8550_v41, %v795_v35  ;;  %v785_v41 = vld [vmem:[%s8832_s3 + $0x8] sm:$0xf] }
 0x19e   : > { %3332 = vmatpush.bf16.msrb.mxu1 %v6145_v21  ;;  %v3082_v17 = vpop.f32.mrf.mxu1  ;;  %v7819_v21 = vld [vmem:[#allocation2 + $0x92c] sm:$0xf]  ;;  %v798_v49 = vperm.slane %v785_v41, 2  ;;  %v797_v58 = vperm.slane %v785_v41, 1  ;;  %v799_v12 = vperm.slane %v785_v41, 3 }
 0x19f   : > { %3326 = vmatmul.bf16.vlgmr.msrb.gmra.mxu0 %v8453_v14  ;;  %v6094_v14 = vld [vmem:[#allocation2 + $0x538] sm:$0xf0]  ;;  %3346 = vmatpush.bf16.msrb.mxu2 %v6481_v26  ;;  %v7627_v26 = vld [vmem:[#allocation2 + $0x32c] sm:$0xf]  ;;  %v6625_v28 = vor.u32 %v7819_v21, %v6622_v22 }
 0x1a0   : > { %3391 = vmatpush.bf16.xpose.msra.mxu0 %v3382_v2  ;;  %v6097_v34 = vor.u32 %v7687_v27, %v6094_v14  ;;  %3359 = vmatpush.bf16.msrb.mxu3 %v6865_v30  ;;  %v3094_v2 = vadd.f32 %v3093_v62, %v3081_v57  ;;  %v5854_v27 = vld [vmem:[#allocation2 + $0x358] sm:$0xf0]  ;;  %v3095_v14 = vpop.f32.mrf.mxu2 }
 0x1a1   : > { %v3108_v29 = vpop.f32.mrf.mxu3  ;;  %v5857_v30 = vor.u32 %v7627_v26, %v5854_v27 }
 0x1a2   : > { %3333 = vmatpush.bf16.msrb.mxu1 %v6097_v34  ;;  %v3107_v10 = vadd.f32 %v3106_v5, %v3094_v2 }
 0x1a3   : > { %3347 = vmatpush.bf16.msrb.mxu2 %v6433_v37 }
 0x1a4   : > { %3360 = vmatpush.bf16.msrb.mxu3 %v6817_v42  ;;  %v3121_v47 = vpop.f32.mrf.mxu0 }
 0x1a6   : > { %3334 = vmatpush.bf16.msrb.mxu1 %v6049_v43 }
 0x1a7   : > { %3348 = vmatpush.bf16.msrb.mxu2 %v6385_v48 }
 0x1a8   : > { %3361 = vmatpush.bf16.msrb.mxu3 %v6769_v56  ;;  %v796_v56 = vperm.slane %v785_v41, 0 }
 0x1aa   : > { %3335 = vmatpush.bf16.msrb.mxu1 %v6001_v4 }
 0x1ab   : > { %3349 = vmatpush.bf16.msrb.mxu2 %v6337_v59 }
 0x1ac   : > { %3362 = vmatpush.bf16.msrb.mxu3 %v6721_v3 }
 0x1ae   : > { %3336 = vmatpush.bf16.msrb.mxu1 %v5953_v7 }
 0x1af   : > { %6962 = vmatmul.msk.bf16.vlgmr.msra.gmra.mxu0 %vm3377_vm0, %v8490_v24  ;;  %3350 = vmatpush.bf16.msrb.mxu2 %v6289_v11 }
 0x1b0   : > { %3363 = vmatpush.bf16.msrb.mxu3 %v6673_v18 }
 0x1b2   : > { %3337 = vmatpush.bf16.msrb.mxu1 %v5905_v19 }
 0x1b3   : > { %3351 = vmatpush.bf16.msrb.mxu2 %v6241_v23 }
 0x1b4   : > { %3364 = vmatpush.bf16.msrb.mxu3 %v6625_v28  ;;  %v3132_v37 = vpop.f32.mrf.mxu1 }
 0x1b5   : > { %v3133_v38 = vadd.f32 %v3132_v37, %v3120_v36 }
 0x1b6   : > { %3352 = vmatmul.bf16.vlgmr.msrb.gmra.mxu2 %v8447_v1  ;;  %3338 = vmatpush.bf16.msrb.mxu1 %v5857_v30 }
 0x1b7   : > { %3365 = vmatmul.bf16.vlgmr.msrb.gmra.mxu3 %v8450_v6 }
 0x1b9   : > { %3339 = vmatmul.bf16.vlgmr.msrb.gmra.mxu1 %v8455_v15  ;;  %v3145_v20 = vpop.f32.mrf.mxu2  ;;  %v3158_v40 = vpop.f32.mrf.mxu3 }
 0x1ba   : > { %v3146_v39 = vadd.f32 %v3145_v20, %v3133_v38 }
 0x1bc   : > { %v3171_v33 = vpop.f32.mrf.mxu0  ;;  %v3159_v31 = vadd.f32 %v3158_v40, %v3146_v39  ;;  %v3134_v1 = vpop.f32.mrf.mxu1 }
 0x1bd   : > { %v3172_v25 = vadd.f32 %v3171_v33, %v796_v56 }
 0x1be   : > { %v8566_v42 = vpack.c.bf16 %v3159_v31, %v3107_v10 }
 0x1c1   : > { %v3147_v43 = vpop.f32.mrf.mxu2  ;;  %v3160_v6 = vpop.f32.mrf.mxu3 }
 0x1c4   : > { %v3173_v34 = vpop.f32.mrf.mxu0 }
 0x1d4   : > { %v3184_v50 = vpop.f32.mrf.mxu1 }
 0x1d5   : > { %v3185_v62 = vadd.f32 %v3184_v50, %v3172_v25 }
 0x1d9   : > { %v3197_v55 = vpop.f32.mrf.mxu2  ;;  %v3210_v57 = vpop.f32.mrf.mxu3 }
 0x1da   : > { %v3198_v47 = vadd.f32 %v3197_v55, %v3185_v62 }
 0x1dc   : > { %v3223_v45 = vpop.f32.mrf.mxu0  ;;  %v3186_v4 = vpop.f32.mrf.mxu1  ;;  %v3211_v5 = vadd.f32 %v3210_v57, %v3198_v47  ;;  %v3832_v47 = vunpack.c.h.b16 %v8490_v24  ;;  %v7002_v24 = vld [vmem:[#allocation4 + $0xd0] sm:$0xf0] }
 0x1dd   : > { %v3224_v61 = vadd.f32 %v3223_v45, %v797_v58 }
 0x1e1   : > { %v3474_v15 = vpop.permute.xlu0 %3473  ;;  %v3199_v60 = vpop.f32.mrf.mxu2 }
 0x1e2   : > { %v3479_v48 = vsel %vm3377_vm0, %v3474_v15, 0  ;;  %v3212_v63 = vpop.f32.mrf.mxu3 }
 0x1e3   : > { %3488 = vmatpush.bf16.xpose.msra.mxu2 %v3479_v48 }
 0x1e4   : > { %v3225_v46 = vpop.f32.mrf.mxu0 }
 0x1e5   : > { %v8577_v46 = vld [vmem:[%s8557_s11] ss:$0 sm:$0xff] }
 0x1eb   : > { %v3469_v32 = vpop.permute.xlu0 %3468 }
 0x1ec   : > { %6964 = vmatmul.msk.bf16.vlgmr.msra.gmra.mxu2 %vm3377_vm0, %v3469_v32 }
 0x1f6   : > { %v3236_v0 = vpop.f32.mrf.mxu1 }
 0x1f7   : > { %v3237_v2 = vadd.f32 %v3236_v0, %v3224_v61 }
 0x1f9   : > { %v3249_v3 = vpop.f32.mrf.mxu2 }
 0x1fa   : > { %v3250_v7 = vadd.f32 %v3249_v3, %v3237_v2  ;;  %v8597_v2 = vpack.c.b16 %v3832_v47, %v3832_v47  ;;  %v7016_v3 = vld [vmem:[#allocation4 + $0xe0] sm:$0xf]  ;;  %v7933_v47 = vld [vmem:[#allocation4 + $0xb4] sm:$0xf0] }
 0x1fb   : > { %v3262_v8 = vpop.f32.mrf.mxu3 }
 0x1fc   : > { %v3275_v52 = vpop.f32.mrf.mxu0  ;;  %v3263_v9 = vadd.f32 %v3262_v8, %v3250_v7  ;;  %v7938_v7 = vld [vmem:[#allocation4 + $0xe4] sm:$0xf] }
 0x1fd   : > { %v3276_v54 = vadd.f32 %v3275_v52, %v798_v49 }
 0x1fe   : > { %v3238_v10 = vpop.f32.mrf.mxu1  ;;  %v3374_v11 = vpack.c.bf16 %v3263_v9, %v3211_v5  ;;  %v7940_v5 = vld [vmem:[#allocation4 + $0xec] sm:$0xf0]  ;;  %v7018_v9 = vld [vmem:[#allocation4 + $0xf0] sm:$0xf0] }
 0x1ff   : > { %v7017_v8 = vor.u32 %v7940_v5, %v7016_v3 }
 0x200   : > { %v3433_v13 = vsel %vm3431_vm1, %v3374_v11, 0  ;;  %v3522_v61 = vunpack.c.l.b16 %v3374_v11  ;;  %v3882_v63 = vunpack.c.h.b16 %v3374_v11  ;;  %v7021_v11 = vor.u32 %v7938_v7, %v7018_v9 }
 0x201   : > { %3442 = vmatpush.bf16.msra.mxu1 %v3433_v13  ;;  %v3251_v44 = vpop.f32.mrf.mxu2  ;;  %v7936_v13 = vld [vmem:[#allocation4 + $0xcc] sm:$0xf0]  ;;  %3649 = vmatpush.bf16.msrb.mxu0 %v7017_v8 }
 0x202   : > { %v3523_v62 = vpack.c.b16 %v3522_v61, %v3522_v61  ;;  %v8592_v0 = vpack.c.b16 %v3882_v63, %v3882_v63  ;;  %v7934_v44 = vld [vmem:[#allocation4 + $0xc4] sm:$0xf]  ;;  %v6994_v61 = vld [vmem:[#allocation4 + $0xb8] sm:$0xf0]  ;;  %v6992_v63 = vld [vmem:[#allocation4 + $0xa8] sm:$0xf] }
 0x203   : > { %v3264_v17 = vpop.f32.mrf.mxu3  ;;  %v6993_v7 = vor.u32 %v7933_v47, %v6992_v63  ;;  %v7925_v63 = vld [vmem:[#allocation4 + $0x74] sm:$0xf0]  ;;  %v7911_v47 = vld [vmem:[#allocation4 + $0xc] sm:$0xf] }
 0x204   : > { %v3277_v59 = vpop.f32.mrf.mxu0 }
 0x205   : > { %3662 = vmatpush.bf16.msrb.mxu1 %v7021_v11 }
 0x216   : > { %v3288_v19 = vpop.f32.mrf.mxu1 }
 0x217   : > { %v3289_v21 = vadd.f32 %v3288_v19, %v3276_v54  ;;  %v6984_v19 = vld [vmem:[#allocation4 + $0xa0] sm:$0xf] }
 0x219   : > { %v3301_v23 = vpop.f32.mrf.mxu2 }
 0x21a   : > { %v3302_v26 = vadd.f32 %v3301_v23, %v3289_v21  ;;  %v3314_v27 = vpop.f32.mrf.mxu3  ;;  %v7026_v21 = vld [vmem:[#allocation4 + $0xf8] sm:$0xf0]  ;;  %v7930_v23 = vld [vmem:[#allocation4 + $0xa4] sm:$0xf] }
 0x21c   : > { %v3327_v16 = vpop.f32.mrf.mxu0  ;;  %v3315_v14 = vadd.f32 %v3314_v27, %v3302_v26  ;;  %v6986_v26 = vld [vmem:[#allocation4 + $0xb0] sm:$0xf0]  ;;  %v7024_v27 = vld [vmem:[#allocation4 + $0xe8] sm:$0xf] }
 0x21d   : > { %v3328_v18 = vadd.f32 %v3327_v16, %v799_v12  ;;  %v7000_v12 = vld [vmem:[#allocation4 + $0xc0] sm:$0xf]  ;;  %v7939_v16 = vld [vmem:[#allocation4 + $0xec] sm:$0xf] }
 0x21e   : > { %v3290_v28 = vpop.f32.mrf.mxu1  ;;  %v7001_v17 = vor.u32 %v7936_v13, %v7000_v12  ;;  %v7052_v12 = vld [vmem:[#allocation4 + $0x20] sm:$0xf]  ;;  %v7916_v13 = vld [vmem:[#allocation4 + $0x2c] sm:$0xf0] }
 0x220   : > { %3650 = vmatpush.bf16.msrb.mxu0 %v7001_v17  ;;  %v6978_v17 = vld [vmem:[#allocation4 + $0x98] sm:$0xf0] }
 0x221   : > { %v3303_v30 = vpop.f32.mrf.mxu2 }
 0x222   : > { %v3316_v33 = vpop.f32.mrf.mxu3  ;;  %v7935_v30 = vld [vmem:[#allocation4 + $0xcc] sm:$0xf] }
 0x223   : > { %v6989_v33 = vor.u32 %v7930_v23, %v6986_v26  ;;  %v7053_v23 = vor.u32 %v7916_v13, %v7052_v12  ;;  %v7060_v12 = vld [vmem:[#allocation4 + $0x28] sm:$0xf]  ;;  %v7917_v13 = vld [vmem:[#allocation4 + $0x34] sm:$0xf0] }
 0x224   : > { %v3329_v22 = vpop.f32.mrf.mxu0 }
 0x225   : > { %v7932_v22 = vld [vmem:[#allocation4 + $0xac] sm:$0xf0] }
 0x226   : > { %v6985_v28 = vor.u32 %v7932_v22, %v6984_v19  ;;  %v7094_v19 = vld [vmem:[#allocation4 + $0x78] sm:$0xf0] }
 0x228   : > { %3651 = vmatpush.bf16.msrb.mxu0 %v6985_v28 }
 0x22c   : > { %v3393_v29 = vpop.f32.mrf.mxu0 }
 0x22d   : > { %v3397_v48 = vmul.f32 0.125, %v3393_v29 }
 0x22f   : > { %v3401_v49 = vadd.f32 %v8577_v46, %v3397_v48  ;;  %v7937_v48 = vld [vmem:[#allocation4 + $0xd4] sm:$0xf0] }
 0x231   : > { %v3403_v50 = vsel %vm3402_vm2, %v3401_v49, -inf }
 0x234   : > { %v3395_v34 = vpop.f32.mrf.mxu0 }
 0x235   : > { %v6968_v34 = vld [vmem:[#allocation4 + $0x80] sm:$0xf] }
 0x236   : > { %v3340_v35 = vpop.f32.mrf.mxu1 }
 0x237   : > { %v3341_v36 = vadd.f32 %v3340_v35, %v3328_v18  ;;  %v7005_v18 = vor.u32 %v7934_v44, %v7002_v24  ;;  %v7928_v35 = vld [vmem:[#allocation4 + $0x8c] sm:$0xf0] }
 0x239   : > { %v3353_v37 = vpop.f32.mrf.mxu2  ;;  %3663 = vmatpush.bf16.msrb.mxu1 %v7005_v18  ;;  %v7923_v18 = vld [vmem:[#allocation4 + $0x6c] sm:$0xf] }
 0x23a   : > { %v3354_v38 = vadd.f32 %v3353_v37, %v3341_v36  ;;  %v3366_v20 = vpop.f32.mrf.mxu3  ;;  %v7926_v36 = vld [vmem:[#allocation4 + $0x84] sm:$0xf] }
 0x23c   : > { %v3367_v39 = vadd.f32 %v3366_v20, %v3354_v38  ;;  %v7029_v38 = vor.u32 %v7939_v16, %v7026_v21  ;;  %v6970_v20 = vld [vmem:[#allocation4 + $0x90] sm:$0xf0]  ;;  %v7927_v16 = vld [vmem:[#allocation4 + $0x8c] sm:$0xf] }
 0x23d   : > { %3664 = vmatpush.bf16.msrb.mxu1 %v6989_v33  ;;  %v7919_v33 = vld [vmem:[#allocation4 + $0x4c] sm:$0xf] }
 0x23e   : > { %v8574_v40 = vpack.c.bf16 %v3367_v39, %v3315_v14  ;;  %v3342_v31 = vpop.f32.mrf.mxu1  ;;  %v7941_v14 = vld [vmem:[#allocation4 + $0xf4] sm:$0xf0]  ;;  %v7084_v39 = vld [vmem:[#allocation4 + $0x60] sm:$0xf] }
 0x23f   : > { %v7025_v29 = vor.u32 %v7941_v14, %v7024_v27  ;;  %v7924_v31 = vld [vmem:[#allocation4 + $0x6c] sm:$0xf0]  ;;  %v6981_v14 = vor.u32 %v7927_v16, %v6978_v17  ;;  %v7913_v16 = vld [vmem:[#allocation4 + $0x14] sm:$0xf0] }
 0x241   : > { %v3355_v1 = vpop.f32.mrf.mxu2  ;;  %3675 = vmatpush.bf16.msrb.mxu2 %v7025_v29 }
 0x242   : > { %v3368_v43 = vpop.f32.mrf.mxu3 }
 0x26f   : > { %v3490_v45 = vpop.f32.mrf.mxu2 }
 0x270   : > { %v3494_v6 = vmul.f32 0.125, %v3490_v45 }
 0x272   : > { %v3495_v15 = vadd.f32 %v8577_v46, %v3494_v6  ;;  %v7010_v6 = vld [vmem:[#allocation4 + $0xd8] sm:$0xf0] }
 0x274   : > { %v3496_v32 = vsel %vm3402_vm2, %v3495_v15, -inf }
 0x275   : > { %3497 = vmax.xlane.f32.xlu1 %v3496_v32 }
 0x277   : > { %v3492_v41 = vpop.f32.mrf.mxu2 }
 0x278   : > { %v6969_v41 = vor.u32 %v7928_v35, %v6968_v34  ;;  %v7078_v34 = vld [vmem:[#allocation4 + $0x58] sm:$0xf0] }
 0x27a   : > { %3652 = vmatpush.bf16.msrb.mxu0 %v6969_v41 }
 0x27d   : > { %3404 = vmax.xlane.f32.xlu1 %v3403_v50  ;;  %v6973_v50 = vor.u32 %v7926_v36, %v6970_v20  ;;  %v7081_v20 = vor.u32 %v7919_v33, %v7078_v34  ;;  %v7946_v33 = vld [vmem:[#allocation4 + $0x124] sm:$0xf]  ;;  %v7124_v34 = vld [vmem:[#allocation4 + $0x130] sm:$0xf0] }
 0x27f   : > { %3665 = vmatpush.bf16.msrb.mxu1 %v6973_v50  ;;  %v7929_v50 = vld [vmem:[#allocation4 + $0x94] sm:$0xf0] }
 0x2e8   : > { %v3498_v52 = vpop.xlane.xlu1 %3497 }
 0x2e9   : > { %v3499_v54 = vsub.f32 %v3495_v15, %v3498_v52  ;;  %v7008_v15 = vld [vmem:[#allocation4 + $0xc8] sm:$0xf]  ;;  %v7085_v52 = vor.u32 %v7924_v31, %v7084_v39 }
 0x2eb   : > { %v3500_v55 = vmul.f32 1.442695, %v3499_v54  ;;  %v7009_v54 = vor.u32 %v7937_v48, %v7008_v15  ;;  %3784 = vmatpush.bf16.msra.mxu0 %v7085_v52  ;;  %v7070_v15 = vld [vmem:[#allocation4 + $0x50] sm:$0xf0]  ;;  %v7914_v48 = vld [vmem:[#allocation4 + $0x24] sm:$0xf] }
 0x2ed   : > { %8104 = vpow2.f32 %v3500_v55  ;;  %3676 = vmatpush.bf16.msrb.mxu2 %v7009_v54  ;;  %v7915_v54 = vld [vmem:[#allocation4 + $0x2c] sm:$0xf] }
 0x2f0   : > { %v3405_v56 = vpop.xlane.xlu1 %3404 }
 0x2f1   : > { %v3406_v57 = vsub.f32 %v3401_v49, %v3405_v56  ;;  %3677 = vmatpush.bf16.msrb.mxu2 %v6993_v7 }
 0x2f3   : > { %v8583_v4 = vpop.eup %8104  ;;  %v3407_v25 = vmul.f32 1.442695, %v3406_v57  ;;  %v7013_v57 = vor.u32 %v7935_v30, %v7010_v6  ;;  %v7097_v30 = vor.u32 %v7923_v18, %v7094_v19  ;;  %v7918_v6 = vld [vmem:[#allocation4 + $0x44] sm:$0xf]  ;;  %v7156_v19 = vld [vmem:[#allocation4 + $0x170] sm:$0xf0] }
 0x2f4   : > { %v3502_v58 = vsel %vm3402_vm2, %v8583_v4, 0.0  ;;  %v7954_v18 = vld [vmem:[#allocation4 + $0x164] sm:$0xf] }
 0x2f5   : > { %8106 = vpow2.f32 %v3407_v25  ;;  %3503 = vadd.xlane.f32.xlu2 %v3502_v58  ;;  %v7068_v25 = vld [vmem:[#allocation4 + $0x40] sm:$0xf] }
 0x2fb   : > { %v8587_v59 = vpop.eup %8106 }
 0x2fc   : > { %v3409_v60 = vsel %vm3402_vm2, %v8587_v59, 0.0 }
 0x2fd   : > { %3410 = vadd.xlane.f32.xlu0 %v3409_v60  ;;  %v7931_v60 = vld [vmem:[#allocation4 + $0xac] sm:$0xf] }
 0x2fe   : > { %v6997_v11 = vor.u32 %v7931_v60, %v6994_v61  ;;  %v7038_v60 = vld [vmem:[#allocation4 + $0x10] sm:$0xf0] }
 0x30d   : > { %3524 = vrot.lane.b32.xlu2 %v3523_v62, %s8323_s26  ;;  %v7920_v62 = vld [vmem:[#allocation4 + $0x4c] sm:$0xf0] }
 0x30e   : > { %v7069_v5 = vor.u32 %v7920_v62, %v7068_v25  ;;  %v7910_v25 = vld [vmem:[#allocation4 + $0x4] sm:$0xf]  ;;  %v7092_v62 = vld [vmem:[#allocation4 + $0x68] sm:$0xf] }
 0x30f   : > { %v7041_v61 = vor.u32 %v7910_v25, %v7038_v60 }
 0x310   : > { %3785 = vmatpush.bf16.msra.mxu0 %v7069_v5  ;;  %v7046_v5 = vld [vmem:[#allocation4 + $0x18] sm:$0xf0] }
 0x311   : > { %4109 = vrot.lane.b32.xlu0 %v8592_v0, %s8323_s26  ;;  %v7049_v7 = vor.u32 %v7911_v47, %v7046_v5 }
 0x314   : > { %3786 = vmatpush.bf16.msra.mxu0 %v7053_v23 }
 0x315   : > { %4059 = vrot.lane.b32.xlu2 %v8597_v2, %s8323_s26 }
 0x368   : > { %v8601_v10 = vpop.xlane.xlu2 %3503 }
 0x369   : > { %8108 = vrcp.f32 %v8601_v10  ;;  %v3514_v55 = vand.u32 2147483647, %v8601_v10  ;;  %v3516_v56 = vand.u32 2147483648, %v8601_v10  ;;  %vm3510_vm4 = vweird.f32 %v8601_v10 }
 0x36b   : > { %v3517_v9 = vor.u32 1.1754944e-38, %v3516_v56  ;;  %vm3515_vm6 = vcmp.eq.f32.partialorder %v3514_v55, 8.507059e+37  ;;  %v7062_v55 = vld [vmem:[#allocation4 + $0x38] sm:$0xf0]  ;;  %v7036_v56 = vld [vmem:[#allocation4] sm:$0xf] }
 0x36f   : > { %v8109_v37 = vpop.eup %8108 }
 0x370   : > { %v3506_v1 = vmul.f32 %v8109_v37, %v8601_v10  ;;  %v3525_v43 = vpop.permute.xlu2 %3524  ;;  %v8605_v45 = vpop.xlane.xlu0 %3410  ;;  %vm3511_vm3 = vweird.f32 %v8109_v37 }
 0x371   : > { %v3530_v32 = vsel %vm3431_vm1, %v3525_v43, 0  ;;  %8110 = vrcp.f32 %v8605_v45  ;;  %vm3512_vm5 = vmor %vm3510_vm4, %vm3511_vm3  ;;  %v3421_v26 = vand.u32 2147483647, %v8605_v45  ;;  %v3423_v27 = vand.u32 2147483648, %v8605_v45 }
 0x372   : > { %v3507_v49 = vsub.f32 1.0, %v3506_v1  ;;  %3539 = vmatpush.bf16.msra.mxu3 %v3530_v32  ;;  %vm3417_vm8 = vweird.f32 %v8605_v45  ;;  %v7054_v32 = vld [vmem:[#allocation4 + $0x30] sm:$0xf0] }
 0x373   : > { %vm3422_vm10 = vcmp.eq.f32.partialorder %v3421_v26, 8.507059e+37  ;;  %v7057_v41 = vor.u32 %v7914_v48, %v7054_v32 }
 0x374   : > { %v3508_v58 = vmul.f32 %v8109_v37, %v3507_v49  ;;  %v6976_v49 = vld [vmem:[#allocation4 + $0x88] sm:$0xf] }
 0x375   : > { %v6977_v52 = vor.u32 %v7929_v50, %v6976_v49 }
 0x376   : > { %3688 = vmatpush.bf16.msrb.mxu3 %v7029_v38  ;;  %v3509_v3 = vadd.f32 %v8109_v37, %v3508_v58  ;;  %v7086_v38 = vld [vmem:[#allocation4 + $0x70] sm:$0xf0] }
 0x377   : > { %v8111_v8 = vpop.eup %8110  ;;  %3678 = vmatpush.bf16.msrb.mxu2 %v6977_v52 }
 0x378   : > { %v3513_v44 = vsel %vm3512_vm5, %v8109_v37, %v3509_v3  ;;  %v3413_v24 = vmul.f32 %v8111_v8, %v8605_v45  ;;  %vm3418_vm7 = vweird.f32 %v8111_v8  ;;  %v7922_v37 = vld [vmem:[#allocation4 + $0x64] sm:$0xf]  ;;  %v7073_v45 = vor.u32 %v7918_v6, %v7070_v15 }
 0x379   : > { %v3518_v10 = vsel %vm3515_vm6, %v3517_v9, %v3513_v44  ;;  %vm3419_vm9 = vmor %vm3417_vm8, %vm3418_vm7  ;;  %v7089_v1 = vor.u32 %v7922_v37, %v7086_v38  ;;  %v7093_v3 = vor.u32 %v7925_v63, %v7092_v62  ;;  %v7921_v9 = vld [vmem:[#allocation4 + $0x54] sm:$0xf0]  ;;  %v7061_v44 = vor.u32 %v7917_v13, %v7060_v12  ;;  %v7942_v37 = vld [vmem:[#allocation4 + $0x104] sm:$0xf] }
 0x37a   : > { %3689 = vmatpush.bf16.msrb.mxu3 %v7013_v57  ;;  %v3519_v21 = vmul.f32 %v8583_v4, %v3518_v10  ;;  %v3414_v22 = vsub.f32 1.0, %v3413_v24  ;;  %v3424_v4 = vor.u32 1.1754944e-38, %v3423_v27  ;;  %v7912_v57 = vld [vmem:[#allocation4 + $0xc] sm:$0xf0]  ;;  %v7044_v24 = vld [vmem:[#allocation4 + $0x8] sm:$0xf]  ;;  %v3834_v10 = vunpack.c.h.b16 %v8531_v53 }
 0x37b   : > { %v7037_v58 = vor.u32 %v7912_v57, %v7036_v56  ;;  %3810 = vmatpush.bf16.msra.mxu2 %v7093_v3  ;;  %v7045_v17 = vor.u32 %v7913_v16, %v7044_v24  ;;  %v7159_v27 = vor.u32 %v7954_v18, %v7156_v19  ;;  %v7108_v38 = vld [vmem:[#allocation4 + $0x110] sm:$0xf0]  ;;  %v7154_v12 = vld [vmem:[#allocation4 + $0x160] sm:$0xf]  ;;  %v7956_v13 = vld [vmem:[#allocation4 + $0x16c] sm:$0xf0] }
 0x37c   : > { %v3520_v28 = vpack.c.bf16 %v3519_v21, %v3519_v21  ;;  %v3415_v29 = vmul.f32 %v8111_v8, %v3414_v22  ;;  %v8622_v22 = vpack.c.b16 %v3834_v10, %v3834_v10  ;;  %v7138_v24 = vld [vmem:[#allocation4 + $0x140] sm:$0xf]  ;;  %v7952_v16 = vld [vmem:[#allocation4 + $0x14c] sm:$0xf0] }
 0x37d   : > { %3787 = vmatpush.bf16.msra.mxu0 %v7037_v58  ;;  %v7139_v10 = vor.u32 %v7952_v16, %v7138_v24  ;;  %v7948_v18 = vld [vmem:[#allocation4 + $0x12c] sm:$0xf0] }
 0x37e   : > { %3690 = vmatpush.bf16.msrb.mxu3 %v6997_v11  ;;  %v3416_v35 = vadd.f32 %v8111_v8, %v3415_v29  ;;  %v3840_v53 = vsel %vm3377_vm0, %v8622_v22, 0  ;;  %v3888_v29 = vsel %vm3431_vm1, %v8592_v0, 0 }
 0x37f   : > { %6965 = vmatmul.msk.bf16.vlgmr.msra.gmra.mxu3 %vm3402_vm2, %v3520_v28  ;;  %v7140_v28 = vld [vmem:[#allocation4 + $0x150] sm:$0xf0] }
 0x380   : > { %v3420_v36 = vsel %vm3419_vm9, %v8111_v8, %v3416_v35  ;;  %v7076_v8 = vld [vmem:[#allocation4 + $0x48] sm:$0xf] }
 0x381   : > { %v3425_v39 = vsel %vm3422_vm10, %v3424_v4, %v3420_v36  ;;  %v7077_v11 = vor.u32 %v7921_v9, %v7076_v8  ;;  %v7127_v36 = vor.u32 %v7946_v33, %v7124_v34  ;;  %v7951_v34 = vld [vmem:[#allocation4 + $0x14c] sm:$0xf] }
 0x382   : > { %3691 = vmatpush.bf16.msrb.mxu3 %v6981_v14  ;;  %v3426_v31 = vmul.f32 %v8587_v59, %v3425_v39  ;;  %v7065_v59 = vor.u32 %v7915_v54, %v7062_v55  ;;  %v7950_v14 = vld [vmem:[#allocation4 + $0x144] sm:$0xf] }
 0x383   : > { %3811 = vmatpush.bf16.msra.mxu2 %v7077_v11  ;;  %v4110_v39 = vpop.permute.xlu0 %4109 }
 0x384   : > { %v3427_v43 = vpack.c.bf16 %v3426_v31, %v3426_v31  ;;  %v4115_v0 = vsel %vm3431_vm1, %v4110_v39, 0  ;;  %v7132_v39 = vld [vmem:[#allocation4 + $0x138] sm:$0xf0] }
 0x386   : > { %3823 = vmatpush.bf16.msra.mxu3 %v7097_v30  ;;  %6963 = vmatmul.msk.bf16.vlgmr.msra.gmra.mxu1 %vm3402_vm2, %v3427_v43  ;;  %v7143_v30 = vor.u32 %v7950_v14, %v7140_v28  ;;  %v7955_v14 = vld [vmem:[#allocation4 + $0x16c] sm:$0xf] }
 0x387   : > { %3797 = vmatpush.bf16.msra.mxu1 %v7089_v1  ;;  %3812 = vmatpush.bf16.msra.mxu2 %v7061_v44  ;;  %v7155_v44 = vor.u32 %v7956_v13, %v7154_v12  ;;  %v7970_v12 = vld [vmem:[#allocation4 + $0x1e4] sm:$0xf]  ;;  %v7226_v13 = vld [vmem:[#allocation4 + $0x1f0] sm:$0xf0] }
 0x388   : > { %v7229_v16 = vor.u32 %v7970_v12, %v7226_v13  ;;  %v7963_v12 = vld [vmem:[#allocation4 + $0x1ac] sm:$0xf] }
 0x38a   : > { %3824 = vmatpush.bf16.msra.mxu3 %v7081_v20  ;;  %v7111_v20 = vor.u32 %v7942_v37, %v7108_v38  ;;  %v7130_v37 = vld [vmem:[#allocation4 + $0x128] sm:$0xf]  ;;  %v7949_v38 = vld [vmem:[#allocation4 + $0x134] sm:$0xf0] }
 0x38b   : > { %3798 = vmatpush.bf16.msra.mxu1 %v7073_v45  ;;  %3813 = vmatpush.bf16.msra.mxu2 %v7045_v17  ;;  %v7122_v17 = vld [vmem:[#allocation4 + $0x120] sm:$0xf] }
 0x38c   : > { %v7123_v19 = vor.u32 %v7948_v18, %v7122_v17  ;;  %v7210_v18 = vld [vmem:[#allocation4 + $0x1d0] sm:$0xf0] }
 0x38e   : > { %3825 = vmatpush.bf16.msra.mxu3 %v7065_v59 }
 0x38f   : > { %3799 = vmatpush.bf16.msra.mxu1 %v7057_v41 }
 0x392   : > { %3826 = vmatpush.bf16.msra.mxu3 %v7049_v7 }
 0x393   : > { %3800 = vmatpush.bf16.msra.mxu1 %v7041_v61 }
 0x402   : > { %v3541_v21 = vpop.f32.mrf.mxu3 }
 0x403   : > { %v3545_v23 = vpack.c.bf16 %v3541_v21, %v3541_v21  ;;  %v3444_v26 = vpop.f32.mrf.mxu1  ;;  %v7106_v21 = vld [vmem:[#allocation4 + $0x100] sm:$0xf] }
 0x404   : > { %v3448_v31 = vpack.c.bf16 %v3444_v26, %v3444_v26  ;;  %v7162_v26 = vld [vmem:[#allocation4 + $0x168] sm:$0xf] }
 0x405   : > { %7030 = vmatmul.msk.bf16.vlgmr.msrb.gmra.mxu0 %vm3377_vm0, %v3545_v23  ;;  %7031 = vmatmul.msk.bf16.vlgmr.msrb.gmra.mxu1 %vm3377_vm0, %v3545_v23 }
 0x406   : > { %7032 = vmatmul.msk.bf16.vlgmr.msrb.gmra.mxu2 %vm3377_vm0, %v3545_v23  ;;  %7033 = vmatmul.msk.bf16.vlgmr.msrb.gmra.mxu3 %vm3377_vm0, %v3545_v23  ;;  %v7944_v23 = vld [vmem:[#allocation4 + $0x10c] sm:$0xf0] }
 0x407   : > { %3849 = vmatpush.bf16.xpose.msrb.mxu0 %v3840_v53  ;;  %3897 = vmatpush.bf16.msrb.mxu1 %v3888_v29  ;;  %v7107_v28 = vor.u32 %v7944_v23, %v7106_v21  ;;  %v7146_v29 = vld [vmem:[#allocation4 + $0x148] sm:$0xf]  ;;  %v7962_v23 = vld [vmem:[#allocation4 + $0x1a4] sm:$0xf] }
 0x408   : > { %4020 = vmatpush.bf16.msrb.mxu3 %v7159_v27  ;;  %4007 = vmatpush.bf16.msrb.mxu2 %v7155_v44  ;;  %v7957_v27 = vld [vmem:[#allocation4 + $0x174] sm:$0xf0] }
 0x409   : > { %v7163_v53 = vor.u32 %v7957_v27, %v7162_v26  ;;  %v7194_v26 = vld [vmem:[#allocation4 + $0x1b0] sm:$0xf0] }
 0x40a   : > { %v3543_v35 = vpop.f32.mrf.mxu3 }
 0x40b   : > { %v3446_v4 = vpop.f32.mrf.mxu1  ;;  %v7148_v35 = vld [vmem:[#allocation4 + $0x158] sm:$0xf0] }
 0x40c   : > { %4021 = vmatpush.bf16.msrb.mxu3 %v7143_v30  ;;  %4008 = vmatpush.bf16.msrb.mxu2 %v7139_v10  ;;  %v7953_v30 = vld [vmem:[#allocation4 + $0x154] sm:$0xf0]  ;;  %v7966_v10 = vld [vmem:[#allocation4 + $0x1c4] sm:$0xf] }
 0x40d   : > { %v7147_v4 = vor.u32 %v7953_v30, %v7146_v29  ;;  %v7178_v29 = vld [vmem:[#allocation4 + $0x190] sm:$0xf0] }
 0x410   : > { %4022 = vmatpush.bf16.msrb.mxu3 %v7127_v36  ;;  %4009 = vmatpush.bf16.msrb.mxu2 %v7123_v19  ;;  %v7151_v36 = vor.u32 %v7951_v34, %v7148_v35  ;;  %v7213_v19 = vor.u32 %v7966_v10, %v7210_v18  ;;  %v4290_v35 = vsel %vm3377_vm0, %v8566_v42, 0 }
 0x414   : > { %4023 = vmatpush.bf16.msrb.mxu3 %v7111_v20  ;;  %4010 = vmatpush.bf16.msrb.mxu2 %v7107_v28  ;;  %v7947_v20 = vld [vmem:[#allocation4 + $0x12c] sm:$0xf]  ;;  %v7176_v28 = vld [vmem:[#allocation4 + $0x180] sm:$0xf] }
 0x415   : > { %7098 = vmatmul.msk.bf16.vlgmr.msra.gmra.mxu0 %vm3377_vm0, %v3448_v31  ;;  %7099 = vmatmul.msk.bf16.vlgmr.msra.gmra.mxu1 %vm3377_vm0, %v3448_v31 }
 0x416   : > { %7100 = vmatmul.msk.bf16.vlgmr.msra.gmra.mxu2 %vm3377_vm0, %v3448_v31  ;;  %7101 = vmatmul.msk.bf16.vlgmr.msra.gmra.mxu3 %vm3377_vm0, %v3448_v31 }
 0x417   : > { %4033 = vmatpush.bf16.msra.mxu0 %v7163_v53  ;;  %v7958_v53 = vld [vmem:[#allocation4 + $0x184] sm:$0xf] }
 0x418   : > { %4124 = vmatpush.bf16.msra.mxu3 %v4115_v0  ;;  %v7131_v0 = vor.u32 %v7949_v38, %v7130_v37  ;;  %v7181_v30 = vor.u32 %v7958_v53, %v7178_v29  ;;  %v4060_v37 = vpop.permute.xlu2 %4059 }
 0x41b   : > { %4034 = vmatpush.bf16.msra.mxu0 %v7147_v4  ;;  %v4336_v4 = vsel %vm3431_vm1, %v8574_v40, 0 }
 0x41f   : > { %4035 = vmatpush.bf16.msra.mxu0 %v7131_v0 }
 0x425   : > { %7102 = vmatmul.msk.bf16.vlgmr.msrb.gmra.mxu0 %vm3377_vm0, %v8597_v2 }
 0x482   : > { %v3654_v1 = vpop.f32.mrf.mxu0  ;;  %v3667_v43 = vpop.f32.mrf.mxu1 }
 0x489   : > { %v3680_v6 = vpop.f32.mrf.mxu2  ;;  %v3693_v15 = vpop.f32.mrf.mxu3 }
 0x48a   : > { %v3656_v45 = vpop.f32.mrf.mxu0  ;;  %v3669_v48 = vpop.f32.mrf.mxu1 }
 0x48b   : > { %v7116_v45 = vld [vmem:[#allocation4 + $0x118] sm:$0xf0]  ;;  %v7224_v48 = vld [vmem:[#allocation4 + $0x1e0] sm:$0xf] }
 0x491   : > { %v3682_v32 = vpop.f32.mrf.mxu2  ;;  %v3695_v41 = vpop.f32.mrf.mxu3 }
 0x492   : > { %v3789_v49 = vpop.f32.mrf.mxu0  ;;  %v3802_v50 = vpop.f32.mrf.mxu1  ;;  %v7972_v32 = vld [vmem:[#allocation4 + $0x1ec] sm:$0xf0] }
 0x493   : > { %v8639_v52 = vadd.f32 %v3789_v49, %v3654_v1  ;;  %v8641_v54 = vadd.f32 %v3802_v50, %v3667_v43  ;;  %v7135_v1 = vor.u32 %v7947_v20, %v7132_v39  ;;  %v7114_v43 = vld [vmem:[#allocation4 + $0x108] sm:$0xf]  ;;  %v7225_v50 = vor.u32 %v7972_v32, %v7224_v48 }
 0x499   : > { %v3815_v55 = vpop.f32.mrf.mxu2  ;;  %v3828_v59 = vpop.f32.mrf.mxu3 }
 0x49a   : > { %v8643_v56 = vadd.f32 %v3815_v55, %v3680_v6  ;;  %v8645_v57 = vadd.f32 %v3828_v59, %v3693_v15  ;;  %v3791_v2 = vpop.f32.mrf.mxu0  ;;  %v3804_v25 = vpop.f32.mrf.mxu1  ;;  %v7945_v6 = vld [vmem:[#allocation4 + $0x114] sm:$0xf0]  ;;  %v7943_v15 = vld [vmem:[#allocation4 + $0x10c] sm:$0xf]  ;;  %v7208_v59 = vld [vmem:[#allocation4 + $0x1c0] sm:$0xf] }
 0x49b   : > { %v7115_v41 = vor.u32 %v7945_v6, %v7114_v43  ;;  %v7119_v49 = vor.u32 %v7943_v15, %v7116_v45  ;;  %v7968_v2 = vld [vmem:[#allocation4 + $0x1cc] sm:$0xf0] }
 0x49d   : > { %4036 = vmatpush.bf16.msra.mxu0 %v7115_v41 }
 0x4a1   : > { %v3817_v58 = vpop.f32.mrf.mxu2  ;;  %v3830_v60 = vpop.f32.mrf.mxu3  ;;  %4234 = vmatpush.bf16.msrb.mxu0 %v7225_v50 }
 0x4a2   : > { %v3851_v61 = vpop.f32.mrf.mxu0  ;;  %v7209_v60 = vor.u32 %v7968_v2, %v7208_v59 }
 0x4a3   : > { %v3855_v62 = vmul.f32 0.125, %v3851_v61 }
 0x4a5   : > { %v3856_v63 = vadd.f32 %v8577_v46, %v3855_v62  ;;  %v7192_v62 = vld [vmem:[#allocation4 + $0x1a0] sm:$0xf]  ;;  %4235 = vmatpush.bf16.msrb.mxu0 %v7209_v60  ;;  %v4564_v60 = vunpack.c.l.b16 %v8574_v40 }
 0x4a7   : > { %v3857_v47 = vsel %vm3402_vm2, %v3856_v63, -inf }
 0x4a8   : > { %3858 = vmax.xlane.f32.xlu1 %v3857_v47 }
 0x4aa   : > { %v3853_v3 = vpop.f32.mrf.mxu0 }
 0x51b   : > { %v3859_v5 = vpop.xlane.xlu1 %3858 }
 0x51c   : > { %v3860_v7 = vsub.f32 %v3856_v63, %v3859_v5  ;;  %v7964_v63 = vld [vmem:[#allocation4 + $0x1ac] sm:$0xf0] }
 0x51e   : > { %v3861_v8 = vmul.f32 1.442695, %v3860_v7  ;;  %v7193_v7 = vor.u32 %v7964_v63, %v7192_v62  ;;  %v7971_v62 = vld [vmem:[#allocation4 + $0x1ec] sm:$0xf]  ;;  %v7234_v63 = vld [vmem:[#allocation4 + $0x1f8] sm:$0xf0] }
 0x520   : > { %8112 = vpow2.f32 %v3861_v8  ;;  %4236 = vmatpush.bf16.msrb.mxu0 %v7193_v7  ;;  %v7232_v7 = vld [vmem:[#allocation4 + $0x1e8] sm:$0xf] }
 0x526   : > { %v8649_v9 = vpop.eup %8112 }
 0x527   : > { %v3863_v11 = vsel %vm3402_vm2, %v8649_v9, 0.0 }
 0x528   : > { %3864 = vadd.xlane.f32.xlu1 %v3863_v11 }
 0x541   : > { %4061 = vrot.lane.b32.xlu1 %v8622_v22, %s8323_s26  ;;  %v7164_v22 = vld [vmem:[#allocation4 + $0x178] sm:$0xf0] }
 0x542   : > { %v7167_v33 = vor.u32 %v7955_v14, %v7164_v22  ;;  %v7197_v14 = vor.u32 %v7962_v23, %v7194_v26 }
 0x544   : > { %4046 = vmatpush.bf16.msra.mxu1 %v7167_v33 }
 0x548   : > { %4047 = vmatpush.bf16.msra.mxu1 %v7151_v36 }
 0x54c   : > { %4048 = vmatpush.bf16.msra.mxu1 %v7135_v1 }
 0x550   : > { %4049 = vmatpush.bf16.msra.mxu1 %v7119_v49 }
 0x59b   : > { %v3865_v31 = vpop.xlane.xlu1 %3864 }
 0x59c   : > { %8114 = vrcp.f32 %v3865_v31  ;;  %v3877_v61 = vand.u32 2147483648, %v3865_v31  ;;  %v3875_v3 = vand.u32 2147483647, %v3865_v31  ;;  %vm3871_vm12 = vweird.f32 %v3865_v31 }
 0x59e   : > { %v3878_v8 = vor.u32 1.1754944e-38, %v3877_v61  ;;  %vm3876_vm14 = vcmp.eq.f32.partialorder %v3875_v3, 8.507059e+37  ;;  %v7218_v3 = vld [vmem:[#allocation4 + $0x1d8] sm:$0xf0] }
 0x5a2   : > { %v8115_v55 = vpop.eup %8114 }
 0x5a3   : > { %v3867_v25 = vmul.f32 %v8115_v55, %v3865_v31  ;;  %vm3872_vm11 = vweird.f32 %v8115_v55 }
 0x5a4   : > { %vm3873_vm13 = vmor %vm3871_vm12, %vm3872_vm11 }
 0x5a5   : > { %v3868_v58 = vsub.f32 1.0, %v3867_v25  ;;  %v4508_v25 = vunpack.c.l.b16 %v8502_v51 }
 0x5a7   : > { %v3869_v47 = vmul.f32 %v8115_v55, %v3868_v58  ;;  %v4509_v58 = vpack.c.b16 %v4508_v25, %v4508_v25 }
 0x5a9   : > { %v3870_v5 = vadd.f32 %v8115_v55, %v3869_v47  ;;  %v7967_v47 = vld [vmem:[#allocation4 + $0x1cc] sm:$0xf] }
 0x5ab   : > { %v3874_v11 = vsel %vm3873_vm13, %v8115_v55, %v3870_v5  ;;  %v7237_v5 = vor.u32 %v7971_v62, %v7234_v63 }
 0x5ac   : > { %v3879_v44 = vsel %vm3876_vm14, %v3878_v8, %v3874_v11  ;;  %v7973_v8 = vld [vmem:[#allocation4 + $0x1f4] sm:$0xf0]  ;;  %v7221_v11 = vor.u32 %v7967_v47, %v7218_v3 }
 0x5ad   : > { %v3880_v24 = vmul.f32 %v8649_v9, %v3879_v44  ;;  %v7960_v9 = vld [vmem:[#allocation4 + $0x18c] sm:$0xf0]  ;;  %v7233_v13 = vor.u32 %v7973_v8, %v7232_v7  ;;  %v7202_v44 = vld [vmem:[#allocation4 + $0x1b8] sm:$0xf0] }
 0x5ae   : > { %v7177_v22 = vor.u32 %v7960_v9, %v7176_v28  ;;  %v7205_v23 = vor.u32 %v7963_v12, %v7202_v44 }
 0x5af   : > { %v3881_v17 = vpack.c.bf16 %v3880_v24, %v3880_v24  ;;  %v7216_v24 = vld [vmem:[#allocation4 + $0x1c8] sm:$0xf] }
 0x5b0   : > { %4237 = vmatpush.bf16.msrb.mxu0 %v7177_v22 }
 0x5b1   : > { %7103 = vmatmul.msk.bf16.vlgmr.msrb.gmra.mxu1 %vm3402_vm2, %v3881_v17 }
 0x5b2   : > { %4247 = vmatpush.bf16.msrb.mxu1 %v7229_v16  ;;  %v7969_v16 = vld [vmem:[#allocation4 + $0x1d4] sm:$0xf0] }
 0x5b3   : > { %v4062_v21 = vpop.permute.xlu1 %4061  ;;  %v7217_v10 = vor.u32 %v7969_v16, %v7216_v24  ;;  %v8709_v24 = vld [vmem:[%s8557_s11] ss:$0 sm:$0xff] }
 0x5b4   : > { %v4067_v27 = vsel %vm3377_vm0, %v4062_v21, 0  ;;  %v7965_v21 = vld [vmem:[#allocation4 + $0x1b4] sm:$0xf0] }
 0x5b5   : > { %4076 = vmatpush.bf16.xpose.msra.mxu2 %v4067_v27  ;;  %v7959_v27 = vld [vmem:[#allocation4 + $0x18c] sm:$0xf] }
 0x5b6   : > { %4248 = vmatpush.bf16.msrb.mxu1 %v7213_v19  ;;  %v7200_v19 = vld [vmem:[#allocation4 + $0x1a8] sm:$0xf] }
 0x5b7   : > { %v7201_v9 = vor.u32 %v7965_v21, %v7200_v19 }
 0x5ba   : > { %4249 = vmatpush.bf16.msrb.mxu1 %v7197_v14  ;;  %v7186_v14 = vld [vmem:[#allocation4 + $0x198] sm:$0xf0] }
 0x5bb   : > { %v7189_v29 = vor.u32 %v7959_v27, %v7186_v14  ;;  %v7278_v14 = vld [vmem:[#allocation4 + $0x240] sm:$0xf] }
 0x5be   : > { %4250 = vmatpush.bf16.msrb.mxu1 %v7181_v30 }
 0x62e   : > { %v3899_v33 = vpop.f32.mrf.mxu1 }
 0x62f   : > { %v3903_v34 = vpack.c.bf16 %v3899_v33, %v3899_v33 }
 0x631   : > { %7168 = vmatmul.msk.bf16.vlgmr.msrb.gmra.mxu2 %vm3377_vm0, %v3903_v34  ;;  %7169 = vmatmul.msk.bf16.vlgmr.msrb.gmra.mxu3 %vm3377_vm0, %v3903_v34 }
 0x632   : > { %7170 = vmatmul.msk.bf16.vlgmr.msra.gmra.mxu0 %vm3377_vm0, %v3903_v34  ;;  %7171 = vmatmul.msk.bf16.vlgmr.msra.gmra.mxu1 %vm3377_vm0, %v3903_v34 }
 0x633   : > { %4299 = vmatpush.bf16.xpose.msra.mxu0 %v4290_v35  ;;  %4345 = vmatpush.bf16.msra.mxu1 %v4336_v4  ;;  %v7986_v35 = vld [vmem:[#allocation4 + $0x264] sm:$0xf]  ;;  %v7296_v4 = vld [vmem:[#allocation4 + $0x270] sm:$0xf0] }
 0x634   : > { %4273 = vmatpush.bf16.msrb.mxu3 %v7237_v5  ;;  %4260 = vmatpush.bf16.msrb.mxu2 %v7233_v13 }
 0x636   : > { %v3901_v36 = vpop.f32.mrf.mxu1 }
 0x638   : > { %4274 = vmatpush.bf16.msrb.mxu3 %v7221_v11  ;;  %4261 = vmatpush.bf16.msrb.mxu2 %v7217_v10 }
 0x63c   : > { %4275 = vmatpush.bf16.msrb.mxu3 %v7205_v23  ;;  %4262 = vmatpush.bf16.msrb.mxu2 %v7201_v9 }
 0x640   : > { %4276 = vmatpush.bf16.msrb.mxu3 %v7189_v29 }
 0x641   : > { %7172 = vmatmul.msk.bf16.vlgmr.msra.gmra.mxu2 %vm3377_vm0, %v4060_v37 }
 0x6af   : > { %v4038_v38 = vpop.f32.mrf.mxu0  ;;  %v4051_v20 = vpop.f32.mrf.mxu1 }
 0x6b0   : > { %v8668_v39 = vadd.f32 %v4038_v38, %v8643_v56  ;;  %v8671_v31 = vadd.f32 %v4051_v20, %v8645_v57  ;;  %v7299_v38 = vor.u32 %v7986_v35, %v7296_v4  ;;  %v7302_v35 = vld [vmem:[#allocation4 + $0x268] sm:$0xf]  ;;  %v7989_v4 = vld [vmem:[#allocation4 + $0x274] sm:$0xf0] }
 0x6b4   : > { %v4012_v0 = vpop.f32.mrf.mxu2  ;;  %v4025_v1 = vpop.f32.mrf.mxu3 }
 0x6b5   : > { %v8674_v43 = vadd.f32 %v4012_v0, %v8639_v52  ;;  %v8677_v6 = vadd.f32 %v4025_v1, %v8641_v54  ;;  %v7982_v0 = vld [vmem:[#allocation4 + $0x244] sm:$0xf]  ;;  %v7280_v1 = vld [vmem:[#allocation4 + $0x250] sm:$0xf0] }
 0x6b7   : > { %v4040_v15 = vpop.f32.mrf.mxu0  ;;  %v4053_v45 = vpop.f32.mrf.mxu1 }
 0x6b8   : > { %v7283_v15 = vor.u32 %v7982_v0, %v7280_v1  ;;  %v7978_v45 = vld [vmem:[#allocation4 + $0x224] sm:$0xf]  ;;  %v7985_v0 = vld [vmem:[#allocation4 + $0x254] sm:$0xf0] }
 0x6bc   : > { %v4014_v48 = vpop.f32.mrf.mxu2  ;;  %v4027_v32 = vpop.f32.mrf.mxu3 }
 0x6bd   : > { %v7264_v48 = vld [vmem:[#allocation4 + $0x230] sm:$0xf0] }
 0x6be   : > { %v7267_v32 = vor.u32 %v7978_v45, %v7264_v48  ;;  %v7288_v45 = vld [vmem:[#allocation4 + $0x258] sm:$0xf0] }
 0x6c4   : > { %v4078_v41 = vpop.f32.mrf.mxu2 }
 0x6c5   : > { %v4082_v49 = vmul.f32 0.125, %v4078_v41  ;;  %v7184_v41 = vld [vmem:[#allocation4 + $0x188] sm:$0xf] }
 0x6c7   : > { %v4083_v56 = vadd.f32 %v8577_v46, %v4082_v49  ;;  %v4565_v46 = vpack.c.b16 %v4564_v60, %v4564_v60  ;;  %v7961_v49 = vld [vmem:[#allocation4 + $0x194] sm:$0xf0] }
 0x6c9   : > { %v4084_v50 = vsel %vm3402_vm2, %v4083_v56, -inf }
 0x6ca   : > { %4085 = vmax.xlane.f32.xlu2 %v4084_v50  ;;  %v7185_v50 = vor.u32 %v7961_v49, %v7184_v41  ;;  %v7270_v41 = vld [vmem:[#allocation4 + $0x228] sm:$0xf]  ;;  %v7981_v49 = vld [vmem:[#allocation4 + $0x234] sm:$0xf0] }
 0x6cc   : > { %v4080_v57 = vpop.f32.mrf.mxu2  ;;  %4263 = vmatpush.bf16.msrb.mxu2 %v7185_v50  ;;  %v7272_v50 = vld [vmem:[#allocation4 + $0x238] sm:$0xf0] }
 0x6cd   : > { %v7248_v57 = vld [vmem:[#allocation4 + $0x210] sm:$0xf0] }
 0x73d   : > { %v4086_v55 = vpop.xlane.xlu2 %4085 }
 0x73e   : > { %v4087_v59 = vsub.f32 %v4083_v56, %v4086_v55  ;;  %v7974_v56 = vld [vmem:[#allocation4 + $0x204] sm:$0xf] }
 0x73f   : > { %v7251_v55 = vor.u32 %v7974_v56, %v7248_v57  ;;  %v7979_v56 = vld [vmem:[#allocation4 + $0x22c] sm:$0xf]  ;;  %v7271_v57 = vor.u32 %v7981_v49, %v7270_v41 }
 0x740   : > { %v4088_v2 = vmul.f32 1.442695, %v4087_v59 }
 0x742   : > { %8116 = vpow2.f32 %v4088_v2 }
 0x748   : > { %v8117_v52 = vpop.eup %8116 }
 0x749   : > { %v4090_v54 = vsel %vm3402_vm2, %v8117_v52, 0.0 }
 0x74a   : > { %4091 = vadd.xlane.f32.xlu1 %v4090_v54 }
 0x763   : > { %4510 = vrot.lane.b32.xlu1 %v4509_v58, %s8323_s26 }
 0x76b   : > { %4566 = vrot.lane.b32.xlu1 %v4565_v46, %s8323_s26 }
 0x7bd   : > { %v4092_v61 = vpop.xlane.xlu1 %4091 }
 0x7be   : > { %8118 = vrcp.f32 %v4092_v61  ;;  %v4104_v28 = vand.u32 2147483648, %v4092_v61  ;;  %v4102_v22 = vand.u32 2147483647, %v4092_v61  ;;  %vm4098_vm3 = vweird.f32 %v4092_v61 }
 0x7c0   : > { %v4105_v33 = vor.u32 1.1754944e-38, %v4104_v28  ;;  %vm4103_vm5 = vcmp.eq.f32.partialorder %v4102_v22, 8.507059e+37  ;;  %v7984_v28 = vld [vmem:[#allocation4 + $0x24c] sm:$0xf0] }
 0x7c1   : > { %v7279_v9 = vor.u32 %v7984_v28, %v7278_v14  ;;  %v7980_v22 = vld [vmem:[#allocation4 + $0x22c] sm:$0xf0]  ;;  %v8002_v14 = vld [vmem:[#allocation4 + $0x2e4] sm:$0xf]  ;;  %v7366_v28 = vld [vmem:[#allocation4 + $0x2f0] sm:$0xf0] }
 0x7c4   : > { %v8119_v17 = vpop.eup %8118 }
 0x7c5   : > { %v4094_v18 = vmul.f32 %v8119_v17, %v4092_v61  ;;  %vm4099_vm15 = vweird.f32 %v8119_v17 }
 0x7c6   : > { %vm4100_vm4 = vmor %vm4098_vm3, %vm4099_vm15 }
 0x7c7   : > { %v4095_v26 = vsub.f32 1.0, %v4094_v18  ;;  %v7988_v18 = vld [vmem:[#allocation4 + $0x26c] sm:$0xf0] }
 0x7c9   : > { %v4096_v53 = vmul.f32 %v8119_v17, %v4095_v26  ;;  %v4513_v26 = vunpack.c.l.b16 %v8566_v42 }
 0x7cb   : > { %v4097_v30 = vadd.f32 %v8119_v17, %v4096_v53  ;;  %v4514_v27 = vpack.c.b16 %v4513_v26, %v4513_v26  ;;  %v7262_v53 = vld [vmem:[#allocation4 + $0x220] sm:$0xf] }
 0x7cc   : > { %v7263_v29 = vor.u32 %v7980_v22, %v7262_v53  ;;  %v7369_v22 = vor.u32 %v8002_v14, %v7366_v28  ;;  %v8001_v14 = vld [vmem:[#allocation4 + $0x2d4] sm:$0xf0] }
 0x7cd   : > { %v4101_v34 = vsel %vm4100_vm4, %v8119_v17, %v4097_v30  ;;  %v7246_v30 = vld [vmem:[#allocation4 + $0x200] sm:$0xf] }
 0x7ce   : > { %v4106_v36 = vsel %vm4103_vm5, %v4105_v33, %v4101_v34  ;;  %v7976_v33 = vld [vmem:[#allocation4 + $0x20c] sm:$0xf0] }
 0x7cf   : > { %v4107_v37 = vmul.f32 %v8117_v52, %v4106_v36  ;;  %v7247_v34 = vor.u32 %v7976_v33, %v7246_v30  ;;  %v7987_v36 = vld [vmem:[#allocation4 + $0x26c] sm:$0xf]  ;;  %v7998_v30 = vld [vmem:[#allocation4 + $0x2c4] sm:$0xf]  ;;  %v7350_v33 = vld [vmem:[#allocation4 + $0x2d0] sm:$0xf0] }
 0x7d1   : > { %v4108_v20 = vpack.c.bf16 %v4107_v37, %v4107_v37  ;;  %v7303_v37 = vor.u32 %v7989_v4, %v7302_v35  ;;  %v7994_v35 = vld [vmem:[#allocation4 + $0x2a4] sm:$0xf]  ;;  %v7334_v4 = vld [vmem:[#allocation4 + $0x2b0] sm:$0xf0] }
 0x7d3   : > { %7173 = vmatmul.msk.bf16.vlgmr.msra.gmra.mxu3 %vm3402_vm2, %v4108_v20  ;;  %v7286_v20 = vld [vmem:[#allocation4 + $0x248] sm:$0xf] }
 0x7d4   : > { %4468 = vmatpush.bf16.msra.mxu3 %v7299_v38  ;;  %v7304_v38 = vld [vmem:[#allocation4 + $0x278] sm:$0xf0]  ;;  %v7287_v48 = vor.u32 %v7985_v0, %v7286_v20  ;;  %v7990_v20 = vld [vmem:[#allocation4 + $0x284] sm:$0xf] }
 0x7d5   : > { %v8687_v59 = vpop.permute.xlu1 %4510  ;;  %v7307_v1 = vor.u32 %v7987_v36, %v7304_v38  ;;  %v7337_v36 = vor.u32 %v7994_v35, %v7334_v4  ;;  %v7992_v38 = vld [vmem:[#allocation4 + $0x28c] sm:$0xf0] }
 0x7d8   : > { %4469 = vmatpush.bf16.msra.mxu3 %v7283_v15  ;;  %v7983_v15 = vld [vmem:[#allocation4 + $0x24c] sm:$0xf] }
 0x7dc   : > { %4470 = vmatpush.bf16.msra.mxu3 %v7267_v32  ;;  %v7291_v32 = vor.u32 %v7983_v15, %v7288_v45  ;;  %v4793_v45 = vunpack.c.h.b16 %v8574_v40 }
 0x7dd   : > { %v4567_v52 = vpop.permute.xlu1 %4566 }
 0x7de   : > { %v4572_v25 = vsel %vm3431_vm1, %v4567_v52, 0  ;;  %v7977_v52 = vld [vmem:[#allocation4 + $0x214] sm:$0xf0]  ;;  %v4794_v41 = vpack.c.b16 %v4793_v45, %v4793_v45  ;;  %v8018_v45 = vld [vmem:[#allocation4 + $0x364] sm:$0xf] }
 0x7e0   : > { %4471 = vmatpush.bf16.msra.mxu3 %v7251_v55  ;;  %v7275_v55 = vor.u32 %v7979_v56, %v7272_v50 }
 0x856   : > { %v4126_v2 = vpop.f32.mrf.mxu3 }
 0x857   : > { %v4130_v54 = vpack.c.bf16 %v4126_v2, %v4126_v2  ;;  %v7254_v2 = vld [vmem:[#allocation4 + $0x208] sm:$0xf] }
 0x859   : > { %7238 = vmatmul.msk.bf16.vlgmr.msrb.gmra.mxu0 %vm3377_vm0, %v4130_v54  ;;  %7239 = vmatmul.msk.bf16.vlgmr.msrb.gmra.mxu1 %vm3377_vm0, %v4130_v54 }
 0x85a   : > { %7240 = vmatmul.msk.bf16.vlgmr.msrb.gmra.mxu2 %vm3377_vm0, %v4130_v54  ;;  %7241 = vmatmul.msk.bf16.vlgmr.msrb.gmra.mxu3 %vm3377_vm0, %v4130_v54  ;;  %v7975_v54 = vld [vmem:[#allocation4 + $0x20c] sm:$0xf] }
 0x85b   : > { %4581 = vmatpush.bf16.msrb.mxu3 %v4572_v25  ;;  %4481 = vmatpush.bf16.msrb.mxu0 %v7303_v37  ;;  %v7256_v25 = vld [vmem:[#allocation4 + $0x218] sm:$0xf0]  ;;  %v7316_v37 = vld [vmem:[#allocation4 + $0x280] sm:$0xf] }
 0x85c   : > { %4494 = vmatpush.bf16.msrb.mxu1 %v7307_v1  ;;  %v7317_v0 = vor.u32 %v7992_v38, %v7316_v37  ;;  %v7318_v1 = vld [vmem:[#allocation4 + $0x290] sm:$0xf0] }
 0x85d   : > { %v7321_v15 = vor.u32 %v7990_v20, %v7318_v1 }
 0x85e   : > { %v4128_v58 = vpop.f32.mrf.mxu3 }
 0x85f   : > { %4482 = vmatpush.bf16.msrb.mxu0 %v7287_v48  ;;  %v7364_v58 = vld [vmem:[#allocation4 + $0x2e0] sm:$0xf] }
 0x860   : > { %4495 = vmatpush.bf16.msrb.mxu1 %v7291_v32 }
 0x863   : > { %4483 = vmatpush.bf16.msrb.mxu0 %v7271_v57 }
 0x864   : > { %4496 = vmatpush.bf16.msrb.mxu1 %v7275_v55 }
 0x869   : > { %7242 = vmatmul.msk.bf16.vlgmr.msra.gmra.mxu0 %vm3377_vm0, %v8502_v51 }
 0x8d6   : > { %v4239_v60 = vpop.f32.mrf.mxu0  ;;  %v4252_v46 = vpop.f32.mrf.mxu1 }
 0x8d7   : > { %v8697_v61 = vadd.f32 %v4239_v60, %v8674_v43  ;;  %v8700_v62 = vadd.f32 %v4252_v46, %v8677_v6  ;;  %v8004_v60 = vld [vmem:[#allocation4 + $0x2ec] sm:$0xf0] }
 0x8dd   : > { %v4265_v63 = vpop.f32.mrf.mxu2  ;;  %v4278_v47 = vpop.f32.mrf.mxu3 }
 0x8de   : > { %v8703_v3 = vadd.f32 %v4265_v63, %v8668_v39  ;;  %v8706_v5 = vadd.f32 %v4278_v47, %v8671_v31  ;;  %v4241_v7 = vpop.f32.mrf.mxu0  ;;  %v4254_v8 = vpop.f32.mrf.mxu1  ;;  %v7294_v31 = vld [vmem:[#allocation4 + $0x260] sm:$0xf]  ;;  %v7255_v63 = vor.u32 %v7977_v52, %v7254_v2  ;;  %v7259_v47 = vor.u32 %v7975_v54, %v7256_v25 }
 0x8df   : > { %v7295_v19 = vor.u32 %v7988_v18, %v7294_v31  ;;  %v7365_v7 = vor.u32 %v8004_v60, %v7364_v58  ;;  %v7348_v8 = vld [vmem:[#allocation4 + $0x2c0] sm:$0xf] }
 0x8e0   : > { %4484 = vmatpush.bf16.msrb.mxu0 %v7255_v63  ;;  %4497 = vmatpush.bf16.msrb.mxu1 %v7259_v47 }
 0x8e1   : > { %4455 = vmatpush.bf16.msra.mxu2 %v7295_v19 }
 0x8e4   : > { %4691 = vmatpush.bf16.msra.mxu0 %v7365_v7 }
 0x8e5   : > { %v4267_v11 = vpop.f32.mrf.mxu2  ;;  %v4280_v12 = vpop.f32.mrf.mxu3  ;;  %4456 = vmatpush.bf16.msra.mxu2 %v7279_v9 }
 0x8e6   : > { %v4301_v13 = vpop.f32.mrf.mxu0  ;;  %v8000_v11 = vld [vmem:[#allocation4 + $0x2cc] sm:$0xf0] }
 0x8e7   : > { %v4305_v44 = vmul.f32 0.125, %v4301_v13  ;;  %v7349_v12 = vor.u32 %v8000_v11, %v7348_v8  ;;  %v4743_v11 = vunpack.c.h.b16 %v8502_v51  ;;  %v7358_v51 = vld [vmem:[#allocation4 + $0x2d8] sm:$0xf0] }
 0x8e9   : > { %v4306_v43 = vadd.f32 %v8709_v24, %v4305_v44  ;;  %4457 = vmatpush.bf16.msra.mxu2 %v7263_v29  ;;  %v7332_v44 = vld [vmem:[#allocation4 + $0x2a0] sm:$0xf]  ;;  %4692 = vmatpush.bf16.msra.mxu0 %v7349_v12  ;;  %v8750_v12 = vpack.c.b16 %v4743_v11, %v4743_v11 }
 0x8eb   : > { %v4307_v6 = vsel %vm3402_vm2, %v4306_v43, -inf }
 0x8ec   : > { %4308 = vmax.xlane.f32.xlu0 %v4307_v6 }
 0x8ed   : > { %4458 = vmatpush.bf16.msra.mxu2 %v7247_v34  ;;  %v7353_v34 = vor.u32 %v7998_v30, %v7350_v33  ;;  %v7326_v30 = vld [vmem:[#allocation4 + $0x298] sm:$0xf0] }
 0x8ee   : > { %v4303_v16 = vpop.f32.mrf.mxu0 }
 0x95f   : > { %v4309_v17 = vpop.xlane.xlu0 %4308 }
 0x960   : > { %v4310_v39 = vsub.f32 %v4306_v43, %v4309_v17  ;;  %v7996_v43 = vld [vmem:[#allocation4 + $0x2ac] sm:$0xf0] }
 0x962   : > { %v4311_v10 = vmul.f32 1.442695, %v4310_v39 }
 0x964   : > { %8120 = vpow2.f32 %v4311_v10  ;;  %v7333_v10 = vor.u32 %v7996_v43, %v7332_v44 }
 0x966   : > { %4693 = vmatpush.bf16.msra.mxu0 %v7333_v10  ;;  %v7372_v10 = vld [vmem:[#allocation4 + $0x2e8] sm:$0xf] }
 0x96a   : > { %v8713_v21 = vpop.eup %8120  ;;  %4694 = vmatpush.bf16.msra.mxu0 %v7317_v0 }
 0x96b   : > { %v4313_v23 = vsel %vm3402_vm2, %v8713_v21, 0.0 }
 0x96c   : > { %4314 = vadd.xlane.f32.xlu2 %v4313_v23 }
 0x984   : > { %4515 = vrot.lane.b32.xlu2 %v4514_v27, %s8323_s26 }
 0x9df   : > { %v4315_v46 = vpop.xlane.xlu2 %4314 }
 0x9e0   : > { %8122 = vrcp.f32 %v4315_v46  ;;  %v4327_v31 = vand.u32 2147483648, %v4315_v46  ;;  %v4325_v19 = vand.u32 2147483647, %v4315_v46  ;;  %vm4321_vm7 = vweird.f32 %v4315_v46 }
 0x9e2   : > { %v4328_v26 = vor.u32 1.1754944e-38, %v4327_v31  ;;  %vm4326_vm9 = vcmp.eq.f32.partialorder %v4325_v19, 8.507059e+37  ;;  %v8005_v31 = vld [vmem:[#allocation4 + $0x2f4] sm:$0xf0]  ;;  %v7995_v19 = vld [vmem:[#allocation4 + $0x2ac] sm:$0xf] }
 0x9e6   : > { %v8123_v13 = vpop.eup %8122 }
 0x9e7   : > { %v4317_v6 = vmul.f32 %v8123_v13, %v4315_v46  ;;  %v4516_v16 = vpop.permute.xlu2 %4515  ;;  %vm4322_vm6 = vweird.f32 %v8123_v13 }
 0x9e8   : > { %v4521_v17 = vsel %vm3377_vm0, %v4516_v16, 0  ;;  %vm4323_vm8 = vmor %vm4321_vm7, %vm4322_vm6  ;;  %v7374_v16 = vld [vmem:[#allocation4 + $0x2f8] sm:$0xf0] }
 0x9e9   : > { %v4318_v39 = vsub.f32 1.0, %v4317_v6  ;;  %4530 = vmatpush.bf16.xpose.msrb.mxu2 %v4521_v17  ;;  %v8003_v6 = vld [vmem:[#allocation4 + $0x2ec] sm:$0xf] }
 0x9ea   : > { %v7999_v17 = vld [vmem:[#allocation4 + $0x2cc] sm:$0xf] }
 0x9eb   : > { %v4319_v18 = vmul.f32 %v8123_v13, %v4318_v39  ;;  %v7377_v39 = vor.u32 %v8003_v6, %v7374_v16 }
 0x9ed   : > { %v4320_v23 = vadd.f32 %v8123_v13, %v4319_v18  ;;  %v7361_v18 = vor.u32 %v7999_v17, %v7358_v51 }
 0x9ef   : > { %v4324_v27 = vsel %vm4323_vm8, %v8123_v13, %v4320_v23  ;;  %v7373_v23 = vor.u32 %v8005_v31, %v7372_v10 }
 0x9f0   : > { %v4329_v9 = vsel %vm4326_vm9, %v4328_v26, %v4324_v27  ;;  %v7342_v26 = vld [vmem:[#allocation4 + $0x2b8] sm:$0xf0]  ;;  %v7356_v27 = vld [vmem:[#allocation4 + $0x2c8] sm:$0xf] }
 0x9f1   : > { %v4330_v53 = vmul.f32 %v8713_v21, %v4329_v9  ;;  %v4745_v21 = vunpack.c.h.b16 %v8566_v42  ;;  %v4799_v42 = vsel %vm3431_vm1, %v4794_v41, 0  ;;  %v7357_v28 = vor.u32 %v8001_v14, %v7356_v27  ;;  %v7340_v9 = vld [vmem:[#allocation4 + $0x2a8] sm:$0xf]  ;;  %v8020_v14 = vld [vmem:[#allocation4 + $0x36c] sm:$0xf0] }
 0x9f3   : > { %v4331_v29 = vpack.c.bf16 %v4330_v53, %v4330_v53  ;;  %v8724_v32 = vpack.c.b16 %v4745_v21, %v4745_v21  ;;  %v7997_v53 = vld [vmem:[#allocation4 + $0x2b4] sm:$0xf0] }
 0x9f4   : > { %v7341_v33 = vor.u32 %v7997_v53, %v7340_v9  ;;  %v8016_v9 = vld [vmem:[#allocation4 + $0x34c] sm:$0xf0] }
 0x9f5   : > { %7243 = vmatmul.msk.bf16.vlgmr.msra.gmra.mxu1 %vm3402_vm2, %v4331_v29  ;;  %v4751_v56 = vsel %vm3377_vm0, %v8724_v32, 0  ;;  %v7991_v29 = vld [vmem:[#allocation4 + $0x28c] sm:$0xf] }
 0x9f6   : > { %4704 = vmatpush.bf16.msra.mxu1 %v7369_v22  ;;  %v7345_v22 = vor.u32 %v7995_v19, %v7342_v26  ;;  %v7329_v35 = vor.u32 %v7991_v29, %v7326_v30  ;;  %v8012_v29 = vld [vmem:[#allocation4 + $0x32c] sm:$0xf0] }
 0x9fa   : > { %4705 = vmatpush.bf16.msra.mxu1 %v7353_v34 }
 0x9fe   : > { %4706 = vmatpush.bf16.msra.mxu1 %v7337_v36 }
 0xa02   : > { %4707 = vmatpush.bf16.msra.mxu1 %v7321_v15 }
 0xa72   : > { %v4347_v48 = vpop.f32.mrf.mxu1 }
 0xa73   : > { %v4351_v49 = vpack.c.bf16 %v4347_v48, %v4347_v48  ;;  %v7436_v48 = vld [vmem:[#allocation4 + $0x370] sm:$0xf0] }
 0xa75   : > { %7308 = vmatmul.msk.bf16.vlgmr.msra.gmra.mxu2 %vm3377_vm0, %v4351_v49  ;;  %7309 = vmatmul.msk.bf16.vlgmr.msra.gmra.mxu3 %vm3377_vm0, %v4351_v49 }
 0xa76   : > { %7310 = vmatmul.msk.bf16.vlgmr.msrb.gmra.mxu0 %vm3377_vm0, %v4351_v49  ;;  %7311 = vmatmul.msk.bf16.vlgmr.msrb.gmra.mxu1 %vm3377_vm0, %v4351_v49 }
 0xa77   : > { %4760 = vmatpush.bf16.xpose.msrb.mxu0 %v4751_v56  ;;  %4808 = vmatpush.bf16.msrb.mxu1 %v4799_v42  ;;  %v7439_v56 = vor.u32 %v8018_v45, %v7436_v48  ;;  %v7444_v48 = vld [vmem:[#allocation4 + $0x378] sm:$0xf0] }
 0xa78   : > { %4730 = vmatpush.bf16.msra.mxu3 %v7377_v39  ;;  %4717 = vmatpush.bf16.msra.mxu2 %v7373_v23 }
 0xa7a   : > { %v4349_v40 = vpop.f32.mrf.mxu1 }
 0xa7b   : > { %v8014_v40 = vld [vmem:[#allocation4 + $0x344] sm:$0xf] }
 0xa7c   : > { %4731 = vmatpush.bf16.msra.mxu3 %v7361_v18  ;;  %4718 = vmatpush.bf16.msra.mxu2 %v7357_v28  ;;  %v7418_v28 = vld [vmem:[#allocation4 + $0x340] sm:$0xf] }
 0xa7d   : > { %v7419_v53 = vor.u32 %v8016_v9, %v7418_v28 }
 0xa80   : > { %4732 = vmatpush.bf16.msra.mxu3 %v7345_v22  ;;  %4719 = vmatpush.bf16.msra.mxu2 %v7341_v33  ;;  %v7402_v22 = vld [vmem:[#allocation4 + $0x320] sm:$0xf] }
 0xa81   : > { %v7403_v30 = vor.u32 %v8012_v29, %v7402_v22  ;;  %v7386_v33 = vld [vmem:[#allocation4 + $0x300] sm:$0xf] }
 0xa84   : > { %4733 = vmatpush.bf16.msra.mxu3 %v7329_v35 }
 0xa85   : > { %7312 = vmatmul.msk.bf16.vlgmr.msrb.gmra.mxu2 %vm3377_vm0, %v8687_v59 }
 0xaf3   : > { %v4486_v50 = vpop.f32.mrf.mxu0  ;;  %v4499_v57 = vpop.f32.mrf.mxu1 }
 0xaf4   : > { %v8736_v55 = vadd.f32 %v4486_v50, %v8703_v3  ;;  %v8739_v2 = vadd.f32 %v4499_v57, %v8706_v5  ;;  %v7420_v50 = vld [vmem:[#allocation4 + $0x350] sm:$0xf0] }
 0xaf5   : > { %v7423_v57 = vor.u32 %v8014_v40, %v7420_v50  ;;  %v7428_v40 = vld [vmem:[#allocation4 + $0x358] sm:$0xf0] }
 0xaf8   : > { %v4460_v52 = vpop.f32.mrf.mxu2  ;;  %v4473_v54 = vpop.f32.mrf.mxu3 }
 0xaf9   : > { %v8742_v25 = vadd.f32 %v4460_v52, %v8697_v61  ;;  %v8745_v58 = vadd.f32 %v4473_v54, %v8700_v62  ;;  %v8010_v52 = vld [vmem:[#allocation4 + $0x324] sm:$0xf]  ;;  %v7404_v54 = vld [vmem:[#allocation4 + $0x330] sm:$0xf0] }
 0xafb   : > { %v4488_v60 = vpop.f32.mrf.mxu0  ;;  %v4501_v46 = vpop.f32.mrf.mxu1 }
 0xafc   : > { %v7407_v60 = vor.u32 %v8010_v52, %v7404_v54  ;;  %v7324_v46 = vld [vmem:[#allocation4 + $0x288] sm:$0xf]  ;;  %v8013_v54 = vld [vmem:[#allocation4 + $0x334] sm:$0xf0] }
 0xafd   : > { %v7410_v52 = vld [vmem:[#allocation4 + $0x328] sm:$0xf] }
 0xb00   : > { %v4462_v63 = vpop.f32.mrf.mxu2  ;;  %v4475_v59 = vpop.f32.mrf.mxu3 }
 0xb01   : > { %v7993_v63 = vld [vmem:[#allocation4 + $0x294] sm:$0xf0]  ;;  %v8006_v59 = vld [vmem:[#allocation4 + $0x304] sm:$0xf] }
 0xb08   : > { %v4532_v47 = vpop.f32.mrf.mxu2 }
 0xb09   : > { %v4536_v7 = vmul.f32 0.125, %v4532_v47  ;;  %v7325_v47 = vor.u32 %v7993_v63, %v7324_v46  ;;  %v7412_v46 = vld [vmem:[#allocation4 + $0x338] sm:$0xf0]  ;;  %v7411_v63 = vor.u32 %v8013_v54, %v7410_v52  ;;  %v8030_v52 = vld [vmem:[#allocation4 + $0x3c4] sm:$0xf] }
 0xb0a   : > { %v7490_v54 = vld [vmem:[#allocation4 + $0x3d0] sm:$0xf0] }
 0xb0b   : > { %v4537_v3 = vadd.f32 %v8709_v24, %v4536_v7  ;;  %v7388_v7 = vld [vmem:[#allocation4 + $0x310] sm:$0xf0]  ;;  %4720 = vmatpush.bf16.msra.mxu2 %v7325_v47 }
 0xb0d   : > { %v4538_v8 = vsel %vm3402_vm2, %v4537_v3, -inf }
 0xb0e   : > { %4539 = vmax.xlane.f32.xlu2 %v4538_v8 }
 0xb10   : > { %v4534_v5 = vpop.f32.mrf.mxu2 }
 0xb26   : > { %4970 = vrot.lane.b32.xlu2 %v8750_v12, %s8323_s26 }
 0xb2e   : > { %5020 = vrot.lane.b32.xlu2 %v4794_v41, %s8323_s26 }
 0xb81   : > { %v4540_v61 = vpop.xlane.xlu2 %4539 }
 0xb82   : > { %v4541_v62 = vsub.f32 %v4537_v3, %v4540_v61  ;;  %v7391_v3 = vor.u32 %v8006_v59, %v7388_v7 }
 0xb84   : > { %v4542_v13 = vmul.f32 1.442695, %v4541_v62 }
 0xb86   : > { %8124 = vpow2.f32 %v4542_v13 }
 0xb89   : > { %v8757_v8 = vpop.permute.xlu2 %4970 }
 0xb8c   : > { %v8125_v44 = vpop.eup %8124 }
 0xb8d   : > { %v4544_v43 = vsel %vm3402_vm2, %v8125_v44, 0.0 }
 0xb8e   : > { %4545 = vadd.xlane.f32.xlu0 %v4544_v43 }
 0xb91   : > { %v5021_v11 = vpop.permute.xlu2 %5020 }
 0xb92   : > { %v5026_v62 = vsel %vm3431_vm1, %v5021_v11, 0 }
 0xc01   : > { %v4546_v34 = vpop.xlane.xlu0 %4545 }
 0xc02   : > { %8126 = vrcp.f32 %v4546_v34  ;;  %v4558_v38 = vand.u32 2147483648, %v4546_v34  ;;  %v4556_v0 = vand.u32 2147483647, %v4546_v34  ;;  %vm4552_vm11 = vweird.f32 %v4546_v34 }
 0xc04   : > { %v4559_v15 = vor.u32 1.1754944e-38, %v4558_v38  ;;  %vm4557_vm13 = vcmp.eq.f32.partialorder %v4556_v0, 8.507059e+37 }
 0xc08   : > { %v8127_v4 = vpop.eup %8126 }
 0xc09   : > { %v4548_v36 = vmul.f32 %v8127_v4, %v4546_v34  ;;  %vm4553_vm10 = vweird.f32 %v8127_v4  ;;  %v8008_v34 = vld [vmem:[#allocation4 + $0x30c] sm:$0xf0] }
 0xc0a   : > { %vm4554_vm12 = vmor %vm4552_vm11, %vm4553_vm10  ;;  %v7387_v35 = vor.u32 %v8008_v34, %v7386_v33 }
 0xc0b   : > { %v4549_v37 = vsub.f32 1.0, %v4548_v36 }
 0xc0d   : > { %v4550_v20 = vmul.f32 %v8127_v4, %v4549_v37 }
 0xc0f   : > { %v4551_v1 = vadd.f32 %v8127_v4, %v4550_v20 }
 0xc11   : > { %v4555_v21 = vsel %vm4554_vm12, %v8127_v4, %v4551_v1  ;;  %v7442_v1 = vld [vmem:[#allocation4 + $0x368] sm:$0xf] }
 0xc12   : > { %v4560_v41 = vsel %vm4557_vm13, %v4559_v15, %v4555_v21  ;;  %v8021_v15 = vld [vmem:[#allocation4 + $0x374] sm:$0xf0]  ;;  %v8019_v21 = vld [vmem:[#allocation4 + $0x36c] sm:$0xf] }
 0xc13   : > { %v4561_v49 = vmul.f32 %v8125_v44, %v4560_v41  ;;  %v7443_v45 = vor.u32 %v8021_v15, %v7442_v1  ;;  %v7426_v41 = vld [vmem:[#allocation4 + $0x348] sm:$0xf]  ;;  %v8036_v1 = vld [vmem:[#allocation4 + $0x3ec] sm:$0xf0]  ;;  %v8034_v15 = vld [vmem:[#allocation4 + $0x3e4] sm:$0xf] }
 0xc15   : > { %v4562_v42 = vpack.c.bf16 %v4561_v49, %v4561_v49  ;;  %v8017_v49 = vld [vmem:[#allocation4 + $0x354] sm:$0xf0] }
 0xc16   : > { %v7427_v50 = vor.u32 %v8017_v49, %v7426_v41 }
 0xc17   : > { %7313 = vmatmul.msk.bf16.vlgmr.msrb.gmra.mxu3 %vm3402_vm2, %v4562_v42  ;;  %v8015_v42 = vld [vmem:[#allocation4 + $0x34c] sm:$0xf] }
 0xc18   : > { %4931 = vmatpush.bf16.msrb.mxu3 %v7439_v56  ;;  %v7447_v56 = vor.u32 %v8019_v21, %v7444_v48  ;;  %v8037_v48 = vld [vmem:[#allocation4 + $0x3f4] sm:$0xf0] }
 0xc1c   : > { %4932 = vmatpush.bf16.msrb.mxu3 %v7423_v57  ;;  %v7431_v57 = vor.u32 %v8015_v42, %v7428_v40  ;;  %v7514_v42 = vld [vmem:[#allocation4 + $0x3f8] sm:$0xf0]  ;;  %v7488_v40 = vld [vmem:[#allocation4 + $0x3c0] sm:$0xf] }
 0xc20   : > { %4933 = vmatpush.bf16.msrb.mxu3 %v7407_v60  ;;  %v8011_v60 = vld [vmem:[#allocation4 + $0x32c] sm:$0xf] }
 0xc21   : > { %v7415_v59 = vor.u32 %v8011_v60, %v7412_v46  ;;  %v7493_v46 = vor.u32 %v8030_v52, %v7490_v54 }
 0xc24   : > { %4934 = vmatpush.bf16.msrb.mxu3 %v7391_v3 }
 0xc9a   : > { %v4583_v5 = vpop.f32.mrf.mxu3 }
 0xc9b   : > { %v4587_v61 = vpack.c.bf16 %v4583_v5, %v4583_v5 }
 0xc9d   : > { %7378 = vmatmul.msk.bf16.vlgmr.msra.gmra.mxu0 %vm3377_vm0, %v4587_v61  ;;  %7379 = vmatmul.msk.bf16.vlgmr.msra.gmra.mxu1 %vm3377_vm0, %v4587_v61 }
 0xc9e   : > { %7380 = vmatmul.msk.bf16.vlgmr.msra.gmra.mxu2 %vm3377_vm0, %v4587_v61  ;;  %7381 = vmatmul.msk.bf16.vlgmr.msra.gmra.mxu3 %vm3377_vm0, %v4587_v61 }
 0xc9f   : > { %5035 = vmatpush.bf16.msra.mxu3 %v5026_v62  ;;  %4944 = vmatpush.bf16.msra.mxu0 %v7443_v45  ;;  %v7506_v45 = vld [vmem:[#allocation4 + $0x3f0] sm:$0xf0] }
 0xca0   : > { %4957 = vmatpush.bf16.msra.mxu1 %v7447_v56  ;;  %v7509_v41 = vor.u32 %v8034_v15, %v7506_v45  ;;  %v8035_v56 = vld [vmem:[#allocation4 + $0x3ec] sm:$0xf]  ;;  %v5197_v45 = vld [vmem:[#allocation6] sm:$0xf] }
 0xca2   : > { %v4585_v13 = vpop.f32.mrf.mxu3 }
 0xca3   : > { %4945 = vmatpush.bf16.msra.mxu0 %v7427_v50  ;;  %v7517_v50 = vor.u32 %v8035_v56, %v7514_v42 }
 0xca4   : > { %4958 = vmatpush.bf16.msra.mxu1 %v7431_v57  ;;  %v8032_v57 = vld [vmem:[#allocation4 + $0x3cc] sm:$0xf0] }
 0xca5   : > { %v7489_v60 = vor.u32 %v8032_v57, %v7488_v40 }
 0xca7   : > { %4946 = vmatpush.bf16.msra.mxu0 %v7411_v63  ;;  %v7496_v63 = vld [vmem:[#allocation4 + $0x3c8] sm:$0xf] }
 0xca8   : > { %4959 = vmatpush.bf16.msra.mxu1 %v7415_v59  ;;  %v8033_v59 = vld [vmem:[#allocation4 + $0x3d4] sm:$0xf0] }
 0xcad   : > { %7382 = vmatmul.msk.bf16.vlgmr.msrb.gmra.mxu0 %vm3377_vm0, %v8750_v12 }
 0xd1a   : > { %v4696_v44 = vpop.f32.mrf.mxu0  ;;  %v4709_v43 = vpop.f32.mrf.mxu1 }
 0xd1b   : > { %v8767_v6 = vadd.f32 %v4696_v44, %v8742_v25  ;;  %v8770_v16 = vadd.f32 %v4709_v43, %v8745_v58 }
 0xd21   : > { %v4722_v17 = vpop.f32.mrf.mxu2  ;;  %v4735_v39 = vpop.f32.mrf.mxu3 }
 0xd22   : > { %v8773_v51 = vadd.f32 %v4722_v17, %v8736_v55  ;;  %v8776_v10 = vadd.f32 %v4735_v39, %v8739_v2  ;;  %v4698_v31 = vpop.f32.mrf.mxu0  ;;  %v4711_v18 = vpop.f32.mrf.mxu1  ;;  %v7434_v55 = vld [vmem:[#allocation4 + $0x360] sm:$0xf] }
 0xd23   : > { %v7435_v2 = vor.u32 %v8020_v14, %v7434_v55  ;;  %v7394_v18 = vld [vmem:[#allocation4 + $0x308] sm:$0xf] }
 0xd25   : > { %4918 = vmatpush.bf16.msrb.mxu2 %v7435_v2 }
 0xd29   : > { %v4724_v19 = vpop.f32.mrf.mxu2  ;;  %v4737_v12 = vpop.f32.mrf.mxu3  ;;  %4919 = vmatpush.bf16.msrb.mxu2 %v7419_v53 }
 0xd2a   : > { %v4762_v23 = vpop.f32.mrf.mxu0  ;;  %v8009_v19 = vld [vmem:[#allocation4 + $0x314] sm:$0xf0]  ;;  %v8007_v12 = vld [vmem:[#allocation4 + $0x30c] sm:$0xf] }
 0xd2b   : > { %v4766_v26 = vmul.f32 0.125, %v4762_v23  ;;  %v7395_v23 = vor.u32 %v8009_v19, %v7394_v18 }
 0xd2d   : > { %v4767_v25 = vadd.f32 %v8709_v24, %v4766_v26  ;;  %4920 = vmatpush.bf16.msrb.mxu2 %v7403_v30  ;;  %v7396_v26 = vld [vmem:[#allocation4 + $0x318] sm:$0xf0]  ;;  %4947 = vmatpush.bf16.msra.mxu0 %v7395_v23 }
 0xd2f   : > { %v4768_v27 = vsel %vm3402_vm2, %v4767_v25, -inf }
 0xd30   : > { %4769 = vmax.xlane.f32.xlu0 %v4768_v27 }
 0xd31   : > { %4921 = vmatpush.bf16.msrb.mxu2 %v7387_v35 }
 0xd32   : > { %v4764_v58 = vpop.f32.mrf.mxu0 }
 0xd44   : > { %4972 = vrot.lane.b32.xlu0 %v8724_v32, %s8323_s26 }
 0xda3   : > { %v4770_v4 = vpop.xlane.xlu0 %4769 }
 0xda4   : > { %v4771_v36 = vsub.f32 %v4767_v25, %v4770_v4  ;;  %v7399_v25 = vor.u32 %v8007_v12, %v7396_v26 }
 0xda6   : > { %v4772_v37 = vmul.f32 1.442695, %v4771_v36  ;;  %4960 = vmatpush.bf16.msra.mxu1 %v7399_v25 }
 0xda8   : > { %8128 = vpow2.f32 %v4772_v37 }
 0xdae   : > { %v8129_v32 = vpop.eup %8128 }
 0xdaf   : > { %v4774_v38 = vsel %vm3402_vm2, %v8129_v32, 0.0 }
 0xdb0   : > { %4775 = vadd.xlane.f32.xlu1 %v4774_v38 }
 0xdb6   : > { %v4973_v20 = vpop.permute.xlu0 %4972 }
 0xdb7   : > { %v4978_v0 = vsel %vm3377_vm0, %v4973_v20, 0 }
 0xdb8   : > { %4987 = vmatpush.bf16.xpose.msra.mxu2 %v4978_v0  ;;  %v7504_v0 = vld [vmem:[#allocation4 + $0x3e0] sm:$0xf] }
 0xdb9   : > { %v7505_v21 = vor.u32 %v8036_v1, %v7504_v0  ;;  %v7466_v0 = vld [vmem:[#allocation4 + $0x398] sm:$0xf0] }
 0xdbb   : > { %5145 = vmatpush.bf16.msrb.mxu0 %v7505_v21 }
 0xdbf   : > { %5146 = vmatpush.bf16.msrb.mxu0 %v7489_v60  ;;  %v5201_v60 = vperm.slane %v5197_v45, 2 }
 0xe23   : > { %v4776_v47 = vpop.xlane.xlu1 %4775 }
 0xe24   : > { %8130 = vrcp.f32 %v4776_v47  ;;  %v4788_v11 = vand.u32 2147483648, %v4776_v47  ;;  %v4786_v62 = vand.u32 2147483647, %v4776_v47  ;;  %vm4782_vm14 = vweird.f32 %v4776_v47 }
 0xe26   : > { %v4789_v44 = vor.u32 1.1754944e-38, %v4788_v11  ;;  %vm4787_vm3 = vcmp.eq.f32.partialorder %v4786_v62, 8.507059e+37  ;;  %v8028_v11 = vld [vmem:[#allocation4 + $0x3ac] sm:$0xf0]  ;;  %v8026_v62 = vld [vmem:[#allocation4 + $0x3a4] sm:$0xf] }
 0xe2a   : > { %v8131_v7 = vpop.eup %8130 }
 0xe2b   : > { %v4778_v3 = vmul.f32 %v8131_v7, %v4776_v47  ;;  %vm4783_vm1 = vweird.f32 %v8131_v7  ;;  %v8031_v47 = vld [vmem:[#allocation4 + $0x3cc] sm:$0xf] }
 0xe2c   : > { %vm4784_vm15 = vmor %vm4782_vm14, %vm4783_vm1 }
 0xe2d   : > { %v4779_v5 = vsub.f32 1.0, %v4778_v3  ;;  %v7498_v3 = vld [vmem:[#allocation4 + $0x3d8] sm:$0xf0] }
 0xe2f   : > { %v4780_v61 = vmul.f32 %v8131_v7, %v4779_v5  ;;  %v7472_v5 = vld [vmem:[#allocation4 + $0x3a0] sm:$0xf] }
 0xe31   : > { %v4781_v13 = vadd.f32 %v8131_v7, %v4780_v61  ;;  %v7501_v61 = vor.u32 %v8031_v47, %v7498_v3 }
 0xe33   : > { %v4785_v43 = vsel %vm4784_vm15, %v8131_v7, %v4781_v13  ;;  %v7497_v7 = vor.u32 %v8033_v59, %v7496_v63  ;;  %v7474_v13 = vld [vmem:[#allocation4 + $0x3b0] sm:$0xf0]  ;;  %v8143_v59 = vld [vmem:[%s8444_s21 + $0x8] sm:$0xff] }
 0xe34   : > { %v4790_v17 = vsel %vm4787_vm3, %v4789_v44, %v4785_v43  ;;  %v7480_v44 = vld [vmem:[#allocation4 + $0x3a8] sm:$0xf]  ;;  %v7473_v43 = vor.u32 %v8028_v11, %v7472_v5  ;;  %v7477_v18 = vor.u32 %v8026_v62, %v7474_v13  ;;  %v5213_v47 = vunpack.c.l.bf16 %v8143_v59 }
 0xe35   : > { %v4791_v39 = vmul.f32 %v8129_v32, %v4790_v17  ;;  %v8029_v17 = vld [vmem:[#allocation4 + $0x3b4] sm:$0xf0] }
 0xe36   : > { %v7481_v19 = vor.u32 %v8029_v17, %v7480_v44  ;;  %5147 = vmatpush.bf16.msrb.mxu0 %v7473_v43  ;;  %v5214_v44 = vunpack.c.h.bf16 %v8143_v59 }
 0xe37   : > { %v4792_v31 = vpack.c.bf16 %v4791_v39, %v4791_v39  ;;  %v8027_v39 = vld [vmem:[#allocation4 + $0x3ac] sm:$0xf] }
 0xe39   : > { %7383 = vmatmul.msk.bf16.vlgmr.msrb.gmra.mxu1 %vm3402_vm2, %v4792_v31  ;;  %v7482_v31 = vld [vmem:[#allocation4 + $0x3b8] sm:$0xf0] }
 0xe3a   : > { %5158 = vmatpush.bf16.msrb.mxu1 %v7509_v41  ;;  %v7485_v12 = vor.u32 %v8027_v39, %v7482_v31 }
 0xe3e   : > { %5159 = vmatpush.bf16.msrb.mxu1 %v7493_v46  ;;  %v5202_v46 = vperm.slane %v5197_v45, 3 }
 0xe42   : > { %5160 = vmatpush.bf16.msrb.mxu1 %v7477_v18 }
 0xeb6   : > { %v4810_v27 = vpop.f32.mrf.mxu1 }
 0xeb7   : > { %v4814_v58 = vpack.c.bf16 %v4810_v27, %v4810_v27 }
 0xeb9   : > { %7448 = vmatmul.msk.bf16.vlgmr.msrb.gmra.mxu2 %vm3377_vm0, %v4814_v58  ;;  %7449 = vmatmul.msk.bf16.vlgmr.msrb.gmra.mxu3 %vm3377_vm0, %v4814_v58 }
 0xeba   : > { %7450 = vmatmul.msk.bf16.vlgmr.msra.gmra.mxu0 %vm3377_vm0, %v4814_v58  ;;  %7451 = vmatmul.msk.bf16.vlgmr.msra.gmra.mxu1 %vm3377_vm0, %v4814_v58 }
 0xebb   : > { %5184 = vmatpush.bf16.msrb.mxu3 %v7517_v50  ;;  %v8142_v50 = vld [vmem:[%s8444_s21] sm:$0xff] }
 0xebc   : > { %v5211_v57 = vunpack.c.l.bf16 %v8142_v50  ;;  %v5212_v54 = vunpack.c.h.bf16 %v8142_v50 }
 0xebe   : > { %v4812_v55 = vpop.f32.mrf.mxu1 }
 0xebf   : > { %5185 = vmatpush.bf16.msrb.mxu3 %v7501_v61 }
 0xec3   : > { %5186 = vmatpush.bf16.msrb.mxu3 %v7485_v12 }
 0xec9   : > { %7452 = vmatmul.msk.bf16.vlgmr.msra.gmra.mxu2 %vm3377_vm0, %v8757_v8 }
 0xf37   : > { %v4949_v14 = vpop.f32.mrf.mxu0  ;;  %v4962_v28 = vpop.f32.mrf.mxu1 }
 0xf38   : > { %v8792_v2 = vadd.f32 %v4949_v14, %v8773_v51  ;;  %v8795_v9 = vadd.f32 %v4962_v28, %v8776_v10 }
 0xf3c   : > { %v4923_v53 = vpop.f32.mrf.mxu2  ;;  %v4936_v22 = vpop.f32.mrf.mxu3 }
 0xf3d   : > { %v8798_v29 = vadd.f32 %v4923_v53, %v8767_v6  ;;  %v8801_v30 = vadd.f32 %v4936_v22, %v8770_v16 }
 0xf3f   : > { %v4951_v33 = vpop.f32.mrf.mxu0  ;;  %v4964_v34 = vpop.f32.mrf.mxu1 }
 0xf44   : > { %v4925_v35 = vpop.f32.mrf.mxu2  ;;  %v4938_v8 = vpop.f32.mrf.mxu3 }
 0xf45   : > { %v7456_v8 = vld [vmem:[#allocation4 + $0x380] sm:$0xf] }
 0xf4c   : > { %v4989_v4 = vpop.f32.mrf.mxu2 }
 0xf4d   : > { %v4993_v36 = vmul.f32 0.125, %v4989_v4  ;;  %v8024_v4 = vld [vmem:[#allocation4 + $0x38c] sm:$0xf0] }
 0xf4f   : > { %v4994_v51 = vadd.f32 %v8709_v24, %v4993_v36  ;;  %v7512_v24 = vld [vmem:[#allocation4 + $0x3e8] sm:$0xf]  ;;  %v8022_v36 = vld [vmem:[#allocation4 + $0x384] sm:$0xf] }
 0xf50   : > { %v7513_v49 = vor.u32 %v8037_v48, %v7512_v24  ;;  %v5199_v48 = vperm.slane %v5197_v45, 0 }
 0xf51   : > { %v4995_v37 = vsel %vm3402_vm2, %v4994_v51, -inf }
 0xf52   : > { %4996 = vmax.xlane.f32.xlu0 %v4995_v37  ;;  %5171 = vmatpush.bf16.msrb.mxu2 %v7513_v49  ;;  %v7458_v37 = vld [vmem:[#allocation4 + $0x390] sm:$0xf0]  ;;  %v5200_v49 = vperm.slane %v5197_v45, 1 }
 0xf54   : > { %v4991_v10 = vpop.f32.mrf.mxu2 }
 0xf55   : > { %v7464_v10 = vld [vmem:[#allocation4 + $0x388] sm:$0xf] }
 0xf56   : > { %5172 = vmatpush.bf16.msrb.mxu2 %v7497_v7 }
 0xf5a   : > { %5173 = vmatpush.bf16.msrb.mxu2 %v7481_v19 }
 0xfc5   : > { %v4997_v32 = vpop.xlane.xlu0 %4996 }
 0xfc6   : > { %v4998_v38 = vsub.f32 %v4994_v51, %v4997_v32  ;;  %v7457_v51 = vor.u32 %v8024_v4, %v7456_v8  ;;  %v8025_v32 = vld [vmem:[#allocation4 + $0x394] sm:$0xf0] }
 0xfc8   : > { %v4999_v20 = vmul.f32 1.442695, %v4998_v38  ;;  %v7461_v38 = vor.u32 %v8022_v36, %v7458_v37  ;;  %5148 = vmatpush.bf16.msrb.mxu0 %v7457_v51 }
 0xfca   : > { %8132 = vpow2.f32 %v4999_v20  ;;  %v7465_v20 = vor.u32 %v8025_v32, %v7464_v10  ;;  %5161 = vmatpush.bf16.msrb.mxu1 %v7461_v38 }
 0xfcc   : > { %5174 = vmatpush.bf16.msrb.mxu2 %v7465_v20 }
 0xfd0   : > { %v8805_v6 = vpop.eup %8132 }
 0xfd1   : > { %v5001_v16 = vsel %vm3402_vm2, %v8805_v6, 0.0 }
 0xfd2   : > { %5002 = vadd.xlane.f32.xlu1 %v5001_v16  ;;  %v8023_v16 = vld [vmem:[#allocation4 + $0x38c] sm:$0xf] }
 0xfd3   : > { %v7469_v1 = vor.u32 %v8023_v16, %v7466_v0 }
 0xfd5   : > { %5187 = vmatpush.bf16.msrb.mxu3 %v7469_v1 }
0x1045   : > { %v5003_v23 = vpop.xlane.xlu1 %5002 }
0x1046   : > { %8134 = vrcp.f32 %v5003_v23  ;;  %v5015_v58 = vand.u32 2147483648, %v5003_v23  ;;  %v5013_v14 = vand.u32 2147483647, %v5003_v23  ;;  %vm5009_vm5 = vweird.f32 %v5003_v23 }
0x1048   : > { %v5016_v53 = vor.u32 1.1754944e-38, %v5015_v58  ;;  %vm5014_vm7 = vcmp.eq.f32.partialorder %v5013_v14, 8.507059e+37 }
0x104c   : > { %v8135_v26 = vpop.eup %8134 }
0x104d   : > { %v5005_v25 = vmul.f32 %v8135_v26, %v5003_v23  ;;  %vm5010_vm4 = vweird.f32 %v8135_v26  ;;  %v8324_v23 = vmov 512.0  }
0x104e   : > { %vm5011_vm6 = vmor %vm5009_vm5, %vm5010_vm4  ;;  %8136 = vrcp.f32 %v8324_v23 }
0x104f   : > { %v5006_v27 = vsub.f32 1.0, %v5005_v25 }
0x1051   : > { %v5007_v55 = vmul.f32 %v8135_v26, %v5006_v27 }
0x1053   : > { %v5008_v28 = vadd.f32 %v8135_v26, %v5007_v55 }
0x1055   : > { %v5012_v22 = vsel %vm5011_vm6, %v8135_v26, %v5008_v28  ;;  %v8137_v26 = vpop.eup %8136 }
0x1056   : > { %v5017_v33 = vsel %vm5014_vm7, %v5016_v53, %v5012_v22  ;;  %v5225_v25 = vmul.f32 512.0, %v8137_v26 }
0x1057   : > { %v5018_v34 = vmul.f32 %v8805_v6, %v5017_v33 }
0x1059   : > { %v5019_v35 = vpack.c.bf16 %v5018_v34, %v5018_v34 }
0x105b   : > { %7453 = vmatmul.msk.bf16.vlgmr.msra.gmra.mxu3 %vm3402_vm2, %v5019_v35 }
0x10de   : > { %v5037_v6 = vpop.f32.mrf.mxu3 }
0x10df   : > { %v5041_v15 = vpack.c.bf16 %v5037_v6, %v5037_v6  ;;  %v5261_v6 = vld [vmem:[#allocation7] sm:$0xf] }
0x10e0   : > { %v5263_v45 = vperm.slane %v5261_v6, 0 }
0x10e1   : > { %7518 = vmatmul.msk.bf16.vlgmr.msrb.gmra.mxu0 %vm3377_vm0, %v5041_v15  ;;  %7519 = vmatmul.msk.bf16.vlgmr.msrb.gmra.mxu1 %vm3377_vm0, %v5041_v15 }
0x10e2   : > { %7520 = vmatmul.msk.bf16.vlgmr.msrb.gmra.mxu2 %vm3377_vm0, %v5041_v15  ;;  %7521 = vmatmul.msk.bf16.vlgmr.msrb.gmra.mxu3 %vm3377_vm0, %v5041_v15  ;;  %vm5229_vm0 = vweird.f32 %v8137_v26  ;;  %v5275_v15 = vld [vmem:[#allocation9] sm:$0xf] }
0x10e3   : > { %v5280_v50 = vperm.slane %v5275_v15, 3 }
0x10e6   : > { %v5039_v21 = vpop.f32.mrf.mxu3 }
0x115e   : > { %v5150_v24 = vpop.f32.mrf.mxu0  ;;  %v5163_v41 = vpop.f32.mrf.mxu1 }
0x115f   : > { %v5193_v56 = vadd.f32 %v5150_v24, %v8798_v29  ;;  %v5194_v42 = vadd.f32 %v5163_v41, %v8801_v30  ;;  %v5265_v41 = vperm.slane %v5261_v6, 2 }
0x1161   : > { %v5207_v40 = vadd.f32 %v5199_v48, %v5193_v56  ;;  %v5208_v52 = vadd.f32 %v5200_v49, %v5194_v42  ;;  %v5264_v48 = vperm.slane %v5261_v6, 1  ;;  %v5266_v49 = vperm.slane %v5261_v6, 3 }
0x1162   : > { %v5277_v56 = vperm.slane %v5275_v15, 0  ;;  %v5278_v42 = vperm.slane %v5275_v15, 1 }
0x1163   : > { %v5215_v3 = vadd.f32 %v5211_v57, %v5207_v40  ;;  %v5216_v5 = vadd.f32 %v5212_v54, %v5208_v52  ;;  %v5279_v40 = vperm.slane %v5275_v15, 2 }
0x1165   : > { %v5176_v63 = vpop.f32.mrf.mxu2  ;;  %v5189_v7 = vpop.f32.mrf.mxu3  ;;  %v5219_v17 = vadd.f32 %v5216_v5, %v5215_v3 }
0x1166   : > { %v5195_v11 = vadd.f32 %v5176_v63, %v8792_v2  ;;  %v5196_v61 = vadd.f32 %v5189_v7, %v8795_v9  ;;  %v5152_v29 = vpop.f32.mrf.mxu0  ;;  %v5165_v62 = vpop.f32.mrf.mxu1  ;;  %v5226_v2 = vsub.f32 1.0, %v5225_v25 }
0x1168   : > { %v5209_v30 = vadd.f32 %v5201_v60, %v5195_v11  ;;  %v5210_v13 = vadd.f32 %v5202_v46, %v5196_v61  ;;  %v5227_v27 = vmul.f32 %v8137_v26, %v5226_v2 }
0x116a   : > { %v5217_v43 = vadd.f32 %v5213_v47, %v5209_v30  ;;  %v5218_v39 = vadd.f32 %v5214_v44, %v5210_v13  ;;  %v5228_v9 = vadd.f32 %v8137_v26, %v5227_v27 }
0x116c   : > { %v5220_v31 = vadd.f32 %v5219_v17, %v5217_v43  ;;  %v5230_v58 = vsel %vm5229_vm0, %v8137_v26, %v5228_v9 }
0x116d   : > { %v5178_v18 = vpop.f32.mrf.mxu2  ;;  %v5191_v19 = vpop.f32.mrf.mxu3 }
0x116e   : > { %v5221_v12 = vadd.f32 %v5220_v31, %v5218_v39 }
0x1170   : > { %5222 = vadd.xlane.f32.xlu1 %v5221_v12 }
0x11e3   : > { %v5223_v55 = vpop.xlane.xlu1 %5222 }
0x11e4   : > { %v5231_v14 = vmul.f32 %v5230_v58, %v5223_v55 }
0x11e6   : > { %v5232_v28 = vsub.f32 %v5215_v3, %v5231_v14  ;;  %v5233_v53 = vsub.f32 %v5216_v5, %v5231_v14  ;;  %v5234_v22 = vsub.f32 %v5217_v43, %v5231_v14  ;;  %v5235_v33 = vsub.f32 %v5218_v39, %v5231_v14 }
0x11e8   : > { %v5236_v34 = vmul.f32 %v5232_v28, %v5232_v28  ;;  %v5237_v35 = vmul.f32 %v5233_v53, %v5233_v53  ;;  %v5238_v8 = vmul.f32 %v5234_v22, %v5234_v22  ;;  %v5239_v36 = vmul.f32 %v5235_v33, %v5235_v33 }
0x11ea   : > { %v5240_v4 = vadd.f32 %v5237_v35, %v5236_v34 }
0x11ec   : > { %v5241_v51 = vadd.f32 %v5240_v4, %v5238_v8 }
0x11ee   : > { %v5242_v37 = vadd.f32 %v5241_v51, %v5239_v36 }
0x11f0   : > { %5243 = vadd.xlane.f32.xlu2 %v5242_v37 }
0x1263   : > { %v5244_v10 = vpop.xlane.xlu2 %5243 }
0x1264   : > { %v5245_v32 = vmul.f32 %v5244_v10, %v5230_v58 }
0x1266   : > { %v5246_v38 = vadd.f32 1e-05, %v5245_v32 }
0x1268   : > { %8138 = vrsqrt.f32 %v5246_v38  ;;  %vm5253_vm8 = vweird.f32 %v5246_v38 }
0x126e   : > { %v8139_v20 = vpop.eup %8138 }
0x126f   : > { %v5248_v16 = vmul.f32 %v8139_v20, %v5246_v38  ;;  %vm5254_vm2 = vweird.f32 %v8139_v20 }
0x1270   : > { %vm5255_vm9 = vmor %vm5253_vm8, %vm5254_vm2 }
0x1271   : > { %v5249_v0 = vmul.f32 %v8139_v20, %v5248_v16 }
0x1273   : > { %v5250_v1 = vmul.f32 0.5, %v5249_v0 }
0x1275   : > { %v5251_v21 = vsub.f32 1.5, %v5250_v1 }
0x1277   : > { %v5252_v24 = vmul.f32 %v8139_v20, %v5251_v21 }
0x1279   : > { %v5256_v57 = vsel %vm5255_vm9, %v8139_v20, %v5252_v24 }
0x127a   : > { %v5257_v52 = vmul.f32 %v5256_v57, %v5232_v28  ;;  %v5258_v54 = vmul.f32 %v5256_v57, %v5233_v53  ;;  %v5259_v60 = vmul.f32 %v5256_v57, %v5234_v22  ;;  %v5260_v46 = vmul.f32 %v5256_v57, %v5235_v33 }
0x127c   : > { %v5271_v63 = vmul.f32 %v5263_v45, %v5257_v52  ;;  %v5272_v59 = vmul.f32 %v5264_v48, %v5258_v54  ;;  %v5273_v47 = vmul.f32 %v5265_v41, %v5259_v60  ;;  %v5274_v7 = vmul.f32 %v5266_v49, %v5260_v46 }
0x127e   : > { %v5285_v3 = vadd.f32 %v5277_v56, %v5271_v63  ;;  %v5286_v5 = vadd.f32 %v5278_v42, %v5272_v59  ;;  %v5287_v11 = vadd.f32 %v5279_v40, %v5273_v47  ;;  %v5288_v61 = vadd.f32 %v5280_v50, %v5274_v7 }
0x1280   : > { %v5289_v29 = vpack.c.bf16 %v5286_v5, %v5285_v3  ;;  %v5290_v62 = vpack.c.bf16 %v5288_v61, %v5287_v11 }
0x1282   : > { %5291 = vst [vmem:[%s396_s12] sm:$0xff] %v5289_v29 }
0x1283   : > { %5292 = vst [vmem:[%s396_s12 + $0x8] sm:$0xff] %v5290_v62 }
0x1284 PF: > { %s21_s27 = sadd.s32 1, %s8312_s27  }
0x1285   : > { %p18_p7 = scmp.ge.s32.totalorder %s21_s27, 4  }
0x1287   :  { %20 = sbr.rel (!%p18_p7) target bundleno = 3 (0x3), region = 106 }
0x128c   :  { %5314 = vsyncpa [#allocation3], 1 }
0x128d   :  { %5316 = vsyncpa [#allocation3 + $0x1], 1 }
0x128e   :  { %5317 = vsyncpa [#allocation5], 1 }
0x128f   :  { %5318 = vsyncpa [#allocation8], 1 }

</bundles_post_ra>
